<compile_context>
chip_gen: v5e
topology: v5e:2x2
jax: 0.10.0
libtpu: 0.0.40
codegen_flags: <defaults>
</compile_context>

<pallas_src>
import functools
import math

import jax
import jax.numpy as jnp
from jax.experimental import pallas as pl
from jax.experimental.pallas import tpu as pltpu

TM = 512  # row tile for the fused head matmul kernel


def _round_up(v, m):
    return ((v + m - 1) // m) * m


def _pick_vmem_limit():
    """Generation-aware VMEM budget (v5e/v6e: 128 MiB physical, v7x: 64 MiB)."""
    default = 32 * 1024 * 1024
    try:
        cap = int(pltpu.get_tpu_info().vmem_capacity_bytes)
    except Exception:  # unknown part / interpret mode
        return default
    if cap >= 100 * 1024 * 1024:       # v5e / v6e
        return 96 * 1024 * 1024
    if cap >= 48 * 1024 * 1024:        # v7x: leave headroom for Mosaic internal scratch
        return 48 * 1024 * 1024
    return default


VMEM_LIMIT = _pick_vmem_limit()


# ---------------------------------------------------------------------------
# FlattenNet layer: 3D valid conv (f, f, kz) / stride (1, 1, sz) + folded BN
# + LeakyReLU, ONE Pallas kernel per layer.  z taps are folded into channels
# (free when kz == sz); the (f, f) spatial taps are contiguous row windows of
# the flattened, VMEM-resident slab -> one big-M 2D matmul per tap, f32 acc.
# ---------------------------------------------------------------------------
def _conv_bn_act_kernel(x_ref, w_ref, b_ref, o_ref, *, tap_offs, mrows, slope):
    # x_ref : (1, L, Cz)        bf16  z-folded, spatially flattened slab (one batch)
    # w_ref : (T, Cz, Cout)     bf16  per-tap weights (BN scale folded in)
    # b_ref : (1, Cout)         f32
    # o_ref : (1, mrows, Cout)
    cout = w_ref.shape[-1]
    acc = jnp.zeros((mrows, cout), jnp.float32)
    for t, off in enumerate(tap_offs):                       # unrolled: f0*f1 taps
        win = x_ref[0, off:off + mrows, :]                   # contiguous rows, (mrows, Cz)
        acc = acc + jnp.dot(win, w_ref[t], preferred_element_type=jnp.float32)
    y = acc + b_ref[...]
    y = jnp.maximum(y, 0.0) if slope == 0.0 else jnp.where(y >= 0.0, y, slope * y)
    o_ref[0] = y.astype(o_ref.dtype)


def conv3d_bn_act(x, w, bias, *, stride_z, slope, out_dtype=jnp.bfloat16):
    # x: (B, X, Y, Z, Cin) channels-last;  w: (f0, f1, kz, Cin, Cout), BN scale folded in
    B, X, Y, Z, Cin = x.shape
    f0, f1, kz, _, Cout = w.shape
    sz = stride_z
    Xo, Yo = X - f0 + 1, Y - f1 + 1
    Zo = (Z - kz) // sz + 1
    Cz = kz * Cin

    if kz == sz and Z == Zo * sz:
        zf = x.reshape(B, X, Y, Zo, Cz)                      # free row-major regroup
    else:
        # TODO(synk): general (kz != sz) fallback gathers strided z-taps in plain JAX.
        zf = jnp.concatenate(
            [x[:, :, :, dz: dz + sz * (Zo - 1) + 1: sz, :] for dz in range(kz)], axis=-1)

    L = X * Y * Zo
    flat = zf.reshape(B, L, Cz)                              # free merge of (X, Y, Zo)
    if flat.dtype != jnp.bfloat16:
        flat = flat.astype(jnp.bfloat16)

    row_stride = Y * Zo
    tap_offs = tuple(dx * row_stride + dy * Zo for dx in range(f0) for dy in range(f1))
    # output row m = xo*(Y*Zo) + yo*Zo + zo ; rows with yo >= Yo wrap across the x edge
    # and are cropped after the kernel.
    mrows = (Xo - 1) * row_stride + Yo * Zo

    wt = w.reshape(f0 * f1, Cz, Cout).astype(jnp.bfloat16)   # per-tap (Cz, Cout) weights

    out = pl.pallas_call(
        functools.partial(_conv_bn_act_kernel, tap_offs=tap_offs, mrows=mrows,
                          slope=float(slope)),
        out_shape=jax.ShapeDtypeStruct((B, mrows, Cout), out_dtype),
        grid=(B,),
        in_specs=[
            pl.BlockSpec((1, L, Cz), lambda b: (b, 0, 0)),
            pl.BlockSpec((f0 * f1, Cz, Cout), lambda b: (0, 0, 0)),
            pl.BlockSpec((1, Cout), lambda b: (0, 0)),
        ],
        out_specs=pl.BlockSpec((1, mrows, Cout), lambda b: (b, 0, 0)),
        compiler_params=pltpu.CompilerParams(
            dimension_semantics=("parallel",),
            vmem_limit_bytes=VMEM_LIMIT,
        ),
    )(flat, wt, bias.astype(jnp.float32).reshape(1, Cout))

    # Unpack flat rows -> (B, Xo, Yo, Zo, Cout); drop the wrapped rows (yo >= Yo).
    tail = (Y - Yo) * Zo
    if tail:
        out = jnp.pad(out, ((0, 0), (0, tail), (0, 0)))
    out = out.reshape(B, Xo, Y, Zo, Cout)[:, :, :Yo]
    return out


# ---------------------------------------------------------------------------
# Fused head: Conv2d(nOut, nInter, 1) + ReLU + Dropout(eval) + Conv2d(nInter, noC, 1)
# as one kernel; the (rows, nInter) intermediate stays on-chip.
# ---------------------------------------------------------------------------
def _head_kernel(x_ref, w1_ref, b1_ref, w2_ref, b2_ref, o_ref):
    h = jnp.dot(x_ref[...], w1_ref[...], preferred_element_type=jnp.float32) + b1_ref[...]
    h = jnp.maximum(h, 0.0)
    # TODO(synk): nn.Dropout(p=0.5) treated as eval-mode identity (no RNG).
    y = jnp.dot(h.astype(jnp.bfloat16), w2_ref[...],
                preferred_element_type=jnp.float32) + b2_ref[...]
    o_ref[...] = y                       # no activation on the final matmul


def head_fused(x_rows, w1, b1, w2, b2, *, tm=TM):
    M, K = x_rows.shape
    N1, N2 = w1.shape[1], w2.shape[1]
    tm = min(tm, max(8, _round_up(pl.cdiv(M, 2), 8)))   # keep >= 2 grid steps when possible
    return pl.pallas_call(
        _head_kernel,
        out_shape=jax.ShapeDtypeStruct((M, N2), jnp.float32),
        grid=(pl.cdiv(M, tm),),
        in_specs=[
            pl.BlockSpec((tm, K), lambda i: (i, 0)),
            pl.BlockSpec((K, N1), lambda i: (0, 0)),
            pl.BlockSpec((1, N1), lambda i: (0, 0)),
            pl.BlockSpec((N1, N2), lambda i: (0, 0)),
            pl.BlockSpec((1, N2), lambda i: (0, 0)),
        ],
        out_specs=pl.BlockSpec((tm, N2), lambda i: (i, 0)),
        compiler_params=pltpu.CompilerParams(
            dimension_semantics=("parallel",),
            vmem_limit_bytes=VMEM_LIMIT,
        ),
    )(
        x_rows.astype(jnp.bfloat16),
        w1.astype(jnp.bfloat16), b1.astype(jnp.float32).reshape(1, N1),
        w2.astype(jnp.bfloat16), b2.astype(jnp.float32).reshape(1, N2),
    )


# ---------------------------------------------------------------------------
# Parameters (deterministic synthetic init; shapes follow the module __init__).
# BatchNorm is eval-mode; its scale is folded into the conv weights here.
# ---------------------------------------------------------------------------
def init_params(key, nIn, noC, input_size, filter_size, downsample_flatten, nPlanes):
    m = nPlanes[0]
    f = filter_size
    kzf, szf = downsample_flatten
    height = input_size[2]
    n_layers = int(round(math.log(height, szf)))
    assert szf ** n_layers == height, "input height must be a power of the flatten stride"

    keys = iter(jax.random.split(key, 4 + 2 * n_layers))
    p = {}
    # stem (stand-in for the sparse U-Net body): pointwise affine nIn -> m, folded BN, ReLU
    stem_w = 0.3 * jax.random.normal(next(keys), (nIn, m), jnp.float32)
    p["stem_w"] = stem_w * jnp.ones((m,), jnp.float32)[None, :]
    p["stem_bias"] = jnp.full((m,), 0.05, jnp.float32)

    # FlattenNet: n_layers strided convs, channels m*(i+1) -> m*(i+2)
    p["flatten"] = []
    cin = m
    for i in range(n_layers):
        cout = m * (i + 2)
        fan_in = f * f * kzf * cin
        w = (1.0 / fan_in) ** 0.5 * jax.random.normal(
            next(keys), (f, f, kzf, cin, cout), jnp.float32)
        scale = jnp.ones((cout,), jnp.float32)          # folded eval-mode BatchNorm scale
        bias = jnp.full((cout,), 0.05, jnp.float32)
        p["flatten"].append((w * scale, bias))
        cin = cout
    nOut = cin
    nInter = nOut // 2

    # head: Conv2d(nOut, nInter, 1) -> ReLU -> Dropout(eval) -> Conv2d(nInter, noC, 1)
    p["head_w1"] = (1.0 / nOut) ** 0.5 * jax.random.normal(next(keys), (nOut, nInter), jnp.float32)
    p["head_b1"] = jnp.full((nInter,), 0.01, jnp.float32)
    p["head_w2"] = (1.0 / nInter) ** 0.5 * jax.random.normal(next(keys), (nInter, noC), jnp.float32)
    p["head_b2"] = jnp.full((noC,), 0.01, jnp.float32)
    return p, n_layers, nOut


# ---------------------------------------------------------------------------
# Forward pass (mirrors SUNet3D2D.forward), channels-last throughout.
# ---------------------------------------------------------------------------
def sunet3d2d_forward(params, coords, feats, *, batch, nIn, noC,
                      input_size, filter_size, downsample_flatten):
    X2, Y2 = 2 * input_size[0], 2 * input_size[1]
    Z = input_size[2]
    kzf, szf = downsample_flatten

    # coords padding (coords_padded[:, [0,1]] += input_size[0:2] // 2); the dense grid
    # extent is the doubled input size, matching scn.InputLayer(dims, 2*input_size).
    shift = jnp.array([input_size[0] // 2, input_size[1] // 2], jnp.int32)
    cp = coords.at[:, 0:2].add(shift)

    # Stem stand-in applied to the SPARSE features (pointwise per row, so pre-scatter ==
    # post-scatter), scattered onto a bf16 dense grid whose background is relu(stem_bias).
    # TODO(synk): duplicates resolve last-write-wins (not scn mode=2 aggregation).
    m = params["stem_w"].shape[1]
    stem_rows = jnp.maximum(feats @ params["stem_w"] + params["stem_bias"], 0.0)
    bg = jnp.maximum(params["stem_bias"], 0.0).astype(jnp.bfloat16)
    dense = jnp.broadcast_to(bg, (batch, X2, Y2, Z, m))
    x = dense.at[cp[:, 3], cp[:, 0], cp[:, 1], cp[:, 2]].set(stem_rows.astype(jnp.bfloat16))

    # FlattenNet: strided convs collapsing Z to 1 (+ folded BN, LeakyReLU(0) == ReLU)
    for (w, bias) in params["flatten"]:
        x = conv3d_bn_act(x, w, bias, stride_z=szf, slope=0.0)

    # SparseToDense(...).squeeze() -> drop the size-1 Z axis
    x = x[:, :, :, 0, :]                                  # (B, Xo, Yo, nOut)

    # center crop to self.input_size[0:2]
    B_, H, W, C_ = x.shape
    dh, dw = H - input_size[0], W - input_size[1]
    lh, lw = dh // 2, dw // 2
    uh, uw = dh - lh, dw - lw
    x = x[:, lh:H - uh, lw:W - uw, :]                     # (B, Hc, Wc, nOut)

    # fused linear head over (b, h, w) rows, channels last
    B_, Hc, Wc, C_ = x.shape
    rows = x.reshape(-1, C_)
    out = head_fused(rows, params["head_w1"], params["head_b1"],
                     params["head_w2"], params["head_b2"])

    # permute(0,2,3,1).reshape(-1, noC): rows are already (b, h, w)-ordered, channels last
    return out                                            # (B*Hc*Wc, noC)


# ---------------------------------------------------------------------------
if __name__ == "__main__":
    key = jax.random.PRNGKey(0)
    nIn, noC = 4, 3
    input_size = (8, 8, 8)          # original (un-doubled) spatial size [X, Y, Z]
    filter_size = 3
    downsample_flatten = (2, 2)
    nPlanes = [4, 8, 12]            # only nPlanes[0] matters on the dense-equivalent path
    B, Npts = 2, 64

    params, n_layers, nOut = init_params(
        key, nIn, noC, input_size, filter_size, downsample_flatten, nPlanes)

    kx, ky, kz, kb, kf = jax.random.split(jax.random.fold_in(key, 1), 5)
    cx = jax.random.randint(kx, (Npts,), -input_size[0] // 2, input_size[0] // 2)
    cy = jax.random.randint(ky, (Npts,), -input_size[1] // 2, input_size[1] // 2)
    cz = jax.random.randint(kz, (Npts,), 0, input_size[2])
    cb = jax.random.randint(kb, (Npts,), 0, B)
    coords = jnp.stack([cx, cy, cz, cb], axis=1).astype(jnp.int32)   # (N, 4) = (x, y, z, batch)
    feats = jax.random.normal(kf, (Npts, nIn), jnp.float32)

    fwd = jax.jit(functools.partial(
        sunet3d2d_forward,
        batch=B, nIn=nIn, noC=noC, input_size=input_size,
        filter_size=filter_size, downsample_flatten=downsample_flatten))

    out = fwd(params, coords, feats)
    out = jax.block_until_ready(out)

    assert out.shape == (B * input_size[0] * input_size[1], noC), out.shape
    assert bool(jnp.all(jnp.isfinite(out)))
    print("KERNEL_OK")
</pallas_src>

<mosaic_0001>
module attributes {stable_mosaic.version = 11 : i64} {
  func.func @_conv_bn_act_kernel(%arg0: i32, %arg1: memref<1x1024x8xbf16, #tpu.memory_space<vmem>>, %arg2: memref<9x8x8xbf16, #tpu.memory_space<vmem>>, %arg3: memref<1x8xf32, #tpu.memory_space<vmem>>, %arg4: memref<1x888x8xbf16, #tpu.memory_space<vmem>>) attributes {dimension_semantics = [#tpu.dimension_semantics<parallel>], iteration_bounds = array<i64: 2>, scalar_prefetch = 0 : i64, scratch_operands = 0 : i64, tpu.core_type = #tpu.core_type<tc>, window_params = [{transform_indices = @transform_0, window_bounds = array<i64: 1, 1024, 8>}, {pipeline_mode = #tpu.pipeline_mode<synchronous>, transform_indices = @transform_1, window_bounds = array<i64: 9, 8, 8>}, {pipeline_mode = #tpu.pipeline_mode<synchronous>, transform_indices = @transform_2, window_bounds = array<i64: 1, 8>}, {transform_indices = @transform_3, window_bounds = array<i64: 1, 888, 8>}]} {
    %cst = arith.constant 0.000000e+00 : f32
    %0 = vector.broadcast %cst : f32 to vector<888x8xf32>
    %c0 = arith.constant 0 : index
    %c0_0 = arith.constant 0 : index
    %c0_1 = arith.constant 0 : index
    %1 = vector.load %arg1[%c0, %c0_0, %c0_1] : memref<1x1024x8xbf16, #tpu.memory_space<vmem>>, vector<1x888x8xbf16>
    %2 = vector.shape_cast %1 : vector<1x888x8xbf16> to vector<888x8xbf16>
    %c0_2 = arith.constant 0 : index
    %c0_3 = arith.constant 0 : index
    %c0_4 = arith.constant 0 : index
    %3 = vector.load %arg2[%c0_2, %c0_3, %c0_4] : memref<9x8x8xbf16, #tpu.memory_space<vmem>>, vector<1x8x8xbf16>
    %4 = vector.shape_cast %3 : vector<1x8x8xbf16> to vector<8x8xbf16>
    %cst_5 = arith.constant dense<0.000000e+00> : vector<888x8xf32>
    %5 = tpu.matmul %2, %4, %cst_5 {dimension_numbers = #tpu.dot_dimension_numbers<[1], [0], [0], [1], [0, 0, 1, 1], [], []>} : vector<888x8xbf16>, vector<8x8xbf16>, vector<888x8xf32> -> vector<888x8xf32>
    %6 = arith.addf %0, %5 : vector<888x8xf32>
    %c0_6 = arith.constant 0 : index
    %c4 = arith.constant 4 : index
    %c0_7 = arith.constant 0 : index
    %7 = vector.load %arg1[%c0_6, %c4, %c0_7] : memref<1x1024x8xbf16, #tpu.memory_space<vmem>>, vector<1x888x8xbf16>
    %8 = vector.shape_cast %7 : vector<1x888x8xbf16> to vector<888x8xbf16>
    %c1 = arith.constant 1 : index
    %c0_8 = arith.constant 0 : index
    %c0_9 = arith.constant 0 : index
    %9 = vector.load %arg2[%c1, %c0_8, %c0_9] : memref<9x8x8xbf16, #tpu.memory_space<vmem>>, vector<1x8x8xbf16>
    %10 = vector.shape_cast %9 : vector<1x8x8xbf16> to vector<8x8xbf16>
    %cst_10 = arith.constant dense<0.000000e+00> : vector<888x8xf32>
    %11 = tpu.matmul %8, %10, %cst_10 {dimension_numbers = #tpu.dot_dimension_numbers<[1], [0], [0], [1], [0, 0, 1, 1], [], []>} : vector<888x8xbf16>, vector<8x8xbf16>, vector<888x8xf32> -> vector<888x8xf32>
    %12 = arith.addf %6, %11 : vector<888x8xf32>
    %c0_11 = arith.constant 0 : index
    %c8 = arith.constant 8 : index
    %c0_12 = arith.constant 0 : index
    %13 = vector.load %arg1[%c0_11, %c8, %c0_12] : memref<1x1024x8xbf16, #tpu.memory_space<vmem>>, vector<1x888x8xbf16>
    %14 = vector.shape_cast %13 : vector<1x888x8xbf16> to vector<888x8xbf16>
    %c2 = arith.constant 2 : index
    %c0_13 = arith.constant 0 : index
    %c0_14 = arith.constant 0 : index
    %15 = vector.load %arg2[%c2, %c0_13, %c0_14] : memref<9x8x8xbf16, #tpu.memory_space<vmem>>, vector<1x8x8xbf16>
    %16 = vector.shape_cast %15 : vector<1x8x8xbf16> to vector<8x8xbf16>
    %cst_15 = arith.constant dense<0.000000e+00> : vector<888x8xf32>
    %17 = tpu.matmul %14, %16, %cst_15 {dimension_numbers = #tpu.dot_dimension_numbers<[1], [0], [0], [1], [0, 0, 1, 1], [], []>} : vector<888x8xbf16>, vector<8x8xbf16>, vector<888x8xf32> -> vector<888x8xf32>
    %18 = arith.addf %12, %17 : vector<888x8xf32>
    %c0_16 = arith.constant 0 : index
    %c64 = arith.constant 64 : index
    %c0_17 = arith.constant 0 : index
    %19 = vector.load %arg1[%c0_16, %c64, %c0_17] : memref<1x1024x8xbf16, #tpu.memory_space<vmem>>, vector<1x888x8xbf16>
    %20 = vector.shape_cast %19 : vector<1x888x8xbf16> to vector<888x8xbf16>
    %c3 = arith.constant 3 : index
    %c0_18 = arith.constant 0 : index
    %c0_19 = arith.constant 0 : index
    %21 = vector.load %arg2[%c3, %c0_18, %c0_19] : memref<9x8x8xbf16, #tpu.memory_space<vmem>>, vector<1x8x8xbf16>
    %22 = vector.shape_cast %21 : vector<1x8x8xbf16> to vector<8x8xbf16>
    %cst_20 = arith.constant dense<0.000000e+00> : vector<888x8xf32>
    %23 = tpu.matmul %20, %22, %cst_20 {dimension_numbers = #tpu.dot_dimension_numbers<[1], [0], [0], [1], [0, 0, 1, 1], [], []>} : vector<888x8xbf16>, vector<8x8xbf16>, vector<888x8xf32> -> vector<888x8xf32>
    %24 = arith.addf %18, %23 : vector<888x8xf32>
    %c0_21 = arith.constant 0 : index
    %c68 = arith.constant 68 : index
    %c0_22 = arith.constant 0 : index
    %25 = vector.load %arg1[%c0_21, %c68, %c0_22] : memref<1x1024x8xbf16, #tpu.memory_space<vmem>>, vector<1x888x8xbf16>
    %26 = vector.shape_cast %25 : vector<1x888x8xbf16> to vector<888x8xbf16>
    %c4_23 = arith.constant 4 : index
    %c0_24 = arith.constant 0 : index
    %c0_25 = arith.constant 0 : index
    %27 = vector.load %arg2[%c4_23, %c0_24, %c0_25] : memref<9x8x8xbf16, #tpu.memory_space<vmem>>, vector<1x8x8xbf16>
    %28 = vector.shape_cast %27 : vector<1x8x8xbf16> to vector<8x8xbf16>
    %cst_26 = arith.constant dense<0.000000e+00> : vector<888x8xf32>
    %29 = tpu.matmul %26, %28, %cst_26 {dimension_numbers = #tpu.dot_dimension_numbers<[1], [0], [0], [1], [0, 0, 1, 1], [], []>} : vector<888x8xbf16>, vector<8x8xbf16>, vector<888x8xf32> -> vector<888x8xf32>
    %30 = arith.addf %24, %29 : vector<888x8xf32>
    %c0_27 = arith.constant 0 : index
    %c72 = arith.constant 72 : index
    %c0_28 = arith.constant 0 : index
    %31 = vector.load %arg1[%c0_27, %c72, %c0_28] : memref<1x1024x8xbf16, #tpu.memory_space<vmem>>, vector<1x888x8xbf16>
    %32 = vector.shape_cast %31 : vector<1x888x8xbf16> to vector<888x8xbf16>
    %c5 = arith.constant 5 : index
    %c0_29 = arith.constant 0 : index
    %c0_30 = arith.constant 0 : index
    %33 = vector.load %arg2[%c5, %c0_29, %c0_30] : memref<9x8x8xbf16, #tpu.memory_space<vmem>>, vector<1x8x8xbf16>
    %34 = vector.shape_cast %33 : vector<1x8x8xbf16> to vector<8x8xbf16>
    %cst_31 = arith.constant dense<0.000000e+00> : vector<888x8xf32>
    %35 = tpu.matmul %32, %34, %cst_31 {dimension_numbers = #tpu.dot_dimension_numbers<[1], [0], [0], [1], [0, 0, 1, 1], [], []>} : vector<888x8xbf16>, vector<8x8xbf16>, vector<888x8xf32> -> vector<888x8xf32>
    %36 = arith.addf %30, %35 : vector<888x8xf32>
    %c0_32 = arith.constant 0 : index
    %c128 = arith.constant 128 : index
    %c0_33 = arith.constant 0 : index
    %37 = vector.load %arg1[%c0_32, %c128, %c0_33] : memref<1x1024x8xbf16, #tpu.memory_space<vmem>>, vector<1x888x8xbf16>
    %38 = vector.shape_cast %37 : vector<1x888x8xbf16> to vector<888x8xbf16>
    %c6 = arith.constant 6 : index
    %c0_34 = arith.constant 0 : index
    %c0_35 = arith.constant 0 : index
    %39 = vector.load %arg2[%c6, %c0_34, %c0_35] : memref<9x8x8xbf16, #tpu.memory_space<vmem>>, vector<1x8x8xbf16>
    %40 = vector.shape_cast %39 : vector<1x8x8xbf16> to vector<8x8xbf16>
    %cst_36 = arith.constant dense<0.000000e+00> : vector<888x8xf32>
    %41 = tpu.matmul %38, %40, %cst_36 {dimension_numbers = #tpu.dot_dimension_numbers<[1], [0], [0], [1], [0, 0, 1, 1], [], []>} : vector<888x8xbf16>, vector<8x8xbf16>, vector<888x8xf32> -> vector<888x8xf32>
    %42 = arith.addf %36, %41 : vector<888x8xf32>
    %c0_37 = arith.constant 0 : index
    %c132 = arith.constant 132 : index
    %c0_38 = arith.constant 0 : index
    %43 = vector.load %arg1[%c0_37, %c132, %c0_38] : memref<1x1024x8xbf16, #tpu.memory_space<vmem>>, vector<1x888x8xbf16>
    %44 = vector.shape_cast %43 : vector<1x888x8xbf16> to vector<888x8xbf16>
    %c7 = arith.constant 7 : index
    %c0_39 = arith.constant 0 : index
    %c0_40 = arith.constant 0 : index
    %45 = vector.load %arg2[%c7, %c0_39, %c0_40] : memref<9x8x8xbf16, #tpu.memory_space<vmem>>, vector<1x8x8xbf16>
    %46 = vector.shape_cast %45 : vector<1x8x8xbf16> to vector<8x8xbf16>
    %cst_41 = arith.constant dense<0.000000e+00> : vector<888x8xf32>
    %47 = tpu.matmul %44, %46, %cst_41 {dimension_numbers = #tpu.dot_dimension_numbers<[1], [0], [0], [1], [0, 0, 1, 1], [], []>} : vector<888x8xbf16>, vector<8x8xbf16>, vector<888x8xf32> -> vector<888x8xf32>
    %48 = arith.addf %42, %47 : vector<888x8xf32>
    %c0_42 = arith.constant 0 : index
    %c136 = arith.constant 136 : index
    %c0_43 = arith.constant 0 : index
    %49 = vector.load %arg1[%c0_42, %c136, %c0_43] : memref<1x1024x8xbf16, #tpu.memory_space<vmem>>, vector<1x888x8xbf16>
    %50 = vector.shape_cast %49 : vector<1x888x8xbf16> to vector<888x8xbf16>
    %c8_44 = arith.constant 8 : index
    %c0_45 = arith.constant 0 : index
    %c0_46 = arith.constant 0 : index
    %51 = vector.load %arg2[%c8_44, %c0_45, %c0_46] : memref<9x8x8xbf16, #tpu.memory_space<vmem>>, vector<1x8x8xbf16>
    %52 = vector.shape_cast %51 : vector<1x8x8xbf16> to vector<8x8xbf16>
    %cst_47 = arith.constant dense<0.000000e+00> : vector<888x8xf32>
    %53 = tpu.matmul %50, %52, %cst_47 {dimension_numbers = #tpu.dot_dimension_numbers<[1], [0], [0], [1], [0, 0, 1, 1], [], []>} : vector<888x8xbf16>, vector<8x8xbf16>, vector<888x8xf32> -> vector<888x8xf32>
    %54 = arith.addf %48, %53 : vector<888x8xf32>
    %c0_48 = arith.constant 0 : index
    %c0_49 = arith.constant 0 : index
    %55 = vector.load %arg3[%c0_48, %c0_49] : memref<1x8xf32, #tpu.memory_space<vmem>>, vector<1x8xf32>
    %56 = vector.broadcast %55 : vector<1x8xf32> to vector<888x8xf32>
    %57 = arith.addf %54, %56 : vector<888x8xf32>
    %cst_50 = arith.constant 0.000000e+00 : f32
    %58 = vector.broadcast %cst_50 : f32 to vector<888x8xf32>
    %59 = arith.maximumf %57, %58 : vector<888x8xf32>
    %60 = arith.truncf %59 : vector<888x8xf32> to vector<888x8xbf16>
    %c0_51 = arith.constant 0 : index
    %c0_52 = arith.constant 0 : index
    %c0_53 = arith.constant 0 : index
    %61 = vector.load %arg4[%c0_51, %c0_52, %c0_53] : memref<1x888x8xbf16, #tpu.memory_space<vmem>>, vector<1x888x8xbf16>
    %62 = vector.shape_cast %61 : vector<1x888x8xbf16> to vector<888x8xbf16>
    %63 = vector.shape_cast %60 : vector<888x8xbf16> to vector<1x888x8xbf16>
    tpu.vector_store %arg4[%c0_51, %c0_52, %c0_53], %63 {strides = array<i32>} : memref<1x888x8xbf16, #tpu.memory_space<vmem>>, vector<1x888x8xbf16>,
    return
  }
  func.func @transform_0(%arg0: i32) -> (i32, i32, i32) {
    %c0_i32 = arith.constant 0 : i32
    %c0_i32_0 = arith.constant 0 : i32
    %c0_i32_1 = arith.constant 0 : i32
    return %arg0, %c0_i32, %c0_i32_0 : i32, i32, i32
  }
  func.func @transform_1(%arg0: i32) -> (i32, i32, i32) {
    %c0_i32 = arith.constant 0 : i32
    %c0_i32_0 = arith.constant 0 : i32
    %c0_i32_1 = arith.constant 0 : i32
    %c0_i32_2 = arith.constant 0 : i32
    return %c0_i32, %c0_i32_0, %c0_i32_1 : i32, i32, i32
  }
  func.func @transform_2(%arg0: i32) -> (i32, i32) {
    %c0_i32 = arith.constant 0 : i32
    %c0_i32_0 = arith.constant 0 : i32
    %c0_i32_1 = arith.constant 0 : i32
    return %c0_i32, %c0_i32_0 : i32, i32
  }
  func.func @transform_3(%arg0: i32) -> (i32, i32, i32) {
    %c0_i32 = arith.constant 0 : i32
    %c0_i32_0 = arith.constant 0 : i32
    %c0_i32_1 = arith.constant 0 : i32
    return %arg0, %c0_i32, %c0_i32_0 : i32, i32, i32
  }
}

module attributes {stable_mosaic.version = 11 : i64} {
  func.func @_conv_bn_act_kernel(%arg0: i32, %arg1: memref<1x392x16xbf16, #tpu.memory_space<vmem>>, %arg2: memref<9x16x12xbf16, #tpu.memory_space<vmem>>, %arg3: memref<1x12xf32, #tpu.memory_space<vmem>>, %arg4: memref<1x332x12xbf16, #tpu.memory_space<vmem>>) attributes {dimension_semantics = [#tpu.dimension_semantics<parallel>], iteration_bounds = array<i64: 2>, scalar_prefetch = 0 : i64, scratch_operands = 0 : i64, tpu.core_type = #tpu.core_type<tc>, window_params = [{transform_indices = @transform_0, window_bounds = array<i64: 1, 392, 16>}, {pipeline_mode = #tpu.pipeline_mode<synchronous>, transform_indices = @transform_1, window_bounds = array<i64: 9, 16, 12>}, {pipeline_mode = #tpu.pipeline_mode<synchronous>, transform_indices = @transform_2, window_bounds = array<i64: 1, 12>}, {transform_indices = @transform_3, window_bounds = array<i64: 1, 332, 12>}]} {
    %cst = arith.constant 0.000000e+00 : f32
    %0 = vector.broadcast %cst : f32 to vector<332x12xf32>
    %c0 = arith.constant 0 : index
    %c0_0 = arith.constant 0 : index
    %c0_1 = arith.constant 0 : index
    %1 = vector.load %arg1[%c0, %c0_0, %c0_1] : memref<1x392x16xbf16, #tpu.memory_space<vmem>>, vector<1x332x16xbf16>
    %2 = vector.shape_cast %1 : vector<1x332x16xbf16> to vector<332x16xbf16>
    %c0_2 = arith.constant 0 : index
    %c0_3 = arith.constant 0 : index
    %c0_4 = arith.constant 0 : index
    %3 = vector.load %arg2[%c0_2, %c0_3, %c0_4] : memref<9x16x12xbf16, #tpu.memory_space<vmem>>, vector<1x16x12xbf16>
    %4 = vector.shape_cast %3 : vector<1x16x12xbf16> to vector<16x12xbf16>
    %cst_5 = arith.constant dense<0.000000e+00> : vector<332x12xf32>
    %5 = tpu.matmul %2, %4, %cst_5 {dimension_numbers = #tpu.dot_dimension_numbers<[1], [0], [0], [1], [0, 0, 1, 1], [], []>} : vector<332x16xbf16>, vector<16x12xbf16>, vector<332x12xf32> -> vector<332x12xf32>
    %6 = arith.addf %0, %5 : vector<332x12xf32>
    %c0_6 = arith.constant 0 : index
    %c2 = arith.constant 2 : index
    %c0_7 = arith.constant 0 : index
    %7 = vector.load %arg1[%c0_6, %c2, %c0_7] : memref<1x392x16xbf16, #tpu.memory_space<vmem>>, vector<1x332x16xbf16>
    %8 = vector.shape_cast %7 : vector<1x332x16xbf16> to vector<332x16xbf16>
    %c1 = arith.constant 1 : index
    %c0_8 = arith.constant 0 : index
    %c0_9 = arith.constant 0 : index
    %9 = vector.load %arg2[%c1, %c0_8, %c0_9] : memref<9x16x12xbf16, #tpu.memory_space<vmem>>, vector<1x16x12xbf16>
    %10 = vector.shape_cast %9 : vector<1x16x12xbf16> to vector<16x12xbf16>
    %cst_10 = arith.constant dense<0.000000e+00> : vector<332x12xf32>
    %11 = tpu.matmul %8, %10, %cst_10 {dimension_numbers = #tpu.dot_dimension_numbers<[1], [0], [0], [1], [0, 0, 1, 1], [], []>} : vector<332x16xbf16>, vector<16x12xbf16>, vector<332x12xf32> -> vector<332x12xf32>
    %12 = arith.addf %6, %11 : vector<332x12xf32>
    %c0_11 = arith.constant 0 : index
    %c4 = arith.constant 4 : index
    %c0_12 = arith.constant 0 : index
    %13 = vector.load %arg1[%c0_11, %c4, %c0_12] : memref<1x392x16xbf16, #tpu.memory_space<vmem>>, vector<1x332x16xbf16>
    %14 = vector.shape_cast %13 : vector<1x332x16xbf16> to vector<332x16xbf16>
    %c2_13 = arith.constant 2 : index
    %c0_14 = arith.constant 0 : index
    %c0_15 = arith.constant 0 : index
    %15 = vector.load %arg2[%c2_13, %c0_14, %c0_15] : memref<9x16x12xbf16, #tpu.memory_space<vmem>>, vector<1x16x12xbf16>
    %16 = vector.shape_cast %15 : vector<1x16x12xbf16> to vector<16x12xbf16>
    %cst_16 = arith.constant dense<0.000000e+00> : vector<332x12xf32>
    %17 = tpu.matmul %14, %16, %cst_16 {dimension_numbers = #tpu.dot_dimension_numbers<[1], [0], [0], [1], [0, 0, 1, 1], [], []>} : vector<332x16xbf16>, vector<16x12xbf16>, vector<332x12xf32> -> vector<332x12xf32>
    %18 = arith.addf %12, %17 : vector<332x12xf32>
    %c0_17 = arith.constant 0 : index
    %c28 = arith.constant 28 : index
    %c0_18 = arith.constant 0 : index
    %19 = vector.load %arg1[%c0_17, %c28, %c0_18] : memref<1x392x16xbf16, #tpu.memory_space<vmem>>, vector<1x332x16xbf16>
    %20 = vector.shape_cast %19 : vector<1x332x16xbf16> to vector<332x16xbf16>
    %c3 = arith.constant 3 : index
    %c0_19 = arith.constant 0 : index
    %c0_20 = arith.constant 0 : index
    %21 = vector.load %arg2[%c3, %c0_19, %c0_20] : memref<9x16x12xbf16, #tpu.memory_space<vmem>>, vector<1x16x12xbf16>
    %22 = vector.shape_cast %21 : vector<1x16x12xbf16> to vector<16x12xbf16>
    %cst_21 = arith.constant dense<0.000000e+00> : vector<332x12xf32>
    %23 = tpu.matmul %20, %22, %cst_21 {dimension_numbers = #tpu.dot_dimension_numbers<[1], [0], [0], [1], [0, 0, 1, 1], [], []>} : vector<332x16xbf16>, vector<16x12xbf16>, vector<332x12xf32> -> vector<332x12xf32>
    %24 = arith.addf %18, %23 : vector<332x12xf32>
    %c0_22 = arith.constant 0 : index
    %c30 = arith.constant 30 : index
    %c0_23 = arith.constant 0 : index
    %25 = vector.load %arg1[%c0_22, %c30, %c0_23] : memref<1x392x16xbf16, #tpu.memory_space<vmem>>, vector<1x332x16xbf16>
    %26 = vector.shape_cast %25 : vector<1x332x16xbf16> to vector<332x16xbf16>
    %c4_24 = arith.constant 4 : index
    %c0_25 = arith.constant 0 : index
    %c0_26 = arith.constant 0 : index
    %27 = vector.load %arg2[%c4_24, %c0_25, %c0_26] : memref<9x16x12xbf16, #tpu.memory_space<vmem>>, vector<1x16x12xbf16>
    %28 = vector.shape_cast %27 : vector<1x16x12xbf16> to vector<16x12xbf16>
    %cst_27 = arith.constant dense<0.000000e+00> : vector<332x12xf32>
    %29 = tpu.matmul %26, %28, %cst_27 {dimension_numbers = #tpu.dot_dimension_numbers<[1], [0], [0], [1], [0, 0, 1, 1], [], []>} : vector<332x16xbf16>, vector<16x12xbf16>, vector<332x12xf32> -> vector<332x12xf32>
    %30 = arith.addf %24, %29 : vector<332x12xf32>
    %c0_28 = arith.constant 0 : index
    %c32 = arith.constant 32 : index
    %c0_29 = arith.constant 0 : index
    %31 = vector.load %arg1[%c0_28, %c32, %c0_29] : memref<1x392x16xbf16, #tpu.memory_space<vmem>>, vector<1x332x16xbf16>
    %32 = vector.shape_cast %31 : vector<1x332x16xbf16> to vector<332x16xbf16>
    %c5 = arith.constant 5 : index
    %c0_30 = arith.constant 0 : index
    %c0_31 = arith.constant 0 : index
    %33 = vector.load %arg2[%c5, %c0_30, %c0_31] : memref<9x16x12xbf16, #tpu.memory_space<vmem>>, vector<1x16x12xbf16>
    %34 = vector.shape_cast %33 : vector<1x16x12xbf16> to vector<16x12xbf16>
    %cst_32 = arith.constant dense<0.000000e+00> : vector<332x12xf32>
    %35 = tpu.matmul %32, %34, %cst_32 {dimension_numbers = #tpu.dot_dimension_numbers<[1], [0], [0], [1], [0, 0, 1, 1], [], []>} : vector<332x16xbf16>, vector<16x12xbf16>, vector<332x12xf32> -> vector<332x12xf32>
    %36 = arith.addf %30, %35 : vector<332x12xf32>
    %c0_33 = arith.constant 0 : index
    %c56 = arith.constant 56 : index
    %c0_34 = arith.constant 0 : index
    %37 = vector.load %arg1[%c0_33, %c56, %c0_34] : memref<1x392x16xbf16, #tpu.memory_space<vmem>>, vector<1x332x16xbf16>
    %38 = vector.shape_cast %37 : vector<1x332x16xbf16> to vector<332x16xbf16>
    %c6 = arith.constant 6 : index
    %c0_35 = arith.constant 0 : index
    %c0_36 = arith.constant 0 : index
    %39 = vector.load %arg2[%c6, %c0_35, %c0_36] : memref<9x16x12xbf16, #tpu.memory_space<vmem>>, vector<1x16x12xbf16>
    %40 = vector.shape_cast %39 : vector<1x16x12xbf16> to vector<16x12xbf16>
    %cst_37 = arith.constant dense<0.000000e+00> : vector<332x12xf32>
    %41 = tpu.matmul %38, %40, %cst_37 {dimension_numbers = #tpu.dot_dimension_numbers<[1], [0], [0], [1], [0, 0, 1, 1], [], []>} : vector<332x16xbf16>, vector<16x12xbf16>, vector<332x12xf32> -> vector<332x12xf32>
    %42 = arith.addf %36, %41 : vector<332x12xf32>
    %c0_38 = arith.constant 0 : index
    %c58 = arith.constant 58 : index
    %c0_39 = arith.constant 0 : index
    %43 = vector.load %arg1[%c0_38, %c58, %c0_39] : memref<1x392x16xbf16, #tpu.memory_space<vmem>>, vector<1x332x16xbf16>
    %44 = vector.shape_cast %43 : vector<1x332x16xbf16> to vector<332x16xbf16>
    %c7 = arith.constant 7 : index
    %c0_40 = arith.constant 0 : index
    %c0_41 = arith.constant 0 : index
    %45 = vector.load %arg2[%c7, %c0_40, %c0_41] : memref<9x16x12xbf16, #tpu.memory_space<vmem>>, vector<1x16x12xbf16>
    %46 = vector.shape_cast %45 : vector<1x16x12xbf16> to vector<16x12xbf16>
    %cst_42 = arith.constant dense<0.000000e+00> : vector<332x12xf32>
    %47 = tpu.matmul %44, %46, %cst_42 {dimension_numbers = #tpu.dot_dimension_numbers<[1], [0], [0], [1], [0, 0, 1, 1], [], []>} : vector<332x16xbf16>, vector<16x12xbf16>, vector<332x12xf32> -> vector<332x12xf32>
    %48 = arith.addf %42, %47 : vector<332x12xf32>
    %c0_43 = arith.constant 0 : index
    %c60 = arith.constant 60 : index
    %c0_44 = arith.constant 0 : index
    %49 = vector.load %arg1[%c0_43, %c60, %c0_44] : memref<1x392x16xbf16, #tpu.memory_space<vmem>>, vector<1x332x16xbf16>
    %50 = vector.shape_cast %49 : vector<1x332x16xbf16> to vector<332x16xbf16>
    %c8 = arith.constant 8 : index
    %c0_45 = arith.constant 0 : index
    %c0_46 = arith.constant 0 : index
    %51 = vector.load %arg2[%c8, %c0_45, %c0_46] : memref<9x16x12xbf16, #tpu.memory_space<vmem>>, vector<1x16x12xbf16>
    %52 = vector.shape_cast %51 : vector<1x16x12xbf16> to vector<16x12xbf16>
    %cst_47 = arith.constant dense<0.000000e+00> : vector<332x12xf32>
    %53 = tpu.matmul %50, %52, %cst_47 {dimension_numbers = #tpu.dot_dimension_numbers<[1], [0], [0], [1], [0, 0, 1, 1], [], []>} : vector<332x16xbf16>, vector<16x12xbf16>, vector<332x12xf32> -> vector<332x12xf32>
    %54 = arith.addf %48, %53 : vector<332x12xf32>
    %c0_48 = arith.constant 0 : index
    %c0_49 = arith.constant 0 : index
    %55 = vector.load %arg3[%c0_48, %c0_49] : memref<1x12xf32, #tpu.memory_space<vmem>>, vector<1x12xf32>
    %56 = vector.broadcast %55 : vector<1x12xf32> to vector<332x12xf32>
    %57 = arith.addf %54, %56 : vector<332x12xf32>
    %cst_50 = arith.constant 0.000000e+00 : f32
    %58 = vector.broadcast %cst_50 : f32 to vector<332x12xf32>
    %59 = arith.maximumf %57, %58 : vector<332x12xf32>
    %60 = arith.truncf %59 : vector<332x12xf32> to vector<332x12xbf16>
    %c0_51 = arith.constant 0 : index
    %c0_52 = arith.constant 0 : index
    %c0_53 = arith.constant 0 : index
    %61 = vector.load %arg4[%c0_51, %c0_52, %c0_53] : memref<1x332x12xbf16, #tpu.memory_space<vmem>>, vector<1x332x12xbf16>
    %62 = vector.shape_cast %61 : vector<1x332x12xbf16> to vector<332x12xbf16>
    %63 = vector.shape_cast %60 : vector<332x12xbf16> to vector<1x332x12xbf16>
    tpu.vector_store %arg4[%c0_51, %c0_52, %c0_53], %63 {strides = array<i32>} : memref<1x332x12xbf16, #tpu.memory_space<vmem>>, vector<1x332x12xbf16>,
    return
  }
  func.func @transform_0(%arg0: i32) -> (i32, i32, i32) {
    %c0_i32 = arith.constant 0 : i32
    %c0_i32_0 = arith.constant 0 : i32
    %c0_i32_1 = arith.constant 0 : i32
    return %arg0, %c0_i32, %c0_i32_0 : i32, i32, i32
  }
  func.func @transform_1(%arg0: i32) -> (i32, i32, i32) {
    %c0_i32 = arith.constant 0 : i32
    %c0_i32_0 = arith.constant 0 : i32
    %c0_i32_1 = arith.constant 0 : i32
    %c0_i32_2 = arith.constant 0 : i32
    return %c0_i32, %c0_i32_0, %c0_i32_1 : i32, i32, i32
  }
  func.func @transform_2(%arg0: i32) -> (i32, i32) {
    %c0_i32 = arith.constant 0 : i32
    %c0_i32_0 = arith.constant 0 : i32
    %c0_i32_1 = arith.constant 0 : i32
    return %c0_i32, %c0_i32_0 : i32, i32
  }
  func.func @transform_3(%arg0: i32) -> (i32, i32, i32) {
    %c0_i32 = arith.constant 0 : i32
    %c0_i32_0 = arith.constant 0 : i32
    %c0_i32_1 = arith.constant 0 : i32
    return %arg0, %c0_i32, %c0_i32_0 : i32, i32, i32
  }
}

module attributes {stable_mosaic.version = 11 : i64} {
  func.func @_conv_bn_act_kernel(%arg0: i32, %arg1: memref<1x144x24xbf16, #tpu.memory_space<vmem>>, %arg2: memref<9x24x16xbf16, #tpu.memory_space<vmem>>, %arg3: memref<1x16xf32, #tpu.memory_space<vmem>>, %arg4: memref<1x118x16xbf16, #tpu.memory_space<vmem>>) attributes {dimension_semantics = [#tpu.dimension_semantics<parallel>], iteration_bounds = array<i64: 2>, scalar_prefetch = 0 : i64, scratch_operands = 0 : i64, tpu.core_type = #tpu.core_type<tc>, window_params = [{transform_indices = @transform_0, window_bounds = array<i64: 1, 144, 24>}, {pipeline_mode = #tpu.pipeline_mode<synchronous>, transform_indices = @transform_1, window_bounds = array<i64: 9, 24, 16>}, {pipeline_mode = #tpu.pipeline_mode<synchronous>, transform_indices = @transform_2, window_bounds = array<i64: 1, 16>}, {transform_indices = @transform_3, window_bounds = array<i64: 1, 118, 16>}]} {
    %cst = arith.constant 0.000000e+00 : f32
    %0 = vector.broadcast %cst : f32 to vector<118x16xf32>
    %c0 = arith.constant 0 : index
    %c0_0 = arith.constant 0 : index
    %c0_1 = arith.constant 0 : index
    %1 = vector.load %arg1[%c0, %c0_0, %c0_1] : memref<1x144x24xbf16, #tpu.memory_space<vmem>>, vector<1x118x24xbf16>
    %2 = vector.shape_cast %1 : vector<1x118x24xbf16> to vector<118x24xbf16>
    %c0_2 = arith.constant 0 : index
    %c0_3 = arith.constant 0 : index
    %c0_4 = arith.constant 0 : index
    %3 = vector.load %arg2[%c0_2, %c0_3, %c0_4] : memref<9x24x16xbf16, #tpu.memory_space<vmem>>, vector<1x24x16xbf16>
    %4 = vector.shape_cast %3 : vector<1x24x16xbf16> to vector<24x16xbf16>
    %cst_5 = arith.constant dense<0.000000e+00> : vector<118x16xf32>
    %5 = tpu.matmul %2, %4, %cst_5 {dimension_numbers = #tpu.dot_dimension_numbers<[1], [0], [0], [1], [0, 0, 1, 1], [], []>} : vector<118x24xbf16>, vector<24x16xbf16>, vector<118x16xf32> -> vector<118x16xf32>
    %6 = arith.addf %0, %5 : vector<118x16xf32>
    %c0_6 = arith.constant 0 : index
    %c1 = arith.constant 1 : index
    %c0_7 = arith.constant 0 : index
    %7 = vector.load %arg1[%c0_6, %c1, %c0_7] : memref<1x144x24xbf16, #tpu.memory_space<vmem>>, vector<1x118x24xbf16>
    %8 = vector.shape_cast %7 : vector<1x118x24xbf16> to vector<118x24xbf16>
    %c1_8 = arith.constant 1 : index
    %c0_9 = arith.constant 0 : index
    %c0_10 = arith.constant 0 : index
    %9 = vector.load %arg2[%c1_8, %c0_9, %c0_10] : memref<9x24x16xbf16, #tpu.memory_space<vmem>>, vector<1x24x16xbf16>
    %10 = vector.shape_cast %9 : vector<1x24x16xbf16> to vector<24x16xbf16>
    %cst_11 = arith.constant dense<0.000000e+00> : vector<118x16xf32>
    %11 = tpu.matmul %8, %10, %cst_11 {dimension_numbers = #tpu.dot_dimension_numbers<[1], [0], [0], [1], [0, 0, 1, 1], [], []>} : vector<118x24xbf16>, vector<24x16xbf16>, vector<118x16xf32> -> vector<118x16xf32>
    %12 = arith.addf %6, %11 : vector<118x16xf32>
    %c0_12 = arith.constant 0 : index
    %c2 = arith.constant 2 : index
    %c0_13 = arith.constant 0 : index
    %13 = vector.load %arg1[%c0_12, %c2, %c0_13] : memref<1x144x24xbf16, #tpu.memory_space<vmem>>, vector<1x118x24xbf16>
    %14 = vector.shape_cast %13 : vector<1x118x24xbf16> to vector<118x24xbf16>
    %c2_14 = arith.constant 2 : index
    %c0_15 = arith.constant 0 : index
    %c0_16 = arith.constant 0 : index
    %15 = vector.load %arg2[%c2_14, %c0_15, %c0_16] : memref<9x24x16xbf16, #tpu.memory_space<vmem>>, vector<1x24x16xbf16>
    %16 = vector.shape_cast %15 : vector<1x24x16xbf16> to vector<24x16xbf16>
    %cst_17 = arith.constant dense<0.000000e+00> : vector<118x16xf32>
    %17 = tpu.matmul %14, %16, %cst_17 {dimension_numbers = #tpu.dot_dimension_numbers<[1], [0], [0], [1], [0, 0, 1, 1], [], []>} : vector<118x24xbf16>, vector<24x16xbf16>, vector<118x16xf32> -> vector<118x16xf32>
    %18 = arith.addf %12, %17 : vector<118x16xf32>
    %c0_18 = arith.constant 0 : index
    %c12 = arith.constant 12 : index
    %c0_19 = arith.constant 0 : index
    %19 = vector.load %arg1[%c0_18, %c12, %c0_19] : memref<1x144x24xbf16, #tpu.memory_space<vmem>>, vector<1x118x24xbf16>
    %20 = vector.shape_cast %19 : vector<1x118x24xbf16> to vector<118x24xbf16>
    %c3 = arith.constant 3 : index
    %c0_20 = arith.constant 0 : index
    %c0_21 = arith.constant 0 : index
    %21 = vector.load %arg2[%c3, %c0_20, %c0_21] : memref<9x24x16xbf16, #tpu.memory_space<vmem>>, vector<1x24x16xbf16>
    %22 = vector.shape_cast %21 : vector<1x24x16xbf16> to vector<24x16xbf16>
    %cst_22 = arith.constant dense<0.000000e+00> : vector<118x16xf32>
    %23 = tpu.matmul %20, %22, %cst_22 {dimension_numbers = #tpu.dot_dimension_numbers<[1], [0], [0], [1], [0, 0, 1, 1], [], []>} : vector<118x24xbf16>, vector<24x16xbf16>, vector<118x16xf32> -> vector<118x16xf32>
    %24 = arith.addf %18, %23 : vector<118x16xf32>
    %c0_23 = arith.constant 0 : index
    %c13 = arith.constant 13 : index
    %c0_24 = arith.constant 0 : index
    %25 = vector.load %arg1[%c0_23, %c13, %c0_24] : memref<1x144x24xbf16, #tpu.memory_space<vmem>>, vector<1x118x24xbf16>
    %26 = vector.shape_cast %25 : vector<1x118x24xbf16> to vector<118x24xbf16>
    %c4 = arith.constant 4 : index
    %c0_25 = arith.constant 0 : index
    %c0_26 = arith.constant 0 : index
    %27 = vector.load %arg2[%c4, %c0_25, %c0_26] : memref<9x24x16xbf16, #tpu.memory_space<vmem>>, vector<1x24x16xbf16>
    %28 = vector.shape_cast %27 : vector<1x24x16xbf16> to vector<24x16xbf16>
    %cst_27 = arith.constant dense<0.000000e+00> : vector<118x16xf32>
    %29 = tpu.matmul %26, %28, %cst_27 {dimension_numbers = #tpu.dot_dimension_numbers<[1], [0], [0], [1], [0, 0, 1, 1], [], []>} : vector<118x24xbf16>, vector<24x16xbf16>, vector<118x16xf32> -> vector<118x16xf32>
    %30 = arith.addf %24, %29 : vector<118x16xf32>
    %c0_28 = arith.constant 0 : index
    %c14 = arith.constant 14 : index
    %c0_29 = arith.constant 0 : index
    %31 = vector.load %arg1[%c0_28, %c14, %c0_29] : memref<1x144x24xbf16, #tpu.memory_space<vmem>>, vector<1x118x24xbf16>
    %32 = vector.shape_cast %31 : vector<1x118x24xbf16> to vector<118x24xbf16>
    %c5 = arith.constant 5 : index
    %c0_30 = arith.constant 0 : index
    %c0_31 = arith.constant 0 : index
    %33 = vector.load %arg2[%c5, %c0_30, %c0_31] : memref<9x24x16xbf16, #tpu.memory_space<vmem>>, vector<1x24x16xbf16>
    %34 = vector.shape_cast %33 : vector<1x24x16xbf16> to vector<24x16xbf16>
    %cst_32 = arith.constant dense<0.000000e+00> : vector<118x16xf32>
    %35 = tpu.matmul %32, %34, %cst_32 {dimension_numbers = #tpu.dot_dimension_numbers<[1], [0], [0], [1], [0, 0, 1, 1], [], []>} : vector<118x24xbf16>, vector<24x16xbf16>, vector<118x16xf32> -> vector<118x16xf32>
    %36 = arith.addf %30, %35 : vector<118x16xf32>
    %c0_33 = arith.constant 0 : index
    %c24 = arith.constant 24 : index
    %c0_34 = arith.constant 0 : index
    %37 = vector.load %arg1[%c0_33, %c24, %c0_34] : memref<1x144x24xbf16, #tpu.memory_space<vmem>>, vector<1x118x24xbf16>
    %38 = vector.shape_cast %37 : vector<1x118x24xbf16> to vector<118x24xbf16>
    %c6 = arith.constant 6 : index
    %c0_35 = arith.constant 0 : index
    %c0_36 = arith.constant 0 : index
    %39 = vector.load %arg2[%c6, %c0_35, %c0_36] : memref<9x24x16xbf16, #tpu.memory_space<vmem>>, vector<1x24x16xbf16>
    %40 = vector.shape_cast %39 : vector<1x24x16xbf16> to vector<24x16xbf16>
    %cst_37 = arith.constant dense<0.000000e+00> : vector<118x16xf32>
    %41 = tpu.matmul %38, %40, %cst_37 {dimension_numbers = #tpu.dot_dimension_numbers<[1], [0], [0], [1], [0, 0, 1, 1], [], []>} : vector<118x24xbf16>, vector<24x16xbf16>, vector<118x16xf32> -> vector<118x16xf32>
    %42 = arith.addf %36, %41 : vector<118x16xf32>
    %c0_38 = arith.constant 0 : index
    %c25 = arith.constant 25 : index
    %c0_39 = arith.constant 0 : index
    %43 = vector.load %arg1[%c0_38, %c25, %c0_39] : memref<1x144x24xbf16, #tpu.memory_space<vmem>>, vector<1x118x24xbf16>
    %44 = vector.shape_cast %43 : vector<1x118x24xbf16> to vector<118x24xbf16>
    %c7 = arith.constant 7 : index
    %c0_40 = arith.constant 0 : index
    %c0_41 = arith.constant 0 : index
    %45 = vector.load %arg2[%c7, %c0_40, %c0_41] : memref<9x24x16xbf16, #tpu.memory_space<vmem>>, vector<1x24x16xbf16>
    %46 = vector.shape_cast %45 : vector<1x24x16xbf16> to vector<24x16xbf16>
    %cst_42 = arith.constant dense<0.000000e+00> : vector<118x16xf32>
    %47 = tpu.matmul %44, %46, %cst_42 {dimension_numbers = #tpu.dot_dimension_numbers<[1], [0], [0], [1], [0, 0, 1, 1], [], []>} : vector<118x24xbf16>, vector<24x16xbf16>, vector<118x16xf32> -> vector<118x16xf32>
    %48 = arith.addf %42, %47 : vector<118x16xf32>
    %c0_43 = arith.constant 0 : index
    %c26 = arith.constant 26 : index
    %c0_44 = arith.constant 0 : index
    %49 = vector.load %arg1[%c0_43, %c26, %c0_44] : memref<1x144x24xbf16, #tpu.memory_space<vmem>>, vector<1x118x24xbf16>
    %50 = vector.shape_cast %49 : vector<1x118x24xbf16> to vector<118x24xbf16>
    %c8 = arith.constant 8 : index
    %c0_45 = arith.constant 0 : index
    %c0_46 = arith.constant 0 : index
    %51 = vector.load %arg2[%c8, %c0_45, %c0_46] : memref<9x24x16xbf16, #tpu.memory_space<vmem>>, vector<1x24x16xbf16>
    %52 = vector.shape_cast %51 : vector<1x24x16xbf16> to vector<24x16xbf16>
    %cst_47 = arith.constant dense<0.000000e+00> : vector<118x16xf32>
    %53 = tpu.matmul %50, %52, %cst_47 {dimension_numbers = #tpu.dot_dimension_numbers<[1], [0], [0], [1], [0, 0, 1, 1], [], []>} : vector<118x24xbf16>, vector<24x16xbf16>, vector<118x16xf32> -> vector<118x16xf32>
    %54 = arith.addf %48, %53 : vector<118x16xf32>
    %c0_48 = arith.constant 0 : index
    %c0_49 = arith.constant 0 : index
    %55 = vector.load %arg3[%c0_48, %c0_49] : memref<1x16xf32, #tpu.memory_space<vmem>>, vector<1x16xf32>
    %56 = vector.broadcast %55 : vector<1x16xf32> to vector<118x16xf32>
    %57 = arith.addf %54, %56 : vector<118x16xf32>
    %cst_50 = arith.constant 0.000000e+00 : f32
    %58 = vector.broadcast %cst_50 : f32 to vector<118x16xf32>
    %59 = arith.maximumf %57, %58 : vector<118x16xf32>
    %60 = arith.truncf %59 : vector<118x16xf32> to vector<118x16xbf16>
    %c0_51 = arith.constant 0 : index
    %c0_52 = arith.constant 0 : index
    %c0_53 = arith.constant 0 : index
    %61 = vector.load %arg4[%c0_51, %c0_52, %c0_53] : memref<1x118x16xbf16, #tpu.memory_space<vmem>>, vector<1x118x16xbf16>
    %62 = vector.shape_cast %61 : vector<1x118x16xbf16> to vector<118x16xbf16>
    %63 = vector.shape_cast %60 : vector<118x16xbf16> to vector<1x118x16xbf16>
    tpu.vector_store %arg4[%c0_51, %c0_52, %c0_53], %63 {strides = array<i32>} : memref<1x118x16xbf16, #tpu.memory_space<vmem>>, vector<1x118x16xbf16>,
    return
  }
  func.func @transform_0(%arg0: i32) -> (i32, i32, i32) {
    %c0_i32 = arith.constant 0 : i32
    %c0_i32_0 = arith.constant 0 : i32
    %c0_i32_1 = arith.constant 0 : i32
    return %arg0, %c0_i32, %c0_i32_0 : i32, i32, i32
  }
  func.func @transform_1(%arg0: i32) -> (i32, i32, i32) {
    %c0_i32 = arith.constant 0 : i32
    %c0_i32_0 = arith.constant 0 : i32
    %c0_i32_1 = arith.constant 0 : i32
    %c0_i32_2 = arith.constant 0 : i32
    return %c0_i32, %c0_i32_0, %c0_i32_1 : i32, i32, i32
  }
  func.func @transform_2(%arg0: i32) -> (i32, i32) {
    %c0_i32 = arith.constant 0 : i32
    %c0_i32_0 = arith.constant 0 : i32
    %c0_i32_1 = arith.constant 0 : i32
    return %c0_i32, %c0_i32_0 : i32, i32
  }
  func.func @transform_3(%arg0: i32) -> (i32, i32, i32) {
    %c0_i32 = arith.constant 0 : i32
    %c0_i32_0 = arith.constant 0 : i32
    %c0_i32_1 = arith.constant 0 : i32
    return %arg0, %c0_i32, %c0_i32_0 : i32, i32, i32
  }
}

module attributes {stable_mosaic.version = 11 : i64} {
  func.func @_head_kernel(%arg0: i32, %arg1: memref<64x16xbf16, #tpu.memory_space<vmem>>, %arg2: memref<16x8xbf16, #tpu.memory_space<vmem>>, %arg3: memref<1x8xf32, #tpu.memory_space<vmem>>, %arg4: memref<8x3xbf16, #tpu.memory_space<vmem>>, %arg5: memref<1x3xf32, #tpu.memory_space<vmem>>, %arg6: memref<64x3xf32, #tpu.memory_space<vmem>>) attributes {dimension_semantics = [#tpu.dimension_semantics<parallel>], iteration_bounds = array<i64: 2>, scalar_prefetch = 0 : i64, scratch_operands = 0 : i64, tpu.core_type = #tpu.core_type<tc>, window_params = [{transform_indices = @transform_0, window_bounds = array<i64: 64, 16>}, {pipeline_mode = #tpu.pipeline_mode<synchronous>, transform_indices = @transform_1, window_bounds = array<i64: 16, 8>}, {pipeline_mode = #tpu.pipeline_mode<synchronous>, transform_indices = @transform_2, window_bounds = array<i64: 1, 8>}, {pipeline_mode = #tpu.pipeline_mode<synchronous>, transform_indices = @transform_3, window_bounds = array<i64: 8, 3>}, {pipeline_mode = #tpu.pipeline_mode<synchronous>, transform_indices = @transform_4, window_bounds = array<i64: 1, 3>}, {transform_indices = @transform_5, window_bounds = array<i64: 64, 3>}]} {
    %c0 = arith.constant 0 : index
    %c0_0 = arith.constant 0 : index
    %0 = vector.load %arg1[%c0, %c0_0] : memref<64x16xbf16, #tpu.memory_space<vmem>>, vector<64x16xbf16>
    %c0_1 = arith.constant 0 : index
    %c0_2 = arith.constant 0 : index
    %1 = vector.load %arg2[%c0_1, %c0_2] : memref<16x8xbf16, #tpu.memory_space<vmem>>, vector<16x8xbf16>
    %cst = arith.constant dense<0.000000e+00> : vector<64x8xf32>
    %2 = tpu.matmul %0, %1, %cst {dimension_numbers = #tpu.dot_dimension_numbers<[1], [0], [0], [1], [0, 0, 1, 1], [], []>} : vector<64x16xbf16>, vector<16x8xbf16>, vector<64x8xf32> -> vector<64x8xf32>
    %c0_3 = arith.constant 0 : index
    %c0_4 = arith.constant 0 : index
    %3 = vector.load %arg3[%c0_3, %c0_4] : memref<1x8xf32, #tpu.memory_space<vmem>>, vector<1x8xf32>
    %4 = vector.broadcast %3 : vector<1x8xf32> to vector<64x8xf32>
    %5 = arith.addf %2, %4 : vector<64x8xf32>
    %cst_5 = arith.constant 0.000000e+00 : f32
    %6 = vector.broadcast %cst_5 : f32 to vector<64x8xf32>
    %7 = arith.maximumf %5, %6 : vector<64x8xf32>
    %8 = arith.truncf %7 : vector<64x8xf32> to vector<64x8xbf16>
    %c0_6 = arith.constant 0 : index
    %c0_7 = arith.constant 0 : index
    %9 = vector.load %arg4[%c0_6, %c0_7] : memref<8x3xbf16, #tpu.memory_space<vmem>>, vector<8x3xbf16>
    %cst_8 = arith.constant dense<0.000000e+00> : vector<64x3xf32>
    %10 = tpu.matmul %8, %9, %cst_8 {dimension_numbers = #tpu.dot_dimension_numbers<[1], [0], [0], [1], [0, 0, 1, 1], [], []>} : vector<64x8xbf16>, vector<8x3xbf16>, vector<64x3xf32> -> vector<64x3xf32>
    %c0_9 = arith.constant 0 : index
    %c0_10 = arith.constant 0 : index
    %11 = vector.load %arg5[%c0_9, %c0_10] : memref<1x3xf32, #tpu.memory_space<vmem>>, vector<1x3xf32>
    %12 = vector.broadcast %11 : vector<1x3xf32> to vector<64x3xf32>
    %13 = arith.addf %10, %12 : vector<64x3xf32>
    %c0_11 = arith.constant 0 : index
    %c0_12 = arith.constant 0 : index
    %14 = vector.load %arg6[%c0_11, %c0_12] : memref<64x3xf32, #tpu.memory_space<vmem>>, vector<64x3xf32>
    tpu.vector_store %arg6[%c0_11, %c0_12], %13 {strides = array<i32>} : memref<64x3xf32, #tpu.memory_space<vmem>>, vector<64x3xf32>,
    return
  }
  func.func @transform_0(%arg0: i32) -> (i32, i32) {
    %c0_i32 = arith.constant 0 : i32
    %c0_i32_0 = arith.constant 0 : i32
    return %arg0, %c0_i32 : i32, i32
  }
  func.func @transform_1(%arg0: i32) -> (i32, i32) {
    %c0_i32 = arith.constant 0 : i32
    %c0_i32_0 = arith.constant 0 : i32
    %c0_i32_1 = arith.constant 0 : i32
    return %c0_i32, %c0_i32_0 : i32, i32
  }
  func.func @transform_2(%arg0: i32) -> (i32, i32) {
    %c0_i32 = arith.constant 0 : i32
    %c0_i32_0 = arith.constant 0 : i32
    %c0_i32_1 = arith.constant 0 : i32
    return %c0_i32, %c0_i32_0 : i32, i32
  }
  func.func @transform_3(%arg0: i32) -> (i32, i32) {
    %c0_i32 = arith.constant 0 : i32
    %c0_i32_0 = arith.constant 0 : i32
    %c0_i32_1 = arith.constant 0 : i32
    return %c0_i32, %c0_i32_0 : i32, i32
  }
  func.func @transform_4(%arg0: i32) -> (i32, i32) {
    %c0_i32 = arith.constant 0 : i32
    %c0_i32_0 = arith.constant 0 : i32
    %c0_i32_1 = arith.constant 0 : i32
    return %c0_i32, %c0_i32_0 : i32, i32
  }
  func.func @transform_5(%arg0: i32) -> (i32, i32) {
    %c0_i32 = arith.constant 0 : i32
    %c0_i32_0 = arith.constant 0 : i32
    return %arg0, %c0_i32 : i32, i32
  }
}

</mosaic_0001>

<bundles_post_ra>
// kernel: sunet3d2d_forward.5
= control target key start
LH: loop header
LB: loop body
LE: loop exit
PB: predicated region body
PF: predicated region fallthrough
CT: control target
= control target key end

     0   :  { %s4110_s12 = smov 0   ;;  %s5406_s0 = inlined_call_operand.vmem [shape: bf16[2,392,16], index: 0, kind: input, shape index: {}]   ;;  %s5407_s1 = inlined_call_operand.vmem [shape: bf16[9,16,12], index: 1, kind: input, shape index: {}]   ;;  %s5408_s2 = inlined_call_operand.vmem [shape: f32[1,12], index: 2, kind: input, shape index: {}]   ;;  %s5409_s3 = inlined_call_operand.vmem [shape: bf16[2,332,12], index: 3, kind: output, shape index: {}]  }
   0x1 LB: > { %s3268_s13 = sadd.s32 4294967295, %s4088_s12   ;;  %p3272_p0 = scmp.ge.s32.totalorder %s4088_s12, 1  ;;  %s4088_s12 = sphi %s4110_s12, %s13_s12  }
   0x2   : > { %p137_p1 = scmp.lt.s32.totalorder %s4088_s12, 3 }
   0x4   : > { %p138_p2 = pnand %p3272_p0, %p137_p1 }
   0x6   : > { %141 = sbr.rel (%p138_p2) target bundleno = 927 (0x39f), region = 32 }
   0xb   : > { %v3774_v0 = vld [vmem:[%s5407_s1 + $0x8] sm:$0xff]  ;;  %p161_p3 = scmp.lt.s32.totalorder %s3268_s13, 1  ;;  %v3775_v1 = vld [vmem:[%s5407_s1 + $0x10] sm:$0xff]  ;;  %v3773_v2 = vld [vmem:[%s5407_s1] sm:$0xff]  ;;  %vm326_vm0 = vcmask 1046528   ;;  %vm374_vm1 = vcmask 130048  }
   0xc   : > { %v3798_v3 = vld [vmem:[%s5407_s1 + $0x20] sm:$0xff]  ;;  %4025 = vmatpush.bf16.msra.mxu1 %v3774_v0  ;;  %4026 = vmatpush.bf16.msra.mxu2 %v3774_v0  ;;  %v3797_v40 = vld [vmem:[%s5407_s1 + $0x18] sm:$0xff]  ;;  %vm752_vm2 = vcmask 1045504   ;;  %vm1589_vm3 = vcmask 1044480   ;;  %vm3169_vm4 = vcmask 93184   ;;  %vm3211_vm5 = vcmask 91136  }
   0xd   : > { %s5447_s13 = smov (!%p161_p3, %s3268_s13), 1  ;;  %445 = vmatpush.bf16.msra.mxu0 %v3774_v0  ;;  %4027 = vmatpush.bf16.msra.mxu3 %v3774_v0 }
   0xe   : > { %s4067_s22 = smul.u32 196, %s5447_s13 }
   0xf   : > { %s4068_s11 = smul.u32 168, %s5447_s13 }
  0x10   : > { %870 = vmatpush.bf16.msrb.mxu2 %v3775_v1  ;;  %634 = vmatpush.bf16.msrb.mxu1 %v3773_v2  ;;  %s4136_s25 = scalar_lea.vmem %s5406_s0, %s4067_s22 }
  0x11   : > { %1709 = vmatpush.bf16.msrb.mxu0 %v3798_v3  ;;  %v4139_v4 = vld [vmem:[%s4136_s25 + $0x30] sm:$0xff]  ;;  %v4142_v5 = vld [vmem:[%s4136_s25 + $0x38] sm:$0xff]  ;;  %v4145_v6 = vld [vmem:[%s4136_s25 + $0x60] sm:$0xff]  ;;  %1286 = vmatpush.bf16.msrb.mxu3 %v3797_v40  ;;  %s5030_s16 = scalar_lea.vmem %s5409_s3, %s4068_s11 }
  0x12   : > { %v4148_v7 = vld [vmem:[%s4136_s25 + $0x68] sm:$0xff]  ;;  %v4151_v8 = vld [vmem:[%s4136_s25] sm:$0xff]   ;;  %v338_v10 = vrot.slane %v4139_v4, 1  ;;  %v340_v11 = vrot.slane %v4142_v5, 1  ;;  %v350_v12 = vrot.slane %v4145_v6, 1  ;;  %v4179_v24 = vld [vmem:[%s4136_s25 + $0x90] sm:$0xff] }
  0x13   : > { %v4154_v9 = vld [vmem:[%s4136_s25 + $0x8] sm:$0xff]  ;;  %v3825_v13 = vunpack.c.h.b16 %v4151_v8  ;;  %v216_v14 = vld [vmem:[%s4136_s25] sm:$0xe]  ;;  %v352_v15 = vrot.slane %v4148_v7, 1  ;;  %v3772_v25 = vld [vmem:[%s4136_s25 + $0x98] sm:$0xff]  ;;  %v362_v27 = vrot.slane %v4179_v24, 1 }
  0x14   : > { %v263_v16 = vunpack.c.l.b16 %v216_v14  ;;  %v341_v17 = vsel %vm326_vm0, %v338_v10, %v340_v11  ;;  %v328_v20 = vrot.slane %v4154_v9, 1  ;;  %v4176_v23 = vld [vmem:[%s4136_s25 + $0x40] sm:$0xff]  ;;  %v4183_v26 = vld [vmem:[%s4136_s25 + $0x70] sm:$0xff]  ;;  %v364_v28 = vrot.slane %v3772_v25, 1  ;;  %v4205_v39 = vld [vmem:[%s4136_s25 + $0x48] sm:$0xff] }
  0x15   : > { %3363 = vmatmul.msk.bf16.vlgmr.msra.gmra.mxu1 %vm374_vm1, %v341_v17  ;;  %v353_v18 = vsel %vm326_vm0, %v350_v12, %v352_v15  ;;  %v342_v29 = vrot.slane %v4176_v23, 1  ;;  %v354_v31 = vrot.slane %v4183_v26, 1  ;;  %v4192_v32 = vld [vmem:[%s4136_s25 + $0x10] sm:$0xff]  ;;  %v212_v37 = vld [vmem:[%s4136_s25 + $0xa0] sm:$0xf]  ;;  %v4213_v43 = vld [vmem:[%s4136_s25 + $0x78] sm:$0xff] }
  0x16   : > { %v305_v19 = vpack.c.b16 %v3825_v13, %v263_v16  ;;  %3369 = vmatmul.msk.bf16.vlgmr.msra.gmra.mxu2 %vm374_vm1, %v353_v18  ;;  %v365_v30 = vsel %vm326_vm0, %v362_v27, %v364_v28  ;;  %v330_v35 = vrot.slane %v4192_v32, 1  ;;  %v217_v38 = vld [vmem:[%s4136_s25 + $0xa4] sm:$0x7]  ;;  %v4210_v41 = vunpack.c.l.b16 %v212_v37  ;;  %v4219_v48 = vld [vmem:[%s4136_s25 + $0x18] sm:$0xff]  ;;  %v4231_v54 = vld [vmem:[%s4136_s25 + $0x50] sm:$0xff] }
  0x17   : > { %3375 = vmatmul.msk.bf16.vlgmr.msra.gmra.mxu3 %vm374_vm1, %v365_v30  ;;  %v343_v33 = vsel %vm326_vm0, %v340_v11, %v342_v29  ;;  %v355_v34 = vsel %vm326_vm0, %v352_v15, %v354_v31  ;;  %v304_v42 = vunpack.c.l.b16 %v217_v38  ;;  %v344_v45 = vrot.slane %v4205_v39, 1  ;;  %v4234_v55 = vld [vmem:[%s4136_s25 + $0x80] sm:$0xff]  ;;  %v4249_v63 = vld [vmem:[%s4136_s25 + $0x58] sm:$0xff]  ;;  %v3434_v0 = vld [vmem:[%s4136_s25 + $0xc] sm:$0xc] }
  0x18   : > { %v327_v21 = vrot.slane %v305_v19, 1  ;;  %v331_v36 = vsel %vm326_vm0, %v328_v20, %v330_v35  ;;  %v356_v47 = vrot.slane %v4213_v43, 1  ;;  %v332_v52 = vrot.slane %v4219_v48, 1  ;;  %v4239_v58 = vld [vmem:[%s4136_s25 + $0x20] sm:$0xff]  ;;  %v3776_v1 = vld [vmem:[%s4136_s25 + $0xc] sm:$0xf0] }
  0x19   : > { %v325_v44 = vpack.c.b16 %v304_v42, %v4210_v41  ;;  %v345_v50 = vsel %vm326_vm0, %v342_v29, %v344_v45  ;;  %v346_v56 = vrot.slane %v4231_v54, 1  ;;  %v358_v57 = vrot.slane %v4234_v55, 1  ;;  %v3777_v2 = vld [vmem:[%s4136_s25 + $0x14] sm:$0xff]  ;;  %v4256_v3 = vld [vmem:[%s4136_s25 + $0x88] sm:$0xff]  ;;  %v741_v38 = vld [vmem:[%s4136_s25] sm:$0xc] }
  0x1a   : > { %v329_v22 = vsel %vm326_vm0, %v327_v21, %v328_v20  ;;  %v357_v51 = vsel %vm326_vm0, %v354_v31, %v356_v47  ;;  %v333_v53 = vsel %vm326_vm0, %v330_v35, %v332_v52  ;;  %v334_v61 = vrot.slane %v4239_v58, 1  ;;  %v4261_v18 = vld [vmem:[%s4136_s25 + $0x28] sm:$0xff]  ;;  %v3819_v25 = vld [vmem:[%s5407_s1 + $0x30] sm:$0xff]  ;;  %v3820_v29 = vld [vmem:[%s5407_s1 + $0x38] sm:$0xff] }
  0x1b   : > { %3357 = vmatmul.msk.bf16.vlgmr.msra.gmra.mxu0 %vm374_vm1, %v329_v22  ;;  %v366_v46 = vrot.slane %v325_v44, 1  ;;  %v347_v59 = vsel %vm326_vm0, %v344_v45, %v346_v56  ;;  %v359_v60 = vsel %vm326_vm0, %v356_v47, %v358_v57  ;;  %v3435_v11 = vor.u32 %v3776_v1, %v3434_v0  ;;  %2336 = vmatpush.bf16.msra.mxu2 %v3819_v25  ;;  %v3799_v30 = vld [vmem:[%s5407_s1 + $0x28] sm:$0xff]  ;;  %v3778_v31 = vld [vmem:[%s4136_s25 + $0x1c] sm:$0xff] }
  0x1c   : > { %v335_v62 = vsel %vm326_vm0, %v332_v52, %v334_v61  ;;  %v1170_v14 = vrot.slane %v3777_v2, 2  ;;  %v348_v16 = vrot.slane %v4249_v63, 1  ;;  %v360_v17 = vrot.slane %v4256_v3, 1  ;;  %2613 = vmatpush.bf16.msra.mxu3 %v3820_v29  ;;  %1961 = vmatpush.bf16.msra.mxu1 %v3799_v30  ;;  %v3779_v44 = vld [vmem:[%s4136_s25 + $0x24] sm:$0xff]  ;;  %v3928_v45 = vld [vmem:[%s4136_s25 + $0xc] sm:$0x8] }
  0x1d   : > { %v367_v49 = vsel %vm326_vm0, %v364_v28, %v366_v46  ;;  %v1169_v15 = vrot.slane %v3435_v11, 2  ;;  %v336_v22 = vrot.slane %v4261_v18, 1  ;;  %v748_v42 = vunpack.c.l.b16 %v741_v38  ;;  %v3781_v2 = vld [vmem:[%s4136_s25 + $0x34] sm:$0xff] }
  0x1e   : > { %v349_v20 = vsel %vm326_vm0, %v346_v56, %v348_v16  ;;  %v361_v21 = vsel %vm326_vm0, %v358_v57, %v360_v17  ;;  %v363_v37 = vsel %vm326_vm0, %v360_v17, %v362_v27  ;;  %v1174_v27 = vrot.slane %v3779_v44, 2  ;;  %v3780_v57 = vld [vmem:[%s4136_s25 + $0x2c] sm:$0xff] }
  0x1f   : > { %v1171_v19 = vsel %vm752_vm2, %v1169_v15, %v1170_v14  ;;  %v337_v28 = vsel %vm326_vm0, %v334_v61, %v336_v22  ;;  %v339_v40 = vsel %vm326_vm0, %v336_v22, %v338_v10  ;;  %v4033_v61 = vld [vmem:[%s4136_s25 + $0x1c] sm:$0xff]   ;;  %v1178_v11 = vrot.slane %v3781_v2, 2  ;;  %v4035_v15 = vld [vmem:[%s4136_s25 + $0x24] sm:$0xff]  }
  0x25   : > { %3364 = vmatmul.msk.bf16.gmra.mxu1 %vm374_vm1, %v343_v33  ;;  %v3821_v33 = vld [vmem:[%s5407_s1 + $0x40] sm:$0xff] }
  0x26   : > { %3370 = vmatmul.msk.bf16.gmra.mxu2 %vm374_vm1, %v355_v34  ;;  %v1172_v34 = vrot.slane %v3778_v31, 2  ;;  %2890 = vmatpush.bf16.msra.mxu0 %v3821_v33  ;;  %v760_v31 = vrot.slane %v4239_v58, 2  ;;  %v4037_v33 = vld [vmem:[%s4136_s25 + $0x2c] sm:$0xff]  }
  0x27   : > { %3376 = vmatmul.msk.bf16.gmra.mxu3 %vm374_vm1, %v367_v49  ;;  %v1597_v38 = vrot.slane %v4037_v33, 3  ;;  %v3785_v33 = vld [vmem:[%s4136_s25 + $0x54] sm:$0xff] }
  0x28   : > { %v1173_v35 = vsel %vm752_vm2, %v1170_v14, %v1172_v34  ;;  %v1175_v47 = vsel %vm752_vm2, %v1172_v34, %v1174_v27  ;;  %v758_v14 = vrot.slane %v4219_v48, 2 }
  0x2b   : > { %3358 = vmatmul.msk.bf16.gmra.mxu0 %vm374_vm1, %v331_v36  ;;  %v351_v36 = vsel %vm326_vm0, %v348_v16, %v350_v12  ;;  %v750_v12 = vpack.c.b16 %v3825_v13, %v748_v42 }
  0x2d   : > { %v753_v49 = vrot.slane %v750_v12, 2 }
  0x35   : > { %3365 = vmatmul.msk.bf16.gmra.mxu1 %vm374_vm1, %v345_v50  ;;  %v754_v50 = vrot.slane %v4154_v9, 2 }
  0x36   : > { %3371 = vmatmul.msk.bf16.gmra.mxu2 %vm374_vm1, %v357_v51  ;;  %v4031_v51 = vld [vmem:[%s4136_s25 + $0x14] sm:$0xff]  }
  0x37   : > { %3377 = vmatmul.msk.bf16.gmra.mxu3 %vm374_vm1, %v366_v46  ;;  %v4029_v46 = vld [vmem:[%s4136_s25 + $0xc] sm:$0xf0]   ;;  %v755_v10 = vsel %vm752_vm2, %v753_v49, %v754_v50  ;;  %v1591_v56 = vrot.slane %v4031_v51, 3  ;;  %v4039_v49 = vld [vmem:[%s4136_s25 + $0x34] sm:$0xff]  }
  0x38   : > { %v3929_v52 = vor.u32 %v4029_v46, %v3928_v45  ;;  %v3783_v46 = vld [vmem:[%s4136_s25 + $0x44] sm:$0xff] }
  0x3b   : > { %3359 = vmatmul.msk.bf16.gmra.mxu0 %vm374_vm1, %v333_v53  ;;  %v1590_v53 = vrot.slane %v3929_v52, 3 }
  0x3d   : > { %v1592_v13 = vsel %vm1589_vm3, %v1590_v53, %v1591_v56  ;;  %v1599_v53 = vrot.slane %v4039_v49, 3 }
  0x45   : > { %3366 = vmatmul.msk.bf16.gmra.mxu1 %vm374_vm1, %v347_v59  ;;  %v1176_v59 = vrot.slane %v3780_v57, 2  ;;  %v1600_v57 = vsel %vm1589_vm3, %v1597_v38, %v1599_v53 }
  0x46   : > { %3372 = vmatmul.msk.bf16.gmra.mxu2 %vm374_vm1, %v359_v60  ;;  %v756_v60 = vrot.slane %v4192_v32, 2 }
  0x47   : > { %3520 = vmatmul.msk.bf16.vlgmr.msrb.gmra.mxu3 %vm374_vm1, %v1171_v19  ;;  %v1179_v16 = vsel %vm752_vm2, %v1176_v59, %v1178_v11  ;;  %v1595_v19 = vrot.slane %v4035_v15, 3 }
  0x48   : > { %v757_v0 = vsel %vm752_vm2, %v754_v50, %v756_v60 }
  0x49   : > { %v1598_v42 = vsel %vm1589_vm3, %v1595_v19, %v1597_v38  ;;  %v4043_v38 = vld [vmem:[%s4136_s25 + $0x44] sm:$0xff]  }
  0x4a   : > { %v1603_v49 = vrot.slane %v4043_v38, 3 }
  0x4b   : > { %3360 = vmatmul.msk.bf16.gmra.mxu0 %vm374_vm1, %v335_v62  ;;  %v1177_v62 = vsel %vm752_vm2, %v1174_v27, %v1176_v59  ;;  %v1182_v27 = vrot.slane %v3783_v46, 2 }
  0x55   : > { %3367 = vmatmul.msk.bf16.gmra.mxu1 %vm374_vm1, %v349_v20 }
  0x56   : > { %3373 = vmatmul.msk.bf16.gmra.mxu2 %vm374_vm1, %v361_v21 }
  0x57   : > { %3521 = vmatmul.msk.bf16.gmra.mxu3 %vm374_vm1, %v1173_v35 }
  0x5b   : > { %3361 = vmatmul.msk.bf16.gmra.mxu0 %vm374_vm1, %v337_v28  ;;  %v3782_v28 = vld [vmem:[%s4136_s25 + $0x3c] sm:$0xff] }
  0x5c   : > { %v1180_v29 = vrot.slane %v3782_v28, 2 }
  0x5e   : > { %v1183_v50 = vsel %vm752_vm2, %v1180_v29, %v1182_v27 }
  0x65   : > { %3368 = vmatmul.msk.bf16.gmra.mxu1 %vm374_vm1, %v351_v36 }
  0x66   : > { %3374 = vmatmul.msk.bf16.gmra.mxu2 %vm374_vm1, %v363_v37  ;;  %v761_v37 = vsel %vm752_vm2, %v758_v14, %v760_v31 }
  0x67   : > { %3522 = vmatmul.msk.bf16.gmra.mxu3 %vm374_vm1, %v1175_v47 }
  0x6b   : > { %3362 = vmatmul.msk.bf16.gmra.mxu0 %vm374_vm1, %v339_v40 }
  0x75   : > { %3382 = vmatmul.msk.bf16.vlgmr.msrb.gmra.mxu1 %vm374_vm1, %v4151_v8  ;;  %v1593_v8 = vrot.slane %v4033_v61, 3 }
  0x76   : > { %3409 = vmatmul.msk.bf16.vlgmr.msrb.gmra.mxu2 %vm374_vm1, %v755_v10 }
  0x77   : > { %3523 = vmatmul.msk.bf16.gmra.mxu3 %vm374_vm1, %v1177_v62  ;;  %v1594_v1 = vsel %vm1589_vm3, %v1591_v56, %v1593_v8  ;;  %v1596_v21 = vsel %vm1589_vm3, %v1593_v8, %v1595_v19  ;;  %v3784_v62 = vld [vmem:[%s4136_s25 + $0x4c] sm:$0xff] }
  0x7b   : > { %3547 = vmatmul.msk.bf16.vlgmr.msrb.gmra.mxu0 %vm374_vm1, %v1592_v13 }
  0x85   : > { %3383 = vmatmul.msk.bf16.gmra.mxu1 %vm374_vm1, %v4154_v9  ;;  %v759_v9 = vsel %vm752_vm2, %v756_v60, %v758_v14 }
  0x86   : > { %3410 = vmatmul.msk.bf16.gmra.mxu2 %vm374_vm1, %v757_v0  ;;  %v1184_v0 = vrot.slane %v3784_v62, 2 }
  0x87   : > { %3524 = vmatmul.msk.bf16.gmra.mxu3 %vm374_vm1, %v1179_v16 }
  0x88   : > { %v1185_v2 = vsel %vm752_vm2, %v1182_v27, %v1184_v0 }
  0x8b   : > { %3548 = vmatmul.msk.bf16.gmra.mxu0 %vm374_vm1, %v1594_v1  ;;  %v4041_v1 = vld [vmem:[%s4136_s25 + $0x3c] sm:$0xff]  }
  0x8c   : > { %v1601_v16 = vrot.slane %v4041_v1, 3  ;;  %v3786_v1 = vld [vmem:[%s4136_s25 + $0x5c] sm:$0xff] }
  0x92   : > { %v4331_v17 = vpop.f32.mrf.mxu1 }
  0x95   : > { %3384 = vmatmul.msk.bf16.gmra.mxu1 %vm374_vm1, %v4192_v32  ;;  %v1181_v32 = vsel %vm752_vm2, %v1178_v11, %v1180_v29 }
  0x96   : > { %3411 = vmatmul.msk.bf16.gmra.mxu2 %vm374_vm1, %v759_v9 }
  0x97   : > { %3525 = vmatmul.msk.bf16.gmra.mxu3 %vm374_vm1, %v1181_v32  ;;  %v1186_v32 = vrot.slane %v3785_v33, 2 }
  0x98   : > { %v4337_v20 = vpop.f32.mrf.mxu0 }
  0x99   : > { %v4340_v22 = vpop.f32.mrf.mxu2 }
  0x9a   : > { %v4343_v25 = vpop.f32.mrf.mxu1  ;;  %v4356_v36 = vpop.f32.mrf.mxu3 }
  0x9b   : > { %3549 = vmatmul.msk.bf16.gmra.mxu0 %vm374_vm1, %v1596_v21  ;;  %5411 = vst [vmem:[#allocation2_spill] sm:$0xff] %v4356_v36  ;;  %v1602_v21 = vsel %vm1589_vm3, %v1599_v53, %v1601_v16  ;;  %v1604_v53 = vsel %vm1589_vm3, %v1601_v16, %v1603_v49 }
  0xa0   : > { %v4346_v30 = vpop.f32.mrf.mxu0 }
  0xa1   : > { %v4351_v34 = vpop.f32.mrf.mxu2 }
  0xa2   : > { %v4354_v35 = vpop.f32.mrf.mxu1  ;;  %v4370_v45 = vpop.f32.mrf.mxu3 }
  0xa3   : > { %5412 = vst [vmem:[#allocation3_spill] sm:$0xff] %v4370_v45 }
  0xa5   : > { %3385 = vmatmul.msk.bf16.gmra.mxu1 %vm374_vm1, %v4219_v48  ;;  %v762_v48 = vrot.slane %v4261_v18, 2 }
  0xa6   : > { %3412 = vmatmul.msk.bf16.gmra.mxu2 %vm374_vm1, %v761_v37 }
  0xa7   : > { %3526 = vmatmul.msk.bf16.gmra.mxu3 %vm374_vm1, %v1183_v50  ;;  %v763_v10 = vsel %vm752_vm2, %v760_v31, %v762_v48 }
  0xa8   : > { %v4362_v40 = vpop.f32.mrf.mxu0 }
  0xa9   : > { %v4365_v44 = vpop.f32.mrf.mxu2 }
  0xaa   : > { %v4368_v12 = vpop.f32.mrf.mxu1  ;;  %v4384_v56 = vpop.f32.mrf.mxu3 }
  0xab   : > { %3550 = vmatmul.msk.bf16.gmra.mxu0 %vm374_vm1, %v1598_v42  ;;  %5413 = vst [vmem:[#allocation4_spill] sm:$0xff] %v4384_v56  ;;  %v1187_v42 = vsel %vm752_vm2, %v1184_v0, %v1186_v32 }
  0xb0   : > { %v4373_v47 = vpop.f32.mrf.mxu0 }
  0xb1   : > { %v4378_v51 = vpop.f32.mrf.mxu2 }
  0xb2   : > { %v4381_v52 = vpop.f32.mrf.mxu1  ;;  %v4397_v61 = vpop.f32.mrf.mxu3 }
  0xb3   : > { %5414 = vst [vmem:[#allocation5_spill] sm:$0xff] %v4397_v61  ;;  %v4047_v61 = vld [vmem:[%s4136_s25 + $0x54] sm:$0xff]  }
  0xb4   : > { %v1607_v45 = vrot.slane %v4047_v61, 3 }
  0xb5   : > { %3386 = vmatmul.msk.bf16.gmra.mxu1 %vm374_vm1, %v4239_v58  ;;  %v764_v58 = vrot.slane %v4139_v4, 2 }
  0xb6   : > { %3413 = vmatmul.msk.bf16.gmra.mxu2 %vm374_vm1, %v763_v10 }
  0xb7   : > { %3527 = vmatmul.msk.bf16.gmra.mxu3 %vm374_vm1, %v1185_v2  ;;  %v765_v15 = vsel %vm752_vm2, %v762_v48, %v764_v58 }
  0xb8   : > { %v4389_v13 = vpop.f32.mrf.mxu0 }
  0xb9   : > { %v4392_v59 = vpop.f32.mrf.mxu2 }
  0xba   : > { %v4395_v60 = vpop.f32.mrf.mxu1  ;;  %v4411_v9 = vpop.f32.mrf.mxu3 }
  0xbb   : > { %3551 = vmatmul.msk.bf16.gmra.mxu0 %vm374_vm1, %v1600_v57  ;;  %5416 = vst [vmem:[#allocation7_spill] sm:$0xff] %v4411_v9 }
  0xc0   : > { %v4400_v8 = vpop.f32.mrf.mxu0 }
  0xc1   : > { %v4405_v11 = vpop.f32.mrf.mxu2 }
  0xc2   : > { %5415 = vst [vmem:[#allocation6_spill] sm:$0xff] %v4405_v11  ;;  %v4408_v14 = vpop.f32.mrf.mxu1  ;;  %v4424_v31 = vpop.f32.mrf.mxu3  ;;  %v4049_v11 = vld [vmem:[%s4136_s25 + $0x5c] sm:$0xff]  }
  0xc3   : > { %5418 = vst [vmem:[#allocation9_spill] sm:$0xff] %v4424_v31 }
  0xc5   : > { %3387 = vmatmul.msk.bf16.gmra.mxu1 %vm374_vm1, %v4261_v18  ;;  %v766_v18 = vrot.slane %v4142_v5, 2 }
  0xc6   : > { %3414 = vmatmul.msk.bf16.gmra.mxu2 %vm374_vm1, %v765_v15  ;;  %v768_v15 = vrot.slane %v4176_v23, 2 }
  0xc7   : > { %3528 = vmatmul.msk.bf16.gmra.mxu3 %vm374_vm1, %v1187_v42  ;;  %v767_v48 = vsel %vm752_vm2, %v764_v58, %v766_v18  ;;  %v1188_v58 = vrot.slane %v3786_v1, 2 }
  0xc8   : > { %v4416_v19 = vpop.f32.mrf.mxu0  ;;  %v769_v38 = vsel %vm752_vm2, %v766_v18, %v768_v15  ;;  %v3787_v18 = vld [vmem:[%s4136_s25 + $0x64] sm:$0xff] }
  0xc9   : > { %v4419_v28 = vpop.f32.mrf.mxu2 }
  0xca   : > { %5417 = vst [vmem:[#allocation8_spill] sm:$0xff] %v4419_v28  ;;  %v4422_v29 = vpop.f32.mrf.mxu1  ;;  %v1288_v50 = vpop.f32.mrf.mxu3 }
  0xcb   : > { %3552 = vmatmul.msk.bf16.gmra.mxu0 %vm374_vm1, %v1602_v21  ;;  %v1189_v21 = vsel %vm752_vm2, %v1186_v32, %v1188_v58 }
  0xd0   : > { %v4427_v37 = vpop.f32.mrf.mxu0 }
  0xd1   : > { %v4432_v46 = vpop.f32.mrf.mxu2 }
  0xd2   : > { %5419 = vst [vmem:[#allocation10_spill] sm:$0xff] %v4432_v46  ;;  %v4435_v27 = vpop.f32.mrf.mxu1  ;;  %v1290_v0 = vpop.f32.mrf.mxu3 }
  0xd5   : > { %3388 = vmatmul.msk.bf16.gmra.mxu1 %vm374_vm1, %v4139_v4  ;;  %v4045_v4 = vld [vmem:[%s4136_s25 + $0x4c] sm:$0xff]  }
  0xd6   : > { %3415 = vmatmul.msk.bf16.gmra.mxu2 %vm374_vm1, %v767_v48  ;;  %v1605_v42 = vrot.slane %v4045_v4, 3  ;;  %v1190_v4 = vrot.slane %v3787_v18, 2 }
  0xd7   : > { %3529 = vmatmul.msk.bf16.gmra.mxu3 %vm374_vm1, %v1189_v21 }
  0xd8   : > { %v4441_v10 = vpop.f32.mrf.mxu0  ;;  %v1606_v32 = vsel %vm1589_vm3, %v1603_v49, %v1605_v42 }
  0xd9   : > { %v4444_v57 = vpop.f32.mrf.mxu2 }
  0xda   : > { %5420 = vst [vmem:[#allocation11_spill] sm:$0xff] %v4444_v57  ;;  %v4447_v62 = vpop.f32.mrf.mxu1  ;;  %v1293_v48 = vpop.f32.mrf.mxu3  ;;  %v3788_v57 = vld [vmem:[%s4136_s25 + $0x6c] sm:$0xff] }
  0xdb   : > { %3553 = vmatmul.msk.bf16.gmra.mxu0 %vm374_vm1, %v1604_v53  ;;  %v1192_v46 = vrot.slane %v3788_v57, 2 }
  0xe0   : > { %v4450_v2 = vpop.f32.mrf.mxu0 }
  0xe1   : > { %v4455_v33 = vpop.f32.mrf.mxu2 }
  0xe2   : > { %5421 = vst [vmem:[#allocation12_spill] sm:$0xff] %v4455_v33  ;;  %v4458_v16 = vpop.f32.mrf.mxu1  ;;  %v4472_v31 = vpop.f32.mrf.mxu3 }
  0xe5   : > { %3389 = vmatmul.msk.bf16.gmra.mxu1 %vm374_vm1, %v4142_v5  ;;  %v770_v5 = vrot.slane %v4205_v39, 2 }
  0xe6   : > { %3416 = vmatmul.msk.bf16.gmra.mxu2 %vm374_vm1, %v769_v38  ;;  %v1191_v38 = vsel %vm752_vm2, %v1188_v58, %v1190_v4  ;;  %v1608_v58 = vsel %vm1589_vm3, %v1605_v42, %v1607_v45 }
  0xe7   : > { %3530 = vmatmul.msk.bf16.gmra.mxu3 %vm374_vm1, %v1191_v38 }
  0xe8   : > { %v4464_v53 = vpop.f32.mrf.mxu0 }
  0xe9   : > { %v4467_v1 = vpop.f32.mrf.mxu2 }
  0xea   : > { %5422 = vst [vmem:[#allocation13_spill] sm:$0xff] %v4467_v1  ;;  %v4470_v21 = vpop.f32.mrf.mxu1  ;;  %v4484_v36 = vpop.f32.mrf.mxu3 }
  0xeb   : > { %3554 = vmatmul.msk.bf16.gmra.mxu0 %vm374_vm1, %v1606_v32  ;;  %v771_v32 = vsel %vm752_vm2, %v768_v15, %v770_v5 }
  0xf0   : > { %v4475_v9 = vpop.f32.mrf.mxu0 }
  0xf1   : > { %v4480_v56 = vpop.f32.mrf.mxu2 }
  0xf2   : > { %5423 = vst [vmem:[#allocation14_spill] sm:$0xff] %v4480_v56  ;;  %v636_v49 = vpop.f32.mrf.mxu1  ;;  %v4492_v61 = vpop.f32.mrf.mxu3 }
  0xf3   : > { %v637_v56 = vadd.f32 %v636_v49, %v4337_v20  ;;  %v1193_v20 = vsel %vm752_vm2, %v1190_v4, %v1192_v46 }
  0xf5   : > { %3390 = vmatmul.msk.bf16.gmra.mxu1 %vm374_vm1, %v4176_v23 }
  0xf6   : > { %3417 = vmatmul.msk.bf16.gmra.mxu2 %vm374_vm1, %v771_v32  ;;  %v772_v32 = vrot.slane %v4231_v54, 2 }
  0xf7   : > { %3531 = vmatmul.msk.bf16.gmra.mxu3 %vm374_vm1, %v1193_v20  ;;  %v3789_v20 = vld [vmem:[%s4136_s25 + $0x74] sm:$0xff] }
  0xf8   : > { %v1711_v18 = vpop.f32.mrf.mxu0 }
  0xf9   : > { %v872_v1 = vpop.f32.mrf.mxu2 }
  0xfa   : > { %v977_v38 = vadd.f32 %v872_v1, %v637_v56  ;;  %v638_v33 = vpop.f32.mrf.mxu1 }
  0xfb   : > { %3555 = vmatmul.msk.bf16.gmra.mxu0 %vm374_vm1, %v1608_v58  ;;  %v639_v42 = vadd.f32 %v638_v33, %v4346_v30  ;;  %v1609_v58 = vrot.slane %v4049_v11, 3 }
  0xfc   : > { %v1393_v15 = vadd.f32 %v1288_v50, %v977_v38  ;;  %v773_v50 = vsel %vm752_vm2, %v770_v5, %v772_v32 }
  0xfd   : > { %v1610_v4 = vsel %vm1589_vm3, %v1607_v45, %v1609_v58 }
  0xfe   : > { %v4495_v28 = vadd.f32 %v1711_v18, %v1393_v15  ;;  %v4503_v18 = vpop.f32.mrf.mxu3 }
 0x100   : > { %v1713_v23 = vpop.f32.mrf.mxu0 }
 0x101   : > { %v874_v49 = vpop.f32.mrf.mxu2 }
 0x102   : > { %v978_v56 = vadd.f32 %v874_v49, %v639_v42  ;;  %v641_v1 = vpop.f32.mrf.mxu1 }
 0x103   : > { %v642_v38 = vadd.f32 %v641_v1, %v4362_v40 }
 0x104   : > { %v1394_v57 = vadd.f32 %v1290_v0, %v978_v56 }
 0x105   : > { %3391 = vmatmul.msk.bf16.gmra.mxu1 %vm374_vm1, %v4205_v39  ;;  %v1194_v39 = vrot.slane %v3789_v20, 2 }
 0x106   : > { %3418 = vmatmul.msk.bf16.gmra.mxu2 %vm374_vm1, %v773_v50  ;;  %v4508_v30 = vadd.f32 %v1713_v23, %v1394_v57  ;;  %v4513_v42 = vpop.f32.mrf.mxu3  ;;  %v774_v23 = vrot.slane %v4249_v63, 2  ;;  %v4051_v50 = vld [vmem:[%s4136_s25 + $0x64] sm:$0xff]  }
 0x107   : > { %v1195_v40 = vsel %vm752_vm2, %v1192_v46, %v1194_v39 }
 0x108   : > { %v1716_v33 = vpop.f32.mrf.mxu0  ;;  %3532 = vmatmul.msk.bf16.gmra.mxu3 %vm374_vm1, %v1195_v40 }
 0x109   : > { %v877_v15 = vpop.f32.mrf.mxu2 }
 0x10a   : > { %v979_v11 = vadd.f32 %v877_v15, %v642_v38  ;;  %v643_v0 = vpop.f32.mrf.mxu1  ;;  %v1611_v38 = vrot.slane %v4051_v50, 3 }
 0x10b   : > { %3556 = vmatmul.msk.bf16.gmra.mxu0 %vm374_vm1, %v1610_v4  ;;  %v644_v45 = vadd.f32 %v643_v0, %v4373_v47 }
 0x10c   : > { %v1395_v5 = vadd.f32 %v1293_v48, %v979_v11  ;;  %v775_v48 = vsel %vm752_vm2, %v772_v32, %v774_v23  ;;  %v1612_v11 = vsel %vm1589_vm3, %v1609_v58, %v1611_v38 }
 0x10e   : > { %v4516_v49 = vadd.f32 %v1716_v33, %v1395_v5  ;;  %v4525_v15 = vpop.f32.mrf.mxu3 }
 0x110   : > { %v1718_v56 = vpop.f32.mrf.mxu0 }
 0x111   : > { %v879_v1 = vpop.f32.mrf.mxu2 }
 0x112   : > { %v980_v57 = vadd.f32 %v879_v1, %v644_v45  ;;  %v646_v4 = vpop.f32.mrf.mxu1  ;;  %v776_v1 = vrot.slane %v4145_v6, 2 }
 0x113   : > { %v647_v0 = vadd.f32 %v646_v4, %v4389_v13 }
 0x114   : > { %v1396_v33 = vadd.f32 %v4472_v31, %v980_v57  ;;  %v4053_v57 = vld [vmem:[%s4136_s25 + $0x6c] sm:$0xff]  }
 0x115   : > { %3392 = vmatmul.msk.bf16.gmra.mxu1 %vm374_vm1, %v4231_v54  ;;  %v3790_v54 = vld [vmem:[%s4136_s25 + $0x7c] sm:$0xff] }
 0x116   : > { %3419 = vmatmul.msk.bf16.gmra.mxu2 %vm374_vm1, %v775_v48  ;;  %v4530_v47 = vadd.f32 %v1718_v56, %v1396_v33  ;;  %v4536_v50 = vpop.f32.mrf.mxu3  ;;  %v1196_v45 = vrot.slane %v3790_v54, 2 }
 0x118   : > { %v1721_v46 = vpop.f32.mrf.mxu0  ;;  %v1197_v13 = vsel %vm752_vm2, %v1194_v39, %v1196_v45 }
 0x119   : > { %v882_v32 = vpop.f32.mrf.mxu2  ;;  %3533 = vmatmul.msk.bf16.gmra.mxu3 %vm374_vm1, %v1197_v13  ;;  %v778_v13 = vrot.slane %v4148_v7, 2 }
 0x11a   : > { %v981_v5 = vadd.f32 %v882_v32, %v647_v0  ;;  %v648_v31 = vpop.f32.mrf.mxu1 }
 0x11b   : > { %3557 = vmatmul.msk.bf16.gmra.mxu0 %vm374_vm1, %v1612_v11  ;;  %v649_v58 = vadd.f32 %v648_v31, %v4400_v8  ;;  %v1613_v11 = vrot.slane %v4053_v57, 3 }
 0x11c   : > { %v1397_v20 = vadd.f32 %v4484_v36, %v981_v5  ;;  %v777_v36 = vsel %vm752_vm2, %v774_v23, %v776_v1 }
 0x11d   : > { %v1614_v32 = vsel %vm1589_vm3, %v1611_v38, %v1613_v11 }
 0x11e   : > { %v4539_v40 = vadd.f32 %v1721_v46, %v1397_v20  ;;  %v4548_v0 = vpop.f32.mrf.mxu3 }
 0x120   : > { %v1723_v56 = vpop.f32.mrf.mxu0 }
 0x121   : > { %v884_v4 = vpop.f32.mrf.mxu2 }
 0x122   : > { %v982_v48 = vadd.f32 %v884_v4, %v649_v58  ;;  %v651_v33 = vpop.f32.mrf.mxu1  ;;  %v4055_v4 = vld [vmem:[%s4136_s25 + $0x74] sm:$0xff]  }
 0x123   : > { %v652_v5 = vadd.f32 %v651_v33, %v4416_v19 }
 0x124   : > { %v1398_v46 = vadd.f32 %v4492_v61, %v982_v48 }
 0x125   : > { %3393 = vmatmul.msk.bf16.gmra.mxu1 %vm374_vm1, %v4249_v63  ;;  %v3791_v63 = vld [vmem:[%s4136_s25 + $0x84] sm:$0xff] }
 0x126   : > { %3420 = vmatmul.msk.bf16.gmra.mxu2 %vm374_vm1, %v777_v36  ;;  %v4553_v8 = vadd.f32 %v1723_v56, %v1398_v46  ;;  %v4559_v54 = vpop.f32.mrf.mxu3  ;;  %v1198_v57 = vrot.slane %v3791_v63, 2  ;;  %v1615_v46 = vrot.slane %v4055_v4, 3 }
 0x128   : > { %v1726_v39 = vpop.f32.mrf.mxu0  ;;  %v1199_v19 = vsel %vm752_vm2, %v1196_v45, %v1198_v57 }
 0x129   : > { %v887_v23 = vpop.f32.mrf.mxu2  ;;  %3534 = vmatmul.msk.bf16.gmra.mxu3 %vm374_vm1, %v1199_v19  ;;  %v4057_v19 = vld [vmem:[%s4136_s25 + $0x7c] sm:$0xff]  }
 0x12a   : > { %v983_v31 = vadd.f32 %v887_v23, %v652_v5  ;;  %v653_v61 = vpop.f32.mrf.mxu1  ;;  %v1616_v5 = vsel %vm1589_vm3, %v1613_v11, %v1615_v46 }
 0x12b   : > { %3558 = vmatmul.msk.bf16.gmra.mxu0 %vm374_vm1, %v1614_v32  ;;  %v654_v38 = vadd.f32 %v653_v61, %v4427_v37 }
 0x12c   : > { %v1399_v20 = vadd.f32 %v4503_v18, %v983_v31  ;;  %v779_v18 = vsel %vm752_vm2, %v776_v1, %v778_v13 }
 0x12e   : > { %v4562_v58 = vadd.f32 %v1726_v39, %v1399_v20  ;;  %v4571_v32 = vpop.f32.mrf.mxu3 }
 0x130   : > { %v1728_v56 = vpop.f32.mrf.mxu0 }
 0x131   : > { %v889_v48 = vpop.f32.mrf.mxu2 }
 0x132   : > { %v984_v33 = vadd.f32 %v889_v48, %v654_v38  ;;  %v656_v36 = vpop.f32.mrf.mxu1  ;;  %v780_v38 = vrot.slane %v4183_v26, 2 }
 0x133   : > { %v657_v23 = vadd.f32 %v656_v36, %v4441_v10 }
 0x134   : > { %v1400_v39 = vadd.f32 %v4513_v42, %v984_v33 }
 0x135   : > { %3394 = vmatmul.msk.bf16.gmra.mxu1 %vm374_vm1, %v4145_v6  ;;  %v3792_v6 = vld [vmem:[%s4136_s25 + $0x8c] sm:$0xff] }
 0x136   : > { %3421 = vmatmul.msk.bf16.gmra.mxu2 %vm374_vm1, %v779_v18  ;;  %v4576_v37 = vadd.f32 %v1728_v56, %v1400_v39  ;;  %v4582_v20 = vpop.f32.mrf.mxu3  ;;  %v1200_v63 = vrot.slane %v3792_v6, 2  ;;  %v1617_v18 = vrot.slane %v4057_v19, 3  ;;  %v782_v19 = vrot.slane %v4213_v43, 2 }
 0x138   : > { %v1731_v45 = vpop.f32.mrf.mxu0  ;;  %v1201_v10 = vsel %vm752_vm2, %v1198_v57, %v1200_v63 }
 0x139   : > { %v892_v1 = vpop.f32.mrf.mxu2  ;;  %3535 = vmatmul.msk.bf16.gmra.mxu3 %vm374_vm1, %v1201_v10 }
 0x13a   : > { %v985_v31 = vadd.f32 %v892_v1, %v657_v23  ;;  %v658_v42 = vpop.f32.mrf.mxu1 }
 0x13b   : > { %3559 = vmatmul.msk.bf16.gmra.mxu0 %vm374_vm1, %v1616_v5  ;;  %v659_v11 = vadd.f32 %v658_v42, %v4450_v2  ;;  %v1618_v5 = vsel %vm1589_vm3, %v1615_v46, %v1617_v18 }
 0x13c   : > { %v1401_v61 = vadd.f32 %v4525_v15, %v985_v31  ;;  %v781_v15 = vsel %vm752_vm2, %v778_v13, %v780_v38 }
 0x13e   : > { %v4585_v4 = vadd.f32 %v1731_v45, %v1401_v61  ;;  %v4594_v45 = vpop.f32.mrf.mxu3 }
 0x140   : > { %v1733_v56 = vpop.f32.mrf.mxu0 }
 0x141   : > { %v894_v48 = vpop.f32.mrf.mxu2 }
 0x142   : > { %v986_v33 = vadd.f32 %v894_v48, %v659_v11  ;;  %v661_v36 = vpop.f32.mrf.mxu1  ;;  %v4059_v11 = vld [vmem:[%s4136_s25 + $0x84] sm:$0xff]  }
 0x143   : > { %v662_v23 = vadd.f32 %v661_v36, %v4464_v53  ;;  %v1619_v36 = vrot.slane %v4059_v11, 3  ;;  %v4061_v11 = vld [vmem:[%s4136_s25 + $0x8c] sm:$0xff]  }
 0x144   : > { %v1402_v39 = vadd.f32 %v4536_v50, %v986_v33 }
 0x145   : > { %3395 = vmatmul.msk.bf16.gmra.mxu1 %vm374_vm1, %v4148_v7  ;;  %v3793_v7 = vld [vmem:[%s4136_s25 + $0x94] sm:$0xff] }
 0x146   : > { %3422 = vmatmul.msk.bf16.gmra.mxu2 %vm374_vm1, %v781_v15  ;;  %v4599_v2 = vadd.f32 %v1733_v56, %v1402_v39  ;;  %v4605_v42 = vpop.f32.mrf.mxu3  ;;  %v1202_v61 = vrot.slane %v3793_v7, 2 }
 0x148   : > { %v1736_v57 = vpop.f32.mrf.mxu0  ;;  %v1203_v53 = vsel %vm752_vm2, %v1200_v63, %v1202_v61 }
 0x149   : > { %v897_v13 = vpop.f32.mrf.mxu2  ;;  %3536 = vmatmul.msk.bf16.gmra.mxu3 %vm374_vm1, %v1203_v53 }
 0x14a   : > { %v987_v1 = vadd.f32 %v897_v13, %v662_v23  ;;  %v663_v50 = vpop.f32.mrf.mxu1 }
 0x14b   : > { %3560 = vmatmul.msk.bf16.gmra.mxu0 %vm374_vm1, %v1618_v5  ;;  %v664_v46 = vadd.f32 %v663_v50, %v4475_v9 }
 0x14c   : > { %v1403_v31 = vadd.f32 %v4548_v0, %v987_v1  ;;  %v783_v0 = vsel %vm752_vm2, %v780_v38, %v782_v19 }
 0x14e   : > { %v4608_v6 = vadd.f32 %v1736_v57, %v1403_v31  ;;  %v4617_v39 = vpop.f32.mrf.mxu3  ;;  %v1620_v57 = vsel %vm1589_vm3, %v1617_v18, %v1619_v36 }
 0x150   : > { %v1738_v56 = vpop.f32.mrf.mxu0 }
 0x151   : > { %v899_v10 = vpop.f32.mrf.mxu2 }
 0x152   : > { %v988_v48 = vadd.f32 %v899_v10, %v664_v46  ;;  %v666_v33 = vpop.f32.mrf.mxu1 }
 0x153   : > { %v667_v5 = vadd.f32 %v666_v33, %v4331_v17 }
 0x154   : > { %v1404_v15 = vadd.f32 %v4559_v54, %v988_v48  ;;  %v1621_v48 = vrot.slane %v4061_v11, 3 }
 0x155   : > { %3396 = vmatmul.msk.bf16.gmra.mxu1 %vm374_vm1, %v4183_v26  ;;  %v3794_v26 = vld [vmem:[%s4136_s25 + $0x9c] sm:$0xff] }
 0x156   : > { %3423 = vmatmul.msk.bf16.gmra.mxu2 %vm374_vm1, %v783_v0  ;;  %v4622_v9 = vadd.f32 %v1738_v56, %v1404_v15  ;;  %v4628_v1 = vpop.f32.mrf.mxu3  ;;  %v1204_v50 = vrot.slane %v3794_v26, 2  ;;  %v784_v56 = vrot.slane %v4234_v55, 2  ;;  %v1622_v15 = vsel %vm1589_vm3, %v1619_v36, %v1621_v48 }
 0x157   : > { %v786_v26 = vrot.slane %v4256_v3, 2 }
 0x158   : > { %v1741_v63 = vpop.f32.mrf.mxu0  ;;  %v1205_v17 = vsel %vm752_vm2, %v1202_v61, %v1204_v50 }
 0x159   : > { %v902_v38 = vpop.f32.mrf.mxu2  ;;  %3537 = vmatmul.msk.bf16.gmra.mxu3 %vm374_vm1, %v1205_v17 }
 0x15a   : > { %v989_v23 = vadd.f32 %v902_v38, %v667_v5  ;;  %v668_v54 = vpop.f32.mrf.mxu1 }
 0x15b   : > { %3561 = vmatmul.msk.bf16.gmra.mxu0 %vm374_vm1, %v1620_v57  ;;  %v669_v18 = vadd.f32 %v668_v54, %v4343_v25 }
 0x15c   : > { %v1405_v13 = vadd.f32 %v4571_v32, %v989_v23  ;;  %v785_v32 = vsel %vm752_vm2, %v782_v19, %v784_v56 }
 0x15e   : > { %v4631_v31 = vadd.f32 %v1741_v63, %v1405_v13  ;;  %v4640_v0 = vpop.f32.mrf.mxu3 }
 0x160   : > { %v1743_v7 = vpop.f32.mrf.mxu0 }
 0x161   : > { %v904_v46 = vpop.f32.mrf.mxu2 }
 0x162   : > { %v990_v53 = vadd.f32 %v904_v46, %v669_v18  ;;  %v671_v10 = vpop.f32.mrf.mxu1 }
 0x163   : > { %v672_v63 = vadd.f32 %v671_v10, %v4354_v35 }
 0x164   : > { %v1406_v33 = vadd.f32 %v4582_v20, %v990_v53 }
 0x165   : > { %3397 = vmatmul.msk.bf16.gmra.mxu1 %vm374_vm1, %v4213_v43  ;;  %v3795_v43 = vld [vmem:[%s4136_s25 + $0xa4] sm:$0xff] }
 0x166   : > { %3424 = vmatmul.msk.bf16.gmra.mxu2 %vm374_vm1, %v785_v32  ;;  %v4645_v25 = vadd.f32 %v1743_v7, %v1406_v33  ;;  %v4651_v38 = vpop.f32.mrf.mxu3  ;;  %v1206_v23 = vrot.slane %v3795_v43, 2  ;;  %v4063_v7 = vld [vmem:[%s4136_s25 + $0x94] sm:$0xff]   ;;  %v4065_v43 = vld [vmem:[%s4136_s25 + $0x9c] sm:$0xff]  }
 0x167   : > { %v1623_v46 = vrot.slane %v4063_v7, 3 }
 0x168   : > { %v1746_v61 = vpop.f32.mrf.mxu0  ;;  %v1207_v35 = vsel %vm752_vm2, %v1204_v50, %v1206_v23 }
 0x169   : > { %v907_v19 = vpop.f32.mrf.mxu2  ;;  %3538 = vmatmul.msk.bf16.gmra.mxu3 %vm374_vm1, %v1207_v35  ;;  %v1624_v32 = vsel %vm1589_vm3, %v1621_v48, %v1623_v46  ;;  %v1625_v35 = vrot.slane %v4065_v43, 3  ;;  %v742_v43 = vld [vmem:[%s4136_s25 + $0xa4] sm:$0xf] }
 0x16a   : > { %v991_v57 = vadd.f32 %v907_v19, %v672_v63  ;;  %v673_v20 = vpop.f32.mrf.mxu1 }
 0x16b   : > { %3562 = vmatmul.msk.bf16.gmra.mxu0 %vm374_vm1, %v1622_v15  ;;  %v674_v36 = vadd.f32 %v673_v20, %v4368_v12 }
 0x16c   : > { %v1407_v5 = vadd.f32 %v4594_v45, %v991_v57  ;;  %v787_v45 = vsel %vm752_vm2, %v784_v56, %v786_v26 }
 0x16e   : > { %v4654_v54 = vadd.f32 %v1746_v61, %v1407_v5  ;;  %v4663_v10 = vpop.f32.mrf.mxu3  ;;  %v788_v5 = vrot.slane %v4179_v24, 2 }
 0x170   : > { %v1748_v13 = vpop.f32.mrf.mxu0 }
 0x171   : > { %v909_v11 = vpop.f32.mrf.mxu2 }
 0x172   : > { %v992_v18 = vadd.f32 %v909_v11, %v674_v36  ;;  %v676_v17 = vpop.f32.mrf.mxu1 }
 0x173   : > { %v677_v33 = vadd.f32 %v676_v17, %v4381_v52 }
 0x174   : > { %v1408_v53 = vadd.f32 %v4605_v42, %v992_v18 }
 0x175   : > { %3398 = vmatmul.msk.bf16.gmra.mxu1 %vm374_vm1, %v4234_v55  ;;  %v3796_v55 = vld [vmem:[%s4136_s25 + $0xac] sm:$0xff] }
 0x176   : > { %3425 = vmatmul.msk.bf16.gmra.mxu2 %vm374_vm1, %v787_v45  ;;  %v4668_v12 = vadd.f32 %v1748_v13, %v1408_v53  ;;  %v4674_v63 = vpop.f32.mrf.mxu3  ;;  %v1208_v19 = vrot.slane %v3796_v55, 2 }
 0x178   : > { %v1751_v50 = vpop.f32.mrf.mxu0  ;;  %v1209_v52 = vsel %vm752_vm2, %v1206_v23, %v1208_v19  ;;  %v1626_v23 = vsel %vm1589_vm3, %v1623_v46, %v1625_v35 }
 0x179   : > { %v912_v56 = vpop.f32.mrf.mxu2  ;;  %3539 = vmatmul.msk.bf16.gmra.mxu3 %vm374_vm1, %v1209_v52  ;;  %v4079_v52 = vld [vmem:[%s4136_s25 + $0x90] sm:$0xff] }
 0x17a   : > { %v993_v61 = vadd.f32 %v912_v56, %v677_v33  ;;  %v678_v42 = vpop.f32.mrf.mxu1  ;;  %v4078_v33 = vld [vmem:[%s4136_s25 + $0x98] sm:$0xff] }
 0x17b   : > { %3563 = vmatmul.msk.bf16.gmra.mxu0 %vm374_vm1, %v1624_v32  ;;  %v679_v48 = vadd.f32 %v678_v42, %v4395_v60  ;;  %v790_v56 = vrot.slane %v4078_v33, 2 }
 0x17c   : > { %v1409_v15 = vadd.f32 %v4617_v39, %v993_v61  ;;  %v789_v39 = vsel %vm752_vm2, %v786_v26, %v788_v5  ;;  %v4066_v61 = vld [vmem:[%s4136_s25 + $0xa4] sm:$0xff]  }
 0x17d   : > { %v1627_v55 = vrot.slane %v4066_v61, 3  ;;  %v4733_v61 = vld [vmem:[%s4136_s25 + $0x24] sm:$0xff] }
 0x17e   : > { %v4677_v57 = vadd.f32 %v1751_v50, %v1409_v15  ;;  %v4686_v18 = vpop.f32.mrf.mxu3 }
 0x180   : > { %v1753_v20 = vpop.f32.mrf.mxu0 }
 0x181   : > { %v914_v13 = vpop.f32.mrf.mxu2 }
 0x182   : > { %v994_v7 = vadd.f32 %v914_v13, %v679_v48  ;;  %v681_v36 = vpop.f32.mrf.mxu1  ;;  %v1628_v13 = vsel %vm1589_vm3, %v1625_v35, %v1627_v55 }
 0x183   : > { %v682_v17 = vadd.f32 %v681_v36, %v4408_v14  ;;  %v3925_v36 = vld [vmem:[%s4136_s25 + $0xa8] sm:$0xff]  }
 0x184   : > { %v1410_v11 = vadd.f32 %v4628_v1, %v994_v7  ;;  %v749_v7 = vunpack.c.l.b16 %v742_v43 }
 0x185   : > { %3399 = vmatmul.msk.bf16.gmra.mxu1 %vm374_vm1, %v4256_v3 }
 0x186   : > { %3426 = vmatmul.msk.bf16.gmra.mxu2 %vm374_vm1, %v789_v39  ;;  %v4691_v24 = vadd.f32 %v1753_v20, %v1410_v11  ;;  %v4697_v50 = vpop.f32.mrf.mxu3  ;;  %v4719_v39 = vld [vmem:[%s4136_s25 + $0xb0] sm:$0xf]  ;;  %v4722_v11 = vld [vmem:[%s4136_s25 + $0x1c] sm:$0xff]   ;;  %v751_v35 = vpack.c.b16 %v749_v7, %v4210_v41 }
 0x188   : > { %v1756_v60 = vpop.f32.mrf.mxu0 }
 0x189   : > { %v917_v26 = vpop.f32.mrf.mxu2  ;;  %3540 = vmatmul.msk.bf16.gmra.mxu3 %vm374_vm1, %v1208_v19 }
 0x18a   : > { %v995_v1 = vadd.f32 %v917_v26, %v682_v17  ;;  %v683_v45 = vpop.f32.mrf.mxu1  ;;  %v2198_v26 = vunpack.c.h.b16 %v4722_v11 }
 0x18b   : > { %3564 = vmatmul.msk.bf16.gmra.mxu0 %vm374_vm1, %v1626_v23  ;;  %v684_v46 = vadd.f32 %v683_v45, %v4422_v29  ;;  %v3905_v45 = vunpack.c.h.b16 %v3925_v36 }
 0x18c   : > { %v1411_v53 = vadd.f32 %v4640_v0, %v995_v1  ;;  %v791_v0 = vsel %vm752_vm2, %v788_v5, %v790_v56 }
 0x18e   : > { %v4699_v3 = vadd.f32 %v1756_v60, %v1411_v53  ;;  %v4708_v48 = vpop.f32.mrf.mxu3  ;;  %v2485_v60 = vld [vmem:[%s4136_s25 + $0x1c] sm:$0xe] }
 0x18f   : > { %v2492_v1 = vunpack.c.l.b16 %v2485_v60 }
 0x190   : > { %v1758_v32 = vpop.f32.mrf.mxu0 }
 0x191   : > { %v919_v14 = vpop.f32.mrf.mxu2 }
 0x192   : > { %v996_v42 = vadd.f32 %v919_v14, %v684_v46  ;;  %v686_v15 = vpop.f32.mrf.mxu1  ;;  %v2494_v46 = vpack.c.b16 %v2198_v26, %v2492_v1 }
 0x193   : > { %v687_v5 = vadd.f32 %v686_v15, %v4435_v27  ;;  %v5410_v27 = vunpack.c.l.b16 %v4719_v39 }
 0x194   : > { %v1412_v20 = vadd.f32 %v4651_v38, %v996_v42  ;;  %v2496_v14 = vrot.slane %v2494_v46, 1  ;;  %v2497_v42 = vrot.slane %v4733_v61, 1 }
 0x195   : > { %3400 = vmatmul.msk.bf16.gmra.mxu1 %vm374_vm1, %v4079_v52  ;;  %v1587_v43 = vpack.c.b16 %v5410_v27, %v3905_v45 }
 0x196   : > { %3427 = vmatmul.msk.bf16.gmra.mxu2 %vm374_vm1, %v791_v0  ;;  %v4713_v29 = vadd.f32 %v1758_v32, %v1412_v20  ;;  %v4730_v32 = vpop.f32.mrf.mxu3  ;;  %v792_v20 = vrot.slane %v751_v35, 2  ;;  %v1477_v35 = vld [vmem:[%s4136_s25 + $0xb4] sm:$0x1] }
 0x197   : > { %v1566_v46 = vunpack.c.l.b16 %v1477_v35 }
 0x198   : > { %v1761_v19 = vpop.f32.mrf.mxu0  ;;  %v793_v36 = vsel %vm752_vm2, %v790_v56, %v792_v20 }
 0x199   : > { %v922_v38 = vpop.f32.mrf.mxu2 }
 0x19a   : > { %v997_v23 = vadd.f32 %v922_v38, %v687_v5  ;;  %v688_v17 = vpop.f32.mrf.mxu1 }
 0x19b   : > { %3565 = vmatmul.msk.bf16.gmra.mxu0 %vm374_vm1, %v1628_v13  ;;  %v689_v52 = vadd.f32 %v688_v17, %v4447_v62 }
 0x19c   : > { %v1413_v53 = vadd.f32 %v4663_v10, %v997_v23  ;;  %v2498_v10 = vsel %vm326_vm0, %v2496_v14, %v2497_v42 }
 0x19d   : > { %3704 = vmatmul.msk.bf16.vlgmr.msra.gmra.mxu3 %vm374_vm1, %v2498_v10  ;;  %v1588_v10 = vpack.c.b16 %v1566_v46, %v1566_v46 }
 0x19e   : > { %v4738_v15 = vadd.f32 %v1761_v19, %v1413_v53  ;;  %v1629_v19 = vrot.slane %v1587_v43, 3  ;;  %v4747_v60 = vpop.f32.mrf.mxu3  ;;  %v213_v53 = vld [vmem:[%s4136_s25 + $0xa4] sm:$0x3]  ;;  %v4762_v43 = vld [vmem:[%s4136_s25 + $0x2c] sm:$0xff] }
 0x1a0   : > { %v1763_v0 = vpop.f32.mrf.mxu0  ;;  %v1630_v17 = vsel %vm1589_vm3, %v1627_v55, %v1629_v19 }
 0x1a1   : > { %v924_v13 = vpop.f32.mrf.mxu2 }
 0x1a2   : > { %v998_v7 = vadd.f32 %v924_v13, %v689_v52  ;;  %v691_v5 = vpop.f32.mrf.mxu1  ;;  %v2499_v52 = vrot.slane %v4762_v43, 1 }
 0x1a3   : > { %v692_v1 = vadd.f32 %v691_v5, %v4458_v16 }
 0x1a4   : > { %v1414_v38 = vadd.f32 %v4674_v63, %v998_v7  ;;  %v2500_v7 = vsel %vm326_vm0, %v2497_v42, %v2499_v52 }
 0x1a5   : > { %3401 = vmatmul.msk.bf16.gmra.mxu1 %vm374_vm1, %v4078_v33 }
 0x1a6   : > { %3428 = vmatmul.msk.bf16.gmra.mxu2 %vm374_vm1, %v793_v36  ;;  %v4751_v62 = vadd.f32 %v1763_v0, %v1414_v38  ;;  %v4759_v33 = vpop.f32.mrf.mxu3  ;;  %v555_v0 = vunpack.c.l.b16 %v213_v53 }
 0x1a8   : > { %v1766_v23 = vpop.f32.mrf.mxu0  ;;  %v557_v36 = vpack.c.b16 %v555_v0, %v4210_v41 }
 0x1a9   : > { %v927_v45 = vpop.f32.mrf.mxu2 }
 0x1aa   : > { %v999_v56 = vadd.f32 %v927_v45, %v692_v1  ;;  %v693_v63 = vpop.f32.mrf.mxu1  ;;  %v2762_v45 = vld [vmem:[%s4136_s25 + $0x1c] sm:$0xc] }
 0x1ab   : > { %3566 = vmatmul.msk.bf16.gmra.mxu0 %vm374_vm1, %v1630_v17  ;;  %v694_v13 = vadd.f32 %v693_v63, %v4470_v21  ;;  %v1631_v17 = vrot.slane %v1588_v10, 3  ;;  %v2769_v53 = vunpack.c.l.b16 %v2762_v45 }
 0x1ac   : > { %v1415_v14 = vadd.f32 %v4686_v18, %v999_v56 }
 0x1ad   : > { %3705 = vmatmul.msk.bf16.gmra.mxu3 %vm374_vm1, %v2500_v7  ;;  %v1632_v35 = vsel %vm1589_vm3, %v1629_v19, %v1631_v17 }
 0x1ae   : > { %v4765_v55 = vadd.f32 %v1766_v23, %v1415_v14  ;;  %v4772_v23 = vpop.f32.mrf.mxu3 }
 0x1b0   : > { %v1768_v16 = vpop.f32.mrf.mxu0 }
 0x1b1   : > { %v929_v5 = vpop.f32.mrf.mxu2 }
 0x1b2   : > { %v1000_v18 = vadd.f32 %v929_v5, %v694_v13  ;;  %v696_v38 = vpop.f32.mrf.mxu1 }
 0x1b3   : > { %v697_v41 = vadd.f32 %v696_v38, %v4340_v22  ;;  %v2771_v22 = vpack.c.b16 %v2198_v26, %v2769_v53  ;;  %v2774_v38 = vrot.slane %v4733_v61, 2 }
 0x1b4   : > { %v1416_v1 = vadd.f32 %v4697_v50, %v1000_v18 }
 0x1b5   : > { %3402 = vmatmul.msk.bf16.gmra.mxu1 %vm374_vm1, %v557_v36  ;;  %v3906_v36 = vld [vmem:[%s4136_s25 + $0x10] sm:$0xff]   ;;  %v2773_v18 = vrot.slane %v2771_v22, 2 }
 0x1b6   : > { %3429 = vmatmul.msk.bf16.gmra.mxu2 %vm374_vm1, %v792_v20  ;;  %v4776_v21 = vadd.f32 %v1768_v16, %v1416_v1  ;;  %v4783_v14 = vpop.f32.mrf.mxu3  ;;  %v4786_v20 = vld [vmem:[%s4136_s25 + $0x34] sm:$0xff] }
 0x1b7   : > { %v2501_v0 = vrot.slane %v4786_v20, 1 }
 0x1b8   : > { %v1771_v42 = vpop.f32.mrf.mxu0 }
 0x1b9   : > { %v932_v56 = vpop.f32.mrf.mxu2  ;;  %v2502_v13 = vsel %vm326_vm0, %v2499_v52, %v2501_v0  ;;  %v2775_v52 = vsel %vm752_vm2, %v2773_v18, %v2774_v38 }
 0x1ba   : > { %v1001_v63 = vadd.f32 %v932_v56, %v697_v41  ;;  %v698_v50 = vpop.f32.mrf.mxu1 }
 0x1bb   : > { %3567 = vmatmul.msk.bf16.gmra.mxu0 %vm374_vm1, %v1632_v35  ;;  %v699_v10 = vadd.f32 %v698_v50, %v4351_v34 }
 0x1bc   : > { %v1417_v46 = vadd.f32 %v4708_v48, %v1001_v63  ;;  %v4813_v63 = vld [vmem:[%s4136_s25 + $0x3c] sm:$0xff] }
 0x1bd   : > { %3706 = vmatmul.msk.bf16.gmra.mxu3 %vm374_vm1, %v2502_v13  ;;  %v3907_v13 = vld [vmem:[%s4136_s25 + $0x18] sm:$0xff]  }
 0x1be   : > { %v4789_v16 = vadd.f32 %v1771_v42, %v1417_v46  ;;  %v4799_v1 = vpop.f32.mrf.mxu3 }
 0x1c0   : > { %v1773_v19 = vpop.f32.mrf.mxu0 }
 0x1c1   : > { %v934_v7 = vpop.f32.mrf.mxu2 }
 0x1c2   : > { %v1002_v48 = vadd.f32 %v934_v7, %v699_v10  ;;  %v701_v5 = vpop.f32.mrf.mxu1 }
 0x1c3   : > { %v702_v42 = vadd.f32 %v701_v5, %v4365_v44 }
 0x1c4   : > { %v1418_v17 = vadd.f32 %v4730_v32, %v1002_v48 }
 0x1c5   : > { %3574 = vmatmul.msk.bf16.vlgmr.msra.gmra.mxu1 %vm374_vm1, %v3906_v36 }
 0x1c6   : > { %3677 = vmatmul.msk.bf16.vlgmr.msra.gmra.mxu2 %vm374_vm1, %v4722_v11  ;;  %v4804_v34 = vadd.f32 %v1773_v19, %v1418_v17  ;;  %v4810_v56 = vpop.f32.mrf.mxu3  ;;  %v2503_v11 = vrot.slane %v4813_v63, 1 }
 0x1c8   : > { %v1776_v26 = vpop.f32.mrf.mxu0  ;;  %v2504_v44 = vsel %vm326_vm0, %v2501_v0, %v2503_v11 }
 0x1c9   : > { %v937_v35 = vpop.f32.mrf.mxu2 }
 0x1ca   : > { %v1003_v41 = vadd.f32 %v937_v35, %v702_v42  ;;  %v703_v32 = vpop.f32.mrf.mxu1  ;;  %v4838_v42 = vld [vmem:[%s4136_s25 + $0x44] sm:$0xff] }
 0x1cb   : > { %3731 = vmatmul.msk.bf16.vlgmr.msra.gmra.mxu0 %vm374_vm1, %v2775_v52  ;;  %v704_v46 = vadd.f32 %v703_v32, %v4378_v51 }
 0x1cc   : > { %v1419_v45 = vadd.f32 %v4747_v60, %v1003_v41  ;;  %v2776_v60 = vrot.slane %v4762_v43, 2 }
 0x1cd   : > { %3707 = vmatmul.msk.bf16.gmra.mxu3 %vm374_vm1, %v2504_v44  ;;  %v3908_v44 = vld [vmem:[%s4136_s25 + $0x20] sm:$0xff]  }
 0x1ce   : > { %v4816_v50 = vadd.f32 %v1776_v26, %v1419_v45  ;;  %v4824_v48 = vpop.f32.mrf.mxu3  ;;  %v2777_v5 = vsel %vm752_vm2, %v2774_v38, %v2776_v60  ;;  %v5424_v38 = vld [vmem:[#allocation6_spill] sm:$0xff] }
 0x1d0   : > { %v1778_v53 = vpop.f32.mrf.mxu0 }
 0x1d1   : > { %v939_v19 = vpop.f32.mrf.mxu2 }
 0x1d2   : > { %v1004_v22 = vadd.f32 %v939_v19, %v704_v46  ;;  %v706_v10 = vpop.f32.mrf.mxu1 }
 0x1d3   : > { %v707_v36 = vadd.f32 %v706_v10, %v4392_v59 }
 0x1d4   : > { %v1420_v7 = vadd.f32 %v4759_v33, %v1004_v22 }
 0x1d5   : > { %3575 = vmatmul.msk.bf16.gmra.mxu1 %vm374_vm1, %v3907_v13 }
 0x1d6   : > { %3678 = vmatmul.msk.bf16.gmra.mxu2 %vm374_vm1, %v4733_v61  ;;  %v4829_v51 = vadd.f32 %v1778_v53, %v1420_v7  ;;  %v4835_v52 = vpop.f32.mrf.mxu3  ;;  %v2505_v61 = vrot.slane %v4838_v42, 1  ;;  %v5425_v7 = vld [vmem:[#allocation8_spill] sm:$0xff] }
 0x1d8   : > { %v1781_v0 = vpop.f32.mrf.mxu0  ;;  %v2506_v59 = vsel %vm326_vm0, %v2503_v11, %v2505_v61 }
 0x1d9   : > { %v942_v18 = vpop.f32.mrf.mxu2 }
 0x1da   : > { %v1005_v17 = vadd.f32 %v942_v18, %v707_v36  ;;  %v708_v33 = vpop.f32.mrf.mxu1 }
 0x1db   : > { %3732 = vmatmul.msk.bf16.gmra.mxu0 %vm374_vm1, %v2777_v5  ;;  %v709_v32 = vadd.f32 %v708_v33, %v5424_v38  ;;  %v4863_v33 = vld [vmem:[%s4136_s25 + $0x4c] sm:$0xff] }
 0x1dc   : > { %v1421_v26 = vadd.f32 %v4772_v23, %v1005_v17  ;;  %v2778_v23 = vrot.slane %v4786_v20, 2 }
 0x1dd   : > { %3708 = vmatmul.msk.bf16.gmra.mxu3 %vm374_vm1, %v2506_v59 }
 0x1de   : > { %v4841_v35 = vadd.f32 %v1781_v0, %v1421_v26  ;;  %v4849_v22 = vpop.f32.mrf.mxu3  ;;  %v2779_v13 = vsel %vm752_vm2, %v2776_v60, %v2778_v23  ;;  %v5426_v60 = vld [vmem:[#allocation10_spill] sm:$0xff] }
 0x1e0   : > { %v1783_v41 = vpop.f32.mrf.mxu0 }
 0x1e1   : > { %v944_v45 = vpop.f32.mrf.mxu2 }
 0x1e2   : > { %v1006_v53 = vadd.f32 %v944_v45, %v709_v32  ;;  %v711_v46 = vpop.f32.mrf.mxu1 }
 0x1e3   : > { %v712_v0 = vadd.f32 %v711_v46, %v5425_v7  ;;  %v3909_v46 = vld [vmem:[%s4136_s25 + $0x28] sm:$0xff]  }
 0x1e4   : > { %v1422_v19 = vadd.f32 %v4783_v14, %v1006_v53  ;;  %v5427_v7 = vld [vmem:[#allocation11_spill] sm:$0xff] }
 0x1e5   : > { %3576 = vmatmul.msk.bf16.gmra.mxu1 %vm374_vm1, %v3908_v44 }
 0x1e6   : > { %3679 = vmatmul.msk.bf16.gmra.mxu2 %vm374_vm1, %v4762_v43  ;;  %v4854_v10 = vadd.f32 %v1783_v41, %v1422_v19  ;;  %v4860_v17 = vpop.f32.mrf.mxu3  ;;  %v2507_v43 = vrot.slane %v4863_v33, 1 }
 0x1e8   : > { %v1786_v11 = vpop.f32.mrf.mxu0  ;;  %v2508_v32 = vsel %vm326_vm0, %v2505_v61, %v2507_v43 }
 0x1e9   : > { %v947_v5 = vpop.f32.mrf.mxu2 }
 0x1ea   : > { %v1007_v36 = vadd.f32 %v947_v5, %v712_v0  ;;  %v713_v14 = vpop.f32.mrf.mxu1 }
 0x1eb   : > { %3733 = vmatmul.msk.bf16.gmra.mxu0 %vm374_vm1, %v2779_v13  ;;  %v714_v38 = vadd.f32 %v713_v14, %v5426_v60  ;;  %v4888_v60 = vld [vmem:[%s4136_s25 + $0x54] sm:$0xff] }
 0x1ec   : > { %v1423_v18 = vadd.f32 %v4799_v1, %v1007_v36  ;;  %v2780_v1 = vrot.slane %v4813_v63, 2 }
 0x1ed   : > { %3709 = vmatmul.msk.bf16.gmra.mxu3 %vm374_vm1, %v2508_v32 }
 0x1ee   : > { %v4866_v26 = vadd.f32 %v1786_v11, %v1423_v18  ;;  %v4874_v19 = vpop.f32.mrf.mxu3  ;;  %v2781_v13 = vsel %vm752_vm2, %v2778_v23, %v2780_v1  ;;  %v5428_v23 = vld [vmem:[#allocation12_spill] sm:$0xff] }
 0x1f0   : > { %v1788_v41 = vpop.f32.mrf.mxu0 }
 0x1f1   : > { %v949_v59 = vpop.f32.mrf.mxu2 }
 0x1f2   : > { %v1008_v45 = vadd.f32 %v949_v59, %v714_v38  ;;  %v716_v53 = vpop.f32.mrf.mxu1 }
 0x1f3   : > { %v717_v0 = vadd.f32 %v716_v53, %v5427_v7 }
 0x1f4   : > { %v1424_v44 = vadd.f32 %v4810_v56, %v1008_v45 }
 0x1f5   : > { %3577 = vmatmul.msk.bf16.gmra.mxu1 %vm374_vm1, %v3909_v46 }
 0x1f6   : > { %3680 = vmatmul.msk.bf16.gmra.mxu2 %vm374_vm1, %v4786_v20  ;;  %v4879_v11 = vadd.f32 %v1788_v41, %v1424_v44  ;;  %v4885_v18 = vpop.f32.mrf.mxu3  ;;  %v2509_v20 = vrot.slane %v4888_v60, 1  ;;  %v3910_v44 = vld [vmem:[%s4136_s25 + $0x30] sm:$0xff]  }
 0x1f8   : > { %v1791_v61 = vpop.f32.mrf.mxu0  ;;  %v2510_v59 = vsel %vm326_vm0, %v2507_v43, %v2509_v20 }
 0x1f9   : > { %v952_v5 = vpop.f32.mrf.mxu2 }
 0x1fa   : > { %v1009_v36 = vadd.f32 %v952_v5, %v717_v0  ;;  %v718_v56 = vpop.f32.mrf.mxu1  ;;  %v5429_v5 = vld [vmem:[#allocation13_spill] sm:$0xff] }
 0x1fb   : > { %3734 = vmatmul.msk.bf16.gmra.mxu0 %vm374_vm1, %v2781_v13  ;;  %v719_v32 = vadd.f32 %v718_v56, %v5428_v23 }
 0x1fc   : > { %v1425_v14 = vadd.f32 %v4824_v48, %v1009_v36  ;;  %v2782_v48 = vrot.slane %v4838_v42, 2 }
 0x1fd   : > { %3710 = vmatmul.msk.bf16.gmra.mxu3 %vm374_vm1, %v2510_v59  ;;  %v4913_v59 = vld [vmem:[%s4136_s25 + $0x5c] sm:$0xff] }
 0x1fe   : > { %v4891_v41 = vadd.f32 %v1791_v61, %v1425_v14  ;;  %v4899_v7 = vpop.f32.mrf.mxu3  ;;  %v2783_v0 = vsel %vm752_vm2, %v2780_v1, %v2782_v48  ;;  %v5430_v1 = vld [vmem:[#allocation14_spill] sm:$0xff] }
 0x200   : > { %v1793_v38 = vpop.f32.mrf.mxu0 }
 0x201   : > { %v954_v45 = vpop.f32.mrf.mxu2 }
 0x202   : > { %v1010_v53 = vadd.f32 %v954_v45, %v719_v32  ;;  %v721_v46 = vpop.f32.mrf.mxu1 }
 0x203   : > { %v722_v36 = vadd.f32 %v721_v46, %v5429_v5  ;;  %v3911_v5 = vld [vmem:[%s4136_s25 + $0x38] sm:$0xff]  }
 0x204   : > { %v1426_v13 = vadd.f32 %v4835_v52, %v1010_v53 }
 0x205   : > { %3578 = vmatmul.msk.bf16.gmra.mxu1 %vm374_vm1, %v3910_v44 }
 0x206   : > { %3681 = vmatmul.msk.bf16.gmra.mxu2 %vm374_vm1, %v4813_v63  ;;  %v4904_v61 = vadd.f32 %v1793_v38, %v1426_v13  ;;  %v4910_v32 = vpop.f32.mrf.mxu3  ;;  %v2511_v63 = vrot.slane %v4913_v59, 1 }
 0x208   : > { %v1796_v43 = vpop.f32.mrf.mxu0  ;;  %v2512_v46 = vsel %vm326_vm0, %v2509_v20, %v2511_v63 }
 0x209   : > { %v957_v56 = vpop.f32.mrf.mxu2 }
 0x20a   : > { %v1011_v14 = vadd.f32 %v957_v56, %v722_v36  ;;  %v723_v52 = vpop.f32.mrf.mxu1 }
 0x20b   : > { %3735 = vmatmul.msk.bf16.gmra.mxu0 %vm374_vm1, %v2783_v0  ;;  %v724_v53 = vadd.f32 %v723_v52, %v5430_v1  ;;  %v5431_v52 = vld [vmem:[#allocation2_spill] sm:$0xff] }
 0x20c   : > { %v1427_v23 = vadd.f32 %v4849_v22, %v1011_v14  ;;  %v2784_v22 = vrot.slane %v4863_v33, 2 }
 0x20d   : > { %3711 = vmatmul.msk.bf16.gmra.mxu3 %vm374_vm1, %v2512_v46 }
 0x20e   : > { %v4916_v38 = vadd.f32 %v1796_v43, %v1427_v23  ;;  %v4924_v56 = vpop.f32.mrf.mxu3  ;;  %v2785_v14 = vsel %vm752_vm2, %v2782_v48, %v2784_v22  ;;  %v5433_v48 = vld [vmem:[#allocation3_spill] sm:$0xff] }
 0x210   : > { %v1798_v45 = vpop.f32.mrf.mxu0 }
 0x211   : > { %v959_v44 = vpop.f32.mrf.mxu2 }
 0x212   : > { %v1012_v13 = vadd.f32 %v959_v44, %v724_v53  ;;  %v726_v0 = vpop.f32.mrf.mxu1 }
 0x213   : > { %v727_v23 = vadd.f32 %v726_v0, %v5431_v52 }
 0x214   : > { %v1428_v36 = vadd.f32 %v4860_v17, %v1012_v13  ;;  %v4938_v13 = vld [vmem:[%s4136_s25 + $0x64] sm:$0xff] }
 0x215   : > { %3579 = vmatmul.msk.bf16.gmra.mxu1 %vm374_vm1, %v3911_v5 }
 0x216   : > { %3682 = vmatmul.msk.bf16.gmra.mxu2 %vm374_vm1, %v4838_v42  ;;  %v4929_v43 = vadd.f32 %v1798_v45, %v1428_v36  ;;  %v4935_v44 = vpop.f32.mrf.mxu3  ;;  %v2513_v42 = vrot.slane %v4938_v13, 1 }
 0x218   : > { %v1801_v20 = vpop.f32.mrf.mxu0  ;;  %v2514_v0 = vsel %vm326_vm0, %v2511_v63, %v2513_v42 }
 0x219   : > { %v962_v1 = vpop.f32.mrf.mxu2 }
 0x21a   : > { %v1013_v53 = vadd.f32 %v962_v1, %v727_v23  ;;  %v728_v17 = vpop.f32.mrf.mxu1  ;;  %v3912_v1 = vld [vmem:[%s4136_s25 + $0x40] sm:$0xff]  }
 0x21b   : > { %3736 = vmatmul.msk.bf16.gmra.mxu0 %vm374_vm1, %v2785_v14  ;;  %v729_v36 = vadd.f32 %v728_v17, %v5433_v48 }
 0x21c   : > { %v1429_v46 = vadd.f32 %v4874_v19, %v1013_v53  ;;  %v2786_v19 = vrot.slane %v4888_v60, 2 }
 0x21d   : > { %3712 = vmatmul.msk.bf16.gmra.mxu3 %vm374_vm1, %v2514_v0 }
 0x21e   : > { %v4941_v45 = vadd.f32 %v1801_v20, %v1429_v46  ;;  %v2787_v17 = vsel %vm752_vm2, %v2784_v22, %v2786_v19  ;;  %v5435_v46 = vld [vmem:[#allocation4_spill] sm:$0xff]  ;;  %v5437_v22 = vld [vmem:[#allocation5_spill] sm:$0xff] }
 0x220   : > { %5432 = vst [vmem:[#allocation6_spill] sm:$0xff] %v4941_v45  ;;  %v1803_v5 = vpop.f32.mrf.mxu0  ;;  %v4949_v27 = vpop.f32.mrf.mxu3 }
 0x221   : > { %v964_v52 = vpop.f32.mrf.mxu2 }
 0x222   : > { %v1014_v14 = vadd.f32 %v964_v52, %v729_v36  ;;  %v731_v23 = vpop.f32.mrf.mxu1 }
 0x223   : > { %v732_v48 = vadd.f32 %v731_v23, %v5435_v46 }
 0x224   : > { %v1430_v53 = vadd.f32 %v4885_v18, %v1014_v14 }
 0x225   : > { %3580 = vmatmul.msk.bf16.gmra.mxu1 %vm374_vm1, %v3912_v1  ;;  %v4963_v1 = vld [vmem:[%s4136_s25 + $0x6c] sm:$0xff] }
 0x226   : > { %3683 = vmatmul.msk.bf16.gmra.mxu2 %vm374_vm1, %v4863_v33  ;;  %v4954_v20 = vadd.f32 %v1803_v5, %v1430_v53  ;;  %v2515_v33 = vrot.slane %v4963_v1, 1 }
 0x228   : > { %5434 = vst [vmem:[#allocation8_spill] sm:$0xff] %v4954_v20  ;;  %v1806_v63 = vpop.f32.mrf.mxu0  ;;  %v4960_v14 = vpop.f32.mrf.mxu3  ;;  %v2516_v23 = vsel %vm326_vm0, %v2513_v42, %v2515_v33 }
 0x229   : > { %v967_v36 = vpop.f32.mrf.mxu2 }
 0x22a   : > { %v1015_v0 = vadd.f32 %v967_v36, %v732_v48  ;;  %v733_v18 = vpop.f32.mrf.mxu1  ;;  %v3913_v36 = vld [vmem:[%s4136_s25 + $0x48] sm:$0xff]  }
 0x22b   : > { %3737 = vmatmul.msk.bf16.gmra.mxu0 %vm374_vm1, %v2787_v17  ;;  %v734_v20 = vadd.f32 %v733_v18, %v5437_v22 }
 0x22c   : > { %v1431_v52 = vadd.f32 %v4899_v7, %v1015_v0  ;;  %v2788_v7 = vrot.slane %v4913_v59, 2 }
 0x22d   : > { %3713 = vmatmul.msk.bf16.gmra.mxu3 %vm374_vm1, %v2516_v23 }
 0x22e   : > { %v4966_v5 = vadd.f32 %v1806_v63, %v1431_v52  ;;  %v2789_v18 = vsel %vm752_vm2, %v2786_v19, %v2788_v7  ;;  %v5440_v19 = vld [vmem:[#allocation9_spill] sm:$0xff] }
 0x230   : > { %5436 = vst [vmem:[#allocation10_spill] sm:$0xff] %v4966_v5  ;;  %v1808_v53 = vpop.f32.mrf.mxu0  ;;  %v4974_v45 = vpop.f32.mrf.mxu3 }
 0x231   : > { %v969_v46 = vpop.f32.mrf.mxu2 }
 0x232   : > { %v1016_v17 = vadd.f32 %v969_v46, %v734_v20  ;;  %v736_v48 = vpop.f32.mrf.mxu1  ;;  %v5439_v20 = vld [vmem:[#allocation7_spill] sm:$0xff] }
 0x233   : > { %v737_v52 = vadd.f32 %v736_v48, %v5439_v20 }
 0x234   : > { %v1432_v0 = vadd.f32 %v4910_v32, %v1016_v17 }
 0x235   : > { %3581 = vmatmul.msk.bf16.gmra.mxu1 %vm374_vm1, %v3913_v36  ;;  %v4988_v36 = vld [vmem:[%s4136_s25 + $0x74] sm:$0xff] }
 0x236   : > { %3684 = vmatmul.msk.bf16.gmra.mxu2 %vm374_vm1, %v4888_v60  ;;  %v4979_v63 = vadd.f32 %v1808_v53, %v1432_v0  ;;  %v2517_v60 = vrot.slane %v4988_v36, 1 }
 0x238   : > { %5438 = vst [vmem:[#allocation11_spill] sm:$0xff] %v4979_v63  ;;  %v1811_v42 = vpop.f32.mrf.mxu0  ;;  %v4985_v17 = vpop.f32.mrf.mxu3  ;;  %v2518_v48 = vsel %vm326_vm0, %v2515_v33, %v2517_v60 }
 0x239   : > { %v972_v22 = vpop.f32.mrf.mxu2 }
 0x23a   : > { %v1017_v23 = vadd.f32 %v972_v22, %v737_v52  ;;  %v738_v32 = vpop.f32.mrf.mxu1  ;;  %v3914_v22 = vld [vmem:[%s4136_s25 + $0x50] sm:$0xff]  }
 0x23b   : > { %3738 = vmatmul.msk.bf16.gmra.mxu0 %vm374_vm1, %v2789_v18  ;;  %v739_v63 = vadd.f32 %v738_v32, %v5440_v19 }
 0x23c   : > { %v1433_v46 = vadd.f32 %v4924_v56, %v1017_v23  ;;  %v2790_v56 = vrot.slane %v4938_v13, 2 }
 0x23d   : > { %3714 = vmatmul.msk.bf16.gmra.mxu3 %vm374_vm1, %v2518_v48 }
 0x23e   : > { %v4991_v53 = vadd.f32 %v1811_v42, %v1433_v46 }
 0x240   : > { %v1813_v0 = vpop.f32.mrf.mxu0  ;;  %v4999_v5 = vpop.f32.mrf.mxu3 }
 0x241   : > { %v974_v20 = vpop.f32.mrf.mxu2 }
 0x242   : > { %v1018_v18 = vadd.f32 %v974_v20, %v739_v63  ;;  %v1963_v52 = vpop.f32.mrf.mxu1  ;;  %v2791_v63 = vsel %vm752_vm2, %v2788_v7, %v2790_v56  ;;  %v5013_v20 = vld [vmem:[%s5408_s2] ss:$0 sm:$0xff] }
 0x243   : > { %v2068_v32 = vadd.f32 %v1963_v52, %v4495_v28 }
 0x244   : > { %v1434_v23 = vadd.f32 %v4935_v44, %v1018_v18 }
 0x245   : > { %3582 = vmatmul.msk.bf16.gmra.mxu1 %vm374_vm1, %v3914_v22 }
 0x246   : > { %3685 = vmatmul.msk.bf16.gmra.mxu2 %vm374_vm1, %v4913_v59  ;;  %v5004_v33 = vadd.f32 %v1813_v0, %v1434_v23  ;;  %v5018_v0 = vld [vmem:[%s4136_s25 + $0x7c] sm:$0xff] }
 0x247   : > { %v2519_v28 = vrot.slane %v5018_v0, 1 }
 0x248   : > { %v2892_v42 = vpop.f32.mrf.mxu0  ;;  %v5015_v59 = vpop.f32.mrf.mxu3 }
 0x249   : > { %v2338_v46 = vpop.f32.mrf.mxu2 }
 0x24a   : > { %v2443_v19 = vadd.f32 %v2338_v46, %v2068_v32  ;;  %v1965_v44 = vpop.f32.mrf.mxu1 }
 0x24b   : > { %3739 = vmatmul.msk.bf16.gmra.mxu0 %vm374_vm1, %v2791_v63  ;;  %v2069_v22 = vadd.f32 %v1965_v44, %v4508_v30 }
 0x24c   : > { %v2720_v48 = vadd.f32 %v4949_v27, %v2443_v19  ;;  %v2520_v27 = vsel %vm326_vm0, %v2517_v60, %v2519_v28  ;;  %v3915_v19 = vld [vmem:[%s4136_s25 + $0x58] sm:$0xff]  }
 0x24d   : > { %3715 = vmatmul.msk.bf16.gmra.mxu3 %vm374_vm1, %v2520_v27 }
 0x24e   : > { %v2997_v7 = vadd.f32 %v2892_v42, %v2720_v48  ;;  %v2792_v42 = vrot.slane %v4963_v1, 2 }
 0x250   : > { %v2894_v18 = vpop.f32.mrf.mxu0  ;;  %v3043_v52 = vadd.f32 %v5013_v20, %v2997_v7  ;;  %v5034_v60 = vpop.f32.mrf.mxu3 }
 0x251   : > { %v2340_v23 = vpop.f32.mrf.mxu2 }
 0x252   : > { %v3085_v63 = vmax.f32 %v3043_v52, 0.0  ;;  %v2444_v32 = vadd.f32 %v2340_v23, %v2069_v22  ;;  %v1968_v46 = vpop.f32.mrf.mxu1  ;;  %v2793_v52 = vsel %vm752_vm2, %v2790_v56, %v2792_v42 }
 0x253   : > { %v2070_v27 = vadd.f32 %v1968_v46, %v4516_v49 }
 0x254   : > { %v3127_v48 = vpack.c.bf16 %v3085_v63, %v3085_v63  ;;  %v2721_v30 = vadd.f32 %v4960_v14, %v2444_v32 }
 0x255   : > { %3583 = vmatmul.msk.bf16.gmra.mxu1 %vm374_vm1, %v3915_v19 }
 0x256   : > { %3170 = vst.msk [vmem:[%s5030_s16] sm:$0xf] %vm3169_vm4, %v3127_v48  ;;  %v2998_v44 = vadd.f32 %v2894_v18, %v2721_v30  ;;  %3686 = vmatmul.msk.bf16.gmra.mxu2 %vm374_vm1, %v4938_v13  ;;  %v5049_v13 = vld [vmem:[%s4136_s25 + $0x84] sm:$0xff] }
 0x257   : > { %v2521_v30 = vrot.slane %v5049_v13, 1 }
 0x258   : > { %v2897_v7 = vpop.f32.mrf.mxu0  ;;  %v3044_v22 = vadd.f32 %v5013_v20, %v2998_v44  ;;  %v5046_v48 = vpop.f32.mrf.mxu3 }
 0x259   : > { %v2343_v14 = vpop.f32.mrf.mxu2 }
 0x25a   : > { %v3086_v23 = vmax.f32 %v3044_v22, 0.0  ;;  %v2445_v63 = vadd.f32 %v2343_v14, %v2070_v27  ;;  %v1970_v32 = vpop.f32.mrf.mxu1 }
 0x25b   : > { %3740 = vmatmul.msk.bf16.gmra.mxu0 %vm374_vm1, %v2793_v52  ;;  %v2071_v44 = vadd.f32 %v1970_v32, %v4530_v47  ;;  %v2522_v52 = vsel %vm326_vm0, %v2519_v28, %v2521_v30 }
 0x25c   : > { %v3128_v19 = vpack.c.bf16 %v3086_v23, %v3086_v23  ;;  %v2722_v18 = vadd.f32 %v4974_v45, %v2445_v63  ;;  %v3916_v23 = vld [vmem:[%s4136_s25 + $0x60] sm:$0xff]   ;;  %v2794_v63 = vrot.slane %v4988_v36, 2 }
 0x25d   : > { %3716 = vmatmul.msk.bf16.gmra.mxu3 %vm374_vm1, %v2522_v52 }
 0x25e   : > { %3171 = vst.msk [vmem:[%s5030_s16 + $0x4] sm:$0xf] %vm3169_vm4, %v3128_v19  ;;  %v2999_v56 = vadd.f32 %v2897_v7, %v2722_v18  ;;  %v2795_v32 = vsel %vm752_vm2, %v2792_v42, %v2794_v63 }
 0x260   : > { %v2899_v49 = vpop.f32.mrf.mxu0  ;;  %v3045_v46 = vadd.f32 %v5013_v20, %v2999_v56  ;;  %v5061_v18 = vpop.f32.mrf.mxu3 }
 0x261   : > { %v2345_v22 = vpop.f32.mrf.mxu2 }
 0x262   : > { %v3087_v45 = vmax.f32 %v3045_v46, 0.0  ;;  %v2446_v27 = vadd.f32 %v2345_v22, %v2071_v44  ;;  %v1973_v14 = vpop.f32.mrf.mxu1 }
 0x263   : > { %v2072_v46 = vadd.f32 %v1973_v14, %v4539_v40 }
 0x264   : > { %v3129_v7 = vpack.c.bf16 %v3087_v45, %v3087_v45  ;;  %v2723_v19 = vadd.f32 %v4985_v17, %v2446_v27 }
 0x265   : > { %3584 = vmatmul.msk.bf16.gmra.mxu1 %vm374_vm1, %v3916_v23 }
 0x266   : > { %3172 = vst.msk [vmem:[%s5030_s16 + $0x8] sm:$0xf] %vm3169_vm4, %v3129_v7  ;;  %v3000_v47 = vadd.f32 %v2899_v49, %v2723_v19  ;;  %3687 = vmatmul.msk.bf16.gmra.mxu2 %vm374_vm1, %v4963_v1  ;;  %v5076_v1 = vld [vmem:[%s4136_s25 + $0x8c] sm:$0xff] }
 0x267   : > { %v2523_v23 = vrot.slane %v5076_v1, 1 }
 0x268   : > { %v2902_v28 = vpop.f32.mrf.mxu0  ;;  %v3046_v56 = vadd.f32 %v5013_v20, %v3000_v47  ;;  %v5073_v27 = vpop.f32.mrf.mxu3 }
 0x269   : > { %v2348_v17 = vpop.f32.mrf.mxu2  ;;  %v2524_v19 = vsel %vm326_vm0, %v2521_v30, %v2523_v23 }
 0x26a   : > { %v3088_v44 = vmax.f32 %v3046_v56, 0.0  ;;  %v2447_v52 = vadd.f32 %v2348_v17, %v2072_v46  ;;  %v1975_v22 = vpop.f32.mrf.mxu1  ;;  %v3917_v46 = vld [vmem:[%s4136_s25 + $0x68] sm:$0xff]   ;;  %v2796_v17 = vrot.slane %v5018_v0, 2 }
 0x26b   : > { %3741 = vmatmul.msk.bf16.gmra.mxu0 %vm374_vm1, %v2795_v32  ;;  %v2073_v7 = vadd.f32 %v1975_v22, %v4553_v8 }
 0x26c   : > { %v3130_v45 = vpack.c.bf16 %v3088_v44, %v3088_v44  ;;  %v2724_v49 = vadd.f32 %v4999_v5, %v2447_v52  ;;  %v2797_v22 = vsel %vm752_vm2, %v2794_v63, %v2796_v17 }
 0x26d   : > { %3717 = vmatmul.msk.bf16.gmra.mxu3 %vm374_vm1, %v2524_v19 }
 0x26e   : > { %3173 = vst.msk [vmem:[%s5030_s16 + $0xc] sm:$0xf] %vm3169_vm4, %v3130_v45  ;;  %v3001_v42 = vadd.f32 %v2902_v28, %v2724_v49 }
 0x270   : > { %v2904_v40 = vpop.f32.mrf.mxu0  ;;  %v3047_v14 = vadd.f32 %v5013_v20, %v3001_v42  ;;  %v5088_v52 = vpop.f32.mrf.mxu3 }
 0x271   : > { %v2350_v47 = vpop.f32.mrf.mxu2 }
 0x272   : > { %v3089_v5 = vmax.f32 %v3047_v14, 0.0  ;;  %v2448_v32 = vadd.f32 %v2350_v47, %v2073_v7  ;;  %v1978_v56 = vpop.f32.mrf.mxu1 }
 0x273   : > { %v2074_v49 = vadd.f32 %v1978_v56, %v4562_v58 }
 0x274   : > { %v3131_v28 = vpack.c.bf16 %v3089_v5, %v3089_v5  ;;  %v2725_v44 = vadd.f32 %v5015_v59, %v2448_v32 }
 0x275   : > { %3585 = vmatmul.msk.bf16.gmra.mxu1 %vm374_vm1, %v3917_v46 }
 0x276   : > { %3174 = vst.msk [vmem:[%s5030_s16 + $0x10] sm:$0xf] %vm3169_vm4, %v3131_v28  ;;  %v3002_v8 = vadd.f32 %v2904_v40, %v2725_v44  ;;  %3688 = vmatmul.msk.bf16.gmra.mxu2 %vm374_vm1, %v4988_v36  ;;  %v5103_v36 = vld [vmem:[%s4136_s25 + $0x94] sm:$0xff] }
 0x277   : > { %v2525_v5 = vrot.slane %v5103_v36, 1 }
 0x278   : > { %v2907_v30 = vpop.f32.mrf.mxu0  ;;  %v3048_v45 = vadd.f32 %v5013_v20, %v3002_v8  ;;  %v5100_v47 = vpop.f32.mrf.mxu3 }
 0x279   : > { %v2353_v59 = vpop.f32.mrf.mxu2  ;;  %v2526_v46 = vsel %vm326_vm0, %v2523_v23, %v2525_v5 }
 0x27a   : > { %v3090_v42 = vmax.f32 %v3048_v45, 0.0  ;;  %v2449_v14 = vadd.f32 %v2353_v59, %v2074_v49  ;;  %v1980_v7 = vpop.f32.mrf.mxu1  ;;  %v2798_v45 = vrot.slane %v5049_v13, 2 }
 0x27b   : > { %3742 = vmatmul.msk.bf16.gmra.mxu0 %vm374_vm1, %v2797_v22  ;;  %v2075_v56 = vadd.f32 %v1980_v7, %v4576_v37  ;;  %v3918_v22 = vld [vmem:[%s4136_s25 + $0x70] sm:$0xff]  }
 0x27c   : > { %v3132_v19 = vpack.c.bf16 %v3090_v42, %v3090_v42  ;;  %v2726_v40 = vadd.f32 %v5034_v60, %v2449_v14  ;;  %v2799_v42 = vsel %vm752_vm2, %v2796_v17, %v2798_v45 }
 0x27d   : > { %3718 = vmatmul.msk.bf16.gmra.mxu3 %vm374_vm1, %v2526_v46 }
 0x27e   : > { %3175 = vst.msk [vmem:[%s5030_s16 + $0x14] sm:$0xf] %vm3169_vm4, %v3132_v19  ;;  %v3003_v63 = vadd.f32 %v2907_v30, %v2726_v40 }
 0x280   : > { %v2909_v58 = vpop.f32.mrf.mxu0  ;;  %v3049_v32 = vadd.f32 %v5013_v20, %v3003_v63  ;;  %v5115_v59 = vpop.f32.mrf.mxu3 }
 0x281   : > { %v2355_v28 = vpop.f32.mrf.mxu2 }
 0x282   : > { %v3091_v60 = vmax.f32 %v3049_v32, 0.0  ;;  %v2450_v44 = vadd.f32 %v2355_v28, %v2075_v56  ;;  %v1983_v8 = vpop.f32.mrf.mxu1 }
 0x283   : > { %v2076_v7 = vadd.f32 %v1983_v8, %v4585_v4 }
 0x284   : > { %v3133_v30 = vpack.c.bf16 %v3091_v60, %v3091_v60  ;;  %v2727_v49 = vadd.f32 %v5046_v48, %v2450_v44 }
 0x285   : > { %3586 = vmatmul.msk.bf16.gmra.mxu1 %vm374_vm1, %v3918_v22 }
 0x286   : > { %3176 = vst.msk [vmem:[%s5030_s16 + $0x18] sm:$0xf] %vm3169_vm4, %v3133_v30  ;;  %v3004_v37 = vadd.f32 %v2909_v58, %v2727_v49  ;;  %3689 = vmatmul.msk.bf16.gmra.mxu2 %vm374_vm1, %v5018_v0  ;;  %v5130_v0 = vld [vmem:[%s4136_s25 + $0x9c] sm:$0xff] }
 0x287   : > { %v2527_v46 = vrot.slane %v5130_v0, 1  ;;  %v3919_v49 = vld [vmem:[%s4136_s25 + $0x78] sm:$0xff]  }
 0x288   : > { %v2912_v23 = vpop.f32.mrf.mxu0  ;;  %v3050_v14 = vadd.f32 %v5013_v20, %v3004_v37  ;;  %v5127_v56 = vpop.f32.mrf.mxu3  ;;  %v2800_v37 = vrot.slane %v5076_v1, 2 }
 0x289   : > { %v2358_v48 = vpop.f32.mrf.mxu2  ;;  %v2528_v44 = vsel %vm326_vm0, %v2525_v5, %v2527_v46 }
 0x28a   : > { %v3092_v19 = vmax.f32 %v3050_v14, 0.0  ;;  %v2451_v40 = vadd.f32 %v2358_v48, %v2076_v7  ;;  %v1985_v63 = vpop.f32.mrf.mxu1  ;;  %v2801_v7 = vsel %vm752_vm2, %v2798_v45, %v2800_v37 }
 0x28b   : > { %3743 = vmatmul.msk.bf16.gmra.mxu0 %vm374_vm1, %v2799_v42  ;;  %v2077_v60 = vadd.f32 %v1985_v63, %v4599_v2 }
 0x28c   : > { %v3134_v32 = vpack.c.bf16 %v3092_v19, %v3092_v19  ;;  %v2728_v58 = vadd.f32 %v5061_v18, %v2451_v40 }
 0x28d   : > { %3719 = vmatmul.msk.bf16.gmra.mxu3 %vm374_vm1, %v2528_v44 }
 0x28e   : > { %3177 = vst.msk [vmem:[%s5030_s16 + $0x1c] sm:$0xf] %vm3169_vm4, %v3134_v32  ;;  %v3005_v17 = vadd.f32 %v2912_v23, %v2728_v58 }
 0x290   : > { %v2914_v4 = vpop.f32.mrf.mxu0  ;;  %v3051_v28 = vadd.f32 %v5013_v20, %v3005_v17  ;;  %v5142_v14 = vpop.f32.mrf.mxu3 }
 0x291   : > { %v2360_v8 = vpop.f32.mrf.mxu2 }
 0x292   : > { %v3093_v18 = vmax.f32 %v3051_v28, 0.0  ;;  %v2452_v22 = vadd.f32 %v2360_v8, %v2077_v60  ;;  %v1988_v30 = vpop.f32.mrf.mxu1 }
 0x293   : > { %v2078_v19 = vadd.f32 %v1988_v30, %v4608_v6 }
 0x294   : > { %v3135_v23 = vpack.c.bf16 %v3093_v18, %v3093_v18  ;;  %v2729_v42 = vadd.f32 %v5073_v27, %v2452_v22 }
 0x295   : > { %3587 = vmatmul.msk.bf16.gmra.mxu1 %vm374_vm1, %v3919_v49  ;;  %v3920_v49 = vld [vmem:[%s4136_s25 + $0x80] sm:$0xff]  }
 0x296   : > { %3178 = vst.msk [vmem:[%s5030_s16 + $0x20] sm:$0xf] %vm3169_vm4, %v3135_v23  ;;  %v3006_v2 = vadd.f32 %v2914_v4, %v2729_v42  ;;  %3690 = vmatmul.msk.bf16.gmra.mxu2 %vm374_vm1, %v5049_v13  ;;  %v5157_v13 = vld [vmem:[%s4136_s25 + $0xa4] sm:$0xff]  ;;  %v2802_v23 = vrot.slane %v5103_v36, 2 }
 0x297   : > { %v2529_v28 = vrot.slane %v5157_v13, 1 }
 0x298   : > { %v2917_v5 = vpop.f32.mrf.mxu0  ;;  %v3052_v48 = vadd.f32 %v5013_v20, %v3006_v2  ;;  %v5154_v4 = vpop.f32.mrf.mxu3 }
 0x299   : > { %v2363_v27 = vpop.f32.mrf.mxu2  ;;  %v2530_v8 = vsel %vm326_vm0, %v2527_v46, %v2529_v28 }
 0x29a   : > { %v3094_v40 = vmax.f32 %v3052_v48, 0.0  ;;  %v2453_v63 = vadd.f32 %v2363_v27, %v2078_v19  ;;  %v1990_v32 = vpop.f32.mrf.mxu1 }
 0x29b   : > { %3744 = vmatmul.msk.bf16.gmra.mxu0 %vm374_vm1, %v2801_v7  ;;  %v2079_v44 = vadd.f32 %v1990_v32, %v4622_v9  ;;  %v2803_v7 = vsel %vm752_vm2, %v2800_v37, %v2802_v23 }
 0x29c   : > { %v3136_v58 = vpack.c.bf16 %v3094_v40, %v3094_v40  ;;  %v2730_v17 = vadd.f32 %v5088_v52, %v2453_v63 }
 0x29d   : > { %3720 = vmatmul.msk.bf16.gmra.mxu3 %vm374_vm1, %v2530_v8 }
 0x29e   : > { %3179 = vst.msk [vmem:[%s5030_s16 + $0x24] sm:$0xf] %vm3169_vm4, %v3136_v58  ;;  %v3007_v45 = vadd.f32 %v2917_v5, %v2730_v17 }
 0x2a0   : > { %v2919_v6 = vpop.f32.mrf.mxu0  ;;  %v3053_v60 = vadd.f32 %v5013_v20, %v3007_v45  ;;  %v5169_v5 = vpop.f32.mrf.mxu3 }
 0x2a1   : > { %v2365_v18 = vpop.f32.mrf.mxu2 }
 0x2a2   : > { %v3095_v52 = vmax.f32 %v3053_v60, 0.0  ;;  %v2454_v22 = vadd.f32 %v2365_v18, %v2079_v44  ;;  %v1993_v30 = vpop.f32.mrf.mxu1 }
 0x2a3   : > { %v2080_v19 = vadd.f32 %v1993_v30, %v4631_v31  ;;  %v2804_v30 = vrot.slane %v5130_v0, 2 }
 0x2a4   : > { %v3137_v42 = vpack.c.bf16 %v3095_v52, %v3095_v52  ;;  %v2731_v2 = vadd.f32 %v5100_v47, %v2454_v22  ;;  %v3921_v22 = vld [vmem:[%s4136_s25 + $0x88] sm:$0xff]  }
 0x2a5   : > { %3588 = vmatmul.msk.bf16.gmra.mxu1 %vm374_vm1, %v3920_v49 }
 0x2a6   : > { %3180 = vst.msk [vmem:[%s5030_s16 + $0x28] sm:$0xf] %vm3169_vm4, %v3137_v42  ;;  %v3008_v9 = vadd.f32 %v2919_v6, %v2731_v2  ;;  %3691 = vmatmul.msk.bf16.gmra.mxu2 %vm374_vm1, %v5076_v1  ;;  %v5184_v1 = vld [vmem:[%s4136_s25 + $0xac] sm:$0xff] }
 0x2a7   : > { %v2531_v45 = vrot.slane %v5184_v1, 1 }
 0x2a8   : > { %v2922_v46 = vpop.f32.mrf.mxu0  ;;  %v3054_v48 = vadd.f32 %v5013_v20, %v3008_v9  ;;  %v5181_v17 = vpop.f32.mrf.mxu3  ;;  %v2805_v9 = vsel %vm752_vm2, %v2802_v23, %v2804_v30 }
 0x2a9   : > { %v2368_v47 = vpop.f32.mrf.mxu2  ;;  %v2532_v44 = vsel %vm326_vm0, %v2529_v28, %v2531_v45 }
 0x2aa   : > { %v3096_v27 = vmax.f32 %v3054_v48, 0.0  ;;  %v2455_v40 = vadd.f32 %v2368_v47, %v2080_v19  ;;  %v1995_v63 = vpop.f32.mrf.mxu1 }
 0x2ab   : > { %3745 = vmatmul.msk.bf16.gmra.mxu0 %vm374_vm1, %v2803_v7  ;;  %v2081_v60 = vadd.f32 %v1995_v63, %v4645_v25 }
 0x2ac   : > { %v3138_v32 = vpack.c.bf16 %v3096_v27, %v3096_v27  ;;  %v2732_v58 = vadd.f32 %v5115_v59, %v2455_v40 }
 0x2ad   : > { %3721 = vmatmul.msk.bf16.gmra.mxu3 %vm374_vm1, %v2532_v44 }
 0x2ae   : > { %3181 = vst.msk [vmem:[%s5030_s16 + $0x2c] sm:$0xf] %vm3169_vm4, %v3138_v32  ;;  %v3009_v37 = vadd.f32 %v2922_v46, %v2732_v58 }
 0x2b0   : > { %v2924_v31 = vpop.f32.mrf.mxu0  ;;  %v3055_v6 = vadd.f32 %v5013_v20, %v3009_v37  ;;  %v5196_v2 = vpop.f32.mrf.mxu3 }
 0x2b1   : > { %v2370_v8 = vpop.f32.mrf.mxu2 }
 0x2b2   : > { %v3097_v59 = vmax.f32 %v3055_v6, 0.0  ;;  %v2456_v18 = vadd.f32 %v2370_v8, %v2081_v60  ;;  %v1998_v52 = vpop.f32.mrf.mxu1  ;;  %v3922_v8 = vld [vmem:[%s4136_s25 + $0x90] sm:$0xff]  }
 0x2b3   : > { %v2082_v7 = vadd.f32 %v1998_v52, %v4654_v54 }
 0x2b4   : > { %v3139_v49 = vpack.c.bf16 %v3097_v59, %v3097_v59  ;;  %v2733_v42 = vadd.f32 %v5127_v56, %v2456_v18  ;;  %v2806_v59 = vrot.slane %v5157_v13, 2 }
 0x2b5   : > { %3589 = vmatmul.msk.bf16.gmra.mxu1 %vm374_vm1, %v3921_v22 }
 0x2b6   : > { %3182 = vst.msk [vmem:[%s5030_s16 + $0x30] sm:$0xf] %vm3169_vm4, %v3139_v49  ;;  %v3010_v25 = vadd.f32 %v2924_v31, %v2733_v42  ;;  %3692 = vmatmul.msk.bf16.gmra.mxu2 %vm374_vm1, %v5103_v36  ;;  %v5211_v36 = vld [vmem:[%s4136_s25 + $0xb4] sm:$0xff]  ;;  %v2807_v49 = vsel %vm752_vm2, %v2804_v30, %v2806_v59 }
 0x2b7   : > { %v2533_v32 = vrot.slane %v5211_v36, 1 }
 0x2b8   : > { %v2927_v28 = vpop.f32.mrf.mxu0  ;;  %v3056_v46 = vadd.f32 %v5013_v20, %v3010_v25  ;;  %v5208_v63 = vpop.f32.mrf.mxu3 }
 0x2b9   : > { %v2373_v56 = vpop.f32.mrf.mxu2  ;;  %v2534_v31 = vsel %vm326_vm0, %v2531_v45, %v2533_v32 }
 0x2ba   : > { %v3098_v48 = vmax.f32 %v3056_v46, 0.0  ;;  %v2457_v19 = vadd.f32 %v2373_v56, %v2082_v7  ;;  %v2000_v47 = vpop.f32.mrf.mxu1 }
 0x2bb   : > { %3746 = vmatmul.msk.bf16.gmra.mxu0 %vm374_vm1, %v2805_v9  ;;  %v2083_v37 = vadd.f32 %v2000_v47, %v4668_v12  ;;  %v2486_v9 = vld [vmem:[%s4136_s25 + $0xc0] sm:$0x7] }
 0x2bc   : > { %v3140_v27 = vpack.c.bf16 %v3098_v48, %v3098_v48  ;;  %v2734_v40 = vadd.f32 %v5142_v14, %v2457_v19 }
 0x2bd   : > { %3722 = vmatmul.msk.bf16.gmra.mxu3 %vm374_vm1, %v2534_v31 }
 0x2be   : > { %3183 = vst.msk [vmem:[%s5030_s16 + $0x34] sm:$0xf] %vm3169_vm4, %v3140_v27  ;;  %v3011_v23 = vadd.f32 %v2927_v28, %v2734_v40 }
 0x2c0   : > { %v2929_v54 = vpop.f32.mrf.mxu0  ;;  %v3057_v58 = vadd.f32 %v5013_v20, %v3011_v23  ;;  %v5223_v22 = vpop.f32.mrf.mxu3 }
 0x2c1   : > { %v2375_v6 = vpop.f32.mrf.mxu2 }
 0x2c2   : > { %v3099_v14 = vmax.f32 %v3057_v58, 0.0  ;;  %v2458_v60 = vadd.f32 %v2375_v6, %v2083_v37  ;;  %v2003_v44 = vpop.f32.mrf.mxu1 }
 0x2c3   : > { %v2084_v25 = vadd.f32 %v2003_v44, %v4677_v57  ;;  %v2808_v44 = vrot.slane %v5184_v1, 2 }
 0x2c4   : > { %v3141_v18 = vpack.c.bf16 %v3099_v14, %v3099_v14  ;;  %v2735_v52 = vadd.f32 %v5154_v4, %v2458_v60  ;;  %v5234_v4 = vld [vmem:[%s4136_s25 + $0xbc] sm:$0xff]  }
 0x2c5   : > { %3590 = vmatmul.msk.bf16.gmra.mxu1 %vm374_vm1, %v3922_v8  ;;  %v2237_v48 = vunpack.c.l.b16 %v5234_v4  ;;  %v3923_v60 = vld [vmem:[%s4136_s25 + $0x98] sm:$0xff]  }
 0x2c6   : > { %3184 = vst.msk [vmem:[%s5030_s16 + $0x38] sm:$0xf] %vm3169_vm4, %v3141_v18  ;;  %v3012_v12 = vadd.f32 %v2929_v54, %v2735_v52  ;;  %3693 = vmatmul.msk.bf16.gmra.mxu2 %vm374_vm1, %v5130_v0  ;;  %v2493_v0 = vunpack.c.l.b16 %v2486_v9 }
 0x2c8   : > { %v2932_v45 = vpop.f32.mrf.mxu0  ;;  %v3058_v42 = vadd.f32 %v5013_v20, %v3012_v12  ;;  %v5240_v47 = vpop.f32.mrf.mxu3  ;;  %v2495_v57 = vpack.c.b16 %v2493_v0, %v2237_v48  ;;  %v2809_v12 = vsel %vm752_vm2, %v2806_v59, %v2808_v44 }
 0x2c9   : > { %v2378_v28 = vpop.f32.mrf.mxu2 }
 0x2ca   : > { %v3100_v46 = vmax.f32 %v3058_v42, 0.0  ;;  %v2459_v7 = vadd.f32 %v2378_v28, %v2084_v25  ;;  %v2005_v56 = vpop.f32.mrf.mxu1  ;;  %v2535_v40 = vrot.slane %v2495_v57, 1 }
 0x2cb   : > { %3747 = vmatmul.msk.bf16.gmra.mxu0 %vm374_vm1, %v2807_v49  ;;  %v2085_v58 = vadd.f32 %v2005_v56, %v4691_v24 }
 0x2cc   : > { %v3142_v19 = vpack.c.bf16 %v3100_v46, %v3100_v46  ;;  %v2736_v30 = vadd.f32 %v5169_v5, %v2459_v7  ;;  %v2536_v37 = vsel %vm326_vm0, %v2533_v32, %v2535_v40 }
 0x2cd   : > { %3723 = vmatmul.msk.bf16.gmra.mxu3 %vm374_vm1, %v2536_v37 }
 0x2ce   : > { %3185 = vst.msk [vmem:[%s5030_s16 + $0x3c] sm:$0xf] %vm3169_vm4, %v3142_v19  ;;  %v3013_v27 = vadd.f32 %v2932_v45, %v2736_v30 }
 0x2d0   : > { %v2934_v23 = vpop.f32.mrf.mxu0  ;;  %v3059_v54 = vadd.f32 %v5013_v20, %v3013_v27  ;;  %v5254_v52 = vpop.f32.mrf.mxu3  ;;  %v3924_v27 = vld [vmem:[%s4136_s25 + $0xa0] sm:$0xff]  }
 0x2d1   : > { %v2380_v31 = vpop.f32.mrf.mxu2 }
 0x2d2   : > { %v3101_v5 = vmax.f32 %v3059_v54, 0.0  ;;  %v2460_v6 = vadd.f32 %v2380_v31, %v2085_v58  ;;  %v2008_v14 = vpop.f32.mrf.mxu1 }
 0x2d3   : > { %v2086_v49 = vadd.f32 %v2008_v14, %v4699_v3 }
 0x2d4   : > { %v3143_v8 = vpack.c.bf16 %v3101_v5, %v3101_v5  ;;  %v2737_v18 = vadd.f32 %v5181_v17, %v2460_v6 }
 0x2d5   : > { %3591 = vmatmul.msk.bf16.gmra.mxu1 %vm374_vm1, %v3923_v60 }
 0x2d6   : > { %3186 = vst.msk [vmem:[%s5030_s16 + $0x40] sm:$0xf] %vm3169_vm4, %v3143_v8  ;;  %v3014_v24 = vadd.f32 %v2934_v23, %v2737_v18  ;;  %3694 = vmatmul.msk.bf16.gmra.mxu2 %vm374_vm1, %v5157_v13 }
 0x2d8   : > { %v2937_v32 = vpop.f32.mrf.mxu0  ;;  %v3060_v45 = vadd.f32 %v5013_v20, %v3014_v24  ;;  %v5267_v59 = vpop.f32.mrf.mxu3 }
 0x2d9   : > { %v2383_v42 = vpop.f32.mrf.mxu2 }
 0x2da   : > { %v3102_v17 = vmax.f32 %v3060_v45, 0.0  ;;  %v2461_v25 = vadd.f32 %v2383_v42, %v2086_v49  ;;  %v2010_v28 = vpop.f32.mrf.mxu1  ;;  %v2812_v42 = vrot.slane %v5234_v4, 2 }
 0x2db   : > { %3748 = vmatmul.msk.bf16.gmra.mxu0 %vm374_vm1, %v2809_v12  ;;  %v2087_v3 = vadd.f32 %v2010_v28, %v4713_v29  ;;  %v4080_v28 = vld [vmem:[%s4136_s25 + $0xa8] sm:$0xff]  }
 0x2dc   : > { %v3144_v9 = vpack.c.bf16 %v3102_v17, %v3102_v17  ;;  %v2738_v46 = vadd.f32 %v5196_v2, %v2461_v25  ;;  %v2810_v2 = vrot.slane %v5211_v36, 2 }
 0x2dd   : > { %3724 = vmatmul.msk.bf16.gmra.mxu3 %vm374_vm1, %v2535_v40 }
 0x2de   : > { %3187 = vst.msk [vmem:[%s5030_s16 + $0x44] sm:$0xf] %vm3169_vm4, %v3144_v9  ;;  %v3015_v13 = vadd.f32 %v2937_v32, %v2738_v46  ;;  %v2811_v40 = vsel %vm752_vm2, %v2808_v44, %v2810_v2  ;;  %v2813_v46 = vsel %vm752_vm2, %v2810_v2, %v2812_v42 }
 0x2e0   : > { %v2939_v7 = vpop.f32.mrf.mxu0  ;;  %v3061_v56 = vadd.f32 %v5013_v20, %v3015_v13  ;;  %v5283_v6 = vpop.f32.mrf.mxu3 }
 0x2e1   : > { %v2385_v0 = vpop.f32.mrf.mxu2 }
 0x2e2   : > { %v3103_v19 = vmax.f32 %v3061_v56, 0.0  ;;  %v2462_v30 = vadd.f32 %v2385_v0, %v2087_v3  ;;  %v2013_v57 = vpop.f32.mrf.mxu1 }
 0x2e3   : > { %v2088_v31 = vadd.f32 %v2013_v57, %v4738_v15 }
 0x2e4   : > { %v3145_v23 = vpack.c.bf16 %v3103_v19, %v3103_v19  ;;  %v2739_v54 = vadd.f32 %v5208_v63, %v2462_v30  ;;  %v1858_v19 = vld [vmem:[%s4136_s25 + $0xb4] sm:$0x3]  ;;  %v2151_v30 = vld [vmem:[%s4136_s25 + $0xc0] sm:$0x3] }
 0x2e5   : > { %3592 = vmatmul.msk.bf16.gmra.mxu1 %vm374_vm1, %v3924_v27 }
 0x2e6   : > { %3188 = vst.msk [vmem:[%s5030_s16 + $0x48] sm:$0xf] %vm3169_vm4, %v3145_v23  ;;  %v3016_v58 = vadd.f32 %v2939_v7, %v2739_v54  ;;  %3695 = vmatmul.msk.bf16.gmra.mxu2 %vm374_vm1, %v5184_v1  ;;  %v2238_v54 = vunpack.c.l.b16 %v2151_v30 }
 0x2e8   : > { %v2942_v29 = vpop.f32.mrf.mxu0  ;;  %v3062_v37 = vadd.f32 %v5013_v20, %v3016_v58  ;;  %v5292_v17 = vpop.f32.mrf.mxu3 }
 0x2e9   : > { %v2388_v5 = vpop.f32.mrf.mxu2 }
 0x2ea   : > { %v3104_v63 = vmax.f32 %v3062_v37, 0.0  ;;  %v2463_v14 = vadd.f32 %v2388_v5, %v2088_v31  ;;  %v2015_v60 = vpop.f32.mrf.mxu1  ;;  %v5441_v37 = vunpack.c.l.b16 %v4719_v39 }
 0x2eb   : > { %3749 = vmatmul.msk.bf16.gmra.mxu0 %vm374_vm1, %v2811_v40  ;;  %v2089_v15 = vadd.f32 %v2015_v60, %v4751_v62 }
 0x2ec   : > { %v3146_v8 = vpack.c.bf16 %v3104_v63, %v3104_v63  ;;  %v2740_v18 = vadd.f32 %v5223_v22, %v2463_v14 }
 0x2ee   : > { %3189 = vst.msk [vmem:[%s5030_s16 + $0x4c] sm:$0xf] %vm3169_vm4, %v3146_v8  ;;  %v3017_v1 = vadd.f32 %v2942_v29, %v2740_v18 }
 0x2f0   : > { %v2944_v44 = vpop.f32.mrf.mxu0  ;;  %v3063_v24 = vadd.f32 %v5013_v20, %v3017_v1  ;;  %v2680_v23 = vpop.f32.mrf.mxu3 }
 0x2f1   : > { %v2390_v32 = vpop.f32.mrf.mxu2 }
 0x2f2   : > { %v3105_v12 = vmax.f32 %v3063_v24, 0.0  ;;  %v2464_v45 = vadd.f32 %v2390_v32, %v2089_v15  ;;  %v2018_v49 = vpop.f32.mrf.mxu1 }
 0x2f3   : > { %v2090_v7 = vadd.f32 %v2018_v49, %v4765_v55 }
 0x2f4   : > { %v3147_v25 = vpack.c.bf16 %v3105_v12, %v3105_v12  ;;  %v2741_v22 = vadd.f32 %v5240_v47, %v2464_v45 }
 0x2f5   : > { %3593 = vmatmul.msk.bf16.gmra.mxu1 %vm374_vm1, %v4080_v28 }
 0x2f6   : > { %3190 = vst.msk [vmem:[%s5030_s16 + $0x50] sm:$0xf] %vm3169_vm4, %v3147_v25  ;;  %v3018_v9 = vadd.f32 %v2944_v44, %v2741_v22  ;;  %3696 = vmatmul.msk.bf16.gmra.mxu2 %vm374_vm1, %v5211_v36  ;;  %v1863_v36 = vunpack.c.l.b16 %v1858_v19 }
 0x2f8   : > { %v2947_v62 = vpop.f32.mrf.mxu0  ;;  %v3064_v13 = vadd.f32 %v5013_v20, %v3018_v9  ;;  %v1884_v31 = vpack.c.b16 %v1863_v36, %v5441_v37  ;;  %v2682_v39 = vpop.f32.mrf.mxu3 }
 0x2f9   : > { %v2393_v56 = vpop.f32.mrf.mxu2 }
 0x2fa   : > { %v3106_v47 = vmax.f32 %v3064_v13, 0.0  ;;  %v2465_v3 = vadd.f32 %v2393_v56, %v2090_v7  ;;  %v2020_v0 = vpop.f32.mrf.mxu1 }
 0x2fb   : > { %3750 = vmatmul.msk.bf16.gmra.mxu0 %vm374_vm1, %v2813_v46  ;;  %v2091_v29 = vadd.f32 %v2020_v0, %v4776_v21 }
 0x2fc   : > { %v3148_v57 = vpack.c.bf16 %v3106_v47, %v3106_v47  ;;  %v2742_v27 = vadd.f32 %v5254_v52, %v2465_v3  ;;  %v2259_v52 = vpack.c.b16 %v2238_v54, %v2237_v48 }
 0x2fe   : > { %3191 = vst.msk [vmem:[%s5030_s16 + $0x54] sm:$0xf] %vm3169_vm4, %v3148_v57  ;;  %v3019_v2 = vadd.f32 %v2947_v62, %v2742_v27 }
 0x300   : > { %v2949_v58 = vpop.f32.mrf.mxu0  ;;  %v3065_v55 = vadd.f32 %v5013_v20, %v3019_v2 }
 0x301   : > { %v2395_v40 = vpop.f32.mrf.mxu2 }
 0x302   : > { %v3107_v5 = vmax.f32 %v3065_v55, 0.0  ;;  %v2466_v63 = vadd.f32 %v2395_v40, %v2091_v29  ;;  %v2023_v14 = vpop.f32.mrf.mxu1 }
 0x303   : > { %v2092_v44 = vadd.f32 %v2023_v14, %v4789_v16  ;;  %v2685_v16 = vpop.f32.mrf.mxu3 }
 0x304   : > { %v3149_v60 = vpack.c.bf16 %v3107_v5, %v3107_v5  ;;  %v2743_v8 = vadd.f32 %v5267_v59, %v2466_v63 }
 0x305   : > { %3594 = vmatmul.msk.bf16.gmra.mxu1 %vm374_vm1, %v1884_v31 }
 0x306   : > { %3192 = vst.msk [vmem:[%s5030_s16 + $0x58] sm:$0xf] %vm3169_vm4, %v3149_v60  ;;  %v3020_v18 = vadd.f32 %v2949_v58, %v2743_v8  ;;  %3697 = vmatmul.msk.bf16.gmra.mxu2 %vm374_vm1, %v2259_v52 }
 0x308   : > { %v2952_v21 = vpop.f32.mrf.mxu0  ;;  %v3066_v1 = vadd.f32 %v5013_v20, %v3020_v18 }
 0x309   : > { %v2398_v24 = vpop.f32.mrf.mxu2 }
 0x30a   : > { %v3108_v4 = vmax.f32 %v3066_v1, 0.0  ;;  %v2467_v48 = vadd.f32 %v2398_v24, %v2092_v44  ;;  %v2025_v59 = vpop.f32.mrf.mxu1 }
 0x30b   : > { %3751 = vmatmul.msk.bf16.gmra.mxu0 %vm374_vm1, %v2812_v42  ;;  %v2093_v25 = vadd.f32 %v2025_v59, %v4804_v34  ;;  %v2687_v19 = vpop.f32.mrf.mxu3 }
 0x30c   : > { %v3150_v15 = vpack.c.bf16 %v3108_v4, %v3108_v4  ;;  %v2744_v32 = vadd.f32 %v5283_v6, %v2467_v48 }
 0x30e   : > { %3193 = vst.msk [vmem:[%s5030_s16 + $0x5c] sm:$0xf] %vm3169_vm4, %v3150_v15  ;;  %v3021_v12 = vadd.f32 %v2952_v21, %v2744_v32 }
 0x310   : > { %v2954_v45 = vpop.f32.mrf.mxu0  ;;  %v3067_v49 = vadd.f32 %v5013_v20, %v3021_v12 }
 0x311   : > { %v2400_v22 = vpop.f32.mrf.mxu2 }
 0x312   : > { %v3109_v28 = vmax.f32 %v3067_v49, 0.0  ;;  %v2468_v9 = vadd.f32 %v2400_v22, %v2093_v25  ;;  %v2028_v42 = vpop.f32.mrf.mxu1 }
 0x313   : > { %v2094_v56 = vadd.f32 %v2028_v42, %v4816_v50  ;;  %v2690_v37 = vpop.f32.mrf.mxu3 }
 0x314   : > { %v3151_v62 = vpack.c.bf16 %v3109_v28, %v3109_v28  ;;  %v2745_v46 = vadd.f32 %v5292_v17, %v2468_v9 }
 0x316   : > { %3194 = vst.msk [vmem:[%s5030_s16 + $0x60] sm:$0xf] %vm3169_vm4, %v3151_v62  ;;  %v3022_v6 = vadd.f32 %v2954_v45, %v2745_v46 }
 0x318   : > { %v2957_v13 = vpop.f32.mrf.mxu0  ;;  %v3068_v7 = vadd.f32 %v5013_v20, %v3022_v6 }
 0x319   : > { %v2403_v47 = vpop.f32.mrf.mxu2 }
 0x31a   : > { %v3110_v3 = vmax.f32 %v3068_v7, 0.0  ;;  %v2469_v34 = vadd.f32 %v2403_v47, %v2094_v56  ;;  %v2030_v0 = vpop.f32.mrf.mxu1 }
 0x31b   : > { %v2095_v2 = vadd.f32 %v2030_v0, %v4829_v51  ;;  %v2692_v1 = vpop.f32.mrf.mxu3 }
 0x31c   : > { %v3152_v30 = vpack.c.bf16 %v3110_v3, %v3110_v3  ;;  %v2746_v57 = vadd.f32 %v2680_v23, %v2469_v34 }
 0x31e   : > { %3195 = vst.msk [vmem:[%s5030_s16 + $0x64] sm:$0xf] %vm3169_vm4, %v3152_v30  ;;  %v3023_v27 = vadd.f32 %v2957_v13, %v2746_v57 }
 0x320   : > { %v2959_v17 = vpop.f32.mrf.mxu0  ;;  %v3069_v36 = vadd.f32 %v5013_v20, %v3023_v27 }
 0x321   : > { %v2405_v54 = vpop.f32.mrf.mxu2 }
 0x322   : > { %v3111_v58 = vmax.f32 %v3069_v36, 0.0  ;;  %v2470_v55 = vadd.f32 %v2405_v54, %v2095_v2  ;;  %v2033_v50 = vpop.f32.mrf.mxu1 }
 0x323   : > { %v2096_v63 = vadd.f32 %v2033_v50, %v4841_v35 }
 0x324   : > { %v3153_v29 = vpack.c.bf16 %v3111_v58, %v3111_v58  ;;  %v2747_v40 = vadd.f32 %v2682_v39, %v2470_v55 }
 0x326   : > { %3196 = vst.msk [vmem:[%s5030_s16 + $0x68] sm:$0xf] %vm3169_vm4, %v3153_v29  ;;  %v3024_v31 = vadd.f32 %v2959_v17, %v2747_v40 }
 0x328   : > { %v2962_v23 = vpop.f32.mrf.mxu0  ;;  %v3070_v5 = vadd.f32 %v5013_v20, %v3024_v31 }
 0x329   : > { %v2408_v14 = vpop.f32.mrf.mxu2 }
 0x32a   : > { %v3112_v52 = vmax.f32 %v3070_v5, 0.0  ;;  %v2471_v60 = vadd.f32 %v2408_v14, %v2096_v63  ;;  %v2035_v51 = vpop.f32.mrf.mxu1 }
 0x32b   : > { %v2097_v24 = vadd.f32 %v2035_v51, %v4854_v10 }
 0x32c   : > { %v3154_v8 = vpack.c.bf16 %v3112_v52, %v3112_v52  ;;  %v2748_v18 = vadd.f32 %v2685_v16, %v2471_v60  ;;  %v2695_v16 = vpop.f32.mrf.mxu3 }
 0x32e   : > { %3197 = vst.msk [vmem:[%s5030_s16 + $0x6c] sm:$0xf] %vm3169_vm4, %v3154_v8  ;;  %v3025_v21 = vadd.f32 %v2962_v23, %v2748_v18  ;;  %v5367_v18 = vld [vmem:[%s5408_s2] ss:$0 sm:$0xff] }
 0x330   : > { %v2964_v39 = vpop.f32.mrf.mxu0  ;;  %v3071_v44 = vadd.f32 %v5013_v20, %v3025_v21 }
 0x331   : > { %v2410_v4 = vpop.f32.mrf.mxu2 }
 0x332   : > { %v3113_v48 = vmax.f32 %v3071_v44, 0.0  ;;  %v2472_v59 = vadd.f32 %v2410_v4, %v2097_v24  ;;  %v2038_v35 = vpop.f32.mrf.mxu1 }
 0x333   : > { %v2098_v25 = vadd.f32 %v2038_v35, %v4866_v26 }
 0x334   : > { %v3155_v15 = vpack.c.bf16 %v3113_v48, %v3113_v48  ;;  %v2749_v32 = vadd.f32 %v2687_v19, %v2472_v59  ;;  %v2697_v34 = vpop.f32.mrf.mxu3 }
 0x336   : > { %3198 = vst.msk [vmem:[%s5030_s16 + $0x70] sm:$0xf] %vm3169_vm4, %v3155_v15  ;;  %v3026_v12 = vadd.f32 %v2964_v39, %v2749_v32 }
 0x338   : > { %v2967_v45 = vpop.f32.mrf.mxu0  ;;  %v3072_v49 = vadd.f32 %v5013_v20, %v3026_v12 }
 0x339   : > { %v2413_v22 = vpop.f32.mrf.mxu2 }
 0x33a   : > { %v3114_v28 = vmax.f32 %v3072_v49, 0.0  ;;  %v2473_v9 = vadd.f32 %v2413_v22, %v2098_v25  ;;  %v2040_v10 = vpop.f32.mrf.mxu1 }
 0x33b   : > { %v2099_v7 = vadd.f32 %v2040_v10, %v4879_v11  ;;  %v5442_v10 = vld [vmem:[#allocation6_spill] sm:$0xff] }
 0x33c   : > { %v3156_v42 = vpack.c.bf16 %v3114_v28, %v3114_v28  ;;  %v2750_v62 = vadd.f32 %v2690_v37, %v2473_v9  ;;  %v2700_v50 = vpop.f32.mrf.mxu3 }
 0x33e   : > { %3199 = vst.msk [vmem:[%s5030_s16 + $0x74] sm:$0xf] %vm3169_vm4, %v3156_v42  ;;  %v3027_v46 = vadd.f32 %v2967_v45, %v2750_v62 }
 0x340   : > { %v2969_v6 = vpop.f32.mrf.mxu0  ;;  %v3073_v13 = vadd.f32 %v5013_v20, %v3027_v46 }
 0x341   : > { %v2415_v56 = vpop.f32.mrf.mxu2 }
 0x342   : > { %v3115_v47 = vmax.f32 %v3073_v13, 0.0  ;;  %v2474_v3 = vadd.f32 %v2415_v56, %v2099_v7  ;;  %v2043_v26 = vpop.f32.mrf.mxu1 }
 0x343   : > { %v2100_v17 = vadd.f32 %v2043_v26, %v4891_v41 }
 0x344   : > { %v3157_v0 = vpack.c.bf16 %v3115_v47, %v3115_v47  ;;  %v2751_v19 = vadd.f32 %v2692_v1, %v2474_v3  ;;  %v2702_v8 = vpop.f32.mrf.mxu3 }
 0x346   : > { %3200 = vst.msk [vmem:[%s5030_s16 + $0x78] sm:$0xf] %vm3169_vm4, %v3157_v0  ;;  %v3028_v30 = vadd.f32 %v2969_v6, %v2751_v19 }
 0x348   : > { %v2972_v57 = vpop.f32.mrf.mxu0  ;;  %v3074_v27 = vadd.f32 %v5013_v20, %v3028_v30 }
 0x349   : > { %v2418_v36 = vpop.f32.mrf.mxu2 }
 0x34a   : > { %v3116_v2 = vmax.f32 %v3074_v27, 0.0  ;;  %v2475_v54 = vadd.f32 %v2418_v36, %v2100_v17  ;;  %v2045_v11 = vpop.f32.mrf.mxu1 }
 0x34b   : > { %v2101_v31 = vadd.f32 %v2045_v11, %v4904_v61 }
 0x34c   : > { %v3158_v58 = vpack.c.bf16 %v3116_v2, %v3116_v2  ;;  %v2752_v55 = vadd.f32 %v2695_v16, %v2475_v54  ;;  %v2705_v12 = vpop.f32.mrf.mxu3 }
 0x34e   : > { %3201 = vst.msk [vmem:[%s5030_s16 + $0x7c] sm:$0xf] %vm3169_vm4, %v3158_v58  ;;  %v3029_v29 = vadd.f32 %v2972_v57, %v2752_v55  ;;  %v5444_v55 = vld [vmem:[#allocation10_spill] sm:$0xff] }
 0x350   : > { %v2974_v40 = vpop.f32.mrf.mxu0  ;;  %v3075_v37 = vadd.f32 %v5013_v20, %v3029_v29 }
 0x351   : > { %v2420_v23 = vpop.f32.mrf.mxu2 }
 0x352   : > { %v3117_v5 = vmax.f32 %v3075_v37, 0.0  ;;  %v2476_v63 = vadd.f32 %v2420_v23, %v2101_v31  ;;  %v2048_v41 = vpop.f32.mrf.mxu1 }
 0x353   : > { %v2102_v61 = vadd.f32 %v2048_v41, %v4916_v38 }
 0x354   : > { %v3159_v14 = vpack.c.bf16 %v3117_v5, %v3117_v5  ;;  %v2753_v52 = vadd.f32 %v2697_v34, %v2476_v63  ;;  %v2707_v13 = vpop.f32.mrf.mxu3  ;;  %v5443_v34 = vld [vmem:[#allocation8_spill] sm:$0xff] }
 0x356   : > { %3202 = vst.msk [vmem:[%s5030_s16 + $0x80] sm:$0xf] %vm3169_vm4, %v3159_v14  ;;  %v3030_v60 = vadd.f32 %v2974_v40, %v2753_v52  ;;  %v5445_v52 = vld [vmem:[#allocation11_spill] sm:$0xff] }
 0x358   : > { %v2977_v51 = vpop.f32.mrf.mxu0  ;;  %v3076_v20 = vadd.f32 %v5367_v18, %v3030_v60 }
 0x359   : > { %v2423_v21 = vpop.f32.mrf.mxu2 }
 0x35a   : > { %v3118_v39 = vmax.f32 %v3076_v20, 0.0  ;;  %v2477_v1 = vadd.f32 %v2423_v21, %v2102_v61  ;;  %v2050_v44 = vpop.f32.mrf.mxu1 }
 0x35b   : > { %v2103_v15 = vadd.f32 %v2050_v44, %v4929_v43 }
 0x35c   : > { %v3160_v24 = vpack.c.bf16 %v3118_v39, %v3118_v39  ;;  %v2754_v4 = vadd.f32 %v2700_v50, %v2477_v1  ;;  %v2710_v2 = vpop.f32.mrf.mxu3 }
 0x35e   : > { %3203 = vst.msk [vmem:[%s5030_s16 + $0x84] sm:$0xf] %vm3169_vm4, %v3160_v24  ;;  %v3031_v48 = vadd.f32 %v2977_v51, %v2754_v4 }
 0x360   : > { %v2979_v59 = vpop.f32.mrf.mxu0  ;;  %v3077_v35 = vadd.f32 %v5367_v18, %v3031_v48 }
 0x361   : > { %v2425_v32 = vpop.f32.mrf.mxu2 }
 0x362   : > { %v3119_v45 = vmax.f32 %v3077_v35, 0.0  ;;  %v2478_v49 = vadd.f32 %v2425_v32, %v2103_v15  ;;  %v2053_v38 = vpop.f32.mrf.mxu1 }
 0x363   : > { %v2104_v42 = vadd.f32 %v2053_v38, %v5442_v10 }
 0x364   : > { %v3161_v25 = vpack.c.bf16 %v3119_v45, %v3119_v45  ;;  %v2755_v22 = vadd.f32 %v2702_v8, %v2478_v49  ;;  %v2712_v41 = vpop.f32.mrf.mxu3 }
 0x366   : > { %3204 = vst.msk [vmem:[%s5030_s16 + $0x88] sm:$0xf] %vm3169_vm4, %v3161_v25  ;;  %v3032_v16 = vadd.f32 %v2979_v59, %v2755_v22 }
 0x368   : > { %v2982_v28 = vpop.f32.mrf.mxu0  ;;  %v3078_v9 = vadd.f32 %v5367_v18, %v3032_v16 }
 0x369   : > { %v2428_v62 = vpop.f32.mrf.mxu2 }
 0x36a   : > { %v3120_v46 = vmax.f32 %v3078_v9, 0.0  ;;  %v2479_v6 = vadd.f32 %v2428_v62, %v2104_v42  ;;  %v2055_v43 = vpop.f32.mrf.mxu1 }
 0x36b   : > { %v2105_v0 = vadd.f32 %v2055_v43, %v5443_v34 }
 0x36c   : > { %v3162_v7 = vpack.c.bf16 %v3120_v46, %v3120_v46  ;;  %v2756_v56 = vadd.f32 %v2705_v12, %v2479_v6  ;;  %v2715_v48 = vpop.f32.mrf.mxu3 }
 0x36e   : > { %3205 = vst.msk [vmem:[%s5030_s16 + $0x8c] sm:$0xf] %vm3169_vm4, %v3162_v7  ;;  %v3033_v47 = vadd.f32 %v2982_v28, %v2756_v56 }
 0x370   : > { %v2984_v3 = vpop.f32.mrf.mxu0  ;;  %v3079_v26 = vadd.f32 %v5367_v18, %v3033_v47 }
 0x371   : > { %v2430_v19 = vpop.f32.mrf.mxu2 }
 0x372   : > { %v3121_v30 = vmax.f32 %v3079_v26, 0.0  ;;  %v2480_v57 = vadd.f32 %v2430_v19, %v2105_v0  ;;  %v2058_v27 = vpop.f32.mrf.mxu1 }
 0x373   : > { %v2106_v50 = vadd.f32 %v2058_v27, %v5444_v55 }
 0x374   : > { %v3163_v17 = vpack.c.bf16 %v3121_v30, %v3121_v30  ;;  %v2757_v36 = vadd.f32 %v2707_v13, %v2480_v57  ;;  %v2717_v9 = vpop.f32.mrf.mxu3 }
 0x376   : > { %3206 = vst.msk [vmem:[%s5030_s16 + $0x90] sm:$0xf] %vm3169_vm4, %v3163_v17  ;;  %v3034_v54 = vadd.f32 %v2984_v3, %v2757_v36 }
 0x378   : > { %v2987_v11 = vpop.f32.mrf.mxu0  ;;  %v3080_v58 = vadd.f32 %v5367_v18, %v3034_v54 }
 0x379   : > { %v2433_v29 = vpop.f32.mrf.mxu2 }
 0x37a   : > { %v3122_v40 = vmax.f32 %v3080_v58, 0.0  ;;  %v2481_v37 = vadd.f32 %v2433_v29, %v2106_v50  ;;  %v2060_v31 = vpop.f32.mrf.mxu1 }
 0x37b   : > { %v2107_v60 = vadd.f32 %v2060_v31, %v5445_v52 }
 0x37c   : > { %v3164_v23 = vpack.c.bf16 %v3122_v40, %v3122_v40  ;;  %v2758_v5 = vadd.f32 %v2710_v2, %v2481_v37 }
 0x37e   : > { %3207 = vst.msk [vmem:[%s5030_s16 + $0x94] sm:$0xf] %vm3169_vm4, %v3164_v23  ;;  %v3035_v63 = vadd.f32 %v2987_v11, %v2758_v5 }
 0x380   : > { %v3081_v14 = vadd.f32 %v5367_v18, %v3035_v63  ;;  %v2989_v51 = vpop.f32.mrf.mxu0 }
 0x381   : > { %v2435_v8 = vpop.f32.mrf.mxu2 }
 0x382   : > { %v3123_v20 = vmax.f32 %v3081_v14, 0.0  ;;  %v2482_v61 = vadd.f32 %v2435_v8, %v2107_v60  ;;  %v2063_v21 = vpop.f32.mrf.mxu1 }
 0x383   : > { %v2108_v4 = vadd.f32 %v2063_v21, %v4991_v53 }
 0x384   : > { %v3165_v39 = vpack.c.bf16 %v3123_v20, %v3123_v20  ;;  %v2759_v1 = vadd.f32 %v2712_v41, %v2482_v61 }
 0x386   : > { %3208 = vst.msk [vmem:[%s5030_s16 + $0x98] sm:$0xf] %vm3169_vm4, %v3165_v39  ;;  %v3036_v44 = vadd.f32 %v2989_v51, %v2759_v1 }
 0x388   : > { %v3082_v24 = vadd.f32 %v5367_v18, %v3036_v44  ;;  %v2992_v32 = vpop.f32.mrf.mxu0 }
 0x389   : > { %v2438_v59 = vpop.f32.mrf.mxu2 }
 0x38a   : > { %v3124_v35 = vmax.f32 %v3082_v24, 0.0  ;;  %v2483_v15 = vadd.f32 %v2438_v59, %v2108_v4  ;;  %v2065_v49 = vpop.f32.mrf.mxu1 }
 0x38b   : > { %v2109_v22 = vadd.f32 %v2065_v49, %v5004_v33 }
 0x38c   : > { %v3166_v12 = vpack.c.bf16 %v3124_v35, %v3124_v35  ;;  %v2760_v45 = vadd.f32 %v2715_v48, %v2483_v15 }
 0x38e   : > { %3209 = vst.msk [vmem:[%s5030_s16 + $0x9c] sm:$0xf] %vm3169_vm4, %v3166_v12  ;;  %v3037_v38 = vadd.f32 %v2992_v32, %v2760_v45 }
 0x390   : > { %v3083_v25 = vadd.f32 %v5367_v18, %v3037_v38  ;;  %v2994_v62 = vpop.f32.mrf.mxu0 }
 0x391   : > { %v2440_v16 = vpop.f32.mrf.mxu2 }
 0x392   : > { %v3125_v28 = vmax.f32 %v3083_v25, 0.0  ;;  %v2484_v53 = vadd.f32 %v2440_v16, %v2109_v22 }
 0x394   : > { %v3167_v10 = vpack.c.bf16 %v3125_v28, %v3125_v28  ;;  %v2761_v42 = vadd.f32 %v2717_v9, %v2484_v53 }
 0x396   : > { %3210 = vst.msk [vmem:[%s5030_s16 + $0xa0] sm:$0xf] %vm3169_vm4, %v3167_v10  ;;  %v3038_v46 = vadd.f32 %v2994_v62, %v2761_v42 }
 0x398   : > { %v3084_v6 = vadd.f32 %v5367_v18, %v3038_v46 }
 0x39a   : > { %v3126_v43 = vmax.f32 %v3084_v6, 0.0 }
 0x39c   : > { %v3168_v13 = vpack.c.bf16 %v3126_v43, %v3126_v43 }
 0x39e   : > { %3212 = vst.msk [vmem:[%s5030_s16 + $0xa4] sm:$0x3] %vm3211_vm5, %v3168_v13 }
 0x39f PF: > { %s13_s12 = sadd.s32 1, %s4088_s12  }
 0x3a0   : > { %p10_p4 = scmp.ge.s32.totalorder %s13_s12, 4  }
 0x3a2   :  { %12 = sbr.rel (!%p10_p4) target bundleno = 1 (0x1), region = 70 }

// kernel: sunet3d2d_forward.4
= control target key start
LH: loop header
LB: loop body
LE: loop exit
PB: predicated region body
PF: predicated region fallthrough
CT: control target
= control target key end

     0   :  { %s11160_s12 = smov 0   ;;  %s13537_s0 = inlined_call_operand.vmem [shape: bf16[2,1024,8], index: 0, kind: input, shape index: {}]   ;;  %s13538_s1 = inlined_call_operand.vmem [shape: bf16[9,8,8], index: 1, kind: input, shape index: {}]   ;;  %s13539_s2 = inlined_call_operand.vmem [shape: f32[1,8], index: 2, kind: input, shape index: {}]   ;;  %s13540_s3 = inlined_call_operand.vmem [shape: bf16[2,888,8], index: 3, kind: output, shape index: {}]  }
   0x1 LB: > { %s8073_s13 = sadd.s32 4294967295, %s11138_s12   ;;  %p8077_p0 = scmp.ge.s32.totalorder %s11138_s12, 1  ;;  %s11138_s12 = sphi %s11160_s12, %s13_s12  }
   0x2   : > { %p137_p1 = scmp.lt.s32.totalorder %s11138_s12, 3 }
   0x4   : > { %p138_p2 = pnand %p8077_p0, %p137_p1 }
   0x6   : > { %141 = sbr.rel (%p138_p2) target bundleno = 2166 (0x876), region = 32 }
   0xb   : > { %v8081_v0 = vld [vmem:[%s13538_s1 + $0x4] sm:$0xf]  ;;  %vm849_vm0 = vcmask 1043456   ;;  %p161_p3 = scmp.lt.s32.totalorder %s8073_s13, 1  ;;  %v8194_v2 = vld [vmem:[%s13538_s1 + $0x8] sm:$0xf] }
   0xc   : > { %v851_v1 = vsel %vm849_vm0, %v8081_v0, 0  ;;  %v8251_v3 = vld [vmem:[%s13538_s1 + $0xc] sm:$0xf]  ;;  %v1834_v4 = vsel %vm849_vm0, %v8194_v2, 0  ;;  %v283_v6 = vld [vmem:[%s13538_s1] sm:$0xf] }
   0xd   : > { %11073 = vmatpush.bf16.msra.mxu1 %v851_v1  ;;  %11074 = vmatpush.bf16.msra.mxu2 %v851_v1  ;;  %s13836_s13 = smov (!%p161_p3, %s8073_s13), 1  ;;  %v2795_v5 = vsel %vm849_vm0, %v8251_v3, 0  ;;  %v1314_v7 = vsel %vm849_vm0, %v283_v6, 0  ;;  %v8528_v8 = vld [vmem:[%s13538_s1 + $0x10] sm:$0xf]  ;;  %vm568_vm1 = vcmask 1045504  }
   0xe   : > { %11075 = vmatpush.bf16.msra.mxu3 %v851_v1  ;;  %s9035_s24 = sshll.u32 %s13836_s13, 9  ;;  %860 = vmatpush.bf16.msra.mxu0 %v851_v1  ;;  %v3870_v9 = vsel %vm849_vm0, %v8528_v8, 0  ;;  %vm680_vm2 = vcmask 64512   ;;  %s11076_s11 = smul.u32 444, %s13836_s13  ;;  %vm7906_vm3 = vcmask 60416  }
   0xf   : > { %s11194_s27 = scalar_lea.vmem %s13537_s0, %s9035_s24 }
  0x10   : > { %v11197_v10 = vld [vmem:[%s11194_s27 + $0x70] sm:$0xff]   ;;  %v9812_v11 = vld [vmem:[%s11194_s27 + $0x78] sm:$0xff]   ;;  %v11201_v12 = vld [vmem:[%s11194_s27 + $0xe0] sm:$0xff]   ;;  %s12646_s16 = scalar_lea.vmem %s13540_s3, %s11076_s11 }
  0x11   : > { %1843 = vmatpush.bf16.msrb.mxu2 %v1834_v4  ;;  %1323 = vmatpush.bf16.msrb.mxu1 %v1314_v7  ;;  %v13542_v13 = vrot.slane %v11197_v10, 2  ;;  %v598_v14 = vrot.slane %v9812_v11, 2  ;;  %v9826_v15 = vld [vmem:[%s11194_s27 + $0xe8] sm:$0xff]   ;;  %v13544_v16 = vrot.slane %v11201_v12, 2  ;;  %v11207_v17 = vld [vmem:[%s11194_s27 + $0x150] sm:$0xff]   ;;  %v9840_v18 = vld [vmem:[%s11194_s27 + $0x158] sm:$0xff]  }
  0x12   : > { %2804 = vmatpush.bf16.msrb.mxu3 %v2795_v5  ;;  %3879 = vmatpush.bf16.msrb.mxu0 %v3870_v9  ;;  %v626_v19 = vrot.slane %v9826_v15, 2  ;;  %v13543_v20 = vrot.slane %v11207_v17, 2  ;;  %v654_v21 = vrot.slane %v9840_v18, 2  ;;  %v11212_v22 = vld [vmem:[%s11194_s27] sm:$0xff]   ;;  %v11219_v25 = vld [vmem:[%s11194_s27 + $0x8] sm:$0xff]   ;;  %v9827_v35 = vld [vmem:[%s11194_s27 + $0xf0] sm:$0xff]  }
  0x13   : > { %v599_v23 = vsel %vm568_vm1, %v13542_v13, %v598_v14  ;;  %v13541_v24 = vunpack.c.h.b16 %v11212_v22  ;;  %v284_v26 = vld [vmem:[%s11194_s27] sm:$0xc]  ;;  %v570_v31 = vrot.slane %v11219_v25, 2  ;;  %v628_v38 = vrot.slane %v9827_v35, 2  ;;  %v11241_v41 = vld [vmem:[%s11194_s27 + $0x10] sm:$0xff]   ;;  %v9814_v46 = vld [vmem:[%s11194_s27 + $0x88] sm:$0xff]  }
  0x14   : > { %8096 = vmatmul.msk.bf16.vlgmr.msra.gmra.mxu1 %vm680_vm2, %v599_v23  ;;  %v627_v27 = vsel %vm568_vm1, %v13544_v16, %v626_v19  ;;  %v655_v28 = vsel %vm568_vm1, %v13543_v20, %v654_v21  ;;  %v400_v29 = vunpack.c.l.b16 %v284_v26  ;;  %v9813_v34 = vld [vmem:[%s11194_s27 + $0x80] sm:$0xff]   ;;  %v572_v44 = vrot.slane %v11241_v41, 2  ;;  %v9828_v47 = vld [vmem:[%s11194_s27 + $0xf8] sm:$0xff]   ;;  %v9842_v48 = vld [vmem:[%s11194_s27 + $0x168] sm:$0xff]  }
  0x15   : > { %8110 = vmatmul.msk.bf16.vlgmr.msra.gmra.mxu2 %vm680_vm2, %v627_v27  ;;  %8124 = vmatmul.msk.bf16.vlgmr.msra.gmra.mxu3 %vm680_vm2, %v655_v28  ;;  %v9841_v36 = vld [vmem:[%s11194_s27 + $0x160] sm:$0xff]   ;;  %v600_v37 = vrot.slane %v9813_v34, 2  ;;  %v629_v42 = vsel %vm568_vm1, %v626_v19, %v628_v38  ;;  %v602_v49 = vrot.slane %v9814_v46, 2  ;;  %v630_v50 = vrot.slane %v9828_v47, 2  ;;  %v11256_v53 = vld [vmem:[%s11194_s27 + $0x18] sm:$0xff]   ;;  %v9815_v58 = vld [vmem:[%s11194_s27 + $0x90] sm:$0xff]  }
  0x16   : > { %v512_v30 = vpack.c.b16 %v13541_v24, %v400_v29  ;;  %v656_v39 = vrot.slane %v9841_v36, 2  ;;  %v573_v45 = vsel %vm568_vm1, %v570_v31, %v572_v44  ;;  %v658_v51 = vrot.slane %v9842_v48, 2  ;;  %v9829_v59 = vld [vmem:[%s11194_s27 + $0x100] sm:$0xff]   ;;  %v9843_v60 = vld [vmem:[%s11194_s27 + $0x170] sm:$0xff]   ;;  %v9816_v6 = vld [vmem:[%s11194_s27 + $0x98] sm:$0xff]  }
  0x17   : > { %v601_v40 = vsel %vm568_vm1, %v598_v14, %v600_v37  ;;  %v603_v52 = vsel %vm568_vm1, %v600_v37, %v602_v49  ;;  %v631_v54 = vsel %vm568_vm1, %v628_v38, %v630_v50  ;;  %v574_v56 = vrot.slane %v11256_v53, 2  ;;  %v11271_v1 = vld [vmem:[%s11194_s27 + $0x20] sm:$0xff]   ;;  %v9830_v7 = vld [vmem:[%s11194_s27 + $0x108] sm:$0xff]   ;;  %v9844_v8 = vld [vmem:[%s11194_s27 + $0x178] sm:$0xff]  }
  0x18   : > { %v569_v32 = vrot.slane %v512_v30, 2  ;;  %v657_v43 = vsel %vm568_vm1, %v654_v21, %v656_v39  ;;  %v659_v55 = vsel %vm568_vm1, %v656_v39, %v658_v51  ;;  %v604_v61 = vrot.slane %v9815_v58, 2  ;;  %v11286_v18 = vld [vmem:[%s11194_s27 + $0x28] sm:$0xff]   ;;  %v9817_v27 = vld [vmem:[%s11194_s27 + $0xa0] sm:$0xff]   ;;  %v9831_v28 = vld [vmem:[%s11194_s27 + $0x110] sm:$0xff]  }
  0x19   : > { %v575_v57 = vsel %vm568_vm1, %v572_v44, %v574_v56  ;;  %v632_v62 = vrot.slane %v9829_v59, 2  ;;  %v660_v63 = vrot.slane %v9843_v60, 2  ;;  %v576_v4 = vrot.slane %v11271_v1, 2  ;;  %v9845_v29 = vld [vmem:[%s11194_s27 + $0x180] sm:$0xff]   ;;  %v11304_v34 = vld [vmem:[%s11194_s27 + $0x30] sm:$0xff]   ;;  %v9818_v39 = vld [vmem:[%s11194_s27 + $0xa8] sm:$0xff]  }
  0x1a   : > { %v571_v33 = vsel %vm568_vm1, %v569_v32, %v570_v31  ;;  %v605_v0 = vsel %vm568_vm1, %v602_v49, %v604_v61  ;;  %v606_v9 = vrot.slane %v9816_v6, 2  ;;  %v634_v11 = vrot.slane %v9830_v7, 2  ;;  %v11323_v47 = vld [vmem:[%s11194_s27 + $0x38] sm:$0xff]   ;;  %v11341_v60 = vld [vmem:[%s11194_s27 + $0x40] sm:$0xff]  }
  0x1b   : > { %8082 = vmatmul.msk.bf16.vlgmr.msra.gmra.mxu0 %vm680_vm2, %v571_v33  ;;  %v633_v2 = vsel %vm568_vm1, %v630_v50, %v632_v62  ;;  %v661_v3 = vsel %vm568_vm1, %v658_v51, %v660_v63  ;;  %v577_v5 = vsel %vm568_vm1, %v574_v56, %v576_v4  ;;  %v662_v14 = vrot.slane %v9844_v8, 2 }
  0x1c   : > { %v607_v15 = vsel %vm568_vm1, %v604_v61, %v606_v9  ;;  %v635_v19 = vsel %vm568_vm1, %v632_v62, %v634_v11  ;;  %v11292_v23 = vrot.slane %v11286_v18, 2  ;;  %v608_v30 = vrot.slane %v9817_v27, 2 }
  0x1d   : > { %v663_v21 = vsel %vm568_vm1, %v660_v63, %v662_v14  ;;  %v636_v31 = vrot.slane %v9831_v28, 2  ;;  %v664_v32 = vrot.slane %v9845_v29, 2  ;;  %v580_v37 = vrot.slane %v11304_v34, 2 }
  0x1e   : > { %v579_v26 = vsel %vm568_vm1, %v576_v4, %v11292_v23  ;;  %v609_v33 = vsel %vm568_vm1, %v606_v9, %v608_v30  ;;  %v582_v50 = vrot.slane %v11323_v47, 2  ;;  %v584_v63 = vrot.slane %v11341_v60, 2  ;;  %v9848_v4 = vld [vmem:[%s11194_s27 + $0x198] sm:$0xff]  }
  0x1f   : > { %v637_v35 = vsel %vm568_vm1, %v634_v11, %v636_v31  ;;  %v665_v36 = vsel %vm568_vm1, %v662_v14, %v664_v32  ;;  %v11314_v38 = vsel %vm568_vm1, %v11292_v23, %v580_v37  ;;  %v670_v7 = vrot.slane %v9848_v4, 2  ;;  %v11361_v11 = vld [vmem:[%s11194_s27 + $0x48] sm:$0xff]  }
  0x20   : > { %v11332_v51 = vsel %vm568_vm1, %v580_v37, %v582_v50 }
  0x24   : > { %8097 = vmatmul.msk.bf16.gmra.mxu1 %vm680_vm2, %v601_v40  ;;  %v9832_v40 = vld [vmem:[%s11194_s27 + $0x118] sm:$0xff]  }
  0x25   : > { %8111 = vmatmul.msk.bf16.gmra.mxu2 %vm680_vm2, %v629_v42  ;;  %8125 = vmatmul.msk.bf16.gmra.mxu3 %vm680_vm2, %v657_v43  ;;  %v9846_v42 = vld [vmem:[%s11194_s27 + $0x188] sm:$0xff]   ;;  %v610_v43 = vrot.slane %v9818_v39, 2  ;;  %v638_v44 = vrot.slane %v9832_v40, 2 }
  0x27   : > { %v611_v46 = vsel %vm568_vm1, %v608_v30, %v610_v43  ;;  %v639_v48 = vsel %vm568_vm1, %v636_v31, %v638_v44  ;;  %v9821_v30 = vld [vmem:[%s11194_s27 + $0xc0] sm:$0xff]   ;;  %v9835_v31 = vld [vmem:[%s11194_s27 + $0x130] sm:$0xff]  }
  0x2b   : > { %8083 = vmatmul.msk.bf16.gmra.mxu0 %vm680_vm2, %v573_v45  ;;  %v666_v45 = vrot.slane %v9846_v42, 2 }
  0x2d   : > { %v667_v49 = vsel %vm568_vm1, %v664_v32, %v666_v45  ;;  %v9849_v32 = vld [vmem:[%s11194_s27 + $0x1a0] sm:$0xff]  }
  0x34   : > { %8098 = vmatmul.msk.bf16.gmra.mxu1 %vm680_vm2, %v603_v52  ;;  %v9819_v52 = vld [vmem:[%s11194_s27 + $0xb0] sm:$0xff]  }
  0x35   : > { %8112 = vmatmul.msk.bf16.gmra.mxu2 %vm680_vm2, %v631_v54  ;;  %8126 = vmatmul.msk.bf16.gmra.mxu3 %vm680_vm2, %v659_v55  ;;  %v9833_v54 = vld [vmem:[%s11194_s27 + $0x120] sm:$0xff]   ;;  %v9847_v55 = vld [vmem:[%s11194_s27 + $0x190] sm:$0xff]   ;;  %v612_v56 = vrot.slane %v9819_v52, 2 }
  0x36   : > { %v668_v58 = vrot.slane %v9847_v55, 2 }
  0x37   : > { %v613_v59 = vsel %vm568_vm1, %v610_v43, %v612_v56 }
  0x38   : > { %v669_v62 = vsel %vm568_vm1, %v666_v45, %v668_v58 }
  0x3b   : > { %8084 = vmatmul.msk.bf16.gmra.mxu0 %vm680_vm2, %v575_v57  ;;  %v640_v57 = vrot.slane %v9833_v54, 2 }
  0x3d   : > { %v641_v61 = vsel %vm568_vm1, %v638_v44, %v640_v57  ;;  %v11395_v44 = vld [vmem:[%s11194_s27 + $0x50] sm:$0xff]  }
  0x44   : > { %8099 = vmatmul.msk.bf16.gmra.mxu1 %vm680_vm2, %v605_v0  ;;  %v11350_v0 = vsel %vm568_vm1, %v582_v50, %v584_v63 }
  0x45   : > { %8113 = vmatmul.msk.bf16.gmra.mxu2 %vm680_vm2, %v633_v2  ;;  %8127 = vmatmul.msk.bf16.gmra.mxu3 %vm680_vm2, %v661_v3  ;;  %v9820_v2 = vld [vmem:[%s11194_s27 + $0xb8] sm:$0xff]   ;;  %v9834_v3 = vld [vmem:[%s11194_s27 + $0x128] sm:$0xff]  }
  0x46   : > { %v642_v6 = vrot.slane %v9834_v3, 2 }
  0x48   : > { %v643_v14 = vsel %vm568_vm1, %v640_v57, %v642_v6  ;;  %v9836_v57 = vld [vmem:[%s11194_s27 + $0x138] sm:$0xff]  }
  0x4b   : > { %8085 = vmatmul.msk.bf16.gmra.mxu0 %vm680_vm2, %v577_v5  ;;  %v614_v5 = vrot.slane %v9820_v2, 2 }
  0x4d   : > { %v615_v9 = vsel %vm568_vm1, %v612_v56, %v614_v5  ;;  %v9822_v56 = vld [vmem:[%s11194_s27 + $0xc8] sm:$0xff]  }
  0x54   : > { %8100 = vmatmul.msk.bf16.gmra.mxu1 %vm680_vm2, %v607_v15  ;;  %v671_v15 = vsel %vm568_vm1, %v668_v58, %v670_v7  ;;  %v9850_v58 = vld [vmem:[%s11194_s27 + $0x1a8] sm:$0xff]  }
  0x55   : > { %8114 = vmatmul.msk.bf16.gmra.mxu2 %vm680_vm2, %v635_v19  ;;  %8128 = vmatmul.msk.bf16.gmra.mxu3 %vm680_vm2, %v663_v21  ;;  %v586_v19 = vrot.slane %v11361_v11, 2 }
  0x57   : > { %v11374_v27 = vsel %vm568_vm1, %v584_v63, %v586_v19 }
  0x5b   : > { %8086 = vmatmul.msk.bf16.gmra.mxu0 %vm680_vm2, %v579_v26 }
  0x64   : > { %8101 = vmatmul.msk.bf16.gmra.mxu1 %vm680_vm2, %v609_v33  ;;  %v616_v33 = vrot.slane %v9821_v30, 2 }
  0x65   : > { %8115 = vmatmul.msk.bf16.gmra.mxu2 %vm680_vm2, %v637_v35  ;;  %8129 = vmatmul.msk.bf16.gmra.mxu3 %vm680_vm2, %v665_v36  ;;  %v644_v35 = vrot.slane %v9835_v31, 2  ;;  %v672_v36 = vrot.slane %v9849_v32, 2 }
  0x66   : > { %v617_v43 = vsel %vm568_vm1, %v614_v5, %v616_v33 }
  0x67   : > { %v645_v45 = vsel %vm568_vm1, %v642_v6, %v644_v35  ;;  %v11429_v6 = vld [vmem:[%s11194_s27 + $0x58] sm:$0xff]  }
  0x6b   : > { %8087 = vmatmul.msk.bf16.gmra.mxu0 %vm680_vm2, %v11314_v38 }
  0x74   : > { %8102 = vmatmul.msk.bf16.gmra.mxu1 %vm680_vm2, %v611_v46  ;;  %v673_v46 = vsel %vm568_vm1, %v670_v7, %v672_v36 }
  0x75   : > { %8116 = vmatmul.msk.bf16.gmra.mxu2 %vm680_vm2, %v639_v48  ;;  %8130 = vmatmul.msk.bf16.gmra.mxu3 %vm680_vm2, %v667_v49  ;;  %v588_v48 = vrot.slane %v11395_v44, 2 }
  0x77   : > { %v11408_v52 = vsel %vm568_vm1, %v586_v19, %v588_v48 }
  0x7b   : > { %8088 = vmatmul.msk.bf16.gmra.mxu0 %vm680_vm2, %v11332_v51 }
  0x84   : > { %8103 = vmatmul.msk.bf16.gmra.mxu1 %vm680_vm2, %v613_v59  ;;  %v618_v59 = vrot.slane %v9822_v56, 2 }
  0x85   : > { %8117 = vmatmul.msk.bf16.gmra.mxu2 %vm680_vm2, %v641_v61  ;;  %8131 = vmatmul.msk.bf16.gmra.mxu3 %vm680_vm2, %v669_v62  ;;  %v646_v61 = vrot.slane %v9836_v57, 2  ;;  %v674_v62 = vrot.slane %v9850_v58, 2 }
  0x86   : > { %v619_v5 = vsel %vm568_vm1, %v616_v33, %v618_v59  ;;  %v9823_v33 = vld [vmem:[%s11194_s27 + $0xd0] sm:$0xff]  }
  0x87   : > { %v647_v7 = vsel %vm568_vm1, %v644_v35, %v646_v61  ;;  %v9837_v35 = vld [vmem:[%s11194_s27 + $0x140] sm:$0xff]  }
  0x8b   : > { %8089 = vmatmul.msk.bf16.gmra.mxu0 %vm680_vm2, %v11350_v0 }
  0x91   : > { %v11357_v8 = vpop.f32.mrf.mxu1 }
  0x94   : > { %8104 = vmatmul.msk.bf16.gmra.mxu1 %vm680_vm2, %v615_v9  ;;  %v675_v9 = vsel %vm568_vm1, %v672_v36, %v674_v62  ;;  %v9851_v36 = vld [vmem:[%s11194_s27 + $0x1b0] sm:$0xff]  }
  0x95   : > { %8118 = vmatmul.msk.bf16.gmra.mxu2 %vm680_vm2, %v643_v14  ;;  %8132 = vmatmul.msk.bf16.gmra.mxu3 %vm680_vm2, %v671_v15  ;;  %v590_v14 = vrot.slane %v11429_v6, 2 }
  0x97   : > { %v11442_v30 = vsel %vm568_vm1, %v588_v48, %v590_v14 }
  0x98   : > { %v11369_v21 = vpop.f32.mrf.mxu0  ;;  %v11371_v26 = vpop.f32.mrf.mxu2 }
  0x99   : > { %13551 = vst [vmem:[#allocation2_spill] sm:$0xff] %v11371_v26  ;;  %v11376_v28 = vpop.f32.mrf.mxu3  ;;  %v11378_v29 = vpop.f32.mrf.mxu1  ;;  %v9040_v26 = vld [vmem:[%s11194_s27 + $0x40] sm:$0xff] }
  0x9a   : > { %13552 = vst [vmem:[#allocation3_spill] sm:$0xff] %v11376_v28  ;;  %v11501_v28 = vld [vmem:[%s11194_s27 + $0x68] sm:$0xff]  }
  0x9b   : > { %8090 = vmatmul.msk.bf16.gmra.mxu0 %vm680_vm2, %v11374_v27 }
  0xa0   : > { %v11385_v37 = vpop.f32.mrf.mxu0  ;;  %v11387_v39 = vpop.f32.mrf.mxu2 }
  0xa1   : > { %13553 = vst [vmem:[#allocation4_spill] sm:$0xff] %v11387_v39  ;;  %v11389_v40 = vpop.f32.mrf.mxu3  ;;  %v11391_v42 = vpop.f32.mrf.mxu1 }
  0xa2   : > { %13554 = vst [vmem:[#allocation5_spill] sm:$0xff] %v11389_v40 }
  0xa4   : > { %8105 = vmatmul.msk.bf16.gmra.mxu1 %vm680_vm2, %v617_v43  ;;  %v620_v43 = vrot.slane %v9823_v33, 2  ;;  %v282_v33 = vld [vmem:[%s11194_s27 + $0x1b8] sm:$0xf] }
  0xa5   : > { %8119 = vmatmul.msk.bf16.gmra.mxu2 %vm680_vm2, %v645_v45  ;;  %8133 = vmatmul.msk.bf16.gmra.mxu3 %vm680_vm2, %v673_v46  ;;  %v648_v45 = vrot.slane %v9837_v35, 2  ;;  %v676_v46 = vrot.slane %v9851_v36, 2  ;;  %v285_v35 = vld [vmem:[%s11194_s27 + $0x1bc] sm:$0x3]  ;;  %v11473_v13 = vunpack.c.l.b16 %v282_v33 }
  0xa7   : > { %v677_v24 = vsel %vm568_vm1, %v674_v62, %v676_v46  ;;  %13563 = vst [vmem:[#allocation14_spill] sm:$0xff] %v11473_v13 }
  0xa8   : > { %v11403_v49 = vpop.f32.mrf.mxu0  ;;  %v11405_v50 = vpop.f32.mrf.mxu2 }
  0xa9   : > { %13555 = vst [vmem:[#allocation6_spill] sm:$0xff] %v11405_v50  ;;  %v11410_v54 = vpop.f32.mrf.mxu3  ;;  %v11412_v55 = vpop.f32.mrf.mxu1  ;;  %v9039_v50 = vld [vmem:[%s11194_s27 + $0x38] sm:$0xff] }
  0xaa   : > { %13556 = vst [vmem:[#allocation7_spill] sm:$0xff] %v11410_v54 }
  0xab   : > { %8091 = vmatmul.msk.bf16.gmra.mxu0 %vm680_vm2, %v11408_v52 }
  0xb0   : > { %v11419_v63 = vpop.f32.mrf.mxu0  ;;  %v11421_v2 = vpop.f32.mrf.mxu2 }
  0xb1   : > { %13557 = vst [vmem:[#allocation8_spill] sm:$0xff] %v11421_v2  ;;  %v11423_v3 = vpop.f32.mrf.mxu3  ;;  %v11425_v4 = vpop.f32.mrf.mxu1 }
  0xb2   : > { %13558 = vst [vmem:[#allocation9_spill] sm:$0xff] %v11423_v3 }
  0xb4   : > { %8106 = vmatmul.msk.bf16.gmra.mxu1 %vm680_vm2, %v619_v5  ;;  %v621_v5 = vsel %vm568_vm1, %v618_v59, %v620_v43  ;;  %v511_v59 = vunpack.c.l.b16 %v285_v35 }
  0xb5   : > { %8120 = vmatmul.msk.bf16.gmra.mxu2 %vm680_vm2, %v647_v7  ;;  %8134 = vmatmul.msk.bf16.gmra.mxu3 %vm680_vm2, %v675_v9  ;;  %v11463_v7 = vld [vmem:[%s11194_s27 + $0x60] sm:$0xff]   ;;  %v649_v9 = vsel %vm568_vm1, %v646_v61, %v648_v45 }
  0xb6   : > { %v592_v36 = vrot.slane %v11463_v7, 2 }
  0xb8   : > { %v11437_v15 = vpop.f32.mrf.mxu0  ;;  %v11439_v19 = vpop.f32.mrf.mxu2  ;;  %v11480_v61 = vsel %vm568_vm1, %v590_v14, %v592_v36 }
  0xb9   : > { %13559 = vst [vmem:[#allocation10_spill] sm:$0xff] %v11439_v19  ;;  %v11444_v31 = vpop.f32.mrf.mxu3  ;;  %v11446_v32 = vpop.f32.mrf.mxu1 }
  0xba   : > { %13560 = vst [vmem:[#allocation11_spill] sm:$0xff] %v11444_v31 }
  0xbb   : > { %8092 = vmatmul.msk.bf16.gmra.mxu0 %vm680_vm2, %v11442_v30 }
  0xc0   : > { %v11453_v56 = vpop.f32.mrf.mxu0  ;;  %v11455_v57 = vpop.f32.mrf.mxu2 }
  0xc1   : > { %13561 = vst [vmem:[#allocation12_spill] sm:$0xff] %v11455_v57  ;;  %v11457_v48 = vpop.f32.mrf.mxu3  ;;  %v11459_v58 = vpop.f32.mrf.mxu1 }
  0xc2   : > { %13562 = vst [vmem:[#allocation13_spill] sm:$0xff] %v11457_v48  ;;  %v9824_v48 = vld [vmem:[%s11194_s27 + $0xd8] sm:$0xff]  }
  0xc3   : > { %v622_v33 = vrot.slane %v9824_v48, 2  ;;  %v11507_v48 = vrot.slane %v11501_v28, 2 }
  0xc4   : > { %8107 = vmatmul.msk.bf16.gmra.mxu1 %vm680_vm2, %v621_v5 }
  0xc5   : > { %8121 = vmatmul.msk.bf16.gmra.mxu2 %vm680_vm2, %v649_v9  ;;  %8135 = vmatmul.msk.bf16.gmra.mxu3 %vm680_vm2, %v677_v24  ;;  %v567_v9 = vpack.c.b16 %v511_v59, %v11473_v13  ;;  %v9838_v24 = vld [vmem:[%s11194_s27 + $0x148] sm:$0xff]  }
  0xc6   : > { %v650_v35 = vrot.slane %v9838_v24, 2 }
  0xc7   : > { %v678_v31 = vrot.slane %v567_v9, 2  ;;  %v8642_v9 = vld [vmem:[%s13538_s1 + $0x18] sm:$0xf] }
  0xc8   : > { %v11475_v20 = vpop.f32.mrf.mxu0  ;;  %v11477_v16 = vpop.f32.mrf.mxu2  ;;  %v651_v59 = vsel %vm568_vm1, %v648_v45, %v650_v35 }
  0xc9   : > { %13564 = vst [vmem:[#allocation15_spill] sm:$0xff] %v11477_v16  ;;  %v11482_v62 = vpop.f32.mrf.mxu3  ;;  %v11484_v5 = vpop.f32.mrf.mxu1  ;;  %v679_v13 = vsel %vm568_vm1, %v676_v46, %v678_v31  ;;  %v11521_v46 = vsel %vm568_vm1, %v592_v36, %v11507_v48 }
  0xca   : > { %13565 = vst [vmem:[#allocation16_spill] sm:$0xff] %v11482_v62  ;;  %v623_v62 = vsel %vm568_vm1, %v620_v43, %v622_v33  ;;  %v5462_v43 = vsel %vm849_vm0, %v8642_v9, 0  ;;  %v8585_v9 = vld [vmem:[%s13538_s1 + $0x14] sm:$0xf] }
  0xcb   : > { %8093 = vmatmul.msk.bf16.gmra.mxu0 %vm680_vm2, %v11480_v61  ;;  %5471 = vmatpush.bf16.msra.mxu2 %v5462_v43  ;;  %v4501_v36 = vsel %vm849_vm0, %v8585_v9, 0 }
  0xcc   : > { %4510 = vmatpush.bf16.msra.mxu1 %v4501_v36  ;;  %v13573_v36 = vrot.slane %v11207_v17, 2 }
  0xd0   : > { %v11491_v3 = vpop.f32.mrf.mxu0  ;;  %v11493_v54 = vpop.f32.mrf.mxu2 }
  0xd1   : > { %13566 = vst [vmem:[#allocation17_spill] sm:$0xff] %v11493_v54  ;;  %v11495_v14 = vpop.f32.mrf.mxu3  ;;  %v11497_v40 = vpop.f32.mrf.mxu1  ;;  %v13572_v54 = vrot.slane %v11201_v12, 2  ;;  %v13575_v12 = vrot.slane %v11197_v10, 2 }
  0xd2   : > { %13567 = vst [vmem:[#allocation18_spill] sm:$0xff] %v11495_v14 }
  0xd3   : > { %v625_v16 = vsel %vm568_vm1, %v622_v33, %v13572_v54  ;;  %v597_v54 = vsel %vm568_vm1, %v11507_v48, %v13575_v12  ;;  %v13579_v12 = vunpack.c.h.b16 %v11212_v22 }
  0xd4   : > { %8108 = vmatmul.msk.bf16.gmra.mxu1 %vm680_vm2, %v623_v62  ;;  %v8919_v62 = vld [vmem:[%s13538_s1 + $0x1c] sm:$0xf] }
  0xd5   : > { %8122 = vmatmul.msk.bf16.gmra.mxu2 %vm680_vm2, %v651_v59  ;;  %8136 = vmatmul.msk.bf16.gmra.mxu3 %vm680_vm2, %v679_v13  ;;  %v6537_v14 = vsel %vm849_vm0, %v8919_v62, 0  ;;  %v8976_v62 = vld [vmem:[%s13538_s1 + $0x20] sm:$0xf] }
  0xd6   : > { %6546 = vmatpush.bf16.msra.mxu3 %v6537_v14  ;;  %v7168_v9 = vsel %vm849_vm0, %v8976_v62, 0  ;;  %v9152_v62 = vunpack.c.l.b16 %v11219_v25 }
  0xd7   : > { %7177 = vmatpush.bf16.msra.mxu0 %v7168_v9 }
  0xd8   : > { %v11515_v24 = vpop.f32.mrf.mxu0  ;;  %v11517_v45 = vpop.f32.mrf.mxu2 }
  0xd9   : > { %13568 = vst [vmem:[#allocation19_spill] sm:$0xff] %v11517_v45  ;;  %v11526_v13 = vpop.f32.mrf.mxu3  ;;  %v11528_v59 = vpop.f32.mrf.mxu1 }
  0xda   : > { %13569 = vst [vmem:[#allocation20_spill] sm:$0xff] %v11526_v13 }
  0xdb   : > { %8094 = vmatmul.msk.bf16.gmra.mxu0 %vm680_vm2, %v11521_v46 }
  0xe0   : > { %v11537_v43 = vpop.f32.mrf.mxu0  ;;  %v11539_v45 = vpop.f32.mrf.mxu2 }
  0xe1   : > { %13570 = vst [vmem:[#allocation21_spill] sm:$0xff] %v11539_v45  ;;  %v11544_v14 = vpop.f32.mrf.mxu3  ;;  %v11546_v13 = vpop.f32.mrf.mxu1  ;;  %v653_v45 = vsel %vm568_vm1, %v650_v35, %v13573_v36  ;;  %v3196_v35 = vld [vmem:[%s11194_s27 + $0x20] sm:$0xc] }
  0xe2   : > { %13571 = vst [vmem:[#allocation22_spill] sm:$0xff] %v11544_v14 }
  0xe4   : > { %8109 = vmatmul.msk.bf16.gmra.mxu1 %vm680_vm2, %v625_v16  ;;  %v11572_v16 = vld [vmem:[%s11194_s27 + $0x24] sm:$0xf] }
  0xe5   : > { %8123 = vmatmul.msk.bf16.gmra.mxu2 %vm680_vm2, %v653_v45  ;;  %8137 = vmatmul.msk.bf16.gmra.mxu3 %vm680_vm2, %v678_v31  ;;  %13577 = vst [vmem:[#allocation25_spill] sm:$0xff] %v11572_v16  ;;  %v3422_v31 = vunpack.c.l.b16 %v3196_v35  ;;  %v13548_v45 = vunpack.c.l.b16 %v11572_v16 }
  0xe7   : > { %v3534_v36 = vpack.c.b16 %v13548_v45, %v3422_v31 }
  0xe8   : > { %v11558_v14 = vpop.f32.mrf.mxu0  ;;  %v11560_v57 = vpop.f32.mrf.mxu2 }
  0xe9   : > { %13574 = vst [vmem:[#allocation23_spill] sm:$0xff] %v11560_v57  ;;  %v11566_v17 = vpop.f32.mrf.mxu3  ;;  %v11568_v33 = vpop.f32.mrf.mxu1  ;;  %v3590_v35 = vrot.slane %v3534_v36, 2 }
  0xea   : > { %13576 = vst [vmem:[#allocation24_spill] sm:$0xff] %v11566_v17  ;;  %v1609_v17 = vpack.c.b16 %v9152_v62, %v13579_v12 }
  0xeb   : > { %8095 = vmatmul.msk.bf16.gmra.mxu0 %vm680_vm2, %v597_v54  ;;  %v9036_v54 = vld [vmem:[%s11194_s27 + $0x20] sm:$0xff]  ;;  %v3592_v62 = vsel %vm568_vm1, %v3590_v35, %v11292_v23 }
  0xf0   : > { %v11577_v9 = vpop.f32.mrf.mxu0  ;;  %v11579_v10 = vpop.f32.mrf.mxu2 }
  0xf1   : > { %13578 = vst [vmem:[#allocation26_spill] sm:$0xff] %v11579_v10  ;;  %v11585_v57 = vpop.f32.mrf.mxu3  ;;  %v11587_v19 = vpop.f32.mrf.mxu1  ;;  %v9038_v10 = vld [vmem:[%s11194_s27 + $0x30] sm:$0xff] }
  0xf2   : > { %13580 = vst [vmem:[#allocation27_spill] sm:$0xff] %v11585_v57 }
  0xf3   : > { %13581 = vst [vmem:[#allocation28_spill] sm:$0xff] %v11587_v19 }
  0xf4   : > { %8138 = vmatmul.msk.bf16.vlgmr.msrb.gmra.mxu1 %vm680_vm2, %v11212_v22 }
  0xf5   : > { %8195 = vmatmul.msk.bf16.vlgmr.msrb.gmra.mxu2 %vm680_vm2, %v1609_v17  ;;  %8472 = vmatmul.msk.bf16.vlgmr.msrb.gmra.mxu3 %vm680_vm2, %v9036_v54  ;;  %v10757_v54 = vld [vmem:[%s11194_s27 + $0xc] sm:$0xff]  }
  0xf8   : > { %v11594_v16 = vpop.f32.mrf.mxu0  ;;  %v11596_v31 = vpop.f32.mrf.mxu2 }
  0xf9   : > { %13582 = vst [vmem:[#allocation29_spill] sm:$0xff] %v11596_v31  ;;  %v11600_v12 = vpop.f32.mrf.mxu3  ;;  %v11602_v45 = vpop.f32.mrf.mxu1  ;;  %v9037_v31 = vld [vmem:[%s11194_s27 + $0x28] sm:$0xff] }
  0xfa   : > { %13583 = vst [vmem:[#allocation30_spill] sm:$0xff] %v11600_v12 }
  0xfb   : > { %13584 = vst [vmem:[#allocation31_spill] sm:$0xff] %v11602_v45  ;;  %8529 = vmatmul.msk.bf16.vlgmr.msrb.gmra.mxu0 %vm680_vm2, %v3592_v62  ;;  %v10126_v45 = vld [vmem:[%s11194_s27 + $0x70] sm:$0xff]  }
 0x100   : > { %v11605_v57 = vpop.f32.mrf.mxu0  ;;  %v11607_v22 = vpop.f32.mrf.mxu2 }
 0x101   : > { %13585 = vst [vmem:[#allocation32_spill] sm:$0xff] %v11607_v22  ;;  %v11609_v17 = vpop.f32.mrf.mxu3  ;;  %v11611_v36 = vpop.f32.mrf.mxu1 }
 0x102   : > { %13586 = vst [vmem:[#allocation33_spill] sm:$0xff] %v11609_v17 }
 0x103   : > { %13587 = vst [vmem:[#allocation34_spill] sm:$0xff] %v11611_v36  ;;  %v9045_v36 = vld [vmem:[%s11194_s27 + $0x68] sm:$0xff] }
 0x104   : > { %8139 = vmatmul.msk.bf16.gmra.mxu1 %vm680_vm2, %v11219_v25 }
 0x105   : > { %8196 = vmatmul.msk.bf16.gmra.mxu2 %vm680_vm2, %v10757_v54  ;;  %8473 = vmatmul.msk.bf16.gmra.mxu3 %vm680_vm2, %v9037_v31  ;;  %v10759_v31 = vld [vmem:[%s11194_s27 + $0x14] sm:$0xff]  }
 0x108   : > { %v11619_v23 = vpop.f32.mrf.mxu0  ;;  %v11621_v35 = vpop.f32.mrf.mxu2 }
 0x109   : > { %13588 = vst [vmem:[#allocation35_spill] sm:$0xff] %v11621_v35  ;;  %v11623_v62 = vpop.f32.mrf.mxu3  ;;  %v11625_v17 = vpop.f32.mrf.mxu1 }
 0x10a   : > { %13589 = vst [vmem:[#allocation36_spill] sm:$0xff] %v11623_v62 }
 0x10b   : > { %13590 = vst [vmem:[#allocation37_spill] sm:$0xff] %v11625_v17  ;;  %8530 = vmatmul.msk.bf16.gmra.mxu0 %vm680_vm2, %v11314_v38 }
 0x110   : > { %v11629_v12 = vpop.f32.mrf.mxu0  ;;  %v11631_v22 = vpop.f32.mrf.mxu2 }
 0x111   : > { %13591 = vst [vmem:[#allocation38_spill] sm:$0xff] %v11631_v22  ;;  %v11633_v25 = vpop.f32.mrf.mxu3  ;;  %v11635_v54 = vpop.f32.mrf.mxu1 }
 0x112   : > { %13592 = vst [vmem:[#allocation39_spill] sm:$0xff] %v11633_v25 }
 0x113   : > { %13593 = vst [vmem:[#allocation40_spill] sm:$0xff] %v11635_v54 }
 0x114   : > { %8140 = vmatmul.msk.bf16.gmra.mxu1 %vm680_vm2, %v11241_v41 }
 0x115   : > { %8197 = vmatmul.msk.bf16.gmra.mxu2 %vm680_vm2, %v10759_v31  ;;  %8474 = vmatmul.msk.bf16.gmra.mxu3 %vm680_vm2, %v9038_v10  ;;  %v10761_v10 = vld [vmem:[%s11194_s27 + $0x1c] sm:$0xff]  }
 0x118   : > { %v11643_v38 = vpop.f32.mrf.mxu0  ;;  %v11645_v62 = vpop.f32.mrf.mxu2 }
 0x119   : > { %13594 = vst [vmem:[#allocation41_spill] sm:$0xff] %v11645_v62  ;;  %v11647_v22 = vpop.f32.mrf.mxu3  ;;  %v11649_v25 = vpop.f32.mrf.mxu1 }
 0x11a   : > { %13595 = vst [vmem:[#allocation42_spill] sm:$0xff] %v11647_v22 }
 0x11b   : > { %13596 = vst [vmem:[#allocation43_spill] sm:$0xff] %v11649_v25  ;;  %8531 = vmatmul.msk.bf16.gmra.mxu0 %vm680_vm2, %v11332_v51 }
 0x120   : > { %v11653_v35 = vpop.f32.mrf.mxu0  ;;  %v11655_v2 = vpop.f32.mrf.mxu2 }
 0x121   : > { %13597 = vst [vmem:[#allocation44_spill] sm:$0xff] %v11655_v2  ;;  %v11657_v41 = vpop.f32.mrf.mxu3  ;;  %v11659_v31 = vpop.f32.mrf.mxu1 }
 0x122   : > { %13598 = vst [vmem:[#allocation45_spill] sm:$0xff] %v11657_v41 }
 0x123   : > { %13599 = vst [vmem:[#allocation46_spill] sm:$0xff] %v11659_v31  ;;  %v9044_v31 = vld [vmem:[%s11194_s27 + $0x60] sm:$0xff] }
 0x124   : > { %8141 = vmatmul.msk.bf16.gmra.mxu1 %vm680_vm2, %v11256_v53 }
 0x125   : > { %8198 = vmatmul.msk.bf16.gmra.mxu2 %vm680_vm2, %v10761_v10  ;;  %8475 = vmatmul.msk.bf16.gmra.mxu3 %vm680_vm2, %v9039_v50  ;;  %v10763_v50 = vld [vmem:[%s11194_s27 + $0x24] sm:$0xff]  }
 0x128   : > { %v11667_v51 = vpop.f32.mrf.mxu0  ;;  %v11669_v22 = vpop.f32.mrf.mxu2 }
 0x129   : > { %13600 = vst [vmem:[#allocation47_spill] sm:$0xff] %v11669_v22  ;;  %v11671_v2 = vpop.f32.mrf.mxu3  ;;  %v11673_v41 = vpop.f32.mrf.mxu1 }
 0x12a   : > { %13601 = vst [vmem:[#allocation48_spill] sm:$0xff] %v11671_v2 }
 0x12b   : > { %13602 = vst [vmem:[#allocation49_spill] sm:$0xff] %v11673_v41  ;;  %8532 = vmatmul.msk.bf16.gmra.mxu0 %vm680_vm2, %v11350_v0  ;;  %v9041_v41 = vld [vmem:[%s11194_s27 + $0x48] sm:$0xff] }
 0x130   : > { %v11677_v62 = vpop.f32.mrf.mxu0  ;;  %v11679_v39 = vpop.f32.mrf.mxu2 }
 0x131   : > { %13603 = vst [vmem:[#allocation50_spill] sm:$0xff] %v11679_v39  ;;  %v11681_v53 = vpop.f32.mrf.mxu3  ;;  %v11683_v10 = vpop.f32.mrf.mxu1 }
 0x132   : > { %13604 = vst [vmem:[#allocation51_spill] sm:$0xff] %v11681_v53 }
 0x133   : > { %13605 = vst [vmem:[#allocation52_spill] sm:$0xff] %v11683_v10 }
 0x134   : > { %8142 = vmatmul.msk.bf16.gmra.mxu1 %vm680_vm2, %v11271_v1 }
 0x135   : > { %8199 = vmatmul.msk.bf16.gmra.mxu2 %vm680_vm2, %v10763_v50  ;;  %8476 = vmatmul.msk.bf16.gmra.mxu3 %vm680_vm2, %v9040_v26  ;;  %v10765_v26 = vld [vmem:[%s11194_s27 + $0x2c] sm:$0xff]  }
 0x138   : > { %v11691_v0 = vpop.f32.mrf.mxu0  ;;  %v11693_v2 = vpop.f32.mrf.mxu2 }
 0x139   : > { %13606 = vst [vmem:[#allocation53_spill] sm:$0xff] %v11693_v2  ;;  %v11695_v39 = vpop.f32.mrf.mxu3  ;;  %v11697_v53 = vpop.f32.mrf.mxu1 }
 0x13a   : > { %13607 = vst [vmem:[#allocation54_spill] sm:$0xff] %v11695_v39 }
 0x13b   : > { %13608 = vst [vmem:[#allocation55_spill] sm:$0xff] %v11697_v53  ;;  %8533 = vmatmul.msk.bf16.gmra.mxu0 %vm680_vm2, %v11374_v27  ;;  %v9042_v53 = vld [vmem:[%s11194_s27 + $0x50] sm:$0xff] }
 0x140   : > { %v11701_v22 = vpop.f32.mrf.mxu0  ;;  %v11703_v10 = vpop.f32.mrf.mxu2 }
 0x141   : > { %13609 = vst [vmem:[#allocation56_spill] sm:$0xff] %v11703_v10  ;;  %v11705_v1 = vpop.f32.mrf.mxu3  ;;  %v11707_v50 = vpop.f32.mrf.mxu1 }
 0x142   : > { %13610 = vst [vmem:[#allocation57_spill] sm:$0xff] %v11705_v1 }
 0x143   : > { %13611 = vst [vmem:[#allocation58_spill] sm:$0xff] %v11707_v50 }
 0x144   : > { %8143 = vmatmul.msk.bf16.gmra.mxu1 %vm680_vm2, %v11286_v18 }
 0x145   : > { %8200 = vmatmul.msk.bf16.gmra.mxu2 %vm680_vm2, %v10765_v26  ;;  %8477 = vmatmul.msk.bf16.gmra.mxu3 %vm680_vm2, %v9041_v41  ;;  %v10767_v41 = vld [vmem:[%s11194_s27 + $0x34] sm:$0xff]  }
 0x148   : > { %v11715_v27 = vpop.f32.mrf.mxu0  ;;  %v11717_v39 = vpop.f32.mrf.mxu2 }
 0x149   : > { %13612 = vst [vmem:[#allocation59_spill] sm:$0xff] %v11717_v39  ;;  %v11719_v10 = vpop.f32.mrf.mxu3  ;;  %v11721_v1 = vpop.f32.mrf.mxu1 }
 0x14a   : > { %13613 = vst [vmem:[#allocation60_spill] sm:$0xff] %v11719_v10 }
 0x14b   : > { %13614 = vst [vmem:[#allocation61_spill] sm:$0xff] %v11721_v1  ;;  %8534 = vmatmul.msk.bf16.gmra.mxu0 %vm680_vm2, %v11408_v52  ;;  %v9043_v1 = vld [vmem:[%s11194_s27 + $0x58] sm:$0xff] }
 0x150   : > { %v11725_v2 = vpop.f32.mrf.mxu0  ;;  %v11727_v50 = vpop.f32.mrf.mxu2 }
 0x151   : > { %13615 = vst [vmem:[#allocation62_spill] sm:$0xff] %v11727_v50  ;;  %v11729_v18 = vpop.f32.mrf.mxu3  ;;  %v11731_v26 = vpop.f32.mrf.mxu1 }
 0x152   : > { %13616 = vst [vmem:[#allocation63_spill] sm:$0xff] %v11729_v18 }
 0x153   : > { %13617 = vst [vmem:[#allocation64_spill] sm:$0xff] %v11731_v26 }
 0x154   : > { %8144 = vmatmul.msk.bf16.gmra.mxu1 %vm680_vm2, %v11304_v34 }
 0x155   : > { %8201 = vmatmul.msk.bf16.gmra.mxu2 %vm680_vm2, %v10767_v41  ;;  %8478 = vmatmul.msk.bf16.gmra.mxu3 %vm680_vm2, %v9042_v53  ;;  %v10769_v53 = vld [vmem:[%s11194_s27 + $0x3c] sm:$0xff]  }
 0x158   : > { %v11739_v52 = vpop.f32.mrf.mxu0  ;;  %v11741_v10 = vpop.f32.mrf.mxu2 }
 0x159   : > { %13618 = vst [vmem:[#allocation65_spill] sm:$0xff] %v11741_v10  ;;  %v11743_v50 = vpop.f32.mrf.mxu3  ;;  %v11745_v18 = vpop.f32.mrf.mxu1 }
 0x15a   : > { %13619 = vst [vmem:[#allocation66_spill] sm:$0xff] %v11743_v50 }
 0x15b   : > { %13620 = vst [vmem:[#allocation67_spill] sm:$0xff] %v11745_v18  ;;  %8535 = vmatmul.msk.bf16.gmra.mxu0 %vm680_vm2, %v11442_v30 }
 0x160   : > { %v11749_v39 = vpop.f32.mrf.mxu0  ;;  %v11751_v26 = vpop.f32.mrf.mxu2 }
 0x161   : > { %13621 = vst [vmem:[#allocation68_spill] sm:$0xff] %v11751_v26  ;;  %v11753_v34 = vpop.f32.mrf.mxu3  ;;  %v11755_v41 = vpop.f32.mrf.mxu1 }
 0x162   : > { %13622 = vst [vmem:[#allocation69_spill] sm:$0xff] %v11753_v34 }
 0x163   : > { %13623 = vst [vmem:[#allocation70_spill] sm:$0xff] %v11755_v41 }
 0x164   : > { %8145 = vmatmul.msk.bf16.gmra.mxu1 %vm680_vm2, %v11323_v47 }
 0x165   : > { %8202 = vmatmul.msk.bf16.gmra.mxu2 %vm680_vm2, %v10769_v53  ;;  %8479 = vmatmul.msk.bf16.gmra.mxu3 %vm680_vm2, %v9043_v1  ;;  %v10771_v53 = vld [vmem:[%s11194_s27 + $0x44] sm:$0xff]  }
 0x168   : > { %v11763_v30 = vpop.f32.mrf.mxu0  ;;  %v11765_v50 = vpop.f32.mrf.mxu2 }
 0x169   : > { %13624 = vst [vmem:[#allocation71_spill] sm:$0xff] %v11765_v50  ;;  %v11767_v26 = vpop.f32.mrf.mxu3  ;;  %v11769_v34 = vpop.f32.mrf.mxu1 }
 0x16a   : > { %13625 = vst [vmem:[#allocation72_spill] sm:$0xff] %v11767_v26 }
 0x16b   : > { %13626 = vst [vmem:[#allocation73_spill] sm:$0xff] %v11769_v34  ;;  %8536 = vmatmul.msk.bf16.gmra.mxu0 %vm680_vm2, %v11480_v61 }
 0x170   : > { %v11773_v10 = vpop.f32.mrf.mxu0  ;;  %v11775_v41 = vpop.f32.mrf.mxu2 }
 0x171   : > { %13627 = vst [vmem:[#allocation74_spill] sm:$0xff] %v11775_v41  ;;  %v1139_v47 = vpop.f32.mrf.mxu3  ;;  %v1325_v18 = vpop.f32.mrf.mxu1 }
 0x172   : > { %v1326_v1 = vadd.f32 %v1325_v18, %v11369_v21  ;;  %v10773_v18 = vld [vmem:[%s11194_s27 + $0x4c] sm:$0xff]  }
 0x174   : > { %8146 = vmatmul.msk.bf16.gmra.mxu1 %vm680_vm2, %v11341_v60 }
 0x175   : > { %8203 = vmatmul.msk.bf16.gmra.mxu2 %vm680_vm2, %v10771_v53  ;;  %8480 = vmatmul.msk.bf16.gmra.mxu3 %vm680_vm2, %v9044_v31 }
 0x178   : > { %v3881_v61 = vpop.f32.mrf.mxu0  ;;  %v1845_v26 = vpop.f32.mrf.mxu2 }
 0x179   : > { %v2124_v50 = vadd.f32 %v1845_v26, %v1326_v1  ;;  %v2806_v41 = vpop.f32.mrf.mxu3  ;;  %v1327_v47 = vpop.f32.mrf.mxu1 }
 0x17a   : > { %v1328_v60 = vadd.f32 %v1327_v47, %v11385_v37 }
 0x17b   : > { %v3085_v34 = vadd.f32 %v2806_v41, %v2124_v50  ;;  %8537 = vmatmul.msk.bf16.gmra.mxu0 %vm680_vm2, %v11521_v46  ;;  %v3609_v50 = vrot.slane %v10126_v45, 2 }
 0x17d   : > { %v11786_v25 = vadd.f32 %v3881_v61, %v3085_v34 }
 0x180   : > { %v3883_v53 = vpop.f32.mrf.mxu0  ;;  %v1847_v31 = vpop.f32.mrf.mxu2 }
 0x181   : > { %v2125_v54 = vadd.f32 %v1847_v31, %v1328_v60  ;;  %v2808_v17 = vpop.f32.mrf.mxu3  ;;  %v1330_v21 = vpop.f32.mrf.mxu1  ;;  %v9046_v31 = vld [vmem:[%s11194_s27 + $0x70] sm:$0xff] }
 0x182   : > { %v1331_v37 = vadd.f32 %v1330_v21, %v11403_v49  ;;  %v10127_v21 = vld [vmem:[%s11194_s27 + $0x78] sm:$0xff]  }
 0x183   : > { %v3086_v19 = vadd.f32 %v2808_v17, %v2125_v54  ;;  %v3610_v17 = vsel %vm568_vm1, %v11507_v48, %v3609_v50  ;;  %v3611_v48 = vrot.slane %v10127_v21, 2 }
 0x184   : > { %8147 = vmatmul.msk.bf16.gmra.mxu1 %vm680_vm2, %v11361_v11 }
 0x185   : > { %8204 = vmatmul.msk.bf16.gmra.mxu2 %vm680_vm2, %v10773_v18  ;;  %8481 = vmatmul.msk.bf16.gmra.mxu3 %vm680_vm2, %v9045_v36  ;;  %v11796_v46 = vadd.f32 %v3883_v53, %v3086_v19  ;;  %v10775_v53 = vld [vmem:[%s11194_s27 + $0x54] sm:$0xff]  }
 0x188   : > { %v3886_v26 = vpop.f32.mrf.mxu0  ;;  %v1850_v34 = vpop.f32.mrf.mxu2 }
 0x189   : > { %v2126_v54 = vadd.f32 %v1850_v34, %v1331_v37  ;;  %v2811_v41 = vpop.f32.mrf.mxu3  ;;  %v1332_v11 = vpop.f32.mrf.mxu1 }
 0x18a   : > { %v1333_v19 = vadd.f32 %v1332_v11, %v11419_v63 }
 0x18b   : > { %v3087_v45 = vadd.f32 %v2811_v41, %v2126_v54  ;;  %8538 = vmatmul.msk.bf16.gmra.mxu0 %vm680_vm2, %v3610_v17  ;;  %v3612_v17 = vsel %vm568_vm1, %v3609_v50, %v3611_v48 }
 0x18d   : > { %v11802_v1 = vadd.f32 %v3886_v26, %v3087_v45 }
 0x190   : > { %v3888_v36 = vpop.f32.mrf.mxu0  ;;  %v1852_v49 = vpop.f32.mrf.mxu2 }
 0x191   : > { %v2127_v61 = vadd.f32 %v1852_v49, %v1333_v19  ;;  %v2813_v47 = vpop.f32.mrf.mxu3  ;;  %v1335_v60 = vpop.f32.mrf.mxu1 }
 0x192   : > { %v1336_v63 = vadd.f32 %v1335_v60, %v11437_v15  ;;  %v10777_v60 = vld [vmem:[%s11194_s27 + $0x5c] sm:$0xff]  }
 0x193   : > { %v3088_v18 = vadd.f32 %v2813_v47, %v2127_v61 }
 0x194   : > { %8148 = vmatmul.msk.bf16.gmra.mxu1 %vm680_vm2, %v11395_v44 }
 0x195   : > { %8205 = vmatmul.msk.bf16.gmra.mxu2 %vm680_vm2, %v10775_v53  ;;  %8482 = vmatmul.msk.bf16.gmra.mxu3 %vm680_vm2, %v9046_v31  ;;  %v11812_v37 = vadd.f32 %v3888_v36, %v3088_v18  ;;  %v9047_v53 = vld [vmem:[%s11194_s27 + $0x78] sm:$0xff]  ;;  %v10128_v31 = vld [vmem:[%s11194_s27 + $0x80] sm:$0xff]  }
 0x196   : > { %v3613_v50 = vrot.slane %v10128_v31, 2 }
 0x198   : > { %v3891_v26 = vpop.f32.mrf.mxu0  ;;  %v1855_v34 = vpop.f32.mrf.mxu2 }
 0x199   : > { %v2128_v54 = vadd.f32 %v1855_v34, %v1336_v63  ;;  %v2816_v41 = vpop.f32.mrf.mxu3  ;;  %v1337_v11 = vpop.f32.mrf.mxu1  ;;  %v3614_v34 = vsel %vm568_vm1, %v3611_v48, %v3613_v50 }
 0x19a   : > { %v1338_v19 = vadd.f32 %v1337_v11, %v11453_v56 }
 0x19b   : > { %v3089_v44 = vadd.f32 %v2816_v41, %v2128_v54  ;;  %8539 = vmatmul.msk.bf16.gmra.mxu0 %vm680_vm2, %v3612_v17 }
 0x19d   : > { %v11817_v45 = vadd.f32 %v3891_v26, %v3089_v44 }
 0x1a0   : > { %v3893_v36 = vpop.f32.mrf.mxu0  ;;  %v1857_v49 = vpop.f32.mrf.mxu2 }
 0x1a1   : > { %v2129_v15 = vadd.f32 %v1857_v49, %v1338_v19  ;;  %v2818_v61 = vpop.f32.mrf.mxu3  ;;  %v1340_v47 = vpop.f32.mrf.mxu1 }
 0x1a2   : > { %v1341_v56 = vadd.f32 %v1340_v47, %v11475_v20  ;;  %v9048_v47 = vld [vmem:[%s11194_s27 + $0x80] sm:$0xff] }
 0x1a3   : > { %v3090_v21 = vadd.f32 %v2818_v61, %v2129_v15  ;;  %v10779_v61 = vld [vmem:[%s11194_s27 + $0x64] sm:$0xff]  }
 0x1a4   : > { %8149 = vmatmul.msk.bf16.gmra.mxu1 %vm680_vm2, %v11429_v6 }
 0x1a5   : > { %8206 = vmatmul.msk.bf16.gmra.mxu2 %vm680_vm2, %v10777_v60  ;;  %8483 = vmatmul.msk.bf16.gmra.mxu3 %vm680_vm2, %v9047_v53  ;;  %v11827_v18 = vadd.f32 %v3893_v36, %v3090_v21  ;;  %v10129_v60 = vld [vmem:[%s11194_s27 + $0x88] sm:$0xff]  }
 0x1a6   : > { %v3615_v48 = vrot.slane %v10129_v60, 2 }
 0x1a8   : > { %v3896_v63 = vpop.f32.mrf.mxu0  ;;  %v1860_v26 = vpop.f32.mrf.mxu2 }
 0x1a9   : > { %v2130_v17 = vadd.f32 %v1860_v26, %v1341_v56  ;;  %v2821_v54 = vpop.f32.mrf.mxu3  ;;  %v1342_v41 = vpop.f32.mrf.mxu1 }
 0x1aa   : > { %v1343_v44 = vadd.f32 %v1342_v41, %v11491_v3 }
 0x1ab   : > { %v3091_v6 = vadd.f32 %v2821_v54, %v2130_v17  ;;  %8540 = vmatmul.msk.bf16.gmra.mxu0 %vm680_vm2, %v3614_v34 }
 0x1ad   : > { %v11832_v11 = vadd.f32 %v3896_v63, %v3091_v6  ;;  %v3616_v63 = vsel %vm568_vm1, %v3613_v50, %v3615_v48 }
 0x1b0   : > { %v3898_v19 = vpop.f32.mrf.mxu0  ;;  %v1862_v36 = vpop.f32.mrf.mxu2 }
 0x1b1   : > { %v2131_v20 = vadd.f32 %v1862_v36, %v1343_v44  ;;  %v2823_v49 = vpop.f32.mrf.mxu3  ;;  %v1345_v15 = vpop.f32.mrf.mxu1 }
 0x1b2   : > { %v1346_v3 = vadd.f32 %v1345_v15, %v11515_v24  ;;  %v10130_v15 = vld [vmem:[%s11194_s27 + $0x90] sm:$0xff]  }
 0x1b3   : > { %v3092_v53 = vadd.f32 %v2823_v49, %v2131_v20  ;;  %v10781_v20 = vld [vmem:[%s11194_s27 + $0x6c] sm:$0xff]   ;;  %v3617_v50 = vrot.slane %v10130_v15, 2 }
 0x1b4   : > { %8150 = vmatmul.msk.bf16.gmra.mxu1 %vm680_vm2, %v11463_v7  ;;  %v9049_v49 = vld [vmem:[%s11194_s27 + $0x88] sm:$0xff] }
 0x1b5   : > { %8207 = vmatmul.msk.bf16.gmra.mxu2 %vm680_vm2, %v10779_v61  ;;  %8484 = vmatmul.msk.bf16.gmra.mxu3 %vm680_vm2, %v9048_v47  ;;  %v11842_v31 = vadd.f32 %v3898_v19, %v3092_v53 }
 0x1b8   : > { %v3901_v21 = vpop.f32.mrf.mxu0  ;;  %v1865_v56 = vpop.f32.mrf.mxu2 }
 0x1b9   : > { %v2132_v26 = vadd.f32 %v1865_v56, %v1346_v3  ;;  %v2826_v34 = vpop.f32.mrf.mxu3  ;;  %v1347_v17 = vpop.f32.mrf.mxu1  ;;  %v3618_v3 = vsel %vm568_vm1, %v3615_v48, %v3617_v50 }
 0x1ba   : > { %v1348_v41 = vadd.f32 %v1347_v17, %v11537_v43 }
 0x1bb   : > { %v3093_v7 = vadd.f32 %v2826_v34, %v2132_v26  ;;  %8541 = vmatmul.msk.bf16.gmra.mxu0 %vm680_vm2, %v3616_v63 }
 0x1bd   : > { %v11847_v54 = vadd.f32 %v3901_v21, %v3093_v7 }
 0x1c0   : > { %v3903_v6 = vpop.f32.mrf.mxu0  ;;  %v1867_v44 = vpop.f32.mrf.mxu2 }
 0x1c1   : > { %v2133_v24 = vadd.f32 %v1867_v44, %v1348_v41  ;;  %v2828_v19 = vpop.f32.mrf.mxu3  ;;  %v1350_v36 = vpop.f32.mrf.mxu1  ;;  %v10783_v44 = vld [vmem:[%s11194_s27 + $0x74] sm:$0xff]  }
 0x1c2   : > { %v1351_v43 = vadd.f32 %v1350_v36, %v11558_v14  ;;  %v11086_v36 = vld [vmem:[%s11194_s27 + $0x70] sm:$0xff]  }
 0x1c3   : > { %v3094_v61 = vadd.f32 %v2828_v19, %v2133_v24  ;;  %v9050_v24 = vld [vmem:[%s11194_s27 + $0x90] sm:$0xff]  ;;  %v10131_v19 = vld [vmem:[%s11194_s27 + $0x98] sm:$0xff]  }
 0x1c4   : > { %8151 = vmatmul.msk.bf16.gmra.mxu1 %vm680_vm2, %v11501_v28 }
 0x1c5   : > { %8208 = vmatmul.msk.bf16.gmra.mxu2 %vm680_vm2, %v10781_v20  ;;  %8485 = vmatmul.msk.bf16.gmra.mxu3 %vm680_vm2, %v9049_v49  ;;  %v11857_v47 = vadd.f32 %v3903_v6, %v3094_v61  ;;  %v3619_v20 = vrot.slane %v10131_v19, 2 }
 0x1c8   : > { %v3906_v60 = vpop.f32.mrf.mxu0  ;;  %v1870_v53 = vpop.f32.mrf.mxu2 }
 0x1c9   : > { %v2134_v21 = vadd.f32 %v1870_v53, %v1351_v43  ;;  %v2831_v56 = vpop.f32.mrf.mxu3  ;;  %v1352_v28 = vpop.f32.mrf.mxu1  ;;  %v3620_v43 = vsel %vm568_vm1, %v3617_v50, %v3619_v20 }
 0x1ca   : > { %v1353_v34 = vadd.f32 %v1352_v28, %v11577_v9 }
 0x1cb   : > { %v3095_v63 = vadd.f32 %v2831_v56, %v2134_v21  ;;  %8542 = vmatmul.msk.bf16.gmra.mxu0 %vm680_vm2, %v3618_v3 }
 0x1cd   : > { %v11862_v26 = vadd.f32 %v3906_v60, %v3095_v63 }
 0x1d0   : > { %v3908_v17 = vpop.f32.mrf.mxu0  ;;  %v1872_v14 = vpop.f32.mrf.mxu2 }
 0x1d1   : > { %v2135_v7 = vadd.f32 %v1872_v14, %v1353_v34  ;;  %v2833_v41 = vpop.f32.mrf.mxu3  ;;  %v1355_v6 = vpop.f32.mrf.mxu1 }
 0x1d2   : > { %v1356_v9 = vadd.f32 %v1355_v6, %v11594_v16  ;;  %v10132_v6 = vld [vmem:[%s11194_s27 + $0xa0] sm:$0xff]  }
 0x1d3   : > { %v3096_v48 = vadd.f32 %v2833_v41, %v2135_v7  ;;  %v10785_v7 = vld [vmem:[%s11194_s27 + $0x7c] sm:$0xff]  }
 0x1d4   : > { %8152 = vmatmul.msk.bf16.gmra.mxu1 %vm680_vm2, %v11086_v36  ;;  %v9051_v41 = vld [vmem:[%s11194_s27 + $0x98] sm:$0xff] }
 0x1d5   : > { %8209 = vmatmul.msk.bf16.gmra.mxu2 %vm680_vm2, %v10783_v44  ;;  %8486 = vmatmul.msk.bf16.gmra.mxu3 %vm680_vm2, %v9050_v24  ;;  %v11872_v49 = vadd.f32 %v3908_v17, %v3096_v48  ;;  %v11087_v44 = vld [vmem:[%s11194_s27 + $0x78] sm:$0xff]   ;;  %v3621_v24 = vrot.slane %v10132_v6, 2 }
 0x1d8   : > { %v3911_v15 = vpop.f32.mrf.mxu0  ;;  %v1875_v61 = vpop.f32.mrf.mxu2 }
 0x1d9   : > { %v2136_v60 = vadd.f32 %v1875_v61, %v1356_v9  ;;  %v2836_v53 = vpop.f32.mrf.mxu3  ;;  %v1357_v3 = vpop.f32.mrf.mxu1  ;;  %v3622_v9 = vsel %vm568_vm1, %v3619_v20, %v3621_v24 }
 0x1da   : > { %v1358_v28 = vadd.f32 %v1357_v3, %v11605_v57 }
 0x1db   : > { %v3097_v21 = vadd.f32 %v2836_v53, %v2136_v60  ;;  %8543 = vmatmul.msk.bf16.gmra.mxu0 %vm680_vm2, %v3620_v43 }
 0x1dd   : > { %v11877_v56 = vadd.f32 %v3911_v15, %v3097_v21 }
 0x1e0   : > { %v3913_v63 = vpop.f32.mrf.mxu0  ;;  %v1877_v16 = vpop.f32.mrf.mxu2 }
 0x1e1   : > { %v2137_v34 = vadd.f32 %v1877_v16, %v1358_v28  ;;  %v2838_v17 = vpop.f32.mrf.mxu3  ;;  %v1360_v14 = vpop.f32.mrf.mxu1 }
 0x1e2   : > { %v1361_v57 = vadd.f32 %v1360_v14, %v11619_v23  ;;  %v10133_v14 = vld [vmem:[%s11194_s27 + $0xa8] sm:$0xff]  }
 0x1e3   : > { %v3098_v50 = vadd.f32 %v2838_v17, %v2137_v34  ;;  %v10787_v34 = vld [vmem:[%s11194_s27 + $0x84] sm:$0xff]  }
 0x1e4   : > { %8153 = vmatmul.msk.bf16.gmra.mxu1 %vm680_vm2, %v11087_v44  ;;  %v9052_v17 = vld [vmem:[%s11194_s27 + $0xa0] sm:$0xff] }
 0x1e5   : > { %8210 = vmatmul.msk.bf16.gmra.mxu2 %vm680_vm2, %v10785_v7  ;;  %8487 = vmatmul.msk.bf16.gmra.mxu3 %vm680_vm2, %v9051_v41  ;;  %v11887_v19 = vadd.f32 %v3913_v63, %v3098_v50  ;;  %v11088_v7 = vld [vmem:[%s11194_s27 + $0x80] sm:$0xff]   ;;  %v3623_v41 = vrot.slane %v10133_v14, 2 }
 0x1e8   : > { %v3916_v48 = vpop.f32.mrf.mxu0  ;;  %v1880_v36 = vpop.f32.mrf.mxu2 }
 0x1e9   : > { %v2138_v15 = vadd.f32 %v1880_v36, %v1361_v57  ;;  %v2841_v61 = vpop.f32.mrf.mxu3  ;;  %v1362_v43 = vpop.f32.mrf.mxu1  ;;  %v3624_v57 = vsel %vm568_vm1, %v3621_v24, %v3623_v41 }
 0x1ea   : > { %v1363_v3 = vadd.f32 %v1362_v43, %v11629_v12 }
 0x1eb   : > { %v3099_v60 = vadd.f32 %v2841_v61, %v2138_v15  ;;  %8544 = vmatmul.msk.bf16.gmra.mxu0 %vm680_vm2, %v3622_v9 }
 0x1ed   : > { %v11892_v53 = vadd.f32 %v3916_v48, %v3099_v60 }
 0x1f0   : > { %v3918_v21 = vpop.f32.mrf.mxu0  ;;  %v1882_v23 = vpop.f32.mrf.mxu2 }
 0x1f1   : > { %v2139_v28 = vadd.f32 %v1882_v23, %v1363_v3  ;;  %v2843_v63 = vpop.f32.mrf.mxu3  ;;  %v1365_v16 = vpop.f32.mrf.mxu1 }
 0x1f2   : > { %v1366_v12 = vadd.f32 %v1365_v16, %v11643_v38  ;;  %v10134_v16 = vld [vmem:[%s11194_s27 + $0xb0] sm:$0xff]  }
 0x1f3   : > { %v3100_v20 = vadd.f32 %v2843_v63, %v2139_v28  ;;  %v10789_v28 = vld [vmem:[%s11194_s27 + $0x8c] sm:$0xff]  }
 0x1f4   : > { %8154 = vmatmul.msk.bf16.gmra.mxu1 %vm680_vm2, %v11088_v7  ;;  %v9053_v63 = vld [vmem:[%s11194_s27 + $0xa8] sm:$0xff] }
 0x1f5   : > { %8211 = vmatmul.msk.bf16.gmra.mxu2 %vm680_vm2, %v10787_v34  ;;  %8488 = vmatmul.msk.bf16.gmra.mxu3 %vm680_vm2, %v9052_v17  ;;  %v11902_v6 = vadd.f32 %v3918_v21, %v3100_v20  ;;  %v11089_v34 = vld [vmem:[%s11194_s27 + $0x88] sm:$0xff]   ;;  %v3625_v17 = vrot.slane %v10134_v16, 2 }
 0x1f8   : > { %v3921_v50 = vpop.f32.mrf.mxu0  ;;  %v1885_v44 = vpop.f32.mrf.mxu2 }
 0x1f9   : > { %v2140_v48 = vadd.f32 %v1885_v44, %v1366_v12  ;;  %v2846_v36 = vpop.f32.mrf.mxu3  ;;  %v1367_v9 = vpop.f32.mrf.mxu1  ;;  %v3626_v12 = vsel %vm568_vm1, %v3623_v41, %v3625_v17 }
 0x1fa   : > { %v1368_v43 = vadd.f32 %v1367_v9, %v11653_v35 }
 0x1fb   : > { %v3101_v15 = vadd.f32 %v2846_v36, %v2140_v48  ;;  %8545 = vmatmul.msk.bf16.gmra.mxu0 %vm680_vm2, %v3624_v57 }
 0x1fd   : > { %v11907_v61 = vadd.f32 %v3921_v50, %v3101_v15 }
 0x200   : > { %v3923_v60 = vpop.f32.mrf.mxu0  ;;  %v1887_v38 = vpop.f32.mrf.mxu2 }
 0x201   : > { %v2141_v3 = vadd.f32 %v1887_v38, %v1368_v43  ;;  %v2848_v21 = vpop.f32.mrf.mxu3  ;;  %v1370_v23 = vpop.f32.mrf.mxu1 }
 0x202   : > { %v1371_v35 = vadd.f32 %v1370_v23, %v11667_v51  ;;  %v10135_v23 = vld [vmem:[%s11194_s27 + $0xb8] sm:$0xff]  }
 0x203   : > { %v3102_v24 = vadd.f32 %v2848_v21, %v2141_v3  ;;  %v10791_v3 = vld [vmem:[%s11194_s27 + $0x94] sm:$0xff]  }
 0x204   : > { %8155 = vmatmul.msk.bf16.gmra.mxu1 %vm680_vm2, %v11089_v34  ;;  %v9054_v21 = vld [vmem:[%s11194_s27 + $0xb0] sm:$0xff] }
 0x205   : > { %8212 = vmatmul.msk.bf16.gmra.mxu2 %vm680_vm2, %v10789_v28  ;;  %8489 = vmatmul.msk.bf16.gmra.mxu3 %vm680_vm2, %v9053_v63  ;;  %v11917_v14 = vadd.f32 %v3923_v60, %v3102_v24  ;;  %v11090_v28 = vld [vmem:[%s11194_s27 + $0x90] sm:$0xff]   ;;  %v3627_v63 = vrot.slane %v10135_v23, 2 }
 0x208   : > { %v3926_v20 = vpop.f32.mrf.mxu0  ;;  %v1890_v7 = vpop.f32.mrf.mxu2 }
 0x209   : > { %v2142_v50 = vadd.f32 %v1890_v7, %v1371_v35  ;;  %v2851_v44 = vpop.f32.mrf.mxu3  ;;  %v1372_v57 = vpop.f32.mrf.mxu1  ;;  %v3628_v35 = vsel %vm568_vm1, %v3625_v17, %v3627_v63 }
 0x20a   : > { %v1373_v9 = vadd.f32 %v1372_v57, %v11677_v62 }
 0x20b   : > { %v3103_v48 = vadd.f32 %v2851_v44, %v2142_v50  ;;  %8546 = vmatmul.msk.bf16.gmra.mxu0 %vm680_vm2, %v3626_v12 }
 0x20d   : > { %v11922_v36 = vadd.f32 %v3926_v20, %v3103_v48 }
 0x210   : > { %v3928_v15 = vpop.f32.mrf.mxu0  ;;  %v1892_v51 = vpop.f32.mrf.mxu2 }
 0x211   : > { %v2143_v43 = vadd.f32 %v1892_v51, %v1373_v9  ;;  %v2853_v60 = vpop.f32.mrf.mxu3  ;;  %v1375_v38 = vpop.f32.mrf.mxu1 }
 0x212   : > { %v1376_v62 = vadd.f32 %v1375_v38, %v11691_v0  ;;  %v10136_v38 = vld [vmem:[%s11194_s27 + $0xc0] sm:$0xff]  }
 0x213   : > { %v3104_v41 = vadd.f32 %v2853_v60, %v2143_v43  ;;  %v10793_v43 = vld [vmem:[%s11194_s27 + $0x9c] sm:$0xff]  }
 0x214   : > { %8156 = vmatmul.msk.bf16.gmra.mxu1 %vm680_vm2, %v11090_v28  ;;  %v9055_v60 = vld [vmem:[%s11194_s27 + $0xb8] sm:$0xff] }
 0x215   : > { %8213 = vmatmul.msk.bf16.gmra.mxu2 %vm680_vm2, %v10791_v3  ;;  %8490 = vmatmul.msk.bf16.gmra.mxu3 %vm680_vm2, %v9054_v21  ;;  %v11932_v16 = vadd.f32 %v3928_v15, %v3104_v41  ;;  %v11091_v3 = vld [vmem:[%s11194_s27 + $0x98] sm:$0xff]   ;;  %v3629_v21 = vrot.slane %v10136_v38, 2 }
 0x218   : > { %v3931_v24 = vpop.f32.mrf.mxu0  ;;  %v1895_v34 = vpop.f32.mrf.mxu2 }
 0x219   : > { %v2144_v20 = vadd.f32 %v1895_v34, %v1376_v62  ;;  %v2856_v7 = vpop.f32.mrf.mxu3  ;;  %v1377_v12 = vpop.f32.mrf.mxu1  ;;  %v3630_v62 = vsel %vm568_vm1, %v3627_v63, %v3629_v21 }
 0x21a   : > { %v1378_v57 = vadd.f32 %v1377_v12, %v11701_v22 }
 0x21b   : > { %v3105_v50 = vadd.f32 %v2856_v7, %v2144_v20  ;;  %8547 = vmatmul.msk.bf16.gmra.mxu0 %vm680_vm2, %v3628_v35 }
 0x21d   : > { %v11937_v44 = vadd.f32 %v3931_v24, %v3105_v50 }
 0x220   : > { %v3933_v48 = vpop.f32.mrf.mxu0  ;;  %v1897_v0 = vpop.f32.mrf.mxu2 }
 0x221   : > { %v2145_v9 = vadd.f32 %v1897_v0, %v1378_v57  ;;  %v2858_v15 = vpop.f32.mrf.mxu3  ;;  %v1380_v51 = vpop.f32.mrf.mxu1 }
 0x222   : > { %v1381_v22 = vadd.f32 %v1380_v51, %v11715_v27  ;;  %v10137_v51 = vld [vmem:[%s11194_s27 + $0xc8] sm:$0xff]  }
 0x223   : > { %v3106_v17 = vadd.f32 %v2858_v15, %v2145_v9  ;;  %v10795_v9 = vld [vmem:[%s11194_s27 + $0xa4] sm:$0xff]  }
 0x224   : > { %8157 = vmatmul.msk.bf16.gmra.mxu1 %vm680_vm2, %v11091_v3  ;;  %v9056_v15 = vld [vmem:[%s11194_s27 + $0xc0] sm:$0xff] }
 0x225   : > { %8214 = vmatmul.msk.bf16.gmra.mxu2 %vm680_vm2, %v10793_v43  ;;  %8491 = vmatmul.msk.bf16.gmra.mxu3 %vm680_vm2, %v9055_v60  ;;  %v11947_v23 = vadd.f32 %v3933_v48, %v3106_v17  ;;  %v11092_v43 = vld [vmem:[%s11194_s27 + $0xa0] sm:$0xff]   ;;  %v3631_v60 = vrot.slane %v10137_v51, 2 }
 0x228   : > { %v3936_v41 = vpop.f32.mrf.mxu0  ;;  %v1900_v28 = vpop.f32.mrf.mxu2 }
 0x229   : > { %v2146_v24 = vadd.f32 %v1900_v28, %v1381_v22  ;;  %v2861_v34 = vpop.f32.mrf.mxu3  ;;  %v1382_v35 = vpop.f32.mrf.mxu1  ;;  %v3632_v22 = vsel %vm568_vm1, %v3629_v21, %v3631_v60 }
 0x22a   : > { %v1383_v12 = vadd.f32 %v1382_v35, %v11725_v2 }
 0x22b   : > { %v3107_v20 = vadd.f32 %v2861_v34, %v2146_v24  ;;  %8548 = vmatmul.msk.bf16.gmra.mxu0 %vm680_vm2, %v3630_v62 }
 0x22d   : > { %v11952_v7 = vadd.f32 %v3936_v41, %v3107_v20 }
 0x230   : > { %v3938_v50 = vpop.f32.mrf.mxu0  ;;  %v1902_v27 = vpop.f32.mrf.mxu2 }
 0x231   : > { %v2147_v57 = vadd.f32 %v1902_v27, %v1383_v12  ;;  %v2863_v48 = vpop.f32.mrf.mxu3  ;;  %v1385_v0 = vpop.f32.mrf.mxu1 }
 0x232   : > { %v1386_v2 = vadd.f32 %v1385_v0, %v11739_v52  ;;  %v10138_v0 = vld [vmem:[%s11194_s27 + $0xd0] sm:$0xff]  }
 0x233   : > { %v3108_v63 = vadd.f32 %v2863_v48, %v2147_v57  ;;  %v10797_v57 = vld [vmem:[%s11194_s27 + $0xac] sm:$0xff]  }
 0x234   : > { %8158 = vmatmul.msk.bf16.gmra.mxu1 %vm680_vm2, %v11092_v43  ;;  %v9057_v48 = vld [vmem:[%s11194_s27 + $0xc8] sm:$0xff] }
 0x235   : > { %8215 = vmatmul.msk.bf16.gmra.mxu2 %vm680_vm2, %v10795_v9  ;;  %8492 = vmatmul.msk.bf16.gmra.mxu3 %vm680_vm2, %v9056_v15  ;;  %v11962_v38 = vadd.f32 %v3938_v50, %v3108_v63  ;;  %v11093_v9 = vld [vmem:[%s11194_s27 + $0xa8] sm:$0xff]   ;;  %v3633_v15 = vrot.slane %v10138_v0, 2 }
 0x238   : > { %v3941_v17 = vpop.f32.mrf.mxu0  ;;  %v1905_v3 = vpop.f32.mrf.mxu2 }
 0x239   : > { %v2148_v41 = vadd.f32 %v1905_v3, %v1386_v2  ;;  %v2866_v28 = vpop.f32.mrf.mxu3  ;;  %v1387_v62 = vpop.f32.mrf.mxu1  ;;  %v3634_v2 = vsel %vm568_vm1, %v3631_v60, %v3633_v15 }
 0x23a   : > { %v1388_v35 = vadd.f32 %v1387_v62, %v11749_v39 }
 0x23b   : > { %v3109_v24 = vadd.f32 %v2866_v28, %v2148_v41  ;;  %8549 = vmatmul.msk.bf16.gmra.mxu0 %vm680_vm2, %v3632_v22 }
 0x23d   : > { %v11967_v34 = vadd.f32 %v3941_v17, %v3109_v24 }
 0x240   : > { %v3943_v20 = vpop.f32.mrf.mxu0  ;;  %v1907_v52 = vpop.f32.mrf.mxu2 }
 0x241   : > { %v2149_v12 = vadd.f32 %v1907_v52, %v1388_v35  ;;  %v2868_v50 = vpop.f32.mrf.mxu3  ;;  %v1390_v27 = vpop.f32.mrf.mxu1 }
 0x242   : > { %v1391_v39 = vadd.f32 %v1390_v27, %v11763_v30  ;;  %v10139_v27 = vld [vmem:[%s11194_s27 + $0xd8] sm:$0xff]  }
 0x243   : > { %v3110_v21 = vadd.f32 %v2868_v50, %v2149_v12  ;;  %v10799_v12 = vld [vmem:[%s11194_s27 + $0xb4] sm:$0xff]  }
 0x244   : > { %8159 = vmatmul.msk.bf16.gmra.mxu1 %vm680_vm2, %v11093_v9  ;;  %v9058_v50 = vld [vmem:[%s11194_s27 + $0xd0] sm:$0xff] }
 0x245   : > { %8216 = vmatmul.msk.bf16.gmra.mxu2 %vm680_vm2, %v10797_v57  ;;  %8493 = vmatmul.msk.bf16.gmra.mxu3 %vm680_vm2, %v9057_v48  ;;  %v11977_v51 = vadd.f32 %v3943_v20, %v3110_v21  ;;  %v11094_v57 = vld [vmem:[%s11194_s27 + $0xb0] sm:$0xff]   ;;  %v3635_v48 = vrot.slane %v10139_v27, 2 }
 0x248   : > { %v3946_v63 = vpop.f32.mrf.mxu0  ;;  %v1910_v43 = vpop.f32.mrf.mxu2 }
 0x249   : > { %v2150_v17 = vadd.f32 %v1910_v43, %v1391_v39  ;;  %v2871_v3 = vpop.f32.mrf.mxu3  ;;  %v1392_v22 = vpop.f32.mrf.mxu1  ;;  %v3636_v39 = vsel %vm568_vm1, %v3633_v15, %v3635_v48 }
 0x24a   : > { %v1393_v62 = vadd.f32 %v1392_v22, %v11773_v10 }
 0x24b   : > { %v3111_v41 = vadd.f32 %v2871_v3, %v2150_v17  ;;  %8550 = vmatmul.msk.bf16.gmra.mxu0 %vm680_vm2, %v3634_v2 }
 0x24d   : > { %v11982_v28 = vadd.f32 %v3946_v63, %v3111_v41 }
 0x250   : > { %v3948_v24 = vpop.f32.mrf.mxu0  ;;  %v1912_v30 = vpop.f32.mrf.mxu2 }
 0x251   : > { %v2151_v35 = vadd.f32 %v1912_v30, %v1393_v62  ;;  %v2873_v20 = vpop.f32.mrf.mxu3  ;;  %v1395_v52 = vpop.f32.mrf.mxu1 }
 0x252   : > { %v1396_v10 = vadd.f32 %v1395_v52, %v11357_v8  ;;  %v10140_v52 = vld [vmem:[%s11194_s27 + $0xe0] sm:$0xff]  }
 0x253   : > { %v3112_v60 = vadd.f32 %v2873_v20, %v2151_v35  ;;  %v10801_v35 = vld [vmem:[%s11194_s27 + $0xbc] sm:$0xff]  }
 0x254   : > { %8160 = vmatmul.msk.bf16.gmra.mxu1 %vm680_vm2, %v11094_v57  ;;  %v9059_v20 = vld [vmem:[%s11194_s27 + $0xd8] sm:$0xff] }
 0x255   : > { %8217 = vmatmul.msk.bf16.gmra.mxu2 %vm680_vm2, %v10799_v12  ;;  %8494 = vmatmul.msk.bf16.gmra.mxu3 %vm680_vm2, %v9058_v50  ;;  %v11992_v0 = vadd.f32 %v3948_v24, %v3112_v60  ;;  %v11095_v12 = vld [vmem:[%s11194_s27 + $0xb8] sm:$0xff]   ;;  %v3637_v50 = vrot.slane %v10140_v52, 2 }
 0x258   : > { %v3951_v21 = vpop.f32.mrf.mxu0  ;;  %v1915_v9 = vpop.f32.mrf.mxu2 }
 0x259   : > { %v2152_v63 = vadd.f32 %v1915_v9, %v1396_v10  ;;  %v2876_v43 = vpop.f32.mrf.mxu3  ;;  %v1397_v2 = vpop.f32.mrf.mxu1  ;;  %v3638_v10 = vsel %vm568_vm1, %v3635_v48, %v3637_v50 }
 0x25a   : > { %v1398_v22 = vadd.f32 %v1397_v2, %v11378_v29 }
 0x25b   : > { %v3113_v17 = vadd.f32 %v2876_v43, %v2152_v63  ;;  %8551 = vmatmul.msk.bf16.gmra.mxu0 %vm680_vm2, %v3636_v39 }
 0x25d   : > { %v11997_v3 = vadd.f32 %v3951_v21, %v3113_v17 }
 0x260   : > { %v3953_v41 = vpop.f32.mrf.mxu0  ;;  %v1917_v8 = vpop.f32.mrf.mxu2 }
 0x261   : > { %v2153_v62 = vadd.f32 %v1917_v8, %v1398_v22  ;;  %v2878_v24 = vpop.f32.mrf.mxu3  ;;  %v1400_v30 = vpop.f32.mrf.mxu1 }
 0x262   : > { %v1401_v29 = vadd.f32 %v1400_v30, %v11391_v42  ;;  %v10141_v30 = vld [vmem:[%s11194_s27 + $0xe8] sm:$0xff]  }
 0x263   : > { %v3114_v15 = vadd.f32 %v2878_v24, %v2153_v62  ;;  %v10803_v62 = vld [vmem:[%s11194_s27 + $0xc4] sm:$0xff]  }
 0x264   : > { %8161 = vmatmul.msk.bf16.gmra.mxu1 %vm680_vm2, %v11095_v12  ;;  %v9060_v24 = vld [vmem:[%s11194_s27 + $0xe0] sm:$0xff] }
 0x265   : > { %8218 = vmatmul.msk.bf16.gmra.mxu2 %vm680_vm2, %v10801_v35  ;;  %8495 = vmatmul.msk.bf16.gmra.mxu3 %vm680_vm2, %v9059_v20  ;;  %v12007_v27 = vadd.f32 %v3953_v41, %v3114_v15  ;;  %v11096_v35 = vld [vmem:[%s11194_s27 + $0xc0] sm:$0xff]   ;;  %v3639_v20 = vrot.slane %v10141_v30, 2 }
 0x268   : > { %v3956_v60 = vpop.f32.mrf.mxu0  ;;  %v1920_v57 = vpop.f32.mrf.mxu2 }
 0x269   : > { %v2154_v21 = vadd.f32 %v1920_v57, %v1401_v29  ;;  %v2881_v9 = vpop.f32.mrf.mxu3  ;;  %v1402_v39 = vpop.f32.mrf.mxu1  ;;  %v3640_v29 = vsel %vm568_vm1, %v3637_v50, %v3639_v20 }
 0x26a   : > { %v1403_v2 = vadd.f32 %v1402_v39, %v11412_v55 }
 0x26b   : > { %v3115_v63 = vadd.f32 %v2881_v9, %v2154_v21  ;;  %8552 = vmatmul.msk.bf16.gmra.mxu0 %vm680_vm2, %v3638_v10 }
 0x26d   : > { %v12012_v43 = vadd.f32 %v3956_v60, %v3115_v63 }
 0x270   : > { %v3958_v17 = vpop.f32.mrf.mxu0  ;;  %v1922_v42 = vpop.f32.mrf.mxu2 }
 0x271   : > { %v2155_v22 = vadd.f32 %v1922_v42, %v1403_v2  ;;  %v2883_v41 = vpop.f32.mrf.mxu3  ;;  %v1405_v8 = vpop.f32.mrf.mxu1 }
 0x272   : > { %v1406_v55 = vadd.f32 %v1405_v8, %v11425_v4  ;;  %v10142_v8 = vld [vmem:[%s11194_s27 + $0xf0] sm:$0xff]  }
 0x273   : > { %v3116_v48 = vadd.f32 %v2883_v41, %v2155_v22  ;;  %v10805_v22 = vld [vmem:[%s11194_s27 + $0xcc] sm:$0xff]  }
 0x274   : > { %8162 = vmatmul.msk.bf16.gmra.mxu1 %vm680_vm2, %v11096_v35  ;;  %v9061_v41 = vld [vmem:[%s11194_s27 + $0xe8] sm:$0xff] }
 0x275   : > { %8219 = vmatmul.msk.bf16.gmra.mxu2 %vm680_vm2, %v10803_v62  ;;  %8496 = vmatmul.msk.bf16.gmra.mxu3 %vm680_vm2, %v9060_v24  ;;  %v12022_v52 = vadd.f32 %v3958_v17, %v3116_v48  ;;  %v11097_v62 = vld [vmem:[%s11194_s27 + $0xc8] sm:$0xff]   ;;  %v3641_v24 = vrot.slane %v10142_v8, 2 }
 0x278   : > { %v3961_v15 = vpop.f32.mrf.mxu0  ;;  %v1925_v12 = vpop.f32.mrf.mxu2 }
 0x279   : > { %v2156_v60 = vadd.f32 %v1925_v12, %v1406_v55  ;;  %v2886_v57 = vpop.f32.mrf.mxu3  ;;  %v1407_v10 = vpop.f32.mrf.mxu1  ;;  %v3642_v55 = vsel %vm568_vm1, %v3639_v20, %v3641_v24 }
 0x27a   : > { %v1408_v39 = vadd.f32 %v1407_v10, %v11446_v32 }
 0x27b   : > { %v3117_v21 = vadd.f32 %v2886_v57, %v2156_v60  ;;  %8553 = vmatmul.msk.bf16.gmra.mxu0 %vm680_vm2, %v3640_v29 }
 0x27d   : > { %v12027_v9 = vadd.f32 %v3961_v15, %v3117_v21 }
 0x280   : > { %v3963_v63 = vpop.f32.mrf.mxu0  ;;  %v1927_v4 = vpop.f32.mrf.mxu2 }
 0x281   : > { %v2157_v2 = vadd.f32 %v1927_v4, %v1408_v39  ;;  %v2888_v17 = vpop.f32.mrf.mxu3  ;;  %v1410_v42 = vpop.f32.mrf.mxu1 }
 0x282   : > { %v1411_v32 = vadd.f32 %v1410_v42, %v11459_v58  ;;  %v10143_v42 = vld [vmem:[%s11194_s27 + $0xf8] sm:$0xff]  }
 0x283   : > { %v3118_v50 = vadd.f32 %v2888_v17, %v2157_v2  ;;  %v10807_v2 = vld [vmem:[%s11194_s27 + $0xd4] sm:$0xff]  }
 0x284   : > { %8163 = vmatmul.msk.bf16.gmra.mxu1 %vm680_vm2, %v11097_v62  ;;  %v9062_v17 = vld [vmem:[%s11194_s27 + $0xf0] sm:$0xff] }
 0x285   : > { %8220 = vmatmul.msk.bf16.gmra.mxu2 %vm680_vm2, %v10805_v22  ;;  %8497 = vmatmul.msk.bf16.gmra.mxu3 %vm680_vm2, %v9061_v41  ;;  %v12037_v30 = vadd.f32 %v3963_v63, %v3118_v50  ;;  %v11098_v22 = vld [vmem:[%s11194_s27 + $0xd0] sm:$0xff]   ;;  %v3643_v41 = vrot.slane %v10143_v42, 2 }
 0x288   : > { %v3966_v48 = vpop.f32.mrf.mxu0  ;;  %v1930_v35 = vpop.f32.mrf.mxu2 }
 0x289   : > { %v2158_v15 = vadd.f32 %v1930_v35, %v1411_v32  ;;  %v2891_v12 = vpop.f32.mrf.mxu3  ;;  %v1412_v29 = vpop.f32.mrf.mxu1  ;;  %v3644_v32 = vsel %vm568_vm1, %v3641_v24, %v3643_v41 }
 0x28a   : > { %v1413_v10 = vadd.f32 %v1412_v29, %v11484_v5 }
 0x28b   : > { %v3119_v60 = vadd.f32 %v2891_v12, %v2158_v15  ;;  %8554 = vmatmul.msk.bf16.gmra.mxu0 %vm680_vm2, %v3642_v55 }
 0x28d   : > { %v12042_v57 = vadd.f32 %v3966_v48, %v3119_v60 }
 0x290   : > { %v3968_v21 = vpop.f32.mrf.mxu0  ;;  %v1932_v58 = vpop.f32.mrf.mxu2 }
 0x291   : > { %v2159_v39 = vadd.f32 %v1932_v58, %v1413_v10  ;;  %v2893_v63 = vpop.f32.mrf.mxu3  ;;  %v1415_v4 = vpop.f32.mrf.mxu1 }
 0x292   : > { %v1416_v5 = vadd.f32 %v1415_v4, %v11497_v40  ;;  %v10144_v4 = vld [vmem:[%s11194_s27 + $0x100] sm:$0xff]  }
 0x293   : > { %v3120_v20 = vadd.f32 %v2893_v63, %v2159_v39  ;;  %v10809_v39 = vld [vmem:[%s11194_s27 + $0xdc] sm:$0xff]  }
 0x294   : > { %8164 = vmatmul.msk.bf16.gmra.mxu1 %vm680_vm2, %v11098_v22  ;;  %v9063_v63 = vld [vmem:[%s11194_s27 + $0xf8] sm:$0xff] }
 0x295   : > { %8221 = vmatmul.msk.bf16.gmra.mxu2 %vm680_vm2, %v10807_v2  ;;  %8498 = vmatmul.msk.bf16.gmra.mxu3 %vm680_vm2, %v9062_v17  ;;  %v12052_v8 = vadd.f32 %v3968_v21, %v3120_v20  ;;  %v11099_v2 = vld [vmem:[%s11194_s27 + $0xd8] sm:$0xff]   ;;  %v3645_v17 = vrot.slane %v10144_v4, 2 }
 0x298   : > { %v3971_v50 = vpop.f32.mrf.mxu0  ;;  %v1935_v62 = vpop.f32.mrf.mxu2 }
 0x299   : > { %v2160_v48 = vadd.f32 %v1935_v62, %v1416_v5  ;;  %v2896_v35 = vpop.f32.mrf.mxu3  ;;  %v1417_v55 = vpop.f32.mrf.mxu1  ;;  %v3646_v5 = vsel %vm568_vm1, %v3643_v41, %v3645_v17 }
 0x29a   : > { %v1418_v29 = vadd.f32 %v1417_v55, %v11528_v59 }
 0x29b   : > { %v3121_v15 = vadd.f32 %v2896_v35, %v2160_v48  ;;  %8555 = vmatmul.msk.bf16.gmra.mxu0 %vm680_vm2, %v3644_v32 }
 0x29d   : > { %v12057_v12 = vadd.f32 %v3971_v50, %v3121_v15 }
 0x2a0   : > { %v3973_v60 = vpop.f32.mrf.mxu0  ;;  %v1937_v40 = vpop.f32.mrf.mxu2 }
 0x2a1   : > { %v2161_v10 = vadd.f32 %v1937_v40, %v1418_v29  ;;  %v2898_v21 = vpop.f32.mrf.mxu3  ;;  %v1420_v58 = vpop.f32.mrf.mxu1 }
 0x2a2   : > { %v1421_v59 = vadd.f32 %v1420_v58, %v11546_v13  ;;  %v10145_v58 = vld [vmem:[%s11194_s27 + $0x108] sm:$0xff]  }
 0x2a3   : > { %v3122_v24 = vadd.f32 %v2898_v21, %v2161_v10  ;;  %v10811_v10 = vld [vmem:[%s11194_s27 + $0xe4] sm:$0xff]  }
 0x2a4   : > { %8165 = vmatmul.msk.bf16.gmra.mxu1 %vm680_vm2, %v11099_v2  ;;  %v9064_v21 = vld [vmem:[%s11194_s27 + $0x100] sm:$0xff] }
 0x2a5   : > { %8222 = vmatmul.msk.bf16.gmra.mxu2 %vm680_vm2, %v10809_v39  ;;  %8499 = vmatmul.msk.bf16.gmra.mxu3 %vm680_vm2, %v9063_v63  ;;  %v12067_v42 = vadd.f32 %v3973_v60, %v3122_v24  ;;  %v11100_v39 = vld [vmem:[%s11194_s27 + $0xe0] sm:$0xff]   ;;  %v3647_v63 = vrot.slane %v10145_v58, 2  ;;  %v10146_v58 = vld [vmem:[%s11194_s27 + $0x110] sm:$0xff]  }
 0x2a8   : > { %v3976_v20 = vpop.f32.mrf.mxu0  ;;  %v1940_v22 = vpop.f32.mrf.mxu2 }
 0x2a9   : > { %v2162_v50 = vadd.f32 %v1940_v22, %v1421_v59  ;;  %v2901_v62 = vpop.f32.mrf.mxu3  ;;  %v1422_v32 = vpop.f32.mrf.mxu1 }
 0x2aa   : > { %v1423_v55 = vadd.f32 %v1422_v32, %v11568_v33  ;;  %v13628_v33 = vld [vmem:[#allocation28_spill] sm:$0xff] }
 0x2ab   : > { %v3123_v48 = vadd.f32 %v2901_v62, %v2162_v50  ;;  %8556 = vmatmul.msk.bf16.gmra.mxu0 %vm680_vm2, %v3646_v5 }
 0x2ad   : > { %v12072_v35 = vadd.f32 %v3976_v20, %v3123_v48  ;;  %v3648_v20 = vsel %vm568_vm1, %v3645_v17, %v3647_v63  ;;  %v13630_v48 = vld [vmem:[#allocation31_spill] sm:$0xff] }
 0x2b0   : > { %v3978_v15 = vpop.f32.mrf.mxu0  ;;  %v1942_v13 = vpop.f32.mrf.mxu2 }
 0x2b1   : > { %v2163_v29 = vadd.f32 %v1942_v13, %v1423_v55  ;;  %v2903_v60 = vpop.f32.mrf.mxu3  ;;  %v1425_v40 = vpop.f32.mrf.mxu1 }
 0x2b2   : > { %v1426_v24 = vadd.f32 %v1425_v40, %v13628_v33 }
 0x2b3   : > { %v3124_v41 = vadd.f32 %v2903_v60, %v2163_v29 }
 0x2b4   : > { %8166 = vmatmul.msk.bf16.gmra.mxu1 %vm680_vm2, %v11100_v39  ;;  %v3649_v39 = vrot.slane %v10146_v58, 2  ;;  %v10815_v58 = vld [vmem:[%s11194_s27 + $0xf4] sm:$0xff]  }
 0x2b5   : > { %8223 = vmatmul.msk.bf16.gmra.mxu2 %vm680_vm2, %v10811_v10  ;;  %8500 = vmatmul.msk.bf16.gmra.mxu3 %vm680_vm2, %v9064_v21  ;;  %v12082_v4 = vadd.f32 %v3978_v15, %v3124_v41  ;;  %v10813_v10 = vld [vmem:[%s11194_s27 + $0xec] sm:$0xff]  }
 0x2b6   : > { %v9065_v21 = vld [vmem:[%s11194_s27 + $0x108] sm:$0xff] }
 0x2b7   : > { %v11101_v41 = vld [vmem:[%s11194_s27 + $0xe8] sm:$0xff]  }
 0x2b8   : > { %v3981_v2 = vpop.f32.mrf.mxu0  ;;  %v1945_v59 = vpop.f32.mrf.mxu2 }
 0x2b9   : > { %v2164_v22 = vadd.f32 %v1945_v59, %v1426_v24  ;;  %v2906_v5 = vpop.f32.mrf.mxu3  ;;  %v1427_v50 = vpop.f32.mrf.mxu1  ;;  %v13632_v24 = vld [vmem:[#allocation34_spill] sm:$0xff] }
 0x2ba   : > { %v1428_v55 = vadd.f32 %v1427_v50, %v13630_v48 }
 0x2bb   : > { %v3125_v62 = vadd.f32 %v2906_v5, %v2164_v22  ;;  %8557 = vmatmul.msk.bf16.gmra.mxu0 %vm680_vm2, %v3648_v20  ;;  %v3650_v22 = vsel %vm568_vm1, %v3647_v63, %v3649_v39 }
 0x2bd   : > { %v12087_v32 = vadd.f32 %v3981_v2, %v3125_v62 }
 0x2bf   : > { %13629 = vst [vmem:[#allocation28_spill] sm:$0xff] %v12087_v32  ;;  %v5864_v32 = vld [vmem:[%s11194_s27 + $0x44] sm:$0xf] }
 0x2c0   : > { %v3983_v15 = vpop.f32.mrf.mxu0  ;;  %v1947_v13 = vpop.f32.mrf.mxu2 }
 0x2c1   : > { %v2165_v29 = vadd.f32 %v1947_v13, %v1428_v55  ;;  %v2908_v60 = vpop.f32.mrf.mxu3  ;;  %v1430_v40 = vpop.f32.mrf.mxu1 }
 0x2c2   : > { %v1431_v2 = vadd.f32 %v1430_v40, %v13632_v24  ;;  %v11102_v24 = vld [vmem:[%s11194_s27 + $0xf0] sm:$0xff]  }
 0x2c3   : > { %v3126_v17 = vadd.f32 %v2908_v60, %v2165_v29 }
 0x2c4   : > { %8167 = vmatmul.msk.bf16.gmra.mxu1 %vm680_vm2, %v11101_v41  ;;  %v10147_v41 = vld [vmem:[%s11194_s27 + $0x118] sm:$0xff]  }
 0x2c5   : > { %8224 = vmatmul.msk.bf16.gmra.mxu2 %vm680_vm2, %v10813_v10  ;;  %8501 = vmatmul.msk.bf16.gmra.mxu3 %vm680_vm2, %v9065_v21  ;;  %v12097_v33 = vadd.f32 %v3983_v15, %v3126_v17  ;;  %v13634_v15 = vld [vmem:[#allocation37_spill] sm:$0xff]  ;;  %v9066_v17 = vld [vmem:[%s11194_s27 + $0x110] sm:$0xff] }
 0x2c7   : > { %13631 = vst [vmem:[#allocation31_spill] sm:$0xff] %v12097_v33 }
 0x2c8   : > { %v3986_v59 = vpop.f32.mrf.mxu0  ;;  %v1950_v20 = vpop.f32.mrf.mxu2 }
 0x2c9   : > { %v2166_v5 = vadd.f32 %v1950_v20, %v1431_v2  ;;  %v2911_v50 = vpop.f32.mrf.mxu3  ;;  %v1432_v62 = vpop.f32.mrf.mxu1  ;;  %v3651_v2 = vrot.slane %v10147_v41, 2  ;;  %v13636_v20 = vld [vmem:[#allocation40_spill] sm:$0xff] }
 0x2ca   : > { %v1433_v13 = vadd.f32 %v1432_v62, %v13634_v15 }
 0x2cb   : > { %v3127_v48 = vadd.f32 %v2911_v50, %v2166_v5  ;;  %8558 = vmatmul.msk.bf16.gmra.mxu0 %vm680_vm2, %v3650_v22  ;;  %v3652_v62 = vsel %vm568_vm1, %v3649_v39, %v3651_v2 }
 0x2cd   : > { %v12102_v55 = vadd.f32 %v3986_v59, %v3127_v48 }
 0x2cf   : > { %13633 = vst [vmem:[#allocation34_spill] sm:$0xff] %v12102_v55 }
 0x2d0   : > { %v3988_v29 = vpop.f32.mrf.mxu0  ;;  %v1952_v60 = vpop.f32.mrf.mxu2 }
 0x2d1   : > { %v2167_v40 = vadd.f32 %v1952_v60, %v1433_v13  ;;  %v2913_v10 = vpop.f32.mrf.mxu3  ;;  %v1435_v21 = vpop.f32.mrf.mxu1 }
 0x2d2   : > { %v1436_v22 = vadd.f32 %v1435_v21, %v13636_v20  ;;  %v9067_v20 = vld [vmem:[%s11194_s27 + $0x118] sm:$0xff] }
 0x2d3   : > { %v3128_v63 = vadd.f32 %v2913_v10, %v2167_v40 }
 0x2d4   : > { %8168 = vmatmul.msk.bf16.gmra.mxu1 %vm680_vm2, %v11102_v24  ;;  %v10817_v24 = vld [vmem:[%s11194_s27 + $0xfc] sm:$0xff]  }
 0x2d5   : > { %8225 = vmatmul.msk.bf16.gmra.mxu2 %vm680_vm2, %v10815_v58  ;;  %8502 = vmatmul.msk.bf16.gmra.mxu3 %vm680_vm2, %v9066_v17  ;;  %v12112_v59 = vadd.f32 %v3988_v29, %v3128_v63  ;;  %v13638_v29 = vld [vmem:[#allocation43_spill] sm:$0xff] }
 0x2d7   : > { %13635 = vst [vmem:[#allocation37_spill] sm:$0xff] %v12112_v59  ;;  %v10148_v59 = vld [vmem:[%s11194_s27 + $0x120] sm:$0xff]  }
 0x2d8   : > { %v3991_v5 = vpop.f32.mrf.mxu0  ;;  %v1955_v50 = vpop.f32.mrf.mxu2 }
 0x2d9   : > { %v2168_v48 = vadd.f32 %v1955_v50, %v1436_v22  ;;  %v2916_v15 = vpop.f32.mrf.mxu3  ;;  %v1437_v13 = vpop.f32.mrf.mxu1  ;;  %v11103_v22 = vld [vmem:[%s11194_s27 + $0xf8] sm:$0xff]   ;;  %v3653_v50 = vrot.slane %v10148_v59, 2 }
 0x2da   : > { %v1438_v10 = vadd.f32 %v1437_v13, %v13638_v29 }
 0x2db   : > { %v3129_v60 = vadd.f32 %v2916_v15, %v2168_v48  ;;  %8559 = vmatmul.msk.bf16.gmra.mxu0 %vm680_vm2, %v3652_v62  ;;  %v13640_v62 = vld [vmem:[#allocation46_spill] sm:$0xff] }
 0x2dd   : > { %v12117_v40 = vadd.f32 %v3991_v5, %v3129_v60  ;;  %v3654_v60 = vsel %vm568_vm1, %v3651_v2, %v3653_v50 }
 0x2df   : > { %13637 = vst [vmem:[#allocation40_spill] sm:$0xff] %v12117_v40  ;;  %v10149_v40 = vld [vmem:[%s11194_s27 + $0x128] sm:$0xff]  }
 0x2e0   : > { %v3993_v58 = vpop.f32.mrf.mxu0  ;;  %v1957_v21 = vpop.f32.mrf.mxu2 }
 0x2e1   : > { %v2169_v17 = vadd.f32 %v1957_v21, %v1438_v10  ;;  %v2918_v41 = vpop.f32.mrf.mxu3  ;;  %v1440_v63 = vpop.f32.mrf.mxu1 }
 0x2e2   : > { %v1441_v48 = vadd.f32 %v1440_v63, %v13640_v62  ;;  %v10819_v62 = vld [vmem:[%s11194_s27 + $0x104] sm:$0xff]  }
 0x2e3   : > { %v3130_v39 = vadd.f32 %v2918_v41, %v2169_v17 }
 0x2e4   : > { %8169 = vmatmul.msk.bf16.gmra.mxu1 %vm680_vm2, %v11103_v22 }
 0x2e5   : > { %8226 = vmatmul.msk.bf16.gmra.mxu2 %vm680_vm2, %v10817_v24  ;;  %8503 = vmatmul.msk.bf16.gmra.mxu3 %vm680_vm2, %v9067_v20  ;;  %v12127_v5 = vadd.f32 %v3993_v58, %v3130_v39  ;;  %v13642_v58 = vld [vmem:[#allocation49_spill] sm:$0xff] }
 0x2e7   : > { %13639 = vst [vmem:[#allocation43_spill] sm:$0xff] %v12127_v5  ;;  %v9068_v5 = vld [vmem:[%s11194_s27 + $0x120] sm:$0xff] }
 0x2e8   : > { %v3996_v15 = vpop.f32.mrf.mxu0  ;;  %v1960_v13 = vpop.f32.mrf.mxu2 }
 0x2e9   : > { %v2170_v29 = vadd.f32 %v1960_v13, %v1441_v48  ;;  %v2921_v10 = vpop.f32.mrf.mxu3  ;;  %v1442_v21 = vpop.f32.mrf.mxu1  ;;  %v11104_v48 = vld [vmem:[%s11194_s27 + $0x100] sm:$0xff]   ;;  %v3655_v13 = vrot.slane %v10149_v40, 2 }
 0x2ea   : > { %v1443_v41 = vadd.f32 %v1442_v21, %v13642_v58 }
 0x2eb   : > { %v3131_v59 = vadd.f32 %v2921_v10, %v2170_v29  ;;  %8560 = vmatmul.msk.bf16.gmra.mxu0 %vm680_vm2, %v3654_v60  ;;  %v13644_v60 = vld [vmem:[#allocation52_spill] sm:$0xff] }
 0x2ed   : > { %v12132_v17 = vadd.f32 %v3996_v15, %v3131_v59  ;;  %v3656_v59 = vsel %vm568_vm1, %v3653_v50, %v3655_v13 }
 0x2ef   : > { %13641 = vst [vmem:[#allocation46_spill] sm:$0xff] %v12132_v17  ;;  %v10150_v17 = vld [vmem:[%s11194_s27 + $0x130] sm:$0xff]  }
 0x2f0   : > { %v3998_v24 = vpop.f32.mrf.mxu0  ;;  %v1962_v63 = vpop.f32.mrf.mxu2 }
 0x2f1   : > { %v2171_v20 = vadd.f32 %v1962_v63, %v1443_v41  ;;  %v2923_v39 = vpop.f32.mrf.mxu3  ;;  %v1445_v22 = vpop.f32.mrf.mxu1 }
 0x2f2   : > { %v1446_v29 = vadd.f32 %v1445_v22, %v13644_v60  ;;  %v10821_v60 = vld [vmem:[%s11194_s27 + $0x10c] sm:$0xff]  }
 0x2f3   : > { %v3132_v2 = vadd.f32 %v2923_v39, %v2171_v20 }
 0x2f4   : > { %8170 = vmatmul.msk.bf16.gmra.mxu1 %vm680_vm2, %v11104_v48 }
 0x2f5   : > { %8227 = vmatmul.msk.bf16.gmra.mxu2 %vm680_vm2, %v10819_v62  ;;  %8504 = vmatmul.msk.bf16.gmra.mxu3 %vm680_vm2, %v9068_v5  ;;  %v12142_v15 = vadd.f32 %v3998_v24, %v3132_v2  ;;  %v13646_v5 = vld [vmem:[#allocation55_spill] sm:$0xff] }
 0x2f7   : > { %13643 = vst [vmem:[#allocation49_spill] sm:$0xff] %v12142_v15  ;;  %v9069_v15 = vld [vmem:[%s11194_s27 + $0x128] sm:$0xff] }
 0x2f8   : > { %v4001_v10 = vpop.f32.mrf.mxu0  ;;  %v1965_v21 = vpop.f32.mrf.mxu2 }
 0x2f9   : > { %v2172_v58 = vadd.f32 %v1965_v21, %v1446_v29  ;;  %v2926_v41 = vpop.f32.mrf.mxu3  ;;  %v1447_v63 = vpop.f32.mrf.mxu1  ;;  %v11105_v29 = vld [vmem:[%s11194_s27 + $0x108] sm:$0xff]   ;;  %v3657_v21 = vrot.slane %v10150_v17, 2 }
 0x2fa   : > { %v1448_v24 = vadd.f32 %v1447_v63, %v13646_v5 }
 0x2fb   : > { %v3133_v40 = vadd.f32 %v2926_v41, %v2172_v58  ;;  %8561 = vmatmul.msk.bf16.gmra.mxu0 %vm680_vm2, %v3656_v59  ;;  %v13648_v59 = vld [vmem:[#allocation58_spill] sm:$0xff] }
 0x2fd   : > { %v12147_v20 = vadd.f32 %v4001_v10, %v3133_v40  ;;  %v3658_v40 = vsel %vm568_vm1, %v3655_v13, %v3657_v21 }
 0x2ff   : > { %13645 = vst [vmem:[#allocation52_spill] sm:$0xff] %v12147_v20  ;;  %v10151_v20 = vld [vmem:[%s11194_s27 + $0x138] sm:$0xff]  }
 0x300   : > { %v4003_v39 = vpop.f32.mrf.mxu0  ;;  %v1967_v22 = vpop.f32.mrf.mxu2 }
 0x301   : > { %v2173_v62 = vadd.f32 %v1967_v22, %v1448_v24  ;;  %v2928_v2 = vpop.f32.mrf.mxu3  ;;  %v1450_v48 = vpop.f32.mrf.mxu1 }
 0x302   : > { %v1451_v58 = vadd.f32 %v1450_v48, %v13648_v59  ;;  %v10823_v59 = vld [vmem:[%s11194_s27 + $0x114] sm:$0xff]  }
 0x303   : > { %v3134_v50 = vadd.f32 %v2928_v2, %v2173_v62 }
 0x304   : > { %8171 = vmatmul.msk.bf16.gmra.mxu1 %vm680_vm2, %v11105_v29 }
 0x305   : > { %8228 = vmatmul.msk.bf16.gmra.mxu2 %vm680_vm2, %v10821_v60  ;;  %8505 = vmatmul.msk.bf16.gmra.mxu3 %vm680_vm2, %v9069_v15  ;;  %v12157_v10 = vadd.f32 %v4003_v39, %v3134_v50  ;;  %v13650_v15 = vld [vmem:[#allocation61_spill] sm:$0xff] }
 0x307   : > { %13647 = vst [vmem:[#allocation55_spill] sm:$0xff] %v12157_v10  ;;  %v9070_v10 = vld [vmem:[%s11194_s27 + $0x130] sm:$0xff] }
 0x308   : > { %v4006_v41 = vpop.f32.mrf.mxu0  ;;  %v1970_v63 = vpop.f32.mrf.mxu2 }
 0x309   : > { %v2174_v5 = vadd.f32 %v1970_v63, %v1451_v58  ;;  %v2931_v24 = vpop.f32.mrf.mxu3  ;;  %v1452_v22 = vpop.f32.mrf.mxu1  ;;  %v11106_v58 = vld [vmem:[%s11194_s27 + $0x110] sm:$0xff]   ;;  %v3659_v63 = vrot.slane %v10151_v20, 2 }
 0x30a   : > { %v1453_v39 = vadd.f32 %v1452_v22, %v13650_v15 }
 0x30b   : > { %v3135_v17 = vadd.f32 %v2931_v24, %v2174_v5  ;;  %8562 = vmatmul.msk.bf16.gmra.mxu0 %vm680_vm2, %v3658_v40  ;;  %v13652_v40 = vld [vmem:[#allocation64_spill] sm:$0xff] }
 0x30d   : > { %v12162_v62 = vadd.f32 %v4006_v41, %v3135_v17  ;;  %v3660_v17 = vsel %vm568_vm1, %v3657_v21, %v3659_v63 }
 0x30f   : > { %13649 = vst [vmem:[#allocation58_spill] sm:$0xff] %v12162_v62  ;;  %v10152_v62 = vld [vmem:[%s11194_s27 + $0x140] sm:$0xff]  }
 0x310   : > { %v4008_v2 = vpop.f32.mrf.mxu0  ;;  %v1972_v48 = vpop.f32.mrf.mxu2 }
 0x311   : > { %v2175_v60 = vadd.f32 %v1972_v48, %v1453_v39  ;;  %v2933_v50 = vpop.f32.mrf.mxu3  ;;  %v1455_v29 = vpop.f32.mrf.mxu1 }
 0x312   : > { %v1456_v5 = vadd.f32 %v1455_v29, %v13652_v40  ;;  %v10825_v40 = vld [vmem:[%s11194_s27 + $0x11c] sm:$0xff]  }
 0x313   : > { %v3136_v13 = vadd.f32 %v2933_v50, %v2175_v60 }
 0x314   : > { %8172 = vmatmul.msk.bf16.gmra.mxu1 %vm680_vm2, %v11106_v58 }
 0x315   : > { %8229 = vmatmul.msk.bf16.gmra.mxu2 %vm680_vm2, %v10823_v59  ;;  %8506 = vmatmul.msk.bf16.gmra.mxu3 %vm680_vm2, %v9070_v10  ;;  %v12172_v41 = vadd.f32 %v4008_v2, %v3136_v13  ;;  %v13654_v10 = vld [vmem:[#allocation67_spill] sm:$0xff] }
 0x317   : > { %13651 = vst [vmem:[#allocation61_spill] sm:$0xff] %v12172_v41  ;;  %v9071_v41 = vld [vmem:[%s11194_s27 + $0x138] sm:$0xff] }
 0x318   : > { %v4011_v24 = vpop.f32.mrf.mxu0  ;;  %v1975_v22 = vpop.f32.mrf.mxu2 }
 0x319   : > { %v2176_v15 = vadd.f32 %v1975_v22, %v1456_v5  ;;  %v2936_v39 = vpop.f32.mrf.mxu3  ;;  %v1457_v48 = vpop.f32.mrf.mxu1  ;;  %v11107_v5 = vld [vmem:[%s11194_s27 + $0x118] sm:$0xff]   ;;  %v3661_v22 = vrot.slane %v10152_v62, 2 }
 0x31a   : > { %v1458_v2 = vadd.f32 %v1457_v48, %v13654_v10 }
 0x31b   : > { %v3137_v20 = vadd.f32 %v2936_v39, %v2176_v15  ;;  %8563 = vmatmul.msk.bf16.gmra.mxu0 %vm680_vm2, %v3660_v17  ;;  %v13656_v17 = vld [vmem:[#allocation70_spill] sm:$0xff] }
 0x31d   : > { %v12177_v60 = vadd.f32 %v4011_v24, %v3137_v20  ;;  %v3662_v20 = vsel %vm568_vm1, %v3659_v63, %v3661_v22 }
 0x31f   : > { %13653 = vst [vmem:[#allocation64_spill] sm:$0xff] %v12177_v60  ;;  %v10153_v60 = vld [vmem:[%s11194_s27 + $0x148] sm:$0xff]  }
 0x320   : > { %v4013_v50 = vpop.f32.mrf.mxu0  ;;  %v1977_v29 = vpop.f32.mrf.mxu2 }
 0x321   : > { %v2177_v59 = vadd.f32 %v1977_v29, %v1458_v2  ;;  %v2938_v13 = vpop.f32.mrf.mxu3  ;;  %v1460_v58 = vpop.f32.mrf.mxu1 }
 0x322   : > { %v1461_v15 = vadd.f32 %v1460_v58, %v13656_v17  ;;  %v10827_v17 = vld [vmem:[%s11194_s27 + $0x124] sm:$0xff]  }
 0x323   : > { %v3138_v21 = vadd.f32 %v2938_v13, %v2177_v59 }
 0x324   : > { %8173 = vmatmul.msk.bf16.gmra.mxu1 %vm680_vm2, %v11107_v5 }
 0x325   : > { %8230 = vmatmul.msk.bf16.gmra.mxu2 %vm680_vm2, %v10825_v40  ;;  %8507 = vmatmul.msk.bf16.gmra.mxu3 %vm680_vm2, %v9071_v41  ;;  %v12187_v24 = vadd.f32 %v4013_v50, %v3138_v21  ;;  %v13658_v41 = vld [vmem:[#allocation73_spill] sm:$0xff] }
 0x327   : > { %13655 = vst [vmem:[#allocation67_spill] sm:$0xff] %v12187_v24  ;;  %v9072_v24 = vld [vmem:[%s11194_s27 + $0x140] sm:$0xff] }
 0x328   : > { %v4016_v39 = vpop.f32.mrf.mxu0  ;;  %v1980_v48 = vpop.f32.mrf.mxu2 }
 0x329   : > { %v2178_v10 = vadd.f32 %v1980_v48, %v1461_v15  ;;  %v2941_v2 = vpop.f32.mrf.mxu3  ;;  %v1462_v29 = vpop.f32.mrf.mxu1  ;;  %v11108_v15 = vld [vmem:[%s11194_s27 + $0x120] sm:$0xff]   ;;  %v3663_v48 = vrot.slane %v10153_v60, 2 }
 0x32a   : > { %v1463_v50 = vadd.f32 %v1462_v29, %v13658_v41 }
 0x32b   : > { %v3139_v62 = vadd.f32 %v2941_v2, %v2178_v10  ;;  %8564 = vmatmul.msk.bf16.gmra.mxu0 %vm680_vm2, %v3662_v20  ;;  %v13660_v20 = vld [vmem:[#allocation2_spill] sm:$0xff] }
 0x32d   : > { %v12192_v59 = vadd.f32 %v4016_v39, %v3139_v62  ;;  %v3664_v62 = vsel %vm568_vm1, %v3661_v22, %v3663_v48 }
 0x32f   : > { %13657 = vst [vmem:[#allocation70_spill] sm:$0xff] %v12192_v59  ;;  %v10154_v59 = vld [vmem:[%s11194_s27 + $0x150] sm:$0xff]  }
 0x330   : > { %v4018_v13 = vpop.f32.mrf.mxu0  ;;  %v1982_v58 = vpop.f32.mrf.mxu2 }
 0x331   : > { %v2179_v40 = vadd.f32 %v1982_v58, %v1463_v50  ;;  %v2943_v21 = vpop.f32.mrf.mxu3  ;;  %v1465_v5 = vpop.f32.mrf.mxu1 }
 0x332   : > { %v1466_v10 = vadd.f32 %v1465_v5, %v13660_v20  ;;  %v10829_v20 = vld [vmem:[%s11194_s27 + $0x12c] sm:$0xff]  }
 0x333   : > { %v3140_v63 = vadd.f32 %v2943_v21, %v2179_v40 }
 0x334   : > { %8174 = vmatmul.msk.bf16.gmra.mxu1 %vm680_vm2, %v11108_v15 }
 0x335   : > { %8231 = vmatmul.msk.bf16.gmra.mxu2 %vm680_vm2, %v10827_v17  ;;  %8508 = vmatmul.msk.bf16.gmra.mxu3 %vm680_vm2, %v9072_v24  ;;  %v12202_v39 = vadd.f32 %v4018_v13, %v3140_v63  ;;  %v13662_v24 = vld [vmem:[#allocation4_spill] sm:$0xff] }
 0x337   : > { %13659 = vst [vmem:[#allocation73_spill] sm:$0xff] %v12202_v39  ;;  %v9073_v39 = vld [vmem:[%s11194_s27 + $0x148] sm:$0xff] }
 0x338   : > { %v4021_v2 = vpop.f32.mrf.mxu0  ;;  %v1985_v29 = vpop.f32.mrf.mxu2 }
 0x339   : > { %v2180_v41 = vadd.f32 %v1985_v29, %v1466_v10  ;;  %v2946_v50 = vpop.f32.mrf.mxu3  ;;  %v1467_v58 = vpop.f32.mrf.mxu1  ;;  %v11109_v10 = vld [vmem:[%s11194_s27 + $0x128] sm:$0xff]   ;;  %v3665_v29 = vrot.slane %v10154_v59, 2 }
 0x33a   : > { %v1468_v13 = vadd.f32 %v1467_v58, %v13662_v24 }
 0x33b   : > { %v3141_v60 = vadd.f32 %v2946_v50, %v2180_v41  ;;  %8565 = vmatmul.msk.bf16.gmra.mxu0 %vm680_vm2, %v3664_v62  ;;  %v13664_v62 = vld [vmem:[#allocation6_spill] sm:$0xff] }
 0x33d   : > { %v12207_v40 = vadd.f32 %v4021_v2, %v3141_v60  ;;  %v3666_v60 = vsel %vm568_vm1, %v3663_v48, %v3665_v29 }
 0x33f   : > { %13661 = vst [vmem:[#allocation2_spill] sm:$0xff] %v12207_v40  ;;  %v10155_v40 = vld [vmem:[%s11194_s27 + $0x158] sm:$0xff]  }
 0x340   : > { %v4023_v21 = vpop.f32.mrf.mxu0  ;;  %v1987_v5 = vpop.f32.mrf.mxu2 }
 0x341   : > { %v2181_v17 = vadd.f32 %v1987_v5, %v1468_v13  ;;  %v2948_v63 = vpop.f32.mrf.mxu3  ;;  %v1470_v15 = vpop.f32.mrf.mxu1 }
 0x342   : > { %v1471_v41 = vadd.f32 %v1470_v15, %v13664_v62  ;;  %v10831_v62 = vld [vmem:[%s11194_s27 + $0x134] sm:$0xff]  }
 0x343   : > { %v3142_v22 = vadd.f32 %v2948_v63, %v2181_v17 }
 0x344   : > { %8175 = vmatmul.msk.bf16.gmra.mxu1 %vm680_vm2, %v11109_v10 }
 0x345   : > { %8232 = vmatmul.msk.bf16.gmra.mxu2 %vm680_vm2, %v10829_v20  ;;  %8509 = vmatmul.msk.bf16.gmra.mxu3 %vm680_vm2, %v9073_v39  ;;  %v12217_v2 = vadd.f32 %v4023_v21, %v3142_v22  ;;  %v13666_v39 = vld [vmem:[#allocation8_spill] sm:$0xff] }
 0x347   : > { %13663 = vst [vmem:[#allocation4_spill] sm:$0xff] %v12217_v2  ;;  %v9074_v2 = vld [vmem:[%s11194_s27 + $0x150] sm:$0xff] }
 0x348   : > { %v4026_v50 = vpop.f32.mrf.mxu0  ;;  %v1990_v58 = vpop.f32.mrf.mxu2 }
 0x349   : > { %v2182_v24 = vadd.f32 %v1990_v58, %v1471_v41  ;;  %v2951_v13 = vpop.f32.mrf.mxu3  ;;  %v1472_v5 = vpop.f32.mrf.mxu1  ;;  %v11110_v41 = vld [vmem:[%s11194_s27 + $0x130] sm:$0xff]   ;;  %v3667_v58 = vrot.slane %v10155_v40, 2 }
 0x34a   : > { %v1473_v21 = vadd.f32 %v1472_v5, %v13666_v39 }
 0x34b   : > { %v3143_v59 = vadd.f32 %v2951_v13, %v2182_v24  ;;  %8566 = vmatmul.msk.bf16.gmra.mxu0 %vm680_vm2, %v3666_v60  ;;  %v13668_v60 = vld [vmem:[#allocation10_spill] sm:$0xff] }
 0x34d   : > { %v12222_v17 = vadd.f32 %v4026_v50, %v3143_v59  ;;  %v3668_v59 = vsel %vm568_vm1, %v3665_v29, %v3667_v58 }
 0x34f   : > { %13665 = vst [vmem:[#allocation6_spill] sm:$0xff] %v12222_v17  ;;  %v10156_v17 = vld [vmem:[%s11194_s27 + $0x160] sm:$0xff]  }
 0x350   : > { %v4028_v63 = vpop.f32.mrf.mxu0  ;;  %v1992_v15 = vpop.f32.mrf.mxu2 }
 0x351   : > { %v2183_v20 = vadd.f32 %v1992_v15, %v1473_v21  ;;  %v2953_v22 = vpop.f32.mrf.mxu3  ;;  %v1475_v10 = vpop.f32.mrf.mxu1 }
 0x352   : > { %v1476_v24 = vadd.f32 %v1475_v10, %v13668_v60  ;;  %v10833_v60 = vld [vmem:[%s11194_s27 + $0x13c] sm:$0xff]  }
 0x353   : > { %v3144_v48 = vadd.f32 %v2953_v22, %v2183_v20 }
 0x354   : > { %8176 = vmatmul.msk.bf16.gmra.mxu1 %vm680_vm2, %v11110_v41 }
 0x355   : > { %8233 = vmatmul.msk.bf16.gmra.mxu2 %vm680_vm2, %v10831_v62  ;;  %8510 = vmatmul.msk.bf16.gmra.mxu3 %vm680_vm2, %v9074_v2  ;;  %v12232_v50 = vadd.f32 %v4028_v63, %v3144_v48  ;;  %v13670_v2 = vld [vmem:[#allocation12_spill] sm:$0xff] }
 0x357   : > { %13667 = vst [vmem:[#allocation8_spill] sm:$0xff] %v12232_v50  ;;  %v9075_v50 = vld [vmem:[%s11194_s27 + $0x158] sm:$0xff] }
 0x358   : > { %v4031_v13 = vpop.f32.mrf.mxu0  ;;  %v1995_v5 = vpop.f32.mrf.mxu2 }
 0x359   : > { %v2184_v39 = vadd.f32 %v1995_v5, %v1476_v24  ;;  %v2956_v21 = vpop.f32.mrf.mxu3  ;;  %v1477_v15 = vpop.f32.mrf.mxu1  ;;  %v11111_v24 = vld [vmem:[%s11194_s27 + $0x138] sm:$0xff]   ;;  %v3669_v5 = vrot.slane %v10156_v17, 2 }
 0x35a   : > { %v1478_v63 = vadd.f32 %v1477_v15, %v13670_v2 }
 0x35b   : > { %v3145_v40 = vadd.f32 %v2956_v21, %v2184_v39  ;;  %8567 = vmatmul.msk.bf16.gmra.mxu0 %vm680_vm2, %v3668_v59  ;;  %v13672_v59 = vld [vmem:[#allocation15_spill] sm:$0xff] }
 0x35d   : > { %v12237_v20 = vadd.f32 %v4031_v13, %v3145_v40  ;;  %v3670_v40 = vsel %vm568_vm1, %v3667_v58, %v3669_v5 }
 0x35f   : > { %13669 = vst [vmem:[#allocation10_spill] sm:$0xff] %v12237_v20  ;;  %v10157_v20 = vld [vmem:[%s11194_s27 + $0x168] sm:$0xff]  }
 0x360   : > { %v4033_v22 = vpop.f32.mrf.mxu0  ;;  %v1997_v10 = vpop.f32.mrf.mxu2 }
 0x361   : > { %v2185_v62 = vadd.f32 %v1997_v10, %v1478_v63  ;;  %v2958_v48 = vpop.f32.mrf.mxu3  ;;  %v1480_v41 = vpop.f32.mrf.mxu1 }
 0x362   : > { %v1481_v39 = vadd.f32 %v1480_v41, %v13672_v59  ;;  %v10835_v59 = vld [vmem:[%s11194_s27 + $0x144] sm:$0xff]  }
 0x363   : > { %v3146_v29 = vadd.f32 %v2958_v48, %v2185_v62 }
 0x364   : > { %8177 = vmatmul.msk.bf16.gmra.mxu1 %vm680_vm2, %v11111_v24 }
 0x365   : > { %8234 = vmatmul.msk.bf16.gmra.mxu2 %vm680_vm2, %v10833_v60  ;;  %8511 = vmatmul.msk.bf16.gmra.mxu3 %vm680_vm2, %v9075_v50  ;;  %v12247_v13 = vadd.f32 %v4033_v22, %v3146_v29  ;;  %v13674_v50 = vld [vmem:[#allocation17_spill] sm:$0xff] }
 0x367   : > { %13671 = vst [vmem:[#allocation12_spill] sm:$0xff] %v12247_v13  ;;  %v9076_v13 = vld [vmem:[%s11194_s27 + $0x160] sm:$0xff] }
 0x368   : > { %v4036_v21 = vpop.f32.mrf.mxu0  ;;  %v2000_v15 = vpop.f32.mrf.mxu2 }
 0x369   : > { %v2186_v2 = vadd.f32 %v2000_v15, %v1481_v39  ;;  %v2961_v63 = vpop.f32.mrf.mxu3  ;;  %v1482_v10 = vpop.f32.mrf.mxu1  ;;  %v11112_v39 = vld [vmem:[%s11194_s27 + $0x140] sm:$0xff]   ;;  %v3671_v15 = vrot.slane %v10157_v20, 2 }
 0x36a   : > { %v1483_v22 = vadd.f32 %v1482_v10, %v13674_v50 }
 0x36b   : > { %v3147_v17 = vadd.f32 %v2961_v63, %v2186_v2  ;;  %8568 = vmatmul.msk.bf16.gmra.mxu0 %vm680_vm2, %v3670_v40  ;;  %v13676_v40 = vld [vmem:[#allocation19_spill] sm:$0xff] }
 0x36d   : > { %v12252_v62 = vadd.f32 %v4036_v21, %v3147_v17  ;;  %v3672_v17 = vsel %vm568_vm1, %v3669_v5, %v3671_v15 }
 0x36f   : > { %13673 = vst [vmem:[#allocation15_spill] sm:$0xff] %v12252_v62  ;;  %v10158_v62 = vld [vmem:[%s11194_s27 + $0x170] sm:$0xff]  }
 0x370   : > { %v4038_v48 = vpop.f32.mrf.mxu0  ;;  %v2002_v41 = vpop.f32.mrf.mxu2 }
 0x371   : > { %v2187_v60 = vadd.f32 %v2002_v41, %v1483_v22  ;;  %v2963_v29 = vpop.f32.mrf.mxu3  ;;  %v1485_v24 = vpop.f32.mrf.mxu1 }
 0x372   : > { %v1486_v2 = vadd.f32 %v1485_v24, %v13676_v40  ;;  %v10837_v40 = vld [vmem:[%s11194_s27 + $0x14c] sm:$0xff]  }
 0x373   : > { %v3148_v58 = vadd.f32 %v2963_v29, %v2187_v60 }
 0x374   : > { %8178 = vmatmul.msk.bf16.gmra.mxu1 %vm680_vm2, %v11112_v39 }
 0x375   : > { %8235 = vmatmul.msk.bf16.gmra.mxu2 %vm680_vm2, %v10835_v59  ;;  %8512 = vmatmul.msk.bf16.gmra.mxu3 %vm680_vm2, %v9076_v13  ;;  %v12262_v21 = vadd.f32 %v4038_v48, %v3148_v58  ;;  %v13678_v13 = vld [vmem:[#allocation21_spill] sm:$0xff] }
 0x377   : > { %13675 = vst [vmem:[#allocation17_spill] sm:$0xff] %v12262_v21  ;;  %v9077_v21 = vld [vmem:[%s11194_s27 + $0x168] sm:$0xff] }
 0x378   : > { %v4041_v63 = vpop.f32.mrf.mxu0  ;;  %v2005_v10 = vpop.f32.mrf.mxu2 }
 0x379   : > { %v2188_v50 = vadd.f32 %v2005_v10, %v1486_v2  ;;  %v2966_v22 = vpop.f32.mrf.mxu3  ;;  %v1487_v41 = vpop.f32.mrf.mxu1  ;;  %v11113_v2 = vld [vmem:[%s11194_s27 + $0x148] sm:$0xff]   ;;  %v3673_v10 = vrot.slane %v10158_v62, 2 }
 0x37a   : > { %v1488_v48 = vadd.f32 %v1487_v41, %v13678_v13 }
 0x37b   : > { %v3149_v20 = vadd.f32 %v2966_v22, %v2188_v50  ;;  %8569 = vmatmul.msk.bf16.gmra.mxu0 %vm680_vm2, %v3672_v17  ;;  %v13680_v17 = vld [vmem:[#allocation23_spill] sm:$0xff] }
 0x37d   : > { %v12267_v60 = vadd.f32 %v4041_v63, %v3149_v20  ;;  %v3674_v20 = vsel %vm568_vm1, %v3671_v15, %v3673_v10 }
 0x37f   : > { %13677 = vst [vmem:[#allocation19_spill] sm:$0xff] %v12267_v60  ;;  %v10159_v60 = vld [vmem:[%s11194_s27 + $0x178] sm:$0xff]  }
 0x380   : > { %v4043_v29 = vpop.f32.mrf.mxu0  ;;  %v2007_v24 = vpop.f32.mrf.mxu2 }
 0x381   : > { %v2189_v59 = vadd.f32 %v2007_v24, %v1488_v48  ;;  %v2968_v58 = vpop.f32.mrf.mxu3  ;;  %v1490_v39 = vpop.f32.mrf.mxu1 }
 0x382   : > { %v1491_v50 = vadd.f32 %v1490_v39, %v13680_v17  ;;  %v10839_v17 = vld [vmem:[%s11194_s27 + $0x154] sm:$0xff]  }
 0x383   : > { %v3150_v5 = vadd.f32 %v2968_v58, %v2189_v59 }
 0x384   : > { %8179 = vmatmul.msk.bf16.gmra.mxu1 %vm680_vm2, %v11113_v2 }
 0x385   : > { %8236 = vmatmul.msk.bf16.gmra.mxu2 %vm680_vm2, %v10837_v40  ;;  %8513 = vmatmul.msk.bf16.gmra.mxu3 %vm680_vm2, %v9077_v21  ;;  %v12277_v63 = vadd.f32 %v4043_v29, %v3150_v5  ;;  %v13682_v21 = vld [vmem:[#allocation26_spill] sm:$0xff] }
 0x387   : > { %13679 = vst [vmem:[#allocation21_spill] sm:$0xff] %v12277_v63  ;;  %v9078_v63 = vld [vmem:[%s11194_s27 + $0x170] sm:$0xff] }
 0x388   : > { %v4046_v22 = vpop.f32.mrf.mxu0  ;;  %v2010_v41 = vpop.f32.mrf.mxu2 }
 0x389   : > { %v2190_v13 = vadd.f32 %v2010_v41, %v1491_v50  ;;  %v2971_v48 = vpop.f32.mrf.mxu3  ;;  %v1492_v24 = vpop.f32.mrf.mxu1  ;;  %v11114_v50 = vld [vmem:[%s11194_s27 + $0x150] sm:$0xff]   ;;  %v3675_v41 = vrot.slane %v10159_v60, 2 }
 0x38a   : > { %v1493_v29 = vadd.f32 %v1492_v24, %v13682_v21 }
 0x38b   : > { %v3151_v62 = vadd.f32 %v2971_v48, %v2190_v13  ;;  %8570 = vmatmul.msk.bf16.gmra.mxu0 %vm680_vm2, %v3674_v20  ;;  %v13684_v20 = vld [vmem:[#allocation29_spill] sm:$0xff] }
 0x38d   : > { %v12282_v59 = vadd.f32 %v4046_v22, %v3151_v62  ;;  %v3676_v62 = vsel %vm568_vm1, %v3673_v10, %v3675_v41 }
 0x38f   : > { %13681 = vst [vmem:[#allocation23_spill] sm:$0xff] %v12282_v59  ;;  %v10160_v59 = vld [vmem:[%s11194_s27 + $0x180] sm:$0xff]  }
 0x390   : > { %v4048_v58 = vpop.f32.mrf.mxu0  ;;  %v2012_v39 = vpop.f32.mrf.mxu2 }
 0x391   : > { %v2191_v40 = vadd.f32 %v2012_v39, %v1493_v29  ;;  %v2973_v5 = vpop.f32.mrf.mxu3  ;;  %v1495_v2 = vpop.f32.mrf.mxu1 }
 0x392   : > { %v1496_v13 = vadd.f32 %v1495_v2, %v13684_v20  ;;  %v10841_v20 = vld [vmem:[%s11194_s27 + $0x15c] sm:$0xff]  }
 0x393   : > { %v3152_v15 = vadd.f32 %v2973_v5, %v2191_v40 }
 0x394   : > { %8180 = vmatmul.msk.bf16.gmra.mxu1 %vm680_vm2, %v11114_v50 }
 0x395   : > { %8237 = vmatmul.msk.bf16.gmra.mxu2 %vm680_vm2, %v10839_v17  ;;  %8514 = vmatmul.msk.bf16.gmra.mxu3 %vm680_vm2, %v9078_v63  ;;  %v12292_v22 = vadd.f32 %v4048_v58, %v3152_v15  ;;  %v13686_v63 = vld [vmem:[#allocation32_spill] sm:$0xff] }
 0x397   : > { %13683 = vst [vmem:[#allocation26_spill] sm:$0xff] %v12292_v22  ;;  %v9079_v22 = vld [vmem:[%s11194_s27 + $0x178] sm:$0xff] }
 0x398   : > { %v4051_v48 = vpop.f32.mrf.mxu0  ;;  %v2015_v24 = vpop.f32.mrf.mxu2 }
 0x399   : > { %v2192_v21 = vadd.f32 %v2015_v24, %v1496_v13  ;;  %v2976_v29 = vpop.f32.mrf.mxu3  ;;  %v1497_v39 = vpop.f32.mrf.mxu1  ;;  %v11115_v13 = vld [vmem:[%s11194_s27 + $0x158] sm:$0xff]   ;;  %v3677_v24 = vrot.slane %v10160_v59, 2 }
 0x39a   : > { %v1498_v58 = vadd.f32 %v1497_v39, %v13686_v63 }
 0x39b   : > { %v3153_v60 = vadd.f32 %v2976_v29, %v2192_v21  ;;  %8571 = vmatmul.msk.bf16.gmra.mxu0 %vm680_vm2, %v3676_v62  ;;  %v13688_v62 = vld [vmem:[#allocation35_spill] sm:$0xff] }
 0x39d   : > { %v12297_v40 = vadd.f32 %v4051_v48, %v3153_v60  ;;  %v3678_v60 = vsel %vm568_vm1, %v3675_v41, %v3677_v24 }
 0x39f   : > { %13685 = vst [vmem:[#allocation29_spill] sm:$0xff] %v12297_v40  ;;  %v10161_v40 = vld [vmem:[%s11194_s27 + $0x188] sm:$0xff]  }
 0x3a0   : > { %v4053_v5 = vpop.f32.mrf.mxu0  ;;  %v2017_v2 = vpop.f32.mrf.mxu2 }
 0x3a1   : > { %v2193_v17 = vadd.f32 %v2017_v2, %v1498_v58  ;;  %v2978_v15 = vpop.f32.mrf.mxu3  ;;  %v1500_v50 = vpop.f32.mrf.mxu1 }
 0x3a2   : > { %v1501_v21 = vadd.f32 %v1500_v50, %v13688_v62  ;;  %v10843_v62 = vld [vmem:[%s11194_s27 + $0x164] sm:$0xff]  }
 0x3a3   : > { %v3154_v10 = vadd.f32 %v2978_v15, %v2193_v17 }
 0x3a4   : > { %8181 = vmatmul.msk.bf16.gmra.mxu1 %vm680_vm2, %v11115_v13 }
 0x3a5   : > { %8238 = vmatmul.msk.bf16.gmra.mxu2 %vm680_vm2, %v10841_v20  ;;  %8515 = vmatmul.msk.bf16.gmra.mxu3 %vm680_vm2, %v9079_v22  ;;  %v12307_v48 = vadd.f32 %v4053_v5, %v3154_v10  ;;  %v13690_v22 = vld [vmem:[#allocation38_spill] sm:$0xff] }
 0x3a7   : > { %13687 = vst [vmem:[#allocation32_spill] sm:$0xff] %v12307_v48  ;;  %v9080_v48 = vld [vmem:[%s11194_s27 + $0x180] sm:$0xff] }
 0x3a8   : > { %v4056_v29 = vpop.f32.mrf.mxu0  ;;  %v2020_v39 = vpop.f32.mrf.mxu2 }
 0x3a9   : > { %v2194_v63 = vadd.f32 %v2020_v39, %v1501_v21  ;;  %v2981_v58 = vpop.f32.mrf.mxu3  ;;  %v1502_v2 = vpop.f32.mrf.mxu1  ;;  %v11116_v21 = vld [vmem:[%s11194_s27 + $0x160] sm:$0xff]   ;;  %v3679_v39 = vrot.slane %v10161_v40, 2 }
 0x3aa   : > { %v1503_v5 = vadd.f32 %v1502_v2, %v13690_v22 }
 0x3ab   : > { %v3155_v59 = vadd.f32 %v2981_v58, %v2194_v63  ;;  %8572 = vmatmul.msk.bf16.gmra.mxu0 %vm680_vm2, %v3678_v60  ;;  %v13692_v60 = vld [vmem:[#allocation41_spill] sm:$0xff] }
 0x3ad   : > { %v12312_v17 = vadd.f32 %v4056_v29, %v3155_v59  ;;  %v3680_v59 = vsel %vm568_vm1, %v3677_v24, %v3679_v39 }
 0x3af   : > { %13689 = vst [vmem:[#allocation35_spill] sm:$0xff] %v12312_v17  ;;  %v10162_v17 = vld [vmem:[%s11194_s27 + $0x190] sm:$0xff]  }
 0x3b0   : > { %v4058_v15 = vpop.f32.mrf.mxu0  ;;  %v2022_v50 = vpop.f32.mrf.mxu2 }
 0x3b1   : > { %v2195_v20 = vadd.f32 %v2022_v50, %v1503_v5  ;;  %v2983_v10 = vpop.f32.mrf.mxu3  ;;  %v1505_v13 = vpop.f32.mrf.mxu1 }
 0x3b2   : > { %v1506_v63 = vadd.f32 %v1505_v13, %v13692_v60  ;;  %v10845_v60 = vld [vmem:[%s11194_s27 + $0x16c] sm:$0xff]  }
 0x3b3   : > { %v3156_v41 = vadd.f32 %v2983_v10, %v2195_v20 }
 0x3b4   : > { %8182 = vmatmul.msk.bf16.gmra.mxu1 %vm680_vm2, %v11116_v21 }
 0x3b5   : > { %8239 = vmatmul.msk.bf16.gmra.mxu2 %vm680_vm2, %v10843_v62  ;;  %8516 = vmatmul.msk.bf16.gmra.mxu3 %vm680_vm2, %v9080_v48  ;;  %v12322_v29 = vadd.f32 %v4058_v15, %v3156_v41  ;;  %v13694_v48 = vld [vmem:[#allocation44_spill] sm:$0xff] }
 0x3b7   : > { %13691 = vst [vmem:[#allocation38_spill] sm:$0xff] %v12322_v29  ;;  %v9081_v29 = vld [vmem:[%s11194_s27 + $0x188] sm:$0xff] }
 0x3b8   : > { %v4061_v58 = vpop.f32.mrf.mxu0  ;;  %v2025_v2 = vpop.f32.mrf.mxu2 }
 0x3b9   : > { %v2196_v22 = vadd.f32 %v2025_v2, %v1506_v63  ;;  %v2986_v5 = vpop.f32.mrf.mxu3  ;;  %v1507_v50 = vpop.f32.mrf.mxu1  ;;  %v11117_v63 = vld [vmem:[%s11194_s27 + $0x168] sm:$0xff]   ;;  %v3681_v2 = vrot.slane %v10162_v17, 2 }
 0x3ba   : > { %v1508_v15 = vadd.f32 %v1507_v50, %v13694_v48 }
 0x3bb   : > { %v3157_v40 = vadd.f32 %v2986_v5, %v2196_v22  ;;  %8573 = vmatmul.msk.bf16.gmra.mxu0 %vm680_vm2, %v3680_v59  ;;  %v13696_v59 = vld [vmem:[#allocation47_spill] sm:$0xff] }
 0x3bd   : > { %v12327_v20 = vadd.f32 %v4061_v58, %v3157_v40  ;;  %v3682_v40 = vsel %vm568_vm1, %v3679_v39, %v3681_v2 }
 0x3bf   : > { %13693 = vst [vmem:[#allocation41_spill] sm:$0xff] %v12327_v20  ;;  %v10163_v20 = vld [vmem:[%s11194_s27 + $0x198] sm:$0xff]  }
 0x3c0   : > { %v4063_v10 = vpop.f32.mrf.mxu0  ;;  %v2027_v13 = vpop.f32.mrf.mxu2 }
 0x3c1   : > { %v2197_v62 = vadd.f32 %v2027_v13, %v1508_v15  ;;  %v2988_v41 = vpop.f32.mrf.mxu3  ;;  %v1510_v21 = vpop.f32.mrf.mxu1 }
 0x3c2   : > { %v1511_v22 = vadd.f32 %v1510_v21, %v13696_v59  ;;  %v10847_v59 = vld [vmem:[%s11194_s27 + $0x174] sm:$0xff]  }
 0x3c3   : > { %v3158_v24 = vadd.f32 %v2988_v41, %v2197_v62 }
 0x3c4   : > { %8183 = vmatmul.msk.bf16.gmra.mxu1 %vm680_vm2, %v11117_v63 }
 0x3c5   : > { %8240 = vmatmul.msk.bf16.gmra.mxu2 %vm680_vm2, %v10845_v60  ;;  %8517 = vmatmul.msk.bf16.gmra.mxu3 %vm680_vm2, %v9081_v29  ;;  %v12337_v58 = vadd.f32 %v4063_v10, %v3158_v24  ;;  %v13698_v29 = vld [vmem:[#allocation50_spill] sm:$0xff] }
 0x3c7   : > { %13695 = vst [vmem:[#allocation44_spill] sm:$0xff] %v12337_v58  ;;  %v9082_v58 = vld [vmem:[%s11194_s27 + $0x190] sm:$0xff] }
 0x3c8   : > { %v4066_v5 = vpop.f32.mrf.mxu0  ;;  %v2030_v50 = vpop.f32.mrf.mxu2 }
 0x3c9   : > { %v2198_v48 = vadd.f32 %v2030_v50, %v1511_v22  ;;  %v2991_v15 = vpop.f32.mrf.mxu3  ;;  %v1512_v13 = vpop.f32.mrf.mxu1  ;;  %v11118_v22 = vld [vmem:[%s11194_s27 + $0x170] sm:$0xff]   ;;  %v3683_v50 = vrot.slane %v10163_v20, 2 }
 0x3ca   : > { %v1513_v10 = vadd.f32 %v1512_v13, %v13698_v29 }
 0x3cb   : > { %v3159_v17 = vadd.f32 %v2991_v15, %v2198_v48  ;;  %8574 = vmatmul.msk.bf16.gmra.mxu0 %vm680_vm2, %v3682_v40  ;;  %v13700_v40 = vld [vmem:[#allocation53_spill] sm:$0xff] }
 0x3cd   : > { %v12342_v62 = vadd.f32 %v4066_v5, %v3159_v17  ;;  %v3684_v17 = vsel %vm568_vm1, %v3681_v2, %v3683_v50 }
 0x3cf   : > { %13697 = vst [vmem:[#allocation47_spill] sm:$0xff] %v12342_v62  ;;  %v10164_v62 = vld [vmem:[%s11194_s27 + $0x1a0] sm:$0xff]  }
 0x3d0   : > { %v4068_v41 = vpop.f32.mrf.mxu0  ;;  %v2032_v21 = vpop.f32.mrf.mxu2 }
 0x3d1   : > { %v2199_v60 = vadd.f32 %v2032_v21, %v1513_v10  ;;  %v2993_v24 = vpop.f32.mrf.mxu3  ;;  %v1515_v63 = vpop.f32.mrf.mxu1 }
 0x3d2   : > { %v1516_v48 = vadd.f32 %v1515_v63, %v13700_v40  ;;  %v10849_v40 = vld [vmem:[%s11194_s27 + $0x17c] sm:$0xff]  }
 0x3d3   : > { %v3160_v39 = vadd.f32 %v2993_v24, %v2199_v60 }
 0x3d4   : > { %8184 = vmatmul.msk.bf16.gmra.mxu1 %vm680_vm2, %v11118_v22 }
 0x3d5   : > { %8241 = vmatmul.msk.bf16.gmra.mxu2 %vm680_vm2, %v10847_v59  ;;  %8518 = vmatmul.msk.bf16.gmra.mxu3 %vm680_vm2, %v9082_v58  ;;  %v12352_v5 = vadd.f32 %v4068_v41, %v3160_v39  ;;  %v13702_v58 = vld [vmem:[#allocation56_spill] sm:$0xff] }
 0x3d7   : > { %13699 = vst [vmem:[#allocation50_spill] sm:$0xff] %v12352_v5  ;;  %v9083_v5 = vld [vmem:[%s11194_s27 + $0x198] sm:$0xff] }
 0x3d8   : > { %v4071_v15 = vpop.f32.mrf.mxu0  ;;  %v2035_v13 = vpop.f32.mrf.mxu2 }
 0x3d9   : > { %v2200_v29 = vadd.f32 %v2035_v13, %v1516_v48  ;;  %v2996_v10 = vpop.f32.mrf.mxu3  ;;  %v1517_v21 = vpop.f32.mrf.mxu1  ;;  %v11119_v48 = vld [vmem:[%s11194_s27 + $0x178] sm:$0xff]   ;;  %v3685_v13 = vrot.slane %v10164_v62, 2 }
 0x3da   : > { %v1518_v41 = vadd.f32 %v1517_v21, %v13702_v58 }
 0x3db   : > { %v3161_v20 = vadd.f32 %v2996_v10, %v2200_v29  ;;  %8575 = vmatmul.msk.bf16.gmra.mxu0 %vm680_vm2, %v3684_v17  ;;  %v13704_v17 = vld [vmem:[#allocation59_spill] sm:$0xff] }
 0x3dd   : > { %v12357_v60 = vadd.f32 %v4071_v15, %v3161_v20  ;;  %v3686_v20 = vsel %vm568_vm1, %v3683_v50, %v3685_v13 }
 0x3df   : > { %13701 = vst [vmem:[#allocation53_spill] sm:$0xff] %v12357_v60  ;;  %v10165_v60 = vld [vmem:[%s11194_s27 + $0x1a8] sm:$0xff]  }
 0x3e0   : > { %v4073_v24 = vpop.f32.mrf.mxu0  ;;  %v2037_v63 = vpop.f32.mrf.mxu2 }
 0x3e1   : > { %v2201_v59 = vadd.f32 %v2037_v63, %v1518_v41  ;;  %v2998_v39 = vpop.f32.mrf.mxu3  ;;  %v1520_v22 = vpop.f32.mrf.mxu1 }
 0x3e2   : > { %v1521_v29 = vadd.f32 %v1520_v22, %v13704_v17  ;;  %v10851_v17 = vld [vmem:[%s11194_s27 + $0x184] sm:$0xff]  }
 0x3e3   : > { %v3162_v2 = vadd.f32 %v2998_v39, %v2201_v59 }
 0x3e4   : > { %8185 = vmatmul.msk.bf16.gmra.mxu1 %vm680_vm2, %v11119_v48 }
 0x3e5   : > { %8242 = vmatmul.msk.bf16.gmra.mxu2 %vm680_vm2, %v10849_v40  ;;  %8519 = vmatmul.msk.bf16.gmra.mxu3 %vm680_vm2, %v9083_v5  ;;  %v12367_v15 = vadd.f32 %v4073_v24, %v3162_v2  ;;  %v13706_v5 = vld [vmem:[#allocation62_spill] sm:$0xff] }
 0x3e7   : > { %13703 = vst [vmem:[#allocation56_spill] sm:$0xff] %v12367_v15  ;;  %v9084_v15 = vld [vmem:[%s11194_s27 + $0x1a0] sm:$0xff] }
 0x3e8   : > { %v4076_v10 = vpop.f32.mrf.mxu0  ;;  %v2040_v21 = vpop.f32.mrf.mxu2 }
 0x3e9   : > { %v2202_v58 = vadd.f32 %v2040_v21, %v1521_v29  ;;  %v3001_v41 = vpop.f32.mrf.mxu3  ;;  %v1522_v63 = vpop.f32.mrf.mxu1  ;;  %v11120_v29 = vld [vmem:[%s11194_s27 + $0x180] sm:$0xff]   ;;  %v3687_v21 = vrot.slane %v10165_v60, 2 }
 0x3ea   : > { %v1523_v24 = vadd.f32 %v1522_v63, %v13706_v5 }
 0x3eb   : > { %v3163_v62 = vadd.f32 %v3001_v41, %v2202_v58  ;;  %8576 = vmatmul.msk.bf16.gmra.mxu0 %vm680_vm2, %v3686_v20  ;;  %v13708_v20 = vld [vmem:[#allocation65_spill] sm:$0xff] }
 0x3ed   : > { %v12372_v59 = vadd.f32 %v4076_v10, %v3163_v62  ;;  %v3688_v62 = vsel %vm568_vm1, %v3685_v13, %v3687_v21 }
 0x3ef   : > { %13705 = vst [vmem:[#allocation59_spill] sm:$0xff] %v12372_v59  ;;  %v10166_v59 = vld [vmem:[%s11194_s27 + $0x1b0] sm:$0xff]  }
 0x3f0   : > { %v4078_v39 = vpop.f32.mrf.mxu0  ;;  %v2042_v22 = vpop.f32.mrf.mxu2 }
 0x3f1   : > { %v2203_v40 = vadd.f32 %v2042_v22, %v1523_v24  ;;  %v3003_v2 = vpop.f32.mrf.mxu3  ;;  %v1525_v48 = vpop.f32.mrf.mxu1 }
 0x3f2   : > { %v1526_v58 = vadd.f32 %v1525_v48, %v13708_v20  ;;  %v10853_v20 = vld [vmem:[%s11194_s27 + $0x18c] sm:$0xff]  }
 0x3f3   : > { %v3164_v50 = vadd.f32 %v3003_v2, %v2203_v40 }
 0x3f4   : > { %8186 = vmatmul.msk.bf16.gmra.mxu1 %vm680_vm2, %v11120_v29 }
 0x3f5   : > { %8243 = vmatmul.msk.bf16.gmra.mxu2 %vm680_vm2, %v10851_v17  ;;  %8520 = vmatmul.msk.bf16.gmra.mxu3 %vm680_vm2, %v9084_v15  ;;  %v12382_v10 = vadd.f32 %v4078_v39, %v3164_v50  ;;  %v13710_v15 = vld [vmem:[#allocation68_spill] sm:$0xff] }
 0x3f7   : > { %13707 = vst [vmem:[#allocation62_spill] sm:$0xff] %v12382_v10  ;;  %v9085_v10 = vld [vmem:[%s11194_s27 + $0x1a8] sm:$0xff] }
 0x3f8   : > { %v4081_v41 = vpop.f32.mrf.mxu0  ;;  %v2045_v63 = vpop.f32.mrf.mxu2 }
 0x3f9   : > { %v2204_v5 = vadd.f32 %v2045_v63, %v1526_v58  ;;  %v3006_v24 = vpop.f32.mrf.mxu3  ;;  %v1527_v22 = vpop.f32.mrf.mxu1  ;;  %v11121_v58 = vld [vmem:[%s11194_s27 + $0x188] sm:$0xff]   ;;  %v3689_v63 = vrot.slane %v10166_v59, 2 }
 0x3fa   : > { %v1528_v39 = vadd.f32 %v1527_v22, %v13710_v15 }
 0x3fb   : > { %v3165_v60 = vadd.f32 %v3006_v24, %v2204_v5  ;;  %8577 = vmatmul.msk.bf16.gmra.mxu0 %vm680_vm2, %v3688_v62  ;;  %v13712_v62 = vld [vmem:[#allocation71_spill] sm:$0xff] }
 0x3fd   : > { %v12387_v40 = vadd.f32 %v4081_v41, %v3165_v60  ;;  %v3690_v60 = vsel %vm568_vm1, %v3687_v21, %v3689_v63 }
 0x3ff   : > { %13709 = vst [vmem:[#allocation65_spill] sm:$0xff] %v12387_v40  ;;  %v10167_v40 = vld [vmem:[%s11194_s27 + $0x1b8] sm:$0xff]  }
 0x400   : > { %v4083_v2 = vpop.f32.mrf.mxu0  ;;  %v2047_v48 = vpop.f32.mrf.mxu2 }
 0x401   : > { %v2205_v17 = vadd.f32 %v2047_v48, %v1528_v39  ;;  %v3008_v50 = vpop.f32.mrf.mxu3  ;;  %v1530_v29 = vpop.f32.mrf.mxu1 }
 0x402   : > { %v1531_v5 = vadd.f32 %v1530_v29, %v13712_v62  ;;  %v10855_v62 = vld [vmem:[%s11194_s27 + $0x194] sm:$0xff]  }
 0x403   : > { %v3166_v13 = vadd.f32 %v3008_v50, %v2205_v17 }
 0x404   : > { %8187 = vmatmul.msk.bf16.gmra.mxu1 %vm680_vm2, %v11121_v58 }
 0x405   : > { %8244 = vmatmul.msk.bf16.gmra.mxu2 %vm680_vm2, %v10853_v20  ;;  %8521 = vmatmul.msk.bf16.gmra.mxu3 %vm680_vm2, %v9085_v10  ;;  %v12397_v41 = vadd.f32 %v4083_v2, %v3166_v13  ;;  %v13714_v10 = vld [vmem:[#allocation74_spill] sm:$0xff] }
 0x407   : > { %13711 = vst [vmem:[#allocation68_spill] sm:$0xff] %v12397_v41  ;;  %v9086_v41 = vld [vmem:[%s11194_s27 + $0x1b0] sm:$0xff] }
 0x408   : > { %v4086_v24 = vpop.f32.mrf.mxu0  ;;  %v2050_v22 = vpop.f32.mrf.mxu2 }
 0x409   : > { %v2206_v15 = vadd.f32 %v2050_v22, %v1531_v5  ;;  %v3011_v39 = vpop.f32.mrf.mxu3  ;;  %v1532_v48 = vpop.f32.mrf.mxu1  ;;  %v11122_v5 = vld [vmem:[%s11194_s27 + $0x190] sm:$0xff]   ;;  %v3691_v22 = vrot.slane %v10167_v40, 2 }
 0x40a   : > { %v1533_v2 = vadd.f32 %v1532_v48, %v13714_v10 }
 0x40b   : > { %v3167_v59 = vadd.f32 %v3011_v39, %v2206_v15  ;;  %8578 = vmatmul.msk.bf16.gmra.mxu0 %vm680_vm2, %v3690_v60  ;;  %v13716_v60 = vld [vmem:[#allocation3_spill] sm:$0xff] }
 0x40d   : > { %v12402_v17 = vadd.f32 %v4086_v24, %v3167_v59  ;;  %v3692_v59 = vsel %vm568_vm1, %v3689_v63, %v3691_v22 }
 0x40f   : > { %13713 = vst [vmem:[#allocation71_spill] sm:$0xff] %v12402_v17  ;;  %v10168_v17 = vld [vmem:[%s11194_s27 + $0x1c0] sm:$0xff]  }
 0x410   : > { %v4088_v50 = vpop.f32.mrf.mxu0  ;;  %v2052_v29 = vpop.f32.mrf.mxu2 }
 0x411   : > { %v2207_v20 = vadd.f32 %v2052_v29, %v1533_v2  ;;  %v3013_v13 = vpop.f32.mrf.mxu3  ;;  %v1535_v58 = vpop.f32.mrf.mxu1 }
 0x412   : > { %v1536_v15 = vadd.f32 %v1535_v58, %v13716_v60  ;;  %v10857_v60 = vld [vmem:[%s11194_s27 + $0x19c] sm:$0xff]  }
 0x413   : > { %v3168_v21 = vadd.f32 %v3013_v13, %v2207_v20 }
 0x414   : > { %8188 = vmatmul.msk.bf16.gmra.mxu1 %vm680_vm2, %v11122_v5 }
 0x415   : > { %8245 = vmatmul.msk.bf16.gmra.mxu2 %vm680_vm2, %v10855_v62  ;;  %8522 = vmatmul.msk.bf16.gmra.mxu3 %vm680_vm2, %v9086_v41  ;;  %v12412_v24 = vadd.f32 %v4088_v50, %v3168_v21  ;;  %v13718_v41 = vld [vmem:[#allocation5_spill] sm:$0xff] }
 0x417   : > { %13715 = vst [vmem:[#allocation74_spill] sm:$0xff] %v12412_v24  ;;  %v9087_v24 = vld [vmem:[%s11194_s27 + $0x1b8] sm:$0xff] }
 0x418   : > { %v4091_v39 = vpop.f32.mrf.mxu0  ;;  %v2055_v48 = vpop.f32.mrf.mxu2 }
 0x419   : > { %v2208_v10 = vadd.f32 %v2055_v48, %v1536_v15  ;;  %v3016_v2 = vpop.f32.mrf.mxu3  ;;  %v1537_v29 = vpop.f32.mrf.mxu1  ;;  %v11123_v15 = vld [vmem:[%s11194_s27 + $0x198] sm:$0xff]   ;;  %v3693_v48 = vrot.slane %v10168_v17, 2 }
 0x41a   : > { %v1538_v50 = vadd.f32 %v1537_v29, %v13718_v41 }
 0x41b   : > { %v3169_v40 = vadd.f32 %v3016_v2, %v2208_v10  ;;  %8579 = vmatmul.msk.bf16.gmra.mxu0 %vm680_vm2, %v3692_v59  ;;  %v13720_v59 = vld [vmem:[#allocation7_spill] sm:$0xff] }
 0x41d   : > { %v12417_v20 = vadd.f32 %v4091_v39, %v3169_v40  ;;  %v3694_v40 = vsel %vm568_vm1, %v3691_v22, %v3693_v48 }
 0x41f   : > { %13717 = vst [vmem:[#allocation3_spill] sm:$0xff] %v12417_v20  ;;  %v10169_v20 = vld [vmem:[%s11194_s27 + $0x1c8] sm:$0xff]  }
 0x420   : > { %v4093_v13 = vpop.f32.mrf.mxu0  ;;  %v2057_v58 = vpop.f32.mrf.mxu2 }
 0x421   : > { %v2209_v62 = vadd.f32 %v2057_v58, %v1538_v50  ;;  %v3018_v21 = vpop.f32.mrf.mxu3  ;;  %v1540_v5 = vpop.f32.mrf.mxu1 }
 0x422   : > { %v1541_v10 = vadd.f32 %v1540_v5, %v13720_v59  ;;  %v10859_v59 = vld [vmem:[%s11194_s27 + $0x1a4] sm:$0xff]  }
 0x423   : > { %v3170_v63 = vadd.f32 %v3018_v21, %v2209_v62 }
 0x424   : > { %8189 = vmatmul.msk.bf16.gmra.mxu1 %vm680_vm2, %v11123_v15 }
 0x425   : > { %8246 = vmatmul.msk.bf16.gmra.mxu2 %vm680_vm2, %v10857_v60  ;;  %8523 = vmatmul.msk.bf16.gmra.mxu3 %vm680_vm2, %v9087_v24  ;;  %v12427_v39 = vadd.f32 %v4093_v13, %v3170_v63  ;;  %v13722_v24 = vld [vmem:[#allocation9_spill] sm:$0xff] }
 0x427   : > { %13719 = vst [vmem:[#allocation5_spill] sm:$0xff] %v12427_v39  ;;  %v9088_v39 = vld [vmem:[%s11194_s27 + $0x1c0] sm:$0xff] }
 0x428   : > { %v4096_v2 = vpop.f32.mrf.mxu0  ;;  %v2060_v29 = vpop.f32.mrf.mxu2 }
 0x429   : > { %v2210_v41 = vadd.f32 %v2060_v29, %v1541_v10  ;;  %v3021_v50 = vpop.f32.mrf.mxu3  ;;  %v1542_v58 = vpop.f32.mrf.mxu1  ;;  %v11124_v10 = vld [vmem:[%s11194_s27 + $0x1a0] sm:$0xff]   ;;  %v3695_v29 = vrot.slane %v10169_v20, 2 }
 0x42a   : > { %v1543_v13 = vadd.f32 %v1542_v58, %v13722_v24 }
 0x42b   : > { %v3171_v17 = vadd.f32 %v3021_v50, %v2210_v41  ;;  %8580 = vmatmul.msk.bf16.gmra.mxu0 %vm680_vm2, %v3694_v40  ;;  %v13724_v40 = vld [vmem:[#allocation11_spill] sm:$0xff] }
 0x42d   : > { %v12432_v62 = vadd.f32 %v4096_v2, %v3171_v17  ;;  %v3696_v17 = vsel %vm568_vm1, %v3693_v48, %v3695_v29  ;;  %v10170_v48 = vld [vmem:[%s11194_s27 + $0x1d0] sm:$0xff]  }
 0x42f   : > { %13721 = vst [vmem:[#allocation7_spill] sm:$0xff] %v12432_v62 }
 0x430   : > { %v4098_v21 = vpop.f32.mrf.mxu0  ;;  %v2062_v5 = vpop.f32.mrf.mxu2 }
 0x431   : > { %v2211_v60 = vadd.f32 %v2062_v5, %v1543_v13  ;;  %v3023_v63 = vpop.f32.mrf.mxu3  ;;  %v1545_v15 = vpop.f32.mrf.mxu1 }
 0x432   : > { %v1546_v41 = vadd.f32 %v1545_v15, %v13724_v40  ;;  %v10860_v40 = vld [vmem:[%s11194_s27 + $0x1ac] sm:$0xff]  }
 0x433   : > { %v3172_v22 = vadd.f32 %v3023_v63, %v2211_v60 }
 0x434   : > { %8190 = vmatmul.msk.bf16.gmra.mxu1 %vm680_vm2, %v11124_v10 }
 0x435   : > { %8247 = vmatmul.msk.bf16.gmra.mxu2 %vm680_vm2, %v10859_v59  ;;  %8524 = vmatmul.msk.bf16.gmra.mxu3 %vm680_vm2, %v9088_v39  ;;  %v12442_v2 = vadd.f32 %v4098_v21, %v3172_v22  ;;  %v13726_v39 = vld [vmem:[#allocation13_spill] sm:$0xff] }
 0x437   : > { %13723 = vst [vmem:[#allocation9_spill] sm:$0xff] %v12442_v2  ;;  %v9089_v2 = vld [vmem:[%s11194_s27 + $0x1c8] sm:$0xff] }
 0x438   : > { %v4101_v50 = vpop.f32.mrf.mxu0  ;;  %v2065_v58 = vpop.f32.mrf.mxu2 }
 0x439   : > { %v2212_v24 = vadd.f32 %v2065_v58, %v1546_v41  ;;  %v3026_v13 = vpop.f32.mrf.mxu3  ;;  %v1547_v5 = vpop.f32.mrf.mxu1  ;;  %v11125_v58 = vld [vmem:[%s11194_s27 + $0x1a8] sm:$0xff]  }
 0x43a   : > { %v1548_v21 = vadd.f32 %v1547_v5, %v13726_v39 }
 0x43b   : > { %v3173_v20 = vadd.f32 %v3026_v13, %v2212_v24  ;;  %8581 = vmatmul.msk.bf16.gmra.mxu0 %vm680_vm2, %v3696_v17  ;;  %v3697_v24 = vrot.slane %v10170_v48, 2  ;;  %v13728_v17 = vld [vmem:[#allocation16_spill] sm:$0xff] }
 0x43d   : > { %v12447_v60 = vadd.f32 %v4101_v50, %v3173_v20  ;;  %v3698_v39 = vsel %vm568_vm1, %v3695_v29, %v3697_v24 }
 0x43f   : > { %13725 = vst [vmem:[#allocation11_spill] sm:$0xff] %v12447_v60 }
 0x440   : > { %v4103_v63 = vpop.f32.mrf.mxu0  ;;  %v2067_v15 = vpop.f32.mrf.mxu2 }
 0x441   : > { %v2213_v59 = vadd.f32 %v2067_v15, %v1548_v21  ;;  %v3028_v22 = vpop.f32.mrf.mxu3  ;;  %v1550_v10 = vpop.f32.mrf.mxu1 }
 0x442   : > { %v1551_v13 = vadd.f32 %v1550_v10, %v13728_v17  ;;  %v13731_v17 = vld [vmem:[#allocation18_spill] sm:$0xff] }
 0x443   : > { %v3174_v41 = vadd.f32 %v3028_v22, %v2213_v59  ;;  %v12462_v22 = vld [vmem:[%s11194_s27 + $0x1d8] sm:$0xf] }
 0x444   : > { %8191 = vmatmul.msk.bf16.gmra.mxu1 %vm680_vm2, %v11125_v58  ;;  %13729 = vst [vmem:[#allocation16_spill] sm:$0xff] %v12462_v22  ;;  %v3307_v58 = vld [vmem:[%s11194_s27 + $0x1dc] sm:$0x3] }
 0x445   : > { %8248 = vmatmul.msk.bf16.gmra.mxu2 %vm680_vm2, %v10860_v40  ;;  %8525 = vmatmul.msk.bf16.gmra.mxu3 %vm680_vm2, %v9089_v2  ;;  %v12457_v50 = vadd.f32 %v4103_v63, %v3174_v41  ;;  %v13549_v2 = vunpack.c.l.b16 %v12462_v22  ;;  %v3533_v63 = vunpack.c.l.b16 %v3307_v58  ;;  %v11126_v40 = vld [vmem:[%s11194_s27 + $0x1b0] sm:$0xff]  }
 0x446   : > { %v9365_v41 = vunpack.c.h.b16 %v11126_v40 }
 0x447   : > { %13727 = vst [vmem:[#allocation13_spill] sm:$0xff] %v12457_v50 }
 0x448   : > { %v4106_v5 = vpop.f32.mrf.mxu0  ;;  %v2070_v20 = vpop.f32.mrf.mxu2 }
 0x449   : > { %v2214_v21 = vadd.f32 %v2070_v20, %v1551_v13  ;;  %v3031_v15 = vpop.f32.mrf.mxu3  ;;  %v1552_v59 = vpop.f32.mrf.mxu1  ;;  %v3589_v20 = vpack.c.b16 %v3533_v63, %v13549_v2 }
 0x44a   : > { %v1553_v50 = vadd.f32 %v1552_v59, %v13731_v17 }
 0x44b   : > { %v3175_v48 = vadd.f32 %v3031_v15, %v2214_v21  ;;  %8582 = vmatmul.msk.bf16.gmra.mxu0 %vm680_vm2, %v3698_v39  ;;  %v13732_v21 = vld [vmem:[#allocation14_spill] sm:$0xff]  ;;  %v9090_v15 = vld [vmem:[%s11194_s27 + $0x1d0] sm:$0xff] }
 0x44c   : > { %v1663_v39 = vpack.c.b16 %v13732_v21, %v9365_v41 }
 0x44d   : > { %v12468_v10 = vadd.f32 %v4106_v5, %v3175_v48  ;;  %v3699_v5 = vrot.slane %v3589_v20, 2  ;;  %v13734_v48 = vld [vmem:[#allocation20_spill] sm:$0xff] }
 0x44f   : > { %13730 = vst [vmem:[#allocation75_spill] sm:$0xff] %v12468_v10  ;;  %v1604_v10 = vld [vmem:[%s11194_s27 + $0x1bc] sm:$0xf] }
 0x450   : > { %v4108_v29 = vpop.f32.mrf.mxu0  ;;  %v2072_v13 = vpop.f32.mrf.mxu2 }
 0x451   : > { %v2215_v60 = vadd.f32 %v2072_v13, %v1553_v50  ;;  %v3033_v62 = vpop.f32.mrf.mxu3  ;;  %v1555_v55 = vpop.f32.mrf.mxu1  ;;  %v3700_v13 = vsel %vm568_vm1, %v3697_v24, %v3699_v5  ;;  %v1144_v24 = vpack.c.b16 %v13732_v21, %v13732_v21  ;;  %v6090_v21 = vunpack.c.l.b16 %v5864_v32  ;;  %v13739_v32 = vld [vmem:[#allocation27_spill] sm:$0xff] }
 0x452   : > { %v1556_v63 = vadd.f32 %v1555_v55, %v13734_v48 }
 0x453   : > { %v3176_v58 = vadd.f32 %v3033_v62, %v2215_v60  ;;  %v2345_v62 = vld [vmem:[%s11194_s27 + $0x1d8] sm:$0xf] }
 0x454   : > { %8192 = vmatmul.msk.bf16.gmra.mxu1 %vm680_vm2, %v11126_v40  ;;  %v1608_v40 = vunpack.c.l.b16 %v1604_v10  ;;  %v2569_v20 = vunpack.c.l.b16 %v2345_v62 }
 0x455   : > { %8249 = vmatmul.msk.bf16.gmra.mxu2 %vm680_vm2, %v1663_v39  ;;  %8526 = vmatmul.msk.bf16.gmra.mxu3 %vm680_vm2, %v9090_v15  ;;  %v12478_v59 = vadd.f32 %v4108_v29, %v3176_v58  ;;  %v13736_v39 = vld [vmem:[#allocation22_spill] sm:$0xff] }
 0x456   : > { %v2625_v33 = vpack.c.b16 %v2569_v20, %v2569_v20 }
 0x457   : > { %13733 = vst [vmem:[#allocation18_spill] sm:$0xff] %v12478_v59  ;;  %v1664_v59 = vpack.c.b16 %v1608_v40, %v1608_v40 }
 0x458   : > { %v4111_v50 = vpop.f32.mrf.mxu0  ;;  %v2075_v17 = vpop.f32.mrf.mxu2 }
 0x459   : > { %v2216_v2 = vadd.f32 %v2075_v17, %v1556_v63  ;;  %v3036_v41 = vpop.f32.mrf.mxu3  ;;  %v1557_v22 = vpop.f32.mrf.mxu1 }
 0x45a   : > { %v1558_v55 = vadd.f32 %v1557_v22, %v13736_v39 }
 0x45b   : > { %v3177_v60 = vadd.f32 %v3036_v41, %v2216_v2  ;;  %8583 = vmatmul.msk.bf16.gmra.mxu0 %vm680_vm2, %v3700_v13  ;;  %v5863_v41 = vld [vmem:[%s11194_s27 + $0x40] sm:$0xc] }
 0x45c   : > { %v6089_v10 = vunpack.c.l.b16 %v5863_v41 }
 0x45d   : > { %v12485_v29 = vadd.f32 %v4111_v50, %v3177_v60  ;;  %v13738_v50 = vld [vmem:[#allocation24_spill] sm:$0xff] }
 0x45f   : > { %13735 = vst [vmem:[#allocation14_spill] sm:$0xff] %v12485_v29 }
 0x460   : > { %v4113_v15 = vpop.f32.mrf.mxu0  ;;  %v2077_v58 = vpop.f32.mrf.mxu2 }
 0x461   : > { %v2217_v48 = vadd.f32 %v2077_v58, %v1558_v55  ;;  %v3038_v63 = vpop.f32.mrf.mxu3  ;;  %v1560_v17 = vpop.f32.mrf.mxu1  ;;  %v6201_v55 = vpack.c.b16 %v6090_v21, %v6089_v10 }
 0x462   : > { %v1561_v13 = vadd.f32 %v1560_v17, %v13738_v50  ;;  %v13740_v17 = vld [vmem:[#allocation25_spill] sm:$0xff] }
 0x463   : > { %v3178_v2 = vadd.f32 %v3038_v63, %v2217_v48  ;;  %v13741_v41 = vunpack.c.l.b16 %v13740_v17 }
 0x464   : > { %8193 = vmatmul.msk.bf16.gmra.mxu1 %vm680_vm2, %v1144_v24  ;;  %v10436_v24 = vld [vmem:[%s11194_s27 + $0x48] sm:$0xff]  }
 0x465   : > { %8250 = vmatmul.msk.bf16.gmra.mxu2 %vm680_vm2, %v1664_v59  ;;  %8527 = vmatmul.msk.bf16.gmra.mxu3 %vm680_vm2, %v2625_v33  ;;  %v12495_v22 = vadd.f32 %v4113_v15, %v3178_v2  ;;  %v11127_v59 = vld [vmem:[%s11194_s27 + $0x28] sm:$0xff]   ;;  %v6257_v15 = vrot.slane %v6201_v55, 2  ;;  %v6258_v63 = vrot.slane %v10436_v24, 2 }
 0x466   : > { %v9368_v48 = vunpack.c.l.b16 %v11127_v59  ;;  %v9584_v59 = vunpack.c.l.b16 %v10436_v24  ;;  %v10437_v24 = vld [vmem:[%s11194_s27 + $0x50] sm:$0xff]  }
 0x467   : > { %13737 = vst [vmem:[#allocation20_spill] sm:$0xff] %v12495_v22 }
 0x468   : > { %v4116_v62 = vpop.f32.mrf.mxu0  ;;  %v2080_v60 = vpop.f32.mrf.mxu2  ;;  %v4276_v50 = vpack.c.b16 %v9368_v48, %v13741_v41 }
 0x469   : > { %v2218_v40 = vadd.f32 %v2080_v60, %v1561_v13  ;;  %v3041_v20 = vpop.f32.mrf.mxu3  ;;  %v1562_v39 = vpop.f32.mrf.mxu1 }
 0x46a   : > { %v1563_v2 = vadd.f32 %v1562_v39, %v13739_v32  ;;  %v13742_v39 = vld [vmem:[#allocation30_spill] sm:$0xff] }
 0x46b   : > { %v3179_v58 = vadd.f32 %v3041_v20, %v2218_v40  ;;  %8584 = vmatmul.msk.bf16.gmra.mxu0 %vm680_vm2, %v3699_v5  ;;  %v9091_v40 = vld [vmem:[%s11194_s27 + $0x40] sm:$0xff]  ;;  %v6259_v5 = vsel %vm568_vm1, %v6257_v15, %v6258_v63 }
 0x46d   : > { %v12501_v33 = vadd.f32 %v4116_v62, %v3179_v58  ;;  %v6943_v58 = vpack.c.b16 %v9584_v59, %v6090_v21  ;;  %v9092_v59 = vld [vmem:[%s11194_s27 + $0x48] sm:$0xff] }
 0x470   : > { %v4118_v13 = vpop.f32.mrf.mxu0  ;;  %v2082_v60 = vpop.f32.mrf.mxu2 }
 0x471   : > { %v2219_v22 = vadd.f32 %v2082_v60, %v1563_v2  ;;  %v3043_v10 = vpop.f32.mrf.mxu3  ;;  %v1565_v29 = vpop.f32.mrf.mxu1  ;;  %v13743_v60 = vld [vmem:[#allocation33_spill] sm:$0xff] }
 0x472   : > { %v1566_v55 = vadd.f32 %v1565_v29, %v13742_v39  ;;  %v10863_v29 = vld [vmem:[%s11194_s27 + $0x2c] sm:$0xff]  }
 0x473   : > { %v3180_v20 = vadd.f32 %v3043_v10, %v2219_v22 }
 0x474   : > { %8586 = vmatmul.msk.bf16.vlgmr.msra.gmra.mxu1 %vm680_vm2, %v4276_v50  ;;  %v6260_v50 = vrot.slane %v10437_v24, 2 }
 0x475   : > { %8863 = vmatmul.msk.bf16.vlgmr.msra.gmra.mxu2 %vm680_vm2, %v9091_v40  ;;  %8920 = vmatmul.msk.bf16.vlgmr.msra.gmra.mxu3 %vm680_vm2, %v6259_v5  ;;  %v12511_v62 = vadd.f32 %v4118_v13, %v3180_v20 }
 0x476   : > { %v6261_v39 = vsel %vm568_vm1, %v6258_v63, %v6260_v50 }
 0x478   : > { %v4121_v48 = vpop.f32.mrf.mxu0  ;;  %v2085_v32 = vpop.f32.mrf.mxu2 }
 0x479   : > { %v2220_v2 = vadd.f32 %v2085_v32, %v1566_v55  ;;  %v3046_v15 = vpop.f32.mrf.mxu3  ;;  %v1567_v17 = vpop.f32.mrf.mxu1 }
 0x47a   : > { %v1568_v13 = vadd.f32 %v1567_v17, %v13743_v60 }
 0x47b   : > { %v3181_v22 = vadd.f32 %v3046_v15, %v2220_v2  ;;  %8977 = vmatmul.msk.bf16.vlgmr.msra.gmra.mxu0 %vm680_vm2, %v6943_v58  ;;  %v10969_v2 = vld [vmem:[%s11194_s27 + $0x4c] sm:$0xff]  }
 0x47d   : > { %v12516_v41 = vadd.f32 %v4121_v48, %v3181_v22  ;;  %v13745_v48 = vld [vmem:[#allocation36_spill] sm:$0xff] }
 0x480   : > { %v4123_v10 = vpop.f32.mrf.mxu0  ;;  %v2087_v40 = vpop.f32.mrf.mxu2 }
 0x481   : > { %v2221_v21 = vadd.f32 %v2087_v40, %v1568_v13  ;;  %v3048_v5 = vpop.f32.mrf.mxu3  ;;  %v1570_v20 = vpop.f32.mrf.mxu1  ;;  %v10438_v13 = vld [vmem:[%s11194_s27 + $0x58] sm:$0xff]  }
 0x482   : > { %v1571_v32 = vadd.f32 %v1570_v20, %v13745_v48  ;;  %v10865_v20 = vld [vmem:[%s11194_s27 + $0x34] sm:$0xff]  }
 0x483   : > { %v3182_v55 = vadd.f32 %v3048_v5, %v2221_v21  ;;  %v13747_v21 = vld [vmem:[#allocation39_spill] sm:$0xff] }
 0x484   : > { %8587 = vmatmul.msk.bf16.gmra.mxu1 %vm680_vm2, %v10863_v29  ;;  %v6262_v29 = vrot.slane %v10438_v13, 2 }
 0x485   : > { %8864 = vmatmul.msk.bf16.gmra.mxu2 %vm680_vm2, %v9092_v59  ;;  %8921 = vmatmul.msk.bf16.gmra.mxu3 %vm680_vm2, %v6261_v39  ;;  %v12525_v58 = vadd.f32 %v4123_v10, %v3182_v55 }
 0x487   : > { %13744 = vst [vmem:[#allocation22_spill] sm:$0xff] %v12525_v58  ;;  %v9093_v58 = vld [vmem:[%s11194_s27 + $0x50] sm:$0xff] }
 0x488   : > { %v4126_v15 = vpop.f32.mrf.mxu0  ;;  %v2090_v17 = vpop.f32.mrf.mxu2 }
 0x489   : > { %v2222_v22 = vadd.f32 %v2090_v17, %v1571_v32  ;;  %v3051_v24 = vpop.f32.mrf.mxu3  ;;  %v1572_v60 = vpop.f32.mrf.mxu1  ;;  %v6263_v32 = vsel %vm568_vm1, %v6260_v50, %v6262_v29 }
 0x48a   : > { %v1573_v10 = vadd.f32 %v1572_v60, %v13747_v21 }
 0x48b   : > { %v3183_v63 = vadd.f32 %v3051_v24, %v2222_v22  ;;  %8978 = vmatmul.msk.bf16.gmra.mxu0 %vm680_vm2, %v10969_v2  ;;  %v10971_v24 = vld [vmem:[%s11194_s27 + $0x54] sm:$0xff]  }
 0x48d   : > { %v12531_v40 = vadd.f32 %v4126_v15, %v3183_v63  ;;  %v13749_v15 = vld [vmem:[#allocation42_spill] sm:$0xff] }
 0x48f   : > { %13746 = vst [vmem:[#allocation24_spill] sm:$0xff] %v12531_v40  ;;  %v9094_v40 = vld [vmem:[%s11194_s27 + $0x58] sm:$0xff] }
 0x490   : > { %v4128_v5 = vpop.f32.mrf.mxu0  ;;  %v2092_v59 = vpop.f32.mrf.mxu2 }
 0x491   : > { %v2223_v39 = vadd.f32 %v2092_v59, %v1573_v10  ;;  %v3053_v55 = vpop.f32.mrf.mxu3  ;;  %v1575_v48 = vpop.f32.mrf.mxu1  ;;  %v10439_v59 = vld [vmem:[%s11194_s27 + $0x60] sm:$0xff]  }
 0x492   : > { %v1576_v22 = vadd.f32 %v1575_v48, %v13749_v15  ;;  %v10867_v48 = vld [vmem:[%s11194_s27 + $0x3c] sm:$0xff]  }
 0x493   : > { %v3184_v17 = vadd.f32 %v3053_v55, %v2223_v39  ;;  %v13751_v39 = vld [vmem:[#allocation45_spill] sm:$0xff] }
 0x494   : > { %8588 = vmatmul.msk.bf16.gmra.mxu1 %vm680_vm2, %v10865_v20 }
 0x495   : > { %8865 = vmatmul.msk.bf16.gmra.mxu2 %vm680_vm2, %v9093_v58  ;;  %8922 = vmatmul.msk.bf16.gmra.mxu3 %vm680_vm2, %v6263_v32  ;;  %v12540_v2 = vadd.f32 %v4128_v5, %v3184_v17  ;;  %v6264_v58 = vrot.slane %v10439_v59, 2 }
 0x497   : > { %13748 = vst [vmem:[#allocation27_spill] sm:$0xff] %v12540_v2 }
 0x498   : > { %v4131_v60 = vpop.f32.mrf.mxu0  ;;  %v2095_v63 = vpop.f32.mrf.mxu2 }
 0x499   : > { %v2224_v13 = vadd.f32 %v2095_v63, %v1576_v22  ;;  %v3056_v21 = vpop.f32.mrf.mxu3  ;;  %v1577_v10 = vpop.f32.mrf.mxu1  ;;  %v6265_v22 = vsel %vm568_vm1, %v6262_v29, %v6264_v58 }
 0x49a   : > { %v1578_v5 = vadd.f32 %v1577_v10, %v13751_v39 }
 0x49b   : > { %v3185_v50 = vadd.f32 %v3056_v21, %v2224_v13  ;;  %8979 = vmatmul.msk.bf16.gmra.mxu0 %vm680_vm2, %v10971_v24  ;;  %v10973_v21 = vld [vmem:[%s11194_s27 + $0x5c] sm:$0xff]  }
 0x49d   : > { %v12546_v20 = vadd.f32 %v4131_v60, %v3185_v50  ;;  %v13753_v60 = vld [vmem:[#allocation48_spill] sm:$0xff] }
 0x49f   : > { %13750 = vst [vmem:[#allocation25_spill] sm:$0xff] %v12546_v20  ;;  %v9095_v20 = vld [vmem:[%s11194_s27 + $0x60] sm:$0xff] }
 0x4a0   : > { %v4133_v55 = vpop.f32.mrf.mxu0  ;;  %v2097_v32 = vpop.f32.mrf.mxu2 }
 0x4a1   : > { %v2225_v17 = vadd.f32 %v2097_v32, %v1578_v5  ;;  %v3058_v15 = vpop.f32.mrf.mxu3  ;;  %v1580_v2 = vpop.f32.mrf.mxu1  ;;  %v10440_v32 = vld [vmem:[%s11194_s27 + $0x68] sm:$0xff]  }
 0x4a2   : > { %v1581_v13 = vadd.f32 %v1580_v2, %v13753_v60  ;;  %v10869_v2 = vld [vmem:[%s11194_s27 + $0x44] sm:$0xff]  }
 0x4a3   : > { %v3186_v63 = vadd.f32 %v3058_v15, %v2225_v17  ;;  %v13755_v17 = vld [vmem:[#allocation51_spill] sm:$0xff] }
 0x4a4   : > { %8589 = vmatmul.msk.bf16.gmra.mxu1 %vm680_vm2, %v10867_v48 }
 0x4a5   : > { %8866 = vmatmul.msk.bf16.gmra.mxu2 %vm680_vm2, %v9094_v40  ;;  %8923 = vmatmul.msk.bf16.gmra.mxu3 %vm680_vm2, %v6265_v22  ;;  %v12555_v24 = vadd.f32 %v4133_v55, %v3186_v63  ;;  %v6266_v40 = vrot.slane %v10440_v32, 2 }
 0x4a7   : > { %13752 = vst [vmem:[#allocation30_spill] sm:$0xff] %v12555_v24 }
 0x4a8   : > { %v4136_v10 = vpop.f32.mrf.mxu0  ;;  %v2100_v50 = vpop.f32.mrf.mxu2 }
 0x4a9   : > { %v2226_v59 = vadd.f32 %v2100_v50, %v1581_v13  ;;  %v3061_v39 = vpop.f32.mrf.mxu3  ;;  %v1582_v5 = vpop.f32.mrf.mxu1  ;;  %v6267_v13 = vsel %vm568_vm1, %v6264_v58, %v6266_v40 }
 0x4aa   : > { %v1583_v55 = vadd.f32 %v1582_v5, %v13755_v17 }
 0x4ab   : > { %v3187_v29 = vadd.f32 %v3061_v39, %v2226_v59  ;;  %8980 = vmatmul.msk.bf16.gmra.mxu0 %vm680_vm2, %v10973_v21  ;;  %v10975_v39 = vld [vmem:[%s11194_s27 + $0x64] sm:$0xff]  }
 0x4ad   : > { %v12561_v48 = vadd.f32 %v4136_v10, %v3187_v29  ;;  %v13757_v10 = vld [vmem:[#allocation54_spill] sm:$0xff] }
 0x4af   : > { %13754 = vst [vmem:[#allocation33_spill] sm:$0xff] %v12561_v48  ;;  %v9096_v48 = vld [vmem:[%s11194_s27 + $0x68] sm:$0xff] }
 0x4b0   : > { %v4138_v15 = vpop.f32.mrf.mxu0  ;;  %v2102_v22 = vpop.f32.mrf.mxu2 }
 0x4b1   : > { %v2227_v63 = vadd.f32 %v2102_v22, %v1583_v55  ;;  %v3063_v60 = vpop.f32.mrf.mxu3  ;;  %v1585_v24 = vpop.f32.mrf.mxu1  ;;  %v10441_v22 = vld [vmem:[%s11194_s27 + $0x70] sm:$0xff]  }
 0x4b2   : > { %v1586_v59 = vadd.f32 %v1585_v24, %v13757_v10  ;;  %v10871_v24 = vld [vmem:[%s11194_s27 + $0x4c] sm:$0xff]  }
 0x4b3   : > { %v3188_v50 = vadd.f32 %v3063_v60, %v2227_v63  ;;  %v13759_v63 = vld [vmem:[#allocation57_spill] sm:$0xff] }
 0x4b4   : > { %8590 = vmatmul.msk.bf16.gmra.mxu1 %vm680_vm2, %v10869_v2 }
 0x4b5   : > { %8867 = vmatmul.msk.bf16.gmra.mxu2 %vm680_vm2, %v9095_v20  ;;  %8924 = vmatmul.msk.bf16.gmra.mxu3 %vm680_vm2, %v6267_v13  ;;  %v12570_v21 = vadd.f32 %v4138_v15, %v3188_v50  ;;  %v6268_v20 = vrot.slane %v10441_v22, 2 }
 0x4b7   : > { %13756 = vst [vmem:[#allocation36_spill] sm:$0xff] %v12570_v21 }
 0x4b8   : > { %v4141_v5 = vpop.f32.mrf.mxu0  ;;  %v2105_v29 = vpop.f32.mrf.mxu2 }
 0x4b9   : > { %v2228_v32 = vadd.f32 %v2105_v29, %v1586_v59  ;;  %v3066_v17 = vpop.f32.mrf.mxu3  ;;  %v1587_v55 = vpop.f32.mrf.mxu1  ;;  %v6269_v59 = vsel %vm568_vm1, %v6266_v40, %v6268_v20 }
 0x4ba   : > { %v1588_v15 = vadd.f32 %v1587_v55, %v13759_v63 }
 0x4bb   : > { %v3189_v58 = vadd.f32 %v3066_v17, %v2228_v32  ;;  %8981 = vmatmul.msk.bf16.gmra.mxu0 %vm680_vm2, %v10975_v39  ;;  %v10977_v17 = vld [vmem:[%s11194_s27 + $0x6c] sm:$0xff]  }
 0x4bd   : > { %v12576_v2 = vadd.f32 %v4141_v5, %v3189_v58  ;;  %v13761_v5 = vld [vmem:[#allocation60_spill] sm:$0xff] }
 0x4bf   : > { %13758 = vst [vmem:[#allocation39_spill] sm:$0xff] %v12576_v2  ;;  %v9097_v2 = vld [vmem:[%s11194_s27 + $0x70] sm:$0xff] }
 0x4c0   : > { %v4143_v60 = vpop.f32.mrf.mxu0  ;;  %v2107_v13 = vpop.f32.mrf.mxu2 }
 0x4c1   : > { %v2229_v50 = vadd.f32 %v2107_v13, %v1588_v15  ;;  %v3068_v10 = vpop.f32.mrf.mxu3  ;;  %v1590_v21 = vpop.f32.mrf.mxu1  ;;  %v10442_v13 = vld [vmem:[%s11194_s27 + $0x78] sm:$0xff]  }
 0x4c2   : > { %v1591_v32 = vadd.f32 %v1590_v21, %v13761_v5  ;;  %v10873_v21 = vld [vmem:[%s11194_s27 + $0x54] sm:$0xff]  }
 0x4c3   : > { %v3190_v29 = vadd.f32 %v3068_v10, %v2229_v50  ;;  %v13763_v50 = vld [vmem:[#allocation63_spill] sm:$0xff] }
 0x4c4   : > { %8591 = vmatmul.msk.bf16.gmra.mxu1 %vm680_vm2, %v10871_v24 }
 0x4c5   : > { %8868 = vmatmul.msk.bf16.gmra.mxu2 %vm680_vm2, %v9096_v48  ;;  %8925 = vmatmul.msk.bf16.gmra.mxu3 %vm680_vm2, %v6269_v59  ;;  %v12585_v39 = vadd.f32 %v4143_v60, %v3190_v29  ;;  %v6270_v48 = vrot.slane %v10442_v13, 2 }
 0x4c7   : > { %13760 = vst [vmem:[#allocation42_spill] sm:$0xff] %v12585_v39 }
 0x4c8   : > { %v4146_v55 = vpop.f32.mrf.mxu0  ;;  %v2110_v58 = vpop.f32.mrf.mxu2 }
 0x4c9   : > { %v2230_v22 = vadd.f32 %v2110_v58, %v1591_v32  ;;  %v3071_v63 = vpop.f32.mrf.mxu3  ;;  %v1592_v15 = vpop.f32.mrf.mxu1  ;;  %v6271_v32 = vsel %vm568_vm1, %v6268_v20, %v6270_v48 }
 0x4ca   : > { %v1593_v60 = vadd.f32 %v1592_v15, %v13763_v50 }
 0x4cb   : > { %v3191_v40 = vadd.f32 %v3071_v63, %v2230_v22  ;;  %8982 = vmatmul.msk.bf16.gmra.mxu0 %vm680_vm2, %v10977_v17  ;;  %v10979_v63 = vld [vmem:[%s11194_s27 + $0x74] sm:$0xff]  }
 0x4cd   : > { %v12591_v24 = vadd.f32 %v4146_v55, %v3191_v40  ;;  %v13765_v55 = vld [vmem:[#allocation66_spill] sm:$0xff] }
 0x4cf   : > { %13762 = vst [vmem:[#allocation45_spill] sm:$0xff] %v12591_v24  ;;  %v9098_v24 = vld [vmem:[%s11194_s27 + $0x78] sm:$0xff] }
 0x4d0   : > { %v4148_v10 = vpop.f32.mrf.mxu0  ;;  %v2112_v59 = vpop.f32.mrf.mxu2 }
 0x4d1   : > { %v2231_v29 = vadd.f32 %v2112_v59, %v1593_v60  ;;  %v3073_v5 = vpop.f32.mrf.mxu3  ;;  %v1595_v39 = vpop.f32.mrf.mxu1  ;;  %v10443_v59 = vld [vmem:[%s11194_s27 + $0x80] sm:$0xff]  }
 0x4d2   : > { %v1596_v22 = vadd.f32 %v1595_v39, %v13765_v55  ;;  %v10875_v39 = vld [vmem:[%s11194_s27 + $0x5c] sm:$0xff]  }
 0x4d3   : > { %v3192_v58 = vadd.f32 %v3073_v5, %v2231_v29  ;;  %v13766_v29 = vld [vmem:[#allocation69_spill] sm:$0xff] }
 0x4d4   : > { %8592 = vmatmul.msk.bf16.gmra.mxu1 %vm680_vm2, %v10873_v21 }
 0x4d5   : > { %8869 = vmatmul.msk.bf16.gmra.mxu2 %vm680_vm2, %v9097_v2  ;;  %8926 = vmatmul.msk.bf16.gmra.mxu3 %vm680_vm2, %v6271_v32  ;;  %v12600_v17 = vadd.f32 %v4148_v10, %v3192_v58  ;;  %v6272_v2 = vrot.slane %v10443_v59, 2 }
 0x4d7   : > { %13764 = vst [vmem:[#allocation48_spill] sm:$0xff] %v12600_v17 }
 0x4d8   : > { %v4151_v15 = vpop.f32.mrf.mxu0  ;;  %v2115_v40 = vpop.f32.mrf.mxu2 }
 0x4d9   : > { %v2232_v13 = vadd.f32 %v2115_v40, %v1596_v22  ;;  %v3076_v50 = vpop.f32.mrf.mxu3  ;;  %v1597_v60 = vpop.f32.mrf.mxu1  ;;  %v6273_v22 = vsel %vm568_vm1, %v6270_v48, %v6272_v2 }
 0x4da   : > { %v1598_v10 = vadd.f32 %v1597_v60, %v13766_v29 }
 0x4db   : > { %v3193_v20 = vadd.f32 %v3076_v50, %v2232_v13  ;;  %8983 = vmatmul.msk.bf16.gmra.mxu0 %vm680_vm2, %v10979_v63  ;;  %v10981_v50 = vld [vmem:[%s11194_s27 + $0x7c] sm:$0xff]  }
 0x4dd   : > { %v12606_v21 = vadd.f32 %v4151_v15, %v3193_v20  ;;  %v13767_v15 = vld [vmem:[#allocation72_spill] sm:$0xff] }
 0x4e0   : > { %v4153_v5 = vpop.f32.mrf.mxu0  ;;  %v2117_v32 = vpop.f32.mrf.mxu2 }
 0x4e1   : > { %v2233_v58 = vadd.f32 %v2117_v32, %v1598_v10  ;;  %v3078_v55 = vpop.f32.mrf.mxu3  ;;  %v1600_v17 = vpop.f32.mrf.mxu1  ;;  %v10444_v32 = vld [vmem:[%s11194_s27 + $0x88] sm:$0xff]  }
 0x4e2   : > { %v1601_v13 = vadd.f32 %v1600_v17, %v13767_v15 }
 0x4e3   : > { %v3194_v40 = vadd.f32 %v3078_v55, %v2233_v58  ;;  %v10877_v55 = vld [vmem:[%s11194_s27 + $0x64] sm:$0xff]  }
 0x4e4   : > { %8593 = vmatmul.msk.bf16.gmra.mxu1 %vm680_vm2, %v10875_v39  ;;  %v6274_v39 = vrot.slane %v10444_v32, 2  ;;  %v10445_v32 = vld [vmem:[%s11194_s27 + $0x90] sm:$0xff]  }
 0x4e5   : > { %8870 = vmatmul.msk.bf16.gmra.mxu2 %vm680_vm2, %v9098_v24  ;;  %8927 = vmatmul.msk.bf16.gmra.mxu3 %vm680_vm2, %v6273_v22  ;;  %v12615_v63 = vadd.f32 %v4153_v5, %v3194_v40  ;;  %v9099_v40 = vld [vmem:[%s11194_s27 + $0x80] sm:$0xff] }
 0x4e6   : > { %v6275_v15 = vsel %vm568_vm1, %v6272_v2, %v6274_v39  ;;  %v12634_v2 = vld [vmem:[%s13539_s2] ss:$0 sm:$0xff] }
 0x4e8   : > { %v4156_v60 = vpop.f32.mrf.mxu0  ;;  %v2120_v20 = vpop.f32.mrf.mxu2 }
 0x4e9   : > { %v2234_v59 = vadd.f32 %v2120_v20, %v1601_v13  ;;  %v3081_v29 = vpop.f32.mrf.mxu3  ;;  %v1602_v10 = vpop.f32.mrf.mxu1 }
 0x4eb   : > { %v3195_v48 = vadd.f32 %v3081_v29, %v2234_v59  ;;  %8984 = vmatmul.msk.bf16.gmra.mxu0 %vm680_vm2, %v10981_v50  ;;  %v10983_v50 = vld [vmem:[%s11194_s27 + $0x84] sm:$0xff]  }
 0x4ed   : > { %v12621_v24 = vadd.f32 %v4156_v60, %v3195_v48 }
 0x4f0   : > { %v4158_v58 = vpop.f32.mrf.mxu0  ;;  %v2122_v5 = vpop.f32.mrf.mxu2 }
 0x4f1   : > { %v3083_v22 = vpop.f32.mrf.mxu3  ;;  %v4512_v17 = vpop.f32.mrf.mxu1 }
 0x4f2   : > { %v4791_v13 = vadd.f32 %v4512_v17, %v11786_v25  ;;  %v6276_v25 = vrot.slane %v10445_v32, 2 }
 0x4f4   : > { %8594 = vmatmul.msk.bf16.gmra.mxu1 %vm680_vm2, %v10877_v55 }
 0x4f5   : > { %8871 = vmatmul.msk.bf16.gmra.mxu2 %vm680_vm2, %v9099_v40  ;;  %8928 = vmatmul.msk.bf16.gmra.mxu3 %vm680_vm2, %v6275_v15  ;;  %v10879_v40 = vld [vmem:[%s11194_s27 + $0x6c] sm:$0xff]  }
 0x4f8   : > { %v7179_v60 = vpop.f32.mrf.mxu0  ;;  %v5473_v20 = vpop.f32.mrf.mxu2 }
 0x4f9   : > { %v5752_v59 = vadd.f32 %v5473_v20, %v4791_v13  ;;  %v6548_v29 = vpop.f32.mrf.mxu3  ;;  %v4514_v10 = vpop.f32.mrf.mxu1 }
 0x4fa   : > { %v4792_v55 = vadd.f32 %v4514_v10, %v11796_v46 }
 0x4fb   : > { %v6827_v48 = vadd.f32 %v6548_v29, %v5752_v59  ;;  %8985 = vmatmul.msk.bf16.gmra.mxu0 %vm680_vm2, %v10983_v50  ;;  %v9100_v29 = vld [vmem:[%s11194_s27 + $0x88] sm:$0xff]  ;;  %v6277_v50 = vsel %vm568_vm1, %v6274_v39, %v6276_v25 }
 0x4fd   : > { %v7458_v58 = vadd.f32 %v7179_v60, %v6827_v48 }
 0x4ff   : > { %v7573_v5 = vadd.f32 %v12634_v2, %v7458_v58  ;;  %v10985_v58 = vld [vmem:[%s11194_s27 + $0x8c] sm:$0xff]  }
 0x500   : > { %v7181_v22 = vpop.f32.mrf.mxu0  ;;  %v5475_v17 = vpop.f32.mrf.mxu2 }
 0x501   : > { %v7684_v15 = vmax.f32 %v7573_v5, 0.0  ;;  %v5753_v13 = vadd.f32 %v5475_v17, %v4792_v55  ;;  %v6550_v20 = vpop.f32.mrf.mxu3  ;;  %v4517_v59 = vpop.f32.mrf.mxu1 }
 0x502   : > { %v4793_v32 = vadd.f32 %v4517_v59, %v11802_v1 }
 0x503   : > { %v7795_v60 = vpack.c.bf16 %v7684_v15, %v7684_v15  ;;  %v6828_v46 = vadd.f32 %v6550_v20, %v5753_v13  ;;  %v10446_v20 = vld [vmem:[%s11194_s27 + $0x98] sm:$0xff]  }
 0x504   : > { %8595 = vmatmul.msk.bf16.gmra.mxu1 %vm680_vm2, %v10879_v40 }
 0x505   : > { %7907 = vst.msk [vmem:[%s12646_s16] sm:$0xf] %vm7906_vm3, %v7795_v60  ;;  %v7459_v10 = vadd.f32 %v7181_v22, %v6828_v46  ;;  %8872 = vmatmul.msk.bf16.gmra.mxu2 %vm680_vm2, %v9100_v29  ;;  %8929 = vmatmul.msk.bf16.gmra.mxu3 %vm680_vm2, %v6277_v50  ;;  %v6278_v50 = vrot.slane %v10446_v20, 2 }
 0x507   : > { %v7574_v48 = vadd.f32 %v12634_v2, %v7459_v10  ;;  %v10881_v10 = vld [vmem:[%s11194_s27 + $0x74] sm:$0xff]  }
 0x508   : > { %v7184_v5 = vpop.f32.mrf.mxu0  ;;  %v5478_v39 = vpop.f32.mrf.mxu2 }
 0x509   : > { %v7685_v55 = vmax.f32 %v7574_v48, 0.0  ;;  %v5754_v17 = vadd.f32 %v5478_v39, %v4793_v32  ;;  %v6553_v40 = vpop.f32.mrf.mxu3  ;;  %v4519_v15 = vpop.f32.mrf.mxu1 }
 0x50a   : > { %v4794_v59 = vadd.f32 %v4519_v15, %v11812_v37 }
 0x50b   : > { %v7796_v13 = vpack.c.bf16 %v7685_v55, %v7685_v55  ;;  %v6829_v22 = vadd.f32 %v6553_v40, %v5754_v17  ;;  %8986 = vmatmul.msk.bf16.gmra.mxu0 %vm680_vm2, %v10985_v58  ;;  %v9101_v17 = vld [vmem:[%s11194_s27 + $0x90] sm:$0xff]  ;;  %v6279_v58 = vsel %vm568_vm1, %v6276_v25, %v6278_v50 }
 0x50d   : > { %7908 = vst.msk [vmem:[%s12646_s16 + $0x4] sm:$0xf] %vm7906_vm3, %v7796_v13  ;;  %v7460_v29 = vadd.f32 %v7184_v5, %v6829_v22  ;;  %v10987_v22 = vld [vmem:[%s11194_s27 + $0x94] sm:$0xff]  }
 0x50f   : > { %v7575_v1 = vadd.f32 %v12634_v2, %v7460_v29 }
 0x510   : > { %v7186_v60 = vpop.f32.mrf.mxu0  ;;  %v5480_v46 = vpop.f32.mrf.mxu2 }
 0x511   : > { %v7686_v48 = vmax.f32 %v7575_v1, 0.0  ;;  %v5755_v32 = vadd.f32 %v5480_v46, %v4794_v59  ;;  %v6555_v39 = vpop.f32.mrf.mxu3  ;;  %v4522_v55 = vpop.f32.mrf.mxu1 }
 0x512   : > { %v4795_v15 = vadd.f32 %v4522_v55, %v11817_v45 }
 0x513   : > { %v7797_v40 = vpack.c.bf16 %v7686_v48, %v7686_v48  ;;  %v6830_v13 = vadd.f32 %v6555_v39, %v5755_v32  ;;  %v10447_v48 = vld [vmem:[%s11194_s27 + $0xa0] sm:$0xff]  }
 0x514   : > { %8596 = vmatmul.msk.bf16.gmra.mxu1 %vm680_vm2, %v10881_v10  ;;  %v6280_v39 = vrot.slane %v10447_v48, 2 }
 0x515   : > { %7909 = vst.msk [vmem:[%s12646_s16 + $0x8] sm:$0xf] %vm7906_vm3, %v7797_v40  ;;  %v7461_v5 = vadd.f32 %v7186_v60, %v6830_v13  ;;  %8873 = vmatmul.msk.bf16.gmra.mxu2 %vm680_vm2, %v9101_v17  ;;  %8930 = vmatmul.msk.bf16.gmra.mxu3 %vm680_vm2, %v6279_v58  ;;  %v10883_v40 = vld [vmem:[%s11194_s27 + $0x7c] sm:$0xff]  }
 0x517   : > { %v7576_v37 = vadd.f32 %v12634_v2, %v7461_v5 }
 0x518   : > { %v7189_v20 = vpop.f32.mrf.mxu0  ;;  %v5483_v25 = vpop.f32.mrf.mxu2 }
 0x519   : > { %v7687_v29 = vmax.f32 %v7576_v37, 0.0  ;;  %v5756_v1 = vadd.f32 %v5483_v25, %v4795_v15  ;;  %v6558_v59 = vpop.f32.mrf.mxu3  ;;  %v4524_v46 = vpop.f32.mrf.mxu1  ;;  %v9102_v25 = vld [vmem:[%s11194_s27 + $0x98] sm:$0xff] }
 0x51a   : > { %v4796_v55 = vadd.f32 %v4524_v46, %v11827_v18  ;;  %v10989_v46 = vld [vmem:[%s11194_s27 + $0x9c] sm:$0xff]  }
 0x51b   : > { %v7798_v10 = vpack.c.bf16 %v7687_v29, %v7687_v29  ;;  %v6831_v60 = vadd.f32 %v6558_v59, %v5756_v1  ;;  %8987 = vmatmul.msk.bf16.gmra.mxu0 %vm680_vm2, %v10987_v22  ;;  %v6281_v22 = vsel %vm568_vm1, %v6278_v50, %v6280_v39 }
 0x51d   : > { %7910 = vst.msk [vmem:[%s12646_s16 + $0xc] sm:$0xf] %vm7906_vm3, %v7798_v10  ;;  %v7462_v32 = vadd.f32 %v7189_v20, %v6831_v60 }
 0x51f   : > { %v7577_v45 = vadd.f32 %v12634_v2, %v7462_v32 }
 0x520   : > { %v7191_v17 = vpop.f32.mrf.mxu0  ;;  %v5485_v58 = vpop.f32.mrf.mxu2 }
 0x521   : > { %v7688_v13 = vmax.f32 %v7577_v45, 0.0  ;;  %v5757_v5 = vadd.f32 %v5485_v58, %v4796_v55  ;;  %v6560_v37 = vpop.f32.mrf.mxu3  ;;  %v4527_v15 = vpop.f32.mrf.mxu1  ;;  %v10448_v58 = vld [vmem:[%s11194_s27 + $0xa8] sm:$0xff]  }
 0x522   : > { %v4797_v59 = vadd.f32 %v4527_v15, %v11832_v11 }
 0x523   : > { %v7799_v29 = vpack.c.bf16 %v7688_v13, %v7688_v13  ;;  %v6832_v1 = vadd.f32 %v6560_v37, %v5757_v5  ;;  %v6282_v13 = vrot.slane %v10448_v58, 2 }
 0x524   : > { %8597 = vmatmul.msk.bf16.gmra.mxu1 %vm680_vm2, %v10883_v40 }
 0x525   : > { %7911 = vst.msk [vmem:[%s12646_s16 + $0x10] sm:$0xf] %vm7906_vm3, %v7799_v29  ;;  %v7463_v20 = vadd.f32 %v7191_v17, %v6832_v1  ;;  %8874 = vmatmul.msk.bf16.gmra.mxu2 %vm680_vm2, %v9102_v25  ;;  %8931 = vmatmul.msk.bf16.gmra.mxu3 %vm680_vm2, %v6281_v22  ;;  %v10885_v25 = vld [vmem:[%s11194_s27 + $0x84] sm:$0xff]  }
 0x527   : > { %v7578_v18 = vadd.f32 %v12634_v2, %v7463_v20 }
 0x528   : > { %v7194_v10 = vpop.f32.mrf.mxu0  ;;  %v5488_v50 = vpop.f32.mrf.mxu2 }
 0x529   : > { %v7689_v60 = vmax.f32 %v7578_v18, 0.0  ;;  %v5758_v48 = vadd.f32 %v5488_v50, %v4797_v59  ;;  %v6563_v32 = vpop.f32.mrf.mxu3  ;;  %v4529_v45 = vpop.f32.mrf.mxu1  ;;  %v9103_v18 = vld [vmem:[%s11194_s27 + $0xa0] sm:$0xff]  ;;  %v6283_v59 = vsel %vm568_vm1, %v6280_v39, %v6282_v13 }
 0x52a   : > { %v4798_v5 = vadd.f32 %v4529_v45, %v11842_v31 }
 0x52b   : > { %v7800_v55 = vpack.c.bf16 %v7689_v60, %v7689_v60  ;;  %v6833_v17 = vadd.f32 %v6563_v32, %v5758_v48  ;;  %8988 = vmatmul.msk.bf16.gmra.mxu0 %vm680_vm2, %v10989_v46  ;;  %v10991_v48 = vld [vmem:[%s11194_s27 + $0xa4] sm:$0xff]  }
 0x52d   : > { %7912 = vst.msk [vmem:[%s12646_s16 + $0x14] sm:$0xf] %vm7906_vm3, %v7800_v55  ;;  %v7464_v40 = vadd.f32 %v7194_v10, %v6833_v17 }
 0x52f   : > { %v7579_v11 = vadd.f32 %v12634_v2, %v7464_v40 }
 0x530   : > { %v7196_v37 = vpop.f32.mrf.mxu0  ;;  %v5490_v15 = vpop.f32.mrf.mxu2 }
 0x531   : > { %v7690_v22 = vmax.f32 %v7579_v11, 0.0  ;;  %v5759_v29 = vadd.f32 %v5490_v15, %v4798_v5  ;;  %v6565_v1 = vpop.f32.mrf.mxu3  ;;  %v4532_v20 = vpop.f32.mrf.mxu1  ;;  %v10449_v5 = vld [vmem:[%s11194_s27 + $0xb0] sm:$0xff]  }
 0x532   : > { %v4799_v60 = vadd.f32 %v4532_v20, %v11847_v54  ;;  %v6284_v15 = vrot.slane %v10449_v5, 2 }
 0x533   : > { %v7801_v46 = vpack.c.bf16 %v7690_v22, %v7690_v22  ;;  %v6834_v50 = vadd.f32 %v6565_v1, %v5759_v29  ;;  %v10887_v1 = vld [vmem:[%s11194_s27 + $0x8c] sm:$0xff]  }
 0x534   : > { %8598 = vmatmul.msk.bf16.gmra.mxu1 %vm680_vm2, %v10885_v25 }
 0x535   : > { %7913 = vst.msk [vmem:[%s12646_s16 + $0x18] sm:$0xf] %vm7906_vm3, %v7801_v46  ;;  %v7465_v10 = vadd.f32 %v7196_v37, %v6834_v50  ;;  %8875 = vmatmul.msk.bf16.gmra.mxu2 %vm680_vm2, %v9103_v18  ;;  %8932 = vmatmul.msk.bf16.gmra.mxu3 %vm680_vm2, %v6283_v59  ;;  %v9104_v50 = vld [vmem:[%s11194_s27 + $0xa8] sm:$0xff] }
 0x537   : > { %v7580_v31 = vadd.f32 %v12634_v2, %v7465_v10  ;;  %v6285_v10 = vsel %vm568_vm1, %v6282_v13, %v6284_v15 }
 0x538   : > { %v7199_v32 = vpop.f32.mrf.mxu0  ;;  %v5493_v39 = vpop.f32.mrf.mxu2 }
 0x539   : > { %v7691_v45 = vmax.f32 %v7580_v31, 0.0  ;;  %v5760_v55 = vadd.f32 %v5493_v39, %v4799_v60  ;;  %v6568_v17 = vpop.f32.mrf.mxu3  ;;  %v4534_v58 = vpop.f32.mrf.mxu1  ;;  %v10993_v39 = vld [vmem:[%s11194_s27 + $0xac] sm:$0xff]  }
 0x53a   : > { %v4800_v25 = vadd.f32 %v4534_v58, %v11857_v47 }
 0x53b   : > { %v7802_v40 = vpack.c.bf16 %v7691_v45, %v7691_v45  ;;  %v6835_v11 = vadd.f32 %v6568_v17, %v5760_v55  ;;  %8989 = vmatmul.msk.bf16.gmra.mxu0 %vm680_vm2, %v10991_v48 }
 0x53d   : > { %7914 = vst.msk [vmem:[%s12646_s16 + $0x1c] sm:$0xf] %vm7906_vm3, %v7802_v40  ;;  %v7466_v37 = vadd.f32 %v7199_v32, %v6835_v11 }
 0x53f   : > { %v7581_v54 = vadd.f32 %v12634_v2, %v7466_v37  ;;  %v10450_v37 = vld [vmem:[%s11194_s27 + $0xb8] sm:$0xff]  }
 0x540   : > { %v7201_v22 = vpop.f32.mrf.mxu0  ;;  %v5495_v29 = vpop.f32.mrf.mxu2 }
 0x541   : > { %v7692_v20 = vmax.f32 %v7581_v54, 0.0  ;;  %v5761_v18 = vadd.f32 %v5495_v29, %v4800_v25  ;;  %v6570_v59 = vpop.f32.mrf.mxu3  ;;  %v4537_v46 = vpop.f32.mrf.mxu1  ;;  %v6286_v25 = vrot.slane %v10450_v37, 2 }
 0x542   : > { %v4801_v32 = vadd.f32 %v4537_v46, %v11862_v26 }
 0x543   : > { %v7803_v31 = vpack.c.bf16 %v7692_v20, %v7692_v20  ;;  %v6836_v60 = vadd.f32 %v6570_v59, %v5761_v18  ;;  %v10889_v20 = vld [vmem:[%s11194_s27 + $0x94] sm:$0xff]  }
 0x544   : > { %8599 = vmatmul.msk.bf16.gmra.mxu1 %vm680_vm2, %v10887_v1 }
 0x545   : > { %7915 = vst.msk [vmem:[%s12646_s16 + $0x20] sm:$0xf] %vm7906_vm3, %v7803_v31  ;;  %v7467_v48 = vadd.f32 %v7201_v22, %v6836_v60  ;;  %8876 = vmatmul.msk.bf16.gmra.mxu2 %vm680_vm2, %v9104_v50  ;;  %8933 = vmatmul.msk.bf16.gmra.mxu3 %vm680_vm2, %v6285_v10  ;;  %v9105_v10 = vld [vmem:[%s11194_s27 + $0xb0] sm:$0xff]  ;;  %v6287_v31 = vsel %vm568_vm1, %v6284_v15, %v6286_v25 }
 0x547   : > { %v7582_v47 = vadd.f32 %v12634_v2, %v7467_v48 }
 0x548   : > { %v7204_v45 = vpop.f32.mrf.mxu0  ;;  %v5498_v13 = vpop.f32.mrf.mxu2 }
 0x549   : > { %v7693_v55 = vmax.f32 %v7582_v47, 0.0  ;;  %v5762_v17 = vadd.f32 %v5498_v13, %v4801_v32  ;;  %v6573_v58 = vpop.f32.mrf.mxu3  ;;  %v4539_v40 = vpop.f32.mrf.mxu1 }
 0x54a   : > { %v4802_v22 = vadd.f32 %v4539_v40, %v11872_v49 }
 0x54b   : > { %v7804_v11 = vpack.c.bf16 %v7693_v55, %v7693_v55  ;;  %v6837_v5 = vadd.f32 %v6573_v58, %v5762_v17  ;;  %8990 = vmatmul.msk.bf16.gmra.mxu0 %vm680_vm2, %v10993_v39  ;;  %v10995_v39 = vld [vmem:[%s11194_s27 + $0xb4] sm:$0xff]  }
 0x54d   : > { %7916 = vst.msk [vmem:[%s12646_s16 + $0x24] sm:$0xf] %vm7906_vm3, %v7804_v11  ;;  %v7468_v54 = vadd.f32 %v7204_v45, %v6837_v5  ;;  %v10451_v5 = vld [vmem:[%s11194_s27 + $0xc0] sm:$0xff]  }
 0x54f   : > { %v7583_v26 = vadd.f32 %v12634_v2, %v7468_v54  ;;  %v6288_v54 = vrot.slane %v10451_v5, 2 }
 0x550   : > { %v7206_v29 = vpop.f32.mrf.mxu0  ;;  %v5500_v1 = vpop.f32.mrf.mxu2 }
 0x551   : > { %v7694_v18 = vmax.f32 %v7583_v26, 0.0  ;;  %v5763_v59 = vadd.f32 %v5500_v1, %v4802_v22  ;;  %v6575_v46 = vpop.f32.mrf.mxu3  ;;  %v4542_v50 = vpop.f32.mrf.mxu1  ;;  %v10891_v1 = vld [vmem:[%s11194_s27 + $0x9c] sm:$0xff]  }
 0x552   : > { %v4803_v32 = vadd.f32 %v4542_v50, %v11877_v56  ;;  %v9106_v50 = vld [vmem:[%s11194_s27 + $0xb8] sm:$0xff] }
 0x553   : > { %v7805_v60 = vpack.c.bf16 %v7694_v18, %v7694_v18  ;;  %v6838_v48 = vadd.f32 %v6575_v46, %v5763_v59 }
 0x554   : > { %8600 = vmatmul.msk.bf16.gmra.mxu1 %vm680_vm2, %v10889_v20 }
 0x555   : > { %7917 = vst.msk [vmem:[%s12646_s16 + $0x28] sm:$0xf] %vm7906_vm3, %v7805_v60  ;;  %v7469_v47 = vadd.f32 %v7206_v29, %v6838_v48  ;;  %8877 = vmatmul.msk.bf16.gmra.mxu2 %vm680_vm2, %v9105_v10  ;;  %8934 = vmatmul.msk.bf16.gmra.mxu3 %vm680_vm2, %v6287_v31  ;;  %v6289_v10 = vsel %vm568_vm1, %v6286_v25, %v6288_v54 }
 0x557   : > { %v7584_v49 = vadd.f32 %v12634_v2, %v7469_v47 }
 0x558   : > { %v7209_v45 = vpop.f32.mrf.mxu0  ;;  %v5503_v15 = vpop.f32.mrf.mxu2 }
 0x559   : > { %v7695_v13 = vmax.f32 %v7584_v49, 0.0  ;;  %v5764_v55 = vadd.f32 %v5503_v15, %v4803_v32  ;;  %v6578_v17 = vpop.f32.mrf.mxu3  ;;  %v4544_v58 = vpop.f32.mrf.mxu1  ;;  %v10997_v49 = vld [vmem:[%s11194_s27 + $0xbc] sm:$0xff]  }
 0x55a   : > { %v4804_v26 = vadd.f32 %v4544_v58, %v11887_v19  ;;  %v10452_v58 = vld [vmem:[%s11194_s27 + $0xc8] sm:$0xff]  }
 0x55b   : > { %v7806_v40 = vpack.c.bf16 %v7695_v13, %v7695_v13  ;;  %v6839_v11 = vadd.f32 %v6578_v17, %v5764_v55  ;;  %8991 = vmatmul.msk.bf16.gmra.mxu0 %vm680_vm2, %v10995_v39 }
 0x55d   : > { %7918 = vst.msk [vmem:[%s12646_s16 + $0x2c] sm:$0xf] %vm7906_vm3, %v7806_v40  ;;  %v7470_v37 = vadd.f32 %v7209_v45, %v6839_v11  ;;  %v6290_v11 = vrot.slane %v10452_v58, 2 }
 0x55f   : > { %v7585_v56 = vadd.f32 %v12634_v2, %v7470_v37 }
 0x560   : > { %v7211_v22 = vpop.f32.mrf.mxu0  ;;  %v5505_v29 = vpop.f32.mrf.mxu2 }
 0x561   : > { %v7696_v20 = vmax.f32 %v7585_v56, 0.0  ;;  %v5765_v18 = vadd.f32 %v5505_v29, %v4804_v26  ;;  %v6580_v59 = vpop.f32.mrf.mxu3  ;;  %v4547_v46 = vpop.f32.mrf.mxu1  ;;  %v10893_v26 = vld [vmem:[%s11194_s27 + $0xa4] sm:$0xff]  }
 0x562   : > { %v4805_v47 = vadd.f32 %v4547_v46, %v11892_v53 }
 0x563   : > { %v7807_v31 = vpack.c.bf16 %v7696_v20, %v7696_v20  ;;  %v6840_v60 = vadd.f32 %v6580_v59, %v5765_v18  ;;  %v9107_v18 = vld [vmem:[%s11194_s27 + $0xc0] sm:$0xff]  ;;  %v6291_v59 = vsel %vm568_vm1, %v6288_v54, %v6290_v11 }
 0x564   : > { %8601 = vmatmul.msk.bf16.gmra.mxu1 %vm680_vm2, %v10891_v1 }
 0x565   : > { %7919 = vst.msk [vmem:[%s12646_s16 + $0x30] sm:$0xf] %vm7906_vm3, %v7807_v31  ;;  %v7471_v48 = vadd.f32 %v7211_v22, %v6840_v60  ;;  %8878 = vmatmul.msk.bf16.gmra.mxu2 %vm680_vm2, %v9106_v50  ;;  %8935 = vmatmul.msk.bf16.gmra.mxu3 %vm680_vm2, %v6289_v10  ;;  %v10999_v60 = vld [vmem:[%s11194_s27 + $0xc4] sm:$0xff]  }
 0x567   : > { %v7586_v19 = vadd.f32 %v12634_v2, %v7471_v48 }
 0x568   : > { %v7214_v32 = vpop.f32.mrf.mxu0  ;;  %v5508_v25 = vpop.f32.mrf.mxu2 }
 0x569   : > { %v7697_v39 = vmax.f32 %v7586_v19, 0.0  ;;  %v5766_v45 = vadd.f32 %v5508_v25, %v4805_v47  ;;  %v6583_v15 = vpop.f32.mrf.mxu3  ;;  %v4549_v13 = vpop.f32.mrf.mxu1 }
 0x56a   : > { %v4806_v5 = vadd.f32 %v4549_v13, %v11902_v6 }
 0x56b   : > { %v7808_v55 = vpack.c.bf16 %v7697_v39, %v7697_v39  ;;  %v6841_v17 = vadd.f32 %v6583_v15, %v5766_v45  ;;  %8992 = vmatmul.msk.bf16.gmra.mxu0 %vm680_vm2, %v10997_v49  ;;  %v10453_v45 = vld [vmem:[%s11194_s27 + $0xd0] sm:$0xff]  }
 0x56c   : > { %v6292_v13 = vrot.slane %v10453_v45, 2 }
 0x56d   : > { %7920 = vst.msk [vmem:[%s12646_s16 + $0x34] sm:$0xf] %vm7906_vm3, %v7808_v55  ;;  %v7472_v40 = vadd.f32 %v7214_v32, %v6841_v17 }
 0x56f   : > { %v7587_v53 = vadd.f32 %v12634_v2, %v7472_v40  ;;  %v10895_v40 = vld [vmem:[%s11194_s27 + $0xac] sm:$0xff]  }
 0x570   : > { %v7216_v37 = vpop.f32.mrf.mxu0  ;;  %v5510_v56 = vpop.f32.mrf.mxu2 }
 0x571   : > { %v7698_v22 = vmax.f32 %v7587_v53, 0.0  ;;  %v5767_v29 = vadd.f32 %v5510_v56, %v4806_v5  ;;  %v6585_v1 = vpop.f32.mrf.mxu3  ;;  %v4552_v20 = vpop.f32.mrf.mxu1 }
 0x572   : > { %v4807_v31 = vadd.f32 %v4552_v20, %v11907_v61 }
 0x573   : > { %v7809_v46 = vpack.c.bf16 %v7698_v22, %v7698_v22  ;;  %v6842_v50 = vadd.f32 %v6585_v1, %v5767_v29  ;;  %v6293_v22 = vsel %vm568_vm1, %v6290_v11, %v6292_v13 }
 0x574   : > { %8602 = vmatmul.msk.bf16.gmra.mxu1 %vm680_vm2, %v10893_v26  ;;  %v9108_v26 = vld [vmem:[%s11194_s27 + $0xc8] sm:$0xff] }
 0x575   : > { %7921 = vst.msk [vmem:[%s12646_s16 + $0x38] sm:$0xf] %vm7906_vm3, %v7809_v46  ;;  %v7473_v10 = vadd.f32 %v7216_v37, %v6842_v50  ;;  %8879 = vmatmul.msk.bf16.gmra.mxu2 %vm680_vm2, %v9107_v18  ;;  %8936 = vmatmul.msk.bf16.gmra.mxu3 %vm680_vm2, %v6291_v59  ;;  %v11001_v59 = vld [vmem:[%s11194_s27 + $0xcc] sm:$0xff]  }
 0x577   : > { %v7588_v6 = vadd.f32 %v12634_v2, %v7473_v10 }
 0x578   : > { %v7219_v48 = vpop.f32.mrf.mxu0  ;;  %v5513_v54 = vpop.f32.mrf.mxu2 }
 0x579   : > { %v7699_v19 = vmax.f32 %v7588_v6, 0.0  ;;  %v5768_v47 = vadd.f32 %v5513_v54, %v4807_v31  ;;  %v6588_v49 = vpop.f32.mrf.mxu3  ;;  %v4554_v32 = vpop.f32.mrf.mxu1  ;;  %v10454_v54 = vld [vmem:[%s11194_s27 + $0xd8] sm:$0xff]  }
 0x57a   : > { %v4808_v55 = vadd.f32 %v4554_v32, %v11917_v14 }
 0x57b   : > { %v7810_v25 = vpack.c.bf16 %v7699_v19, %v7699_v19  ;;  %v6843_v39 = vadd.f32 %v6588_v49, %v5768_v47  ;;  %8993 = vmatmul.msk.bf16.gmra.mxu0 %vm680_vm2, %v10999_v60  ;;  %v6294_v47 = vrot.slane %v10454_v54, 2 }
 0x57d   : > { %7922 = vst.msk [vmem:[%s12646_s16 + $0x3c] sm:$0xf] %vm7906_vm3, %v7810_v25  ;;  %v7474_v15 = vadd.f32 %v7219_v48, %v6843_v39  ;;  %v10897_v39 = vld [vmem:[%s11194_s27 + $0xb4] sm:$0xff]  }
 0x57f   : > { %v7589_v61 = vadd.f32 %v12634_v2, %v7474_v15 }
 0x580   : > { %v7221_v17 = vpop.f32.mrf.mxu0  ;;  %v5515_v58 = vpop.f32.mrf.mxu2 }
 0x581   : > { %v7700_v53 = vmax.f32 %v7589_v61, 0.0  ;;  %v5769_v5 = vadd.f32 %v5515_v58, %v4808_v55  ;;  %v6590_v37 = vpop.f32.mrf.mxu3  ;;  %v4557_v56 = vpop.f32.mrf.mxu1  ;;  %v6295_v58 = vsel %vm568_vm1, %v6292_v13, %v6294_v47 }
 0x582   : > { %v4809_v18 = vadd.f32 %v4557_v56, %v11922_v36  ;;  %v11003_v56 = vld [vmem:[%s11194_s27 + $0xd4] sm:$0xff]  }
 0x583   : > { %v7811_v29 = vpack.c.bf16 %v7700_v53, %v7700_v53  ;;  %v6844_v1 = vadd.f32 %v6590_v37, %v5769_v5 }
 0x584   : > { %8603 = vmatmul.msk.bf16.gmra.mxu1 %vm680_vm2, %v10895_v40 }
 0x585   : > { %7923 = vst.msk [vmem:[%s12646_s16 + $0x40] sm:$0xf] %vm7906_vm3, %v7811_v29  ;;  %v7475_v20 = vadd.f32 %v7221_v17, %v6844_v1  ;;  %8880 = vmatmul.msk.bf16.gmra.mxu2 %vm680_vm2, %v9108_v26  ;;  %8937 = vmatmul.msk.bf16.gmra.mxu3 %vm680_vm2, %v6293_v22  ;;  %v9109_v17 = vld [vmem:[%s11194_s27 + $0xd0] sm:$0xff] }
 0x587   : > { %v7590_v14 = vadd.f32 %v12634_v2, %v7475_v20 }
 0x588   : > { %v7224_v46 = vpop.f32.mrf.mxu0  ;;  %v5518_v11 = vpop.f32.mrf.mxu2 }
 0x589   : > { %v7701_v50 = vmax.f32 %v7590_v14, 0.0  ;;  %v5770_v10 = vadd.f32 %v5518_v11, %v4809_v18  ;;  %v6593_v6 = vpop.f32.mrf.mxu3  ;;  %v4559_v31 = vpop.f32.mrf.mxu1 }
 0x58a   : > { %v4810_v49 = vadd.f32 %v4559_v31, %v11932_v16  ;;  %v10899_v31 = vld [vmem:[%s11194_s27 + $0xbc] sm:$0xff]  }
 0x58b   : > { %v7812_v60 = vpack.c.bf16 %v7701_v50, %v7701_v50  ;;  %v6845_v48 = vadd.f32 %v6593_v6, %v5770_v10  ;;  %8994 = vmatmul.msk.bf16.gmra.mxu0 %vm680_vm2, %v11001_v59  ;;  %v10455_v59 = vld [vmem:[%s11194_s27 + $0xe0] sm:$0xff]  }
 0x58c   : > { %v6296_v11 = vrot.slane %v10455_v59, 2  ;;  %v9111_v59 = vld [vmem:[%s11194_s27 + $0xe0] sm:$0xff] }
 0x58d   : > { %7924 = vst.msk [vmem:[%s12646_s16 + $0x44] sm:$0xf] %vm7906_vm3, %v7812_v60  ;;  %v7476_v19 = vadd.f32 %v7224_v46, %v6845_v48 }
 0x58f   : > { %v7591_v36 = vadd.f32 %v12634_v2, %v7476_v19 }
 0x590   : > { %v7226_v32 = vpop.f32.mrf.mxu0  ;;  %v5520_v25 = vpop.f32.mrf.mxu2 }
 0x591   : > { %v7702_v45 = vmax.f32 %v7591_v36, 0.0  ;;  %v5771_v15 = vadd.f32 %v5520_v25, %v4810_v49  ;;  %v6595_v61 = vpop.f32.mrf.mxu3  ;;  %v4562_v55 = vpop.f32.mrf.mxu1  ;;  %v9110_v36 = vld [vmem:[%s11194_s27 + $0xd8] sm:$0xff]  ;;  %v6297_v49 = vsel %vm568_vm1, %v6294_v47, %v6296_v11 }
 0x592   : > { %v4811_v37 = vadd.f32 %v4562_v55, %v11937_v44 }
 0x593   : > { %v7813_v40 = vpack.c.bf16 %v7702_v45, %v7702_v45  ;;  %v6846_v53 = vadd.f32 %v6595_v61, %v5771_v15  ;;  %v11005_v15 = vld [vmem:[%s11194_s27 + $0xdc] sm:$0xff]  }
 0x594   : > { %8604 = vmatmul.msk.bf16.gmra.mxu1 %vm680_vm2, %v10897_v39 }
 0x595   : > { %7925 = vst.msk [vmem:[%s12646_s16 + $0x48] sm:$0xf] %vm7906_vm3, %v7813_v40  ;;  %v7477_v5 = vadd.f32 %v7226_v32, %v6846_v53  ;;  %8881 = vmatmul.msk.bf16.gmra.mxu2 %vm680_vm2, %v9109_v17  ;;  %8938 = vmatmul.msk.bf16.gmra.mxu3 %vm680_vm2, %v6295_v58 }
 0x597   : > { %v7592_v16 = vadd.f32 %v12634_v2, %v7477_v5 }
 0x598   : > { %v7229_v26 = vpop.f32.mrf.mxu0  ;;  %v5523_v13 = vpop.f32.mrf.mxu2 }
 0x599   : > { %v7703_v22 = vmax.f32 %v7592_v16, 0.0  ;;  %v5772_v29 = vadd.f32 %v5523_v13, %v4811_v37  ;;  %v6598_v1 = vpop.f32.mrf.mxu3  ;;  %v4564_v20 = vpop.f32.mrf.mxu1  ;;  %v10456_v16 = vld [vmem:[%s11194_s27 + $0xe8] sm:$0xff]  }
 0x59a   : > { %v4812_v50 = vadd.f32 %v4564_v20, %v11947_v23 }
 0x59b   : > { %v7814_v14 = vpack.c.bf16 %v7703_v22, %v7703_v22  ;;  %v6847_v18 = vadd.f32 %v6598_v1, %v5772_v29  ;;  %8995 = vmatmul.msk.bf16.gmra.mxu0 %vm680_vm2, %v11003_v56  ;;  %v6298_v56 = vrot.slane %v10456_v16, 2  ;;  %v10901_v29 = vld [vmem:[%s11194_s27 + $0xc4] sm:$0xff]  }
 0x59d   : > { %7926 = vst.msk [vmem:[%s12646_s16 + $0x4c] sm:$0xf] %vm7906_vm3, %v7814_v14  ;;  %v7478_v46 = vadd.f32 %v7229_v26, %v6847_v18 }
 0x59f   : > { %v7593_v44 = vadd.f32 %v12634_v2, %v7478_v46  ;;  %v6299_v46 = vsel %vm568_vm1, %v6296_v11, %v6298_v56 }
 0x5a0   : > { %v7231_v10 = vpop.f32.mrf.mxu0  ;;  %v5525_v6 = vpop.f32.mrf.mxu2 }
 0x5a1   : > { %v7704_v60 = vmax.f32 %v7593_v44, 0.0  ;;  %v5773_v48 = vadd.f32 %v5525_v6, %v4812_v50  ;;  %v6600_v54 = vpop.f32.mrf.mxu3  ;;  %v4567_v19 = vpop.f32.mrf.mxu1 }
 0x5a2   : > { %v4813_v45 = vadd.f32 %v4567_v19, %v11952_v7 }
 0x5a3   : > { %v7815_v32 = vpack.c.bf16 %v7704_v60, %v7704_v60  ;;  %v6848_v25 = vadd.f32 %v6600_v54, %v5773_v48 }
 0x5a4   : > { %8605 = vmatmul.msk.bf16.gmra.mxu1 %vm680_vm2, %v10899_v31  ;;  %v11007_v31 = vld [vmem:[%s11194_s27 + $0xe4] sm:$0xff]  }
 0x5a5   : > { %7927 = vst.msk [vmem:[%s12646_s16 + $0x50] sm:$0xf] %vm7906_vm3, %v7815_v32  ;;  %v7479_v39 = vadd.f32 %v7231_v10, %v6848_v25  ;;  %8882 = vmatmul.msk.bf16.gmra.mxu2 %vm680_vm2, %v9110_v36  ;;  %8939 = vmatmul.msk.bf16.gmra.mxu3 %vm680_vm2, %v6297_v49  ;;  %v10457_v25 = vld [vmem:[%s11194_s27 + $0xf0] sm:$0xff]  }
 0x5a7   : > { %v7594_v23 = vadd.f32 %v12634_v2, %v7479_v39 }
 0x5a8   : > { %v7234_v61 = vpop.f32.mrf.mxu0  ;;  %v5528_v47 = vpop.f32.mrf.mxu2 }
 0x5a9   : > { %v7705_v55 = vmax.f32 %v7594_v23, 0.0  ;;  %v5774_v17 = vadd.f32 %v5528_v47, %v4813_v45  ;;  %v6603_v58 = vpop.f32.mrf.mxu3  ;;  %v4569_v40 = vpop.f32.mrf.mxu1  ;;  %v6300_v23 = vrot.slane %v10457_v25, 2  ;;  %v10903_v47 = vld [vmem:[%s11194_s27 + $0xcc] sm:$0xff]  }
 0x5aa   : > { %v4814_v26 = vadd.f32 %v4569_v40, %v11962_v38 }
 0x5ab   : > { %v7816_v53 = vpack.c.bf16 %v7705_v55, %v7705_v55  ;;  %v6849_v5 = vadd.f32 %v6603_v58, %v5774_v17  ;;  %8996 = vmatmul.msk.bf16.gmra.mxu0 %vm680_vm2, %v11005_v15 }
 0x5ad   : > { %7928 = vst.msk [vmem:[%s12646_s16 + $0x54] sm:$0xf] %vm7906_vm3, %v7816_v53  ;;  %v7480_v37 = vadd.f32 %v7234_v61, %v6849_v5  ;;  %v9112_v53 = vld [vmem:[%s11194_s27 + $0xe8] sm:$0xff]  ;;  %v6301_v5 = vsel %vm568_vm1, %v6298_v56, %v6300_v23 }
 0x5af   : > { %v7595_v7 = vadd.f32 %v12634_v2, %v7480_v37 }
 0x5b0   : > { %v7236_v13 = vpop.f32.mrf.mxu0  ;;  %v5530_v22 = vpop.f32.mrf.mxu2 }
 0x5b1   : > { %v7706_v1 = vmax.f32 %v7595_v7, 0.0  ;;  %v5775_v20 = vadd.f32 %v5530_v22, %v4814_v26  ;;  %v6605_v14 = vpop.f32.mrf.mxu3  ;;  %v4572_v18 = vpop.f32.mrf.mxu1 }
 0x5b2   : > { %v4815_v6 = vadd.f32 %v4572_v18, %v11967_v34 }
 0x5b3   : > { %v7817_v44 = vpack.c.bf16 %v7706_v1, %v7706_v1  ;;  %v6850_v50 = vadd.f32 %v6605_v14, %v5775_v20 }
 0x5b4   : > { %8606 = vmatmul.msk.bf16.gmra.mxu1 %vm680_vm2, %v10901_v29 }
 0x5b5   : > { %7929 = vst.msk [vmem:[%s12646_s16 + $0x58] sm:$0xf] %vm7906_vm3, %v7817_v44  ;;  %v7481_v10 = vadd.f32 %v7236_v13, %v6850_v50  ;;  %8883 = vmatmul.msk.bf16.gmra.mxu2 %vm680_vm2, %v9111_v59  ;;  %8940 = vmatmul.msk.bf16.gmra.mxu3 %vm680_vm2, %v6299_v46  ;;  %v11009_v13 = vld [vmem:[%s11194_s27 + $0xec] sm:$0xff]   ;;  %v10458_v46 = vld [vmem:[%s11194_s27 + $0xf8] sm:$0xff]  }
 0x5b6   : > { %v6302_v50 = vrot.slane %v10458_v46, 2  ;;  %v11013_v46 = vld [vmem:[%s11194_s27 + $0xfc] sm:$0xff]  }
 0x5b7   : > { %v7596_v38 = vadd.f32 %v12634_v2, %v7481_v10 }
 0x5b8   : > { %v7239_v60 = vpop.f32.mrf.mxu0  ;;  %v5533_v11 = vpop.f32.mrf.mxu2 }
 0x5b9   : > { %v7707_v48 = vmax.f32 %v7596_v38, 0.0  ;;  %v5776_v54 = vadd.f32 %v5533_v11, %v4815_v6  ;;  %v6608_v19 = vpop.f32.mrf.mxu3  ;;  %v4574_v36 = vpop.f32.mrf.mxu1 }
 0x5ba   : > { %v4816_v45 = vadd.f32 %v4574_v36, %v11977_v51  ;;  %v6303_v36 = vsel %vm568_vm1, %v6300_v23, %v6302_v50 }
 0x5bb   : > { %v7818_v49 = vpack.c.bf16 %v7707_v48, %v7707_v48  ;;  %v6851_v32 = vadd.f32 %v6608_v19, %v5776_v54  ;;  %8997 = vmatmul.msk.bf16.gmra.mxu0 %vm680_vm2, %v11007_v31  ;;  %v10905_v31 = vld [vmem:[%s11194_s27 + $0xd4] sm:$0xff]  }
 0x5bc   : > { %v9113_v19 = vld [vmem:[%s11194_s27 + $0xf0] sm:$0xff] }
 0x5bd   : > { %7930 = vst.msk [vmem:[%s12646_s16 + $0x5c] sm:$0xf] %vm7906_vm3, %v7818_v49  ;;  %v7482_v39 = vadd.f32 %v7239_v60, %v6851_v32 }
 0x5bf   : > { %v7597_v34 = vadd.f32 %v12634_v2, %v7482_v39 }
 0x5c0   : > { %v7241_v15 = vpop.f32.mrf.mxu0  ;;  %v5535_v61 = vpop.f32.mrf.mxu2 }
 0x5c1   : > { %v7708_v55 = vmax.f32 %v7597_v34, 0.0  ;;  %v5777_v17 = vadd.f32 %v5535_v61, %v4816_v45  ;;  %v6610_v58 = vpop.f32.mrf.mxu3  ;;  %v4577_v40 = vpop.f32.mrf.mxu1  ;;  %v11011_v34 = vld [vmem:[%s11194_s27 + $0xf4] sm:$0xff]  }
 0x5c2   : > { %v4817_v26 = vadd.f32 %v4577_v40, %v11982_v28  ;;  %v10459_v40 = vld [vmem:[%s11194_s27 + $0x100] sm:$0xff]  }
 0x5c3   : > { %v7819_v16 = vpack.c.bf16 %v7708_v55, %v7708_v55  ;;  %v6852_v37 = vadd.f32 %v6610_v58, %v5777_v17 }
 0x5c4   : > { %8607 = vmatmul.msk.bf16.gmra.mxu1 %vm680_vm2, %v10903_v47 }
 0x5c5   : > { %7931 = vst.msk [vmem:[%s12646_s16 + $0x60] sm:$0xf] %vm7906_vm3, %v7819_v16  ;;  %v7483_v7 = vadd.f32 %v7241_v15, %v6852_v37  ;;  %8884 = vmatmul.msk.bf16.gmra.mxu2 %vm680_vm2, %v9112_v53  ;;  %8941 = vmatmul.msk.bf16.gmra.mxu3 %vm680_vm2, %v6301_v5  ;;  %v6304_v5 = vrot.slane %v10459_v40, 2 }
 0x5c7   : > { %v7598_v51 = vadd.f32 %v12634_v2, %v7483_v7 }
 0x5c8   : > { %v7244_v22 = vpop.f32.mrf.mxu0  ;;  %v5538_v56 = vpop.f32.mrf.mxu2 }
 0x5c9   : > { %v7709_v29 = vmax.f32 %v7598_v51, 0.0  ;;  %v5778_v1 = vadd.f32 %v5538_v56, %v4817_v26  ;;  %v6613_v20 = vpop.f32.mrf.mxu3  ;;  %v4579_v14 = vpop.f32.mrf.mxu1  ;;  %v10907_v51 = vld [vmem:[%s11194_s27 + $0xdc] sm:$0xff]  }
 0x5ca   : > { %v4818_v10 = vadd.f32 %v4579_v14, %v11992_v0 }
 0x5cb   : > { %v7820_v18 = vpack.c.bf16 %v7709_v29, %v7709_v29  ;;  %v6853_v59 = vadd.f32 %v6613_v20, %v5778_v1  ;;  %8998 = vmatmul.msk.bf16.gmra.mxu0 %vm680_vm2, %v11009_v13  ;;  %v9114_v29 = vld [vmem:[%s11194_s27 + $0xf8] sm:$0xff]  ;;  %v6305_v1 = vsel %vm568_vm1, %v6302_v50, %v6304_v5 }
 0x5cd   : > { %7932 = vst.msk [vmem:[%s12646_s16 + $0x64] sm:$0xf] %vm7906_vm3, %v7820_v18  ;;  %v7484_v44 = vadd.f32 %v7244_v22, %v6853_v59 }
 0x5cf   : > { %v7599_v28 = vadd.f32 %v12634_v2, %v7484_v44 }
 0x5d0   : > { %v7246_v38 = vpop.f32.mrf.mxu0  ;;  %v5540_v6 = vpop.f32.mrf.mxu2 }
 0x5d1   : > { %v7710_v60 = vmax.f32 %v7599_v28, 0.0  ;;  %v5779_v11 = vadd.f32 %v5540_v6, %v4818_v10  ;;  %v6615_v48 = vpop.f32.mrf.mxu3  ;;  %v4582_v54 = vpop.f32.mrf.mxu1 }
 0x5d2   : > { %v4819_v39 = vadd.f32 %v4582_v54, %v11997_v3 }
 0x5d3   : > { %v7821_v49 = vpack.c.bf16 %v7710_v60, %v7710_v60  ;;  %v6854_v32 = vadd.f32 %v6615_v48, %v5779_v11  ;;  %v10460_v11 = vld [vmem:[%s11194_s27 + $0x108] sm:$0xff]  }
 0x5d4   : > { %8608 = vmatmul.msk.bf16.gmra.mxu1 %vm680_vm2, %v10905_v31 }
 0x5d5   : > { %7933 = vst.msk [vmem:[%s12646_s16 + $0x68] sm:$0xf] %vm7906_vm3, %v7821_v49  ;;  %v7485_v25 = vadd.f32 %v7246_v38, %v6854_v32  ;;  %8885 = vmatmul.msk.bf16.gmra.mxu2 %vm680_vm2, %v9113_v19  ;;  %8942 = vmatmul.msk.bf16.gmra.mxu3 %vm680_vm2, %v6303_v36  ;;  %v10909_v32 = vld [vmem:[%s11194_s27 + $0xe4] sm:$0xff]  }
 0x5d7   : > { %v7600_v0 = vadd.f32 %v12634_v2, %v7485_v25 }
 0x5d8   : > { %v7249_v45 = vpop.f32.mrf.mxu0  ;;  %v5543_v23 = vpop.f32.mrf.mxu2 }
 0x5d9   : > { %v7711_v15 = vmax.f32 %v7600_v0, 0.0  ;;  %v5780_v61 = vadd.f32 %v5543_v23, %v4819_v39  ;;  %v6618_v47 = vpop.f32.mrf.mxu3  ;;  %v4584_v55 = vpop.f32.mrf.mxu1 }
 0x5da   : > { %v4820_v16 = vadd.f32 %v4584_v55, %v12007_v27 }
 0x5db   : > { %v7822_v17 = vpack.c.bf16 %v7711_v15, %v7711_v15  ;;  %v6855_v58 = vadd.f32 %v6618_v47, %v5780_v61  ;;  %8999 = vmatmul.msk.bf16.gmra.mxu0 %vm680_vm2, %v11011_v34 }
 0x5dd   : > { %7934 = vst.msk [vmem:[%s12646_s16 + $0x6c] sm:$0xf] %vm7906_vm3, %v7822_v17  ;;  %v7486_v53 = vadd.f32 %v7249_v45, %v6855_v58  ;;  %v9115_v45 = vld [vmem:[%s11194_s27 + $0x100] sm:$0xff] }
 0x5de   : > { %v11015_v17 = vld [vmem:[%s11194_s27 + $0x104] sm:$0xff]  }
 0x5df   : > { %v7601_v3 = vadd.f32 %v12634_v2, %v7486_v53 }
 0x5e0   : > { %v7251_v37 = vpop.f32.mrf.mxu0  ;;  %v5545_v7 = vpop.f32.mrf.mxu2 }
 0x5e1   : > { %v7712_v26 = vmax.f32 %v7601_v3, 0.0  ;;  %v5781_v13 = vadd.f32 %v5545_v7, %v4820_v16  ;;  %v6620_v22 = vpop.f32.mrf.mxu3  ;;  %v4587_v56 = vpop.f32.mrf.mxu1 }
 0x5e2   : > { %v4821_v59 = vadd.f32 %v4587_v56, %v12012_v43  ;;  %v12902_v43 = vld [vmem:[%s13539_s2] ss:$0 sm:$0xff] }
 0x5e3   : > { %v7823_v20 = vpack.c.bf16 %v7712_v26, %v7712_v26  ;;  %v6856_v14 = vadd.f32 %v6620_v22, %v5781_v13 }
 0x5e4   : > { %8609 = vmatmul.msk.bf16.gmra.mxu1 %vm680_vm2, %v10907_v51  ;;  %v10461_v51 = vld [vmem:[%s11194_s27 + $0x110] sm:$0xff]  }
 0x5e5   : > { %7935 = vst.msk [vmem:[%s12646_s16 + $0x70] sm:$0xf] %vm7906_vm3, %v7823_v20  ;;  %v7487_v18 = vadd.f32 %v7251_v37, %v6856_v14  ;;  %8886 = vmatmul.msk.bf16.gmra.mxu2 %vm680_vm2, %v9114_v29  ;;  %8943 = vmatmul.msk.bf16.gmra.mxu3 %vm680_vm2, %v6305_v1  ;;  %v6308_v13 = vrot.slane %v10461_v51, 2  ;;  %v10911_v1 = vld [vmem:[%s11194_s27 + $0xec] sm:$0xff]  }
 0x5e7   : > { %v7602_v27 = vadd.f32 %v12634_v2, %v7487_v18  ;;  %v6306_v2 = vrot.slane %v10460_v11, 2 }
 0x5e8   : > { %v7254_v44 = vpop.f32.mrf.mxu0  ;;  %v5548_v50 = vpop.f32.mrf.mxu2 }
 0x5e9   : > { %v7713_v28 = vmax.f32 %v7602_v27, 0.0  ;;  %v5782_v10 = vadd.f32 %v5548_v50, %v4821_v59  ;;  %v6623_v38 = vpop.f32.mrf.mxu3  ;;  %v4589_v6 = vpop.f32.mrf.mxu1  ;;  %v6307_v23 = vsel %vm568_vm1, %v6304_v5, %v6306_v2  ;;  %v9116_v59 = vld [vmem:[%s11194_s27 + $0x108] sm:$0xff] }
 0x5ea   : > { %v4822_v19 = vadd.f32 %v4589_v6, %v12022_v52 }
 0x5eb   : > { %v7824_v31 = vpack.c.bf16 %v7713_v28, %v7713_v28  ;;  %v6857_v60 = vadd.f32 %v6623_v38, %v5782_v10  ;;  %9000 = vmatmul.msk.bf16.gmra.mxu0 %vm680_vm2, %v11013_v46  ;;  %v6309_v46 = vsel %vm568_vm1, %v6306_v2, %v6308_v13  ;;  %v11017_v38 = vld [vmem:[%s11194_s27 + $0x10c] sm:$0xff]  }
 0x5ed   : > { %7936 = vst.msk [vmem:[%s12646_s16 + $0x74] sm:$0xf] %vm7906_vm3, %v7824_v31  ;;  %v7488_v48 = vadd.f32 %v7254_v44, %v6857_v60 }
 0x5ef   : > { %v7603_v54 = vadd.f32 %v12902_v43, %v7488_v48 }
 0x5f0   : > { %v7256_v36 = vpop.f32.mrf.mxu0  ;;  %v5550_v49 = vpop.f32.mrf.mxu2 }
 0x5f1   : > { %v7714_v25 = vmax.f32 %v7603_v54, 0.0  ;;  %v5783_v0 = vadd.f32 %v5550_v49, %v4822_v19  ;;  %v6625_v39 = vpop.f32.mrf.mxu3  ;;  %v4592_v34 = vpop.f32.mrf.mxu1 }
 0x5f2   : > { %v4823_v55 = vadd.f32 %v4592_v34, %v12027_v9  ;;  %v10913_v34 = vld [vmem:[%s11194_s27 + $0xf4] sm:$0xff]  }
 0x5f3   : > { %v7825_v15 = vpack.c.bf16 %v7714_v25, %v7714_v25  ;;  %v6858_v61 = vadd.f32 %v6625_v39, %v5783_v0 }
 0x5f4   : > { %8610 = vmatmul.msk.bf16.gmra.mxu1 %vm680_vm2, %v10909_v32 }
 0x5f5   : > { %7937 = vst.msk [vmem:[%s12646_s16 + $0x78] sm:$0xf] %vm7906_vm3, %v7825_v15  ;;  %v7489_v47 = vadd.f32 %v7256_v36, %v6858_v61  ;;  %8887 = vmatmul.msk.bf16.gmra.mxu2 %vm680_vm2, %v9115_v45  ;;  %8944 = vmatmul.msk.bf16.gmra.mxu3 %vm680_vm2, %v6307_v23  ;;  %v10462_v36 = vld [vmem:[%s11194_s27 + $0x118] sm:$0xff]  }
 0x5f6   : > { %v6310_v32 = vrot.slane %v10462_v36, 2 }
 0x5f7   : > { %v7604_v52 = vadd.f32 %v12902_v43, %v7489_v47  ;;  %v9117_v47 = vld [vmem:[%s11194_s27 + $0x110] sm:$0xff] }
 0x5f8   : > { %v7259_v58 = vpop.f32.mrf.mxu0  ;;  %v5553_v40 = vpop.f32.mrf.mxu2 }
 0x5f9   : > { %v7715_v53 = vmax.f32 %v7604_v52, 0.0  ;;  %v5784_v5 = vadd.f32 %v5553_v40, %v4823_v55  ;;  %v6628_v3 = vpop.f32.mrf.mxu3  ;;  %v4594_v16 = vpop.f32.mrf.mxu1  ;;  %v6311_v52 = vsel %vm568_vm1, %v6308_v13, %v6310_v32 }
 0x5fa   : > { %v4824_v22 = vadd.f32 %v4594_v16, %v12037_v30 }
 0x5fb   : > { %v7826_v37 = vpack.c.bf16 %v7715_v53, %v7715_v53  ;;  %v6859_v7 = vadd.f32 %v6628_v3, %v5784_v5  ;;  %9001 = vmatmul.msk.bf16.gmra.mxu0 %vm680_vm2, %v11015_v17  ;;  %v11019_v53 = vld [vmem:[%s11194_s27 + $0x114] sm:$0xff]  }
 0x5fd   : > { %7938 = vst.msk [vmem:[%s12646_s16 + $0x7c] sm:$0xf] %vm7906_vm3, %v7826_v37  ;;  %v7490_v26 = vadd.f32 %v7259_v58, %v6859_v7 }
 0x5ff   : > { %v7605_v9 = vadd.f32 %v12902_v43, %v7490_v26 }
 0x600   : > { %v7261_v56 = vpop.f32.mrf.mxu0  ;;  %v5555_v29 = vpop.f32.mrf.mxu2 }
 0x601   : > { %v7716_v20 = vmax.f32 %v7605_v9, 0.0  ;;  %v5785_v14 = vadd.f32 %v5555_v29, %v4824_v22  ;;  %v6630_v18 = vpop.f32.mrf.mxu3  ;;  %v4597_v27 = vpop.f32.mrf.mxu1  ;;  %v10463_v9 = vld [vmem:[%s11194_s27 + $0x120] sm:$0xff]  }
 0x602   : > { %v4825_v10 = vadd.f32 %v4597_v27, %v12042_v57 }
 0x603   : > { %v7827_v44 = vpack.c.bf16 %v7716_v20, %v7716_v20  ;;  %v6860_v50 = vadd.f32 %v6630_v18, %v5785_v14  ;;  %v10915_v14 = vld [vmem:[%s11194_s27 + $0xfc] sm:$0xff]  }
 0x604   : > { %8611 = vmatmul.msk.bf16.gmra.mxu1 %vm680_vm2, %v10911_v1 }
 0x605   : > { %7939 = vst.msk [vmem:[%s12646_s16 + $0x80] sm:$0xf] %vm7906_vm3, %v7827_v44  ;;  %v7491_v28 = vadd.f32 %v7261_v56, %v6860_v50  ;;  %8888 = vmatmul.msk.bf16.gmra.mxu2 %vm680_vm2, %v9116_v59  ;;  %8945 = vmatmul.msk.bf16.gmra.mxu3 %vm680_vm2, %v6309_v46  ;;  %v6312_v56 = vrot.slane %v10463_v9, 2  ;;  %v9118_v44 = vld [vmem:[%s11194_s27 + $0x118] sm:$0xff]  ;;  %v10465_v9 = vld [vmem:[%s11194_s27 + $0x130] sm:$0xff]  }
 0x607   : > { %v7606_v30 = vadd.f32 %v12902_v43, %v7491_v28  ;;  %v6313_v50 = vsel %vm568_vm1, %v6310_v32, %v6312_v56 }
 0x608   : > { %v7264_v6 = vpop.f32.mrf.mxu0  ;;  %v5558_v31 = vpop.f32.mrf.mxu2 }
 0x609   : > { %v7717_v60 = vmax.f32 %v7606_v30, 0.0  ;;  %v5786_v11 = vadd.f32 %v5558_v31, %v4825_v10  ;;  %v6633_v48 = vpop.f32.mrf.mxu3  ;;  %v4599_v2 = vpop.f32.mrf.mxu1 }
 0x60a   : > { %v4826_v25 = vadd.f32 %v4599_v2, %v12052_v8 }
 0x60b   : > { %v7828_v54 = vpack.c.bf16 %v7717_v60, %v7717_v60  ;;  %v6861_v19 = vadd.f32 %v6633_v48, %v5786_v11  ;;  %9002 = vmatmul.msk.bf16.gmra.mxu0 %vm680_vm2, %v11017_v38 }
 0x60d   : > { %7940 = vst.msk [vmem:[%s12646_s16 + $0x84] sm:$0xf] %vm7906_vm3, %v7828_v54  ;;  %v7492_v49 = vadd.f32 %v7264_v6, %v6861_v19  ;;  %v11021_v6 = vld [vmem:[%s11194_s27 + $0x11c] sm:$0xff]  }
 0x60f   : > { %v7607_v57 = vadd.f32 %v12902_v43, %v7492_v49  ;;  %v10464_v49 = vld [vmem:[%s11194_s27 + $0x128] sm:$0xff]  }
 0x610   : > { %v7266_v0 = vpop.f32.mrf.mxu0  ;;  %v5560_v39 = vpop.f32.mrf.mxu2 }
 0x611   : > { %v7718_v45 = vmax.f32 %v7607_v57, 0.0  ;;  %v5787_v23 = vadd.f32 %v5560_v39, %v4826_v25  ;;  %v6635_v15 = vpop.f32.mrf.mxu3  ;;  %v4602_v61 = vpop.f32.mrf.mxu1  ;;  %v6314_v57 = vrot.slane %v10464_v49, 2 }
 0x612   : > { %v4827_v40 = vadd.f32 %v4602_v61, %v12057_v12 }
 0x613   : > { %v7829_v55 = vpack.c.bf16 %v7718_v45, %v7718_v45  ;;  %v6862_v17 = vadd.f32 %v6635_v15, %v5787_v23 }
 0x614   : > { %8612 = vmatmul.msk.bf16.gmra.mxu1 %vm680_vm2, %v10913_v34  ;;  %v10917_v34 = vld [vmem:[%s11194_s27 + $0x104] sm:$0xff]  }
 0x615   : > { %7941 = vst.msk [vmem:[%s12646_s16 + $0x88] sm:$0xf] %vm7906_vm3, %v7829_v55  ;;  %v7493_v58 = vadd.f32 %v7266_v0, %v6862_v17  ;;  %8889 = vmatmul.msk.bf16.gmra.mxu2 %vm680_vm2, %v9117_v47  ;;  %8946 = vmatmul.msk.bf16.gmra.mxu3 %vm680_vm2, %v6311_v52  ;;  %v9119_v47 = vld [vmem:[%s11194_s27 + $0x120] sm:$0xff]  ;;  %v6315_v52 = vsel %vm568_vm1, %v6312_v56, %v6314_v57  ;;  %v6316_v56 = vrot.slane %v10465_v9, 2 }
 0x617   : > { %v7608_v8 = vadd.f32 %v12902_v43, %v7493_v58 }
 0x618   : > { %v7269_v5 = vpop.f32.mrf.mxu0  ;;  %v5563_v3 = vpop.f32.mrf.mxu2 }
 0x619   : > { %v7719_v16 = vmax.f32 %v7608_v8, 0.0  ;;  %v5788_v37 = vadd.f32 %v5563_v3, %v4827_v40  ;;  %v6638_v7 = vpop.f32.mrf.mxu3  ;;  %v4604_v51 = vpop.f32.mrf.mxu1  ;;  %v13768_v8 = vld [vmem:[#allocation28_spill] sm:$0xff] }
 0x61a   : > { %v4828_v29 = vadd.f32 %v4604_v51, %v12067_v42 }
 0x61b   : > { %v7830_v26 = vpack.c.bf16 %v7719_v16, %v7719_v16  ;;  %v6863_v13 = vadd.f32 %v6638_v7, %v5788_v37  ;;  %9003 = vmatmul.msk.bf16.gmra.mxu0 %vm680_vm2, %v11019_v53  ;;  %v11023_v53 = vld [vmem:[%s11194_s27 + $0x124] sm:$0xff]  }
 0x61d   : > { %7942 = vst.msk [vmem:[%s12646_s16 + $0x8c] sm:$0xf] %vm7906_vm3, %v7830_v26  ;;  %v7494_v22 = vadd.f32 %v7269_v5, %v6863_v13 }
 0x61f   : > { %v7609_v12 = vadd.f32 %v12902_v43, %v7494_v22 }
 0x620   : > { %v7271_v1 = vpop.f32.mrf.mxu0  ;;  %v5565_v20 = vpop.f32.mrf.mxu2 }
 0x621   : > { %v7720_v18 = vmax.f32 %v7609_v12, 0.0  ;;  %v5789_v27 = vadd.f32 %v5565_v20, %v4828_v29  ;;  %v6640_v59 = vpop.f32.mrf.mxu3  ;;  %v4607_v46 = vpop.f32.mrf.mxu1  ;;  %v13769_v29 = vld [vmem:[#allocation31_spill] sm:$0xff] }
 0x622   : > { %v4829_v38 = vadd.f32 %v4607_v46, %v12072_v35 }
 0x623   : > { %v7831_v28 = vpack.c.bf16 %v7720_v18, %v7720_v18  ;;  %v6864_v30 = vadd.f32 %v6640_v59, %v5789_v27  ;;  %v10919_v18 = vld [vmem:[%s11194_s27 + $0x10c] sm:$0xff]  }
 0x624   : > { %8613 = vmatmul.msk.bf16.gmra.mxu1 %vm680_vm2, %v10915_v14 }
 0x625   : > { %7943 = vst.msk [vmem:[%s12646_s16 + $0x90] sm:$0xf] %vm7906_vm3, %v7831_v28  ;;  %v7495_v10 = vadd.f32 %v7271_v1, %v6864_v30  ;;  %8890 = vmatmul.msk.bf16.gmra.mxu2 %vm680_vm2, %v9118_v44  ;;  %8947 = vmatmul.msk.bf16.gmra.mxu3 %vm680_vm2, %v6313_v50  ;;  %v9120_v50 = vld [vmem:[%s11194_s27 + $0x128] sm:$0xff]  ;;  %v6317_v28 = vsel %vm568_vm1, %v6314_v57, %v6316_v56  ;;  %v10466_v57 = vld [vmem:[%s11194_s27 + $0x138] sm:$0xff]  }
 0x627   : > { %v7610_v42 = vadd.f32 %v12902_v43, %v7495_v10 }
 0x628   : > { %v7274_v31 = vpop.f32.mrf.mxu0  ;;  %v5568_v60 = vpop.f32.mrf.mxu2 }
 0x629   : > { %v7721_v11 = vmax.f32 %v7610_v42, 0.0  ;;  %v5790_v48 = vadd.f32 %v5568_v60, %v4829_v38  ;;  %v6643_v2 = vpop.f32.mrf.mxu3  ;;  %v4609_v54 = vpop.f32.mrf.mxu1  ;;  %v11025_v60 = vld [vmem:[%s11194_s27 + $0x12c] sm:$0xff]  }
 0x62a   : > { %v4830_v25 = vadd.f32 %v4609_v54, %v12082_v4 }
 0x62b   : > { %v7832_v19 = vpack.c.bf16 %v7721_v11, %v7721_v11  ;;  %v6865_v36 = vadd.f32 %v6643_v2, %v5790_v48  ;;  %9004 = vmatmul.msk.bf16.gmra.mxu0 %vm680_vm2, %v11021_v6  ;;  %v13770_v6 = vld [vmem:[#allocation34_spill] sm:$0xff] }
 0x62d   : > { %7944 = vst.msk [vmem:[%s12646_s16 + $0x94] sm:$0xf] %vm7906_vm3, %v7832_v19  ;;  %v7496_v32 = vadd.f32 %v7274_v31, %v6865_v36 }
 0x62f   : > { %v7611_v35 = vadd.f32 %v12902_v43, %v7496_v32 }
 0x630   : > { %v7276_v0 = vpop.f32.mrf.mxu0  ;;  %v5570_v39 = vpop.f32.mrf.mxu2 }
 0x631   : > { %v7722_v45 = vmax.f32 %v7611_v35, 0.0  ;;  %v5791_v23 = vadd.f32 %v5570_v39, %v4830_v25  ;;  %v6645_v15 = vpop.f32.mrf.mxu3  ;;  %v4612_v61 = vpop.f32.mrf.mxu1  ;;  %v6318_v25 = vrot.slane %v10466_v57, 2  ;;  %v13771_v39 = vld [vmem:[#allocation37_spill] sm:$0xff] }
 0x632   : > { %v4831_v40 = vadd.f32 %v4612_v61, %v13768_v8 }
 0x633   : > { %v7833_v55 = vpack.c.bf16 %v7722_v45, %v7722_v45  ;;  %v6866_v17 = vadd.f32 %v6645_v15, %v5791_v23  ;;  %v10921_v15 = vld [vmem:[%s11194_s27 + $0x114] sm:$0xff]  }
 0x634   : > { %8614 = vmatmul.msk.bf16.gmra.mxu1 %vm680_vm2, %v10917_v34 }
 0x635   : > { %7945 = vst.msk [vmem:[%s12646_s16 + $0x98] sm:$0xf] %vm7906_vm3, %v7833_v55  ;;  %v7497_v58 = vadd.f32 %v7276_v0, %v6866_v17  ;;  %8891 = vmatmul.msk.bf16.gmra.mxu2 %vm680_vm2, %v9119_v47  ;;  %8948 = vmatmul.msk.bf16.gmra.mxu3 %vm680_vm2, %v6315_v52  ;;  %v9121_v17 = vld [vmem:[%s11194_s27 + $0x130] sm:$0xff] }
 0x637   : > { %v7612_v4 = vadd.f32 %v12902_v43, %v7497_v58  ;;  %v6319_v58 = vsel %vm568_vm1, %v6316_v56, %v6318_v25 }
 0x638   : > { %v7279_v5 = vpop.f32.mrf.mxu0  ;;  %v5573_v3 = vpop.f32.mrf.mxu2 }
 0x639   : > { %v7723_v16 = vmax.f32 %v7612_v4, 0.0  ;;  %v5792_v37 = vadd.f32 %v5573_v3, %v4831_v40  ;;  %v6648_v7 = vpop.f32.mrf.mxu3  ;;  %v4614_v51 = vpop.f32.mrf.mxu1 }
 0x63a   : > { %v4832_v1 = vadd.f32 %v4614_v51, %v13769_v29 }
 0x63b   : > { %v7834_v26 = vpack.c.bf16 %v7723_v16, %v7723_v16  ;;  %v6867_v13 = vadd.f32 %v6648_v7, %v5792_v37  ;;  %9005 = vmatmul.msk.bf16.gmra.mxu0 %vm680_vm2, %v11023_v53  ;;  %v11027_v16 = vld [vmem:[%s11194_s27 + $0x134] sm:$0xff]  }
 0x63d   : > { %7946 = vst.msk [vmem:[%s12646_s16 + $0x9c] sm:$0xf] %vm7906_vm3, %v7834_v26  ;;  %v7498_v22 = vadd.f32 %v7279_v5, %v6867_v13  ;;  %v13772_v5 = vld [vmem:[#allocation40_spill] sm:$0xff] }
 0x63f   : > { %v7613_v12 = vadd.f32 %v12902_v43, %v7498_v22 }
 0x640   : > { %v7281_v20 = vpop.f32.mrf.mxu0  ;;  %v5575_v14 = vpop.f32.mrf.mxu2 }
 0x641   : > { %v7724_v27 = vmax.f32 %v7613_v12, 0.0  ;;  %v5793_v59 = vadd.f32 %v5575_v14, %v4832_v1  ;;  %v6650_v46 = vpop.f32.mrf.mxu3  ;;  %v4617_v44 = vpop.f32.mrf.mxu1  ;;  %v10467_v12 = vld [vmem:[%s11194_s27 + $0x140] sm:$0xff]   ;;  %v13773_v14 = vld [vmem:[#allocation43_spill] sm:$0xff] }
 0x642   : > { %v4833_v31 = vadd.f32 %v4617_v44, %v13770_v6  ;;  %v6320_v1 = vrot.slane %v10467_v12, 2 }
 0x643   : > { %v7835_v30 = vpack.c.bf16 %v7724_v27, %v7724_v27  ;;  %v6868_v10 = vadd.f32 %v6650_v46, %v5793_v59  ;;  %v10923_v46 = vld [vmem:[%s11194_s27 + $0x11c] sm:$0xff]  }
 0x644   : > { %8615 = vmatmul.msk.bf16.gmra.mxu1 %vm680_vm2, %v10919_v18 }
 0x645   : > { %7947 = vst.msk [vmem:[%s12646_s16 + $0xa0] sm:$0xf] %vm7906_vm3, %v7835_v30  ;;  %v7499_v42 = vadd.f32 %v7281_v20, %v6868_v10  ;;  %8892 = vmatmul.msk.bf16.gmra.mxu2 %vm680_vm2, %v9120_v50  ;;  %8949 = vmatmul.msk.bf16.gmra.mxu3 %vm680_vm2, %v6317_v28  ;;  %v9122_v10 = vld [vmem:[%s11194_s27 + $0x138] sm:$0xff] }
 0x647   : > { %v7614_v38 = vadd.f32 %v12902_v43, %v7499_v42  ;;  %v6321_v42 = vsel %vm568_vm1, %v6318_v25, %v6320_v1 }
 0x648   : > { %v7284_v11 = vpop.f32.mrf.mxu0  ;;  %v5578_v48 = vpop.f32.mrf.mxu2 }
 0x649   : > { %v7725_v2 = vmax.f32 %v7614_v38, 0.0  ;;  %v5794_v54 = vadd.f32 %v5578_v48, %v4833_v31  ;;  %v6653_v19 = vpop.f32.mrf.mxu3  ;;  %v4619_v36 = vpop.f32.mrf.mxu1 }
 0x64a   : > { %v4834_v34 = vadd.f32 %v4619_v36, %v13771_v39 }
 0x64b   : > { %v7836_v49 = vpack.c.bf16 %v7725_v2, %v7725_v2  ;;  %v6869_v32 = vadd.f32 %v6653_v19, %v5794_v54  ;;  %9006 = vmatmul.msk.bf16.gmra.mxu0 %vm680_vm2, %v11025_v60  ;;  %v11029_v2 = vld [vmem:[%s11194_s27 + $0x13c] sm:$0xff]  }
 0x64d   : > { %7948 = vst.msk [vmem:[%s12646_s16 + $0xa4] sm:$0xf] %vm7906_vm3, %v7836_v49  ;;  %v7500_v35 = vadd.f32 %v7284_v11, %v6869_v32  ;;  %v13774_v11 = vld [vmem:[#allocation46_spill] sm:$0xff] }
 0x64f   : > { %v7615_v0 = vadd.f32 %v12902_v43, %v7500_v35 }
 0x650   : > { %v7286_v45 = vpop.f32.mrf.mxu0  ;;  %v5580_v23 = vpop.f32.mrf.mxu2 }
 0x651   : > { %v7726_v61 = vmax.f32 %v7615_v0, 0.0  ;;  %v5795_v47 = vadd.f32 %v5580_v23, %v4834_v34  ;;  %v6655_v52 = vpop.f32.mrf.mxu3  ;;  %v4622_v55 = vpop.f32.mrf.mxu1  ;;  %v10468_v0 = vld [vmem:[%s11194_s27 + $0x148] sm:$0xff]   ;;  %v13775_v23 = vld [vmem:[#allocation49_spill] sm:$0xff] }
 0x652   : > { %v4835_v3 = vadd.f32 %v4622_v55, %v13772_v5  ;;  %v6322_v34 = vrot.slane %v10468_v0, 2 }
 0x653   : > { %v7837_v4 = vpack.c.bf16 %v7726_v61, %v7726_v61  ;;  %v6870_v8 = vadd.f32 %v6655_v52, %v5795_v47  ;;  %v10925_v52 = vld [vmem:[%s11194_s27 + $0x124] sm:$0xff]  }
 0x654   : > { %8616 = vmatmul.msk.bf16.gmra.mxu1 %vm680_vm2, %v10921_v15 }
 0x655   : > { %7949 = vst.msk [vmem:[%s12646_s16 + $0xa8] sm:$0xf] %vm7906_vm3, %v7837_v4  ;;  %v7501_v40 = vadd.f32 %v7286_v45, %v6870_v8  ;;  %8893 = vmatmul.msk.bf16.gmra.mxu2 %vm680_vm2, %v9121_v17  ;;  %8950 = vmatmul.msk.bf16.gmra.mxu3 %vm680_vm2, %v6319_v58  ;;  %v9123_v8 = vld [vmem:[%s11194_s27 + $0x140] sm:$0xff] }
 0x657   : > { %v7616_v53 = vadd.f32 %v12902_v43, %v7501_v40  ;;  %v6323_v40 = vsel %vm568_vm1, %v6320_v1, %v6322_v34 }
 0x658   : > { %v7289_v37 = vpop.f32.mrf.mxu0  ;;  %v5583_v7 = vpop.f32.mrf.mxu2 }
 0x659   : > { %v7727_v51 = vmax.f32 %v7616_v53, 0.0  ;;  %v5796_v26 = vadd.f32 %v5583_v7, %v4835_v3  ;;  %v6658_v13 = vpop.f32.mrf.mxu3  ;;  %v4624_v9 = vpop.f32.mrf.mxu1 }
 0x65a   : > { %v4836_v18 = vadd.f32 %v4624_v9, %v13773_v14 }
 0x65b   : > { %v7838_v22 = vpack.c.bf16 %v7727_v51, %v7727_v51  ;;  %v6871_v56 = vadd.f32 %v6658_v13, %v5796_v26  ;;  %9007 = vmatmul.msk.bf16.gmra.mxu0 %vm680_vm2, %v11027_v16  ;;  %v11031_v51 = vld [vmem:[%s11194_s27 + $0x144] sm:$0xff]  }
 0x65d   : > { %7950 = vst.msk [vmem:[%s12646_s16 + $0xac] sm:$0xf] %vm7906_vm3, %v7838_v22  ;;  %v7502_v29 = vadd.f32 %v7289_v37, %v6871_v56  ;;  %v13776_v37 = vld [vmem:[#allocation52_spill] sm:$0xff] }
 0x65f   : > { %v7617_v20 = vadd.f32 %v12902_v43, %v7502_v29 }
 0x660   : > { %v7291_v27 = vpop.f32.mrf.mxu0  ;;  %v5585_v59 = vpop.f32.mrf.mxu2 }
 0x661   : > { %v7728_v44 = vmax.f32 %v7617_v20, 0.0  ;;  %v5797_v50 = vadd.f32 %v5585_v59, %v4836_v18  ;;  %v6660_v28 = vpop.f32.mrf.mxu3  ;;  %v4627_v30 = vpop.f32.mrf.mxu1  ;;  %v10469_v20 = vld [vmem:[%s11194_s27 + $0x150] sm:$0xff]   ;;  %v13777_v59 = vld [vmem:[#allocation55_spill] sm:$0xff] }
 0x662   : > { %v4837_v48 = vadd.f32 %v4627_v30, %v13774_v11  ;;  %v6324_v18 = vrot.slane %v10469_v20, 2 }
 0x663   : > { %v7839_v38 = vpack.c.bf16 %v7728_v44, %v7728_v44  ;;  %v6872_v6 = vadd.f32 %v6660_v28, %v5797_v50  ;;  %v10927_v28 = vld [vmem:[%s11194_s27 + $0x12c] sm:$0xff]  }
 0x664   : > { %8617 = vmatmul.msk.bf16.gmra.mxu1 %vm680_vm2, %v10923_v46 }
 0x665   : > { %7951 = vst.msk [vmem:[%s12646_s16 + $0xb0] sm:$0xf] %vm7906_vm3, %v7839_v38  ;;  %v7503_v31 = vadd.f32 %v7291_v27, %v6872_v6  ;;  %8894 = vmatmul.msk.bf16.gmra.mxu2 %vm680_vm2, %v9122_v10  ;;  %8951 = vmatmul.msk.bf16.gmra.mxu3 %vm680_vm2, %v6321_v42  ;;  %v9124_v6 = vld [vmem:[%s11194_s27 + $0x148] sm:$0xff] }
 0x667   : > { %v7618_v60 = vadd.f32 %v12902_v43, %v7503_v31  ;;  %v6325_v31 = vsel %vm568_vm1, %v6322_v34, %v6324_v18 }
 0x668   : > { %v7294_v54 = vpop.f32.mrf.mxu0  ;;  %v5588_v19 = vpop.f32.mrf.mxu2 }
 0x669   : > { %v7729_v36 = vmax.f32 %v7618_v60, 0.0  ;;  %v5798_v49 = vadd.f32 %v5588_v19, %v4837_v48  ;;  %v6663_v32 = vpop.f32.mrf.mxu3  ;;  %v4629_v57 = vpop.f32.mrf.mxu1 }
 0x66a   : > { %v4838_v15 = vadd.f32 %v4629_v57, %v13775_v23 }
 0x66b   : > { %v7840_v35 = vpack.c.bf16 %v7729_v36, %v7729_v36  ;;  %v6873_v25 = vadd.f32 %v6663_v32, %v5798_v49  ;;  %9008 = vmatmul.msk.bf16.gmra.mxu0 %vm680_vm2, %v11029_v2  ;;  %v11033_v36 = vld [vmem:[%s11194_s27 + $0x14c] sm:$0xff]  }
 0x66d   : > { %7952 = vst.msk [vmem:[%s12646_s16 + $0xb4] sm:$0xf] %vm7906_vm3, %v7840_v35  ;;  %v7504_v39 = vadd.f32 %v7294_v54, %v6873_v25  ;;  %v13778_v54 = vld [vmem:[#allocation58_spill] sm:$0xff] }
 0x66f   : > { %v7619_v45 = vadd.f32 %v12902_v43, %v7504_v39 }
 0x670   : > { %v7296_v61 = vpop.f32.mrf.mxu0  ;;  %v5590_v47 = vpop.f32.mrf.mxu2 }
 0x671   : > { %v7730_v55 = vmax.f32 %v7619_v45, 0.0  ;;  %v5799_v17 = vadd.f32 %v5590_v47, %v4838_v15  ;;  %v6665_v58 = vpop.f32.mrf.mxu3  ;;  %v4632_v4 = vpop.f32.mrf.mxu1  ;;  %v10470_v45 = vld [vmem:[%s11194_s27 + $0x158] sm:$0xff]  }
 0x672   : > { %v4839_v7 = vadd.f32 %v4632_v4, %v13776_v37  ;;  %v6326_v15 = vrot.slane %v10470_v45, 2  ;;  %v13779_v47 = vld [vmem:[#allocation61_spill] sm:$0xff] }
 0x673   : > { %v7841_v53 = vpack.c.bf16 %v7730_v55, %v7730_v55  ;;  %v6874_v5 = vadd.f32 %v6665_v58, %v5799_v17  ;;  %v10929_v58 = vld [vmem:[%s11194_s27 + $0x134] sm:$0xff]  }
 0x674   : > { %8618 = vmatmul.msk.bf16.gmra.mxu1 %vm680_vm2, %v10925_v52 }
 0x675   : > { %7953 = vst.msk [vmem:[%s12646_s16 + $0xb8] sm:$0xf] %vm7906_vm3, %v7841_v53  ;;  %v7505_v3 = vadd.f32 %v7296_v61, %v6874_v5  ;;  %8895 = vmatmul.msk.bf16.gmra.mxu2 %vm680_vm2, %v9123_v8  ;;  %8952 = vmatmul.msk.bf16.gmra.mxu3 %vm680_vm2, %v6323_v40  ;;  %v9125_v5 = vld [vmem:[%s11194_s27 + $0x150] sm:$0xff] }
 0x677   : > { %v7620_v16 = vadd.f32 %v12902_v43, %v7505_v3  ;;  %v6327_v3 = vsel %vm568_vm1, %v6324_v18, %v6326_v15 }
 0x678   : > { %v7299_v26 = vpop.f32.mrf.mxu0  ;;  %v5593_v13 = vpop.f32.mrf.mxu2 }
 0x679   : > { %v7731_v9 = vmax.f32 %v7620_v16, 0.0  ;;  %v5800_v22 = vadd.f32 %v5593_v13, %v4839_v7  ;;  %v6668_v56 = vpop.f32.mrf.mxu3  ;;  %v4634_v12 = vpop.f32.mrf.mxu1 }
 0x67a   : > { %v4840_v46 = vadd.f32 %v4634_v12, %v13777_v59 }
 0x67b   : > { %v7842_v29 = vpack.c.bf16 %v7731_v9, %v7731_v9  ;;  %v6875_v1 = vadd.f32 %v6668_v56, %v5800_v22  ;;  %9009 = vmatmul.msk.bf16.gmra.mxu0 %vm680_vm2, %v11031_v51  ;;  %v11035_v9 = vld [vmem:[%s11194_s27 + $0x154] sm:$0xff]  }
 0x67d   : > { %7954 = vst.msk [vmem:[%s12646_s16 + $0xbc] sm:$0xf] %vm7906_vm3, %v7842_v29  ;;  %v7506_v14 = vadd.f32 %v7299_v26, %v6875_v1  ;;  %v13780_v26 = vld [vmem:[#allocation64_spill] sm:$0xff] }
 0x67f   : > { %v7621_v27 = vadd.f32 %v12902_v43, %v7506_v14 }
 0x680   : > { %v7301_v44 = vpop.f32.mrf.mxu0  ;;  %v5595_v50 = vpop.f32.mrf.mxu2 }
 0x681   : > { %v7732_v30 = vmax.f32 %v7621_v27, 0.0  ;;  %v5801_v10 = vadd.f32 %v5595_v50, %v4840_v46  ;;  %v6670_v42 = vpop.f32.mrf.mxu3  ;;  %v4637_v38 = vpop.f32.mrf.mxu1  ;;  %v10471_v27 = vld [vmem:[%s11194_s27 + $0x160] sm:$0xff]   ;;  %v13781_v50 = vld [vmem:[#allocation67_spill] sm:$0xff] }
 0x682   : > { %v4841_v19 = vadd.f32 %v4637_v38, %v13778_v54  ;;  %v6328_v46 = vrot.slane %v10471_v27, 2 }
 0x683   : > { %v7843_v60 = vpack.c.bf16 %v7732_v30, %v7732_v30  ;;  %v6876_v11 = vadd.f32 %v6670_v42, %v5801_v10  ;;  %v10931_v42 = vld [vmem:[%s11194_s27 + $0x13c] sm:$0xff]  }
 0x684   : > { %8619 = vmatmul.msk.bf16.gmra.mxu1 %vm680_vm2, %v10927_v28 }
 0x685   : > { %7955 = vst.msk [vmem:[%s12646_s16 + $0xc0] sm:$0xf] %vm7906_vm3, %v7843_v60  ;;  %v7507_v48 = vadd.f32 %v7301_v44, %v6876_v11  ;;  %8896 = vmatmul.msk.bf16.gmra.mxu2 %vm680_vm2, %v9124_v6  ;;  %8953 = vmatmul.msk.bf16.gmra.mxu3 %vm680_vm2, %v6325_v31  ;;  %v9126_v11 = vld [vmem:[%s11194_s27 + $0x158] sm:$0xff] }
 0x687   : > { %v7622_v2 = vadd.f32 %v12902_v43, %v7507_v48  ;;  %v6329_v48 = vsel %vm568_vm1, %v6326_v15, %v6328_v46 }
 0x688   : > { %v7304_v49 = vpop.f32.mrf.mxu0  ;;  %v5598_v32 = vpop.f32.mrf.mxu2 }
 0x689   : > { %v7733_v57 = vmax.f32 %v7622_v2, 0.0  ;;  %v5802_v35 = vadd.f32 %v5598_v32, %v4841_v19  ;;  %v6673_v25 = vpop.f32.mrf.mxu3  ;;  %v4639_v0 = vpop.f32.mrf.mxu1 }
 0x68a   : > { %v4842_v52 = vadd.f32 %v4639_v0, %v13779_v47 }
 0x68b   : > { %v7844_v39 = vpack.c.bf16 %v7733_v57, %v7733_v57  ;;  %v6877_v34 = vadd.f32 %v6673_v25, %v5802_v35  ;;  %9010 = vmatmul.msk.bf16.gmra.mxu0 %vm680_vm2, %v11033_v36  ;;  %v11037_v57 = vld [vmem:[%s11194_s27 + $0x15c] sm:$0xff]  }
 0x68d   : > { %7956 = vst.msk [vmem:[%s12646_s16 + $0xc4] sm:$0xf] %vm7906_vm3, %v7844_v39  ;;  %v7508_v23 = vadd.f32 %v7304_v49, %v6877_v34  ;;  %v13782_v49 = vld [vmem:[#allocation70_spill] sm:$0xff] }
 0x68f   : > { %v7623_v61 = vadd.f32 %v12902_v43, %v7508_v23 }
 0x690   : > { %v7306_v55 = vpop.f32.mrf.mxu0  ;;  %v5600_v17 = vpop.f32.mrf.mxu2 }
 0x691   : > { %v7734_v4 = vmax.f32 %v7623_v61, 0.0  ;;  %v5803_v8 = vadd.f32 %v5600_v17, %v4842_v52  ;;  %v6675_v40 = vpop.f32.mrf.mxu3  ;;  %v4642_v53 = vpop.f32.mrf.mxu1  ;;  %v10472_v61 = vld [vmem:[%s11194_s27 + $0x168] sm:$0xff]   ;;  %v13783_v17 = vld [vmem:[#allocation73_spill] sm:$0xff] }
 0x692   : > { %v4843_v13 = vadd.f32 %v4642_v53, %v13780_v26  ;;  %v6330_v52 = vrot.slane %v10472_v61, 2 }
 0x693   : > { %v7845_v16 = vpack.c.bf16 %v7734_v4, %v7734_v4  ;;  %v6878_v37 = vadd.f32 %v6675_v40, %v5803_v8  ;;  %v10933_v40 = vld [vmem:[%s11194_s27 + $0x144] sm:$0xff]  }
 0x694   : > { %8620 = vmatmul.msk.bf16.gmra.mxu1 %vm680_vm2, %v10929_v58 }
 0x695   : > { %7957 = vst.msk [vmem:[%s12646_s16 + $0xc8] sm:$0xf] %vm7906_vm3, %v7845_v16  ;;  %v7509_v7 = vadd.f32 %v7306_v55, %v6878_v37  ;;  %8897 = vmatmul.msk.bf16.gmra.mxu2 %vm680_vm2, %v9125_v5  ;;  %8954 = vmatmul.msk.bf16.gmra.mxu3 %vm680_vm2, %v6327_v3  ;;  %v9127_v37 = vld [vmem:[%s11194_s27 + $0x160] sm:$0xff] }
 0x697   : > { %v7624_v51 = vadd.f32 %v12902_v43, %v7509_v7  ;;  %v6331_v7 = vsel %vm568_vm1, %v6328_v46, %v6330_v52 }
 0x698   : > { %v7309_v22 = vpop.f32.mrf.mxu0  ;;  %v5603_v56 = vpop.f32.mrf.mxu2 }
 0x699   : > { %v7735_v12 = vmax.f32 %v7624_v51, 0.0  ;;  %v5804_v29 = vadd.f32 %v5603_v56, %v4843_v13  ;;  %v6678_v1 = vpop.f32.mrf.mxu3  ;;  %v4644_v20 = vpop.f32.mrf.mxu1 }
 0x69a   : > { %v4844_v28 = vadd.f32 %v4644_v20, %v13781_v50 }
 0x69b   : > { %v7846_v14 = vpack.c.bf16 %v7735_v12, %v7735_v12  ;;  %v6879_v18 = vadd.f32 %v6678_v1, %v5804_v29  ;;  %9011 = vmatmul.msk.bf16.gmra.mxu0 %vm680_vm2, %v11035_v9  ;;  %v11039_v12 = vld [vmem:[%s11194_s27 + $0x164] sm:$0xff]  }
 0x69d   : > { %7958 = vst.msk [vmem:[%s12646_s16 + $0xcc] sm:$0xf] %vm7906_vm3, %v7846_v14  ;;  %v7510_v59 = vadd.f32 %v7309_v22, %v6879_v18  ;;  %v13784_v22 = vld [vmem:[#allocation2_spill] sm:$0xff] }
 0x69f   : > { %v7625_v44 = vadd.f32 %v12902_v43, %v7510_v59 }
 0x6a0   : > { %v7311_v30 = vpop.f32.mrf.mxu0  ;;  %v5605_v10 = vpop.f32.mrf.mxu2 }
 0x6a1   : > { %v7736_v38 = vmax.f32 %v7625_v44, 0.0  ;;  %v5805_v6 = vadd.f32 %v5605_v10, %v4844_v28  ;;  %v6680_v31 = vpop.f32.mrf.mxu3  ;;  %v4647_v60 = vpop.f32.mrf.mxu1  ;;  %v10473_v44 = vld [vmem:[%s11194_s27 + $0x170] sm:$0xff]  }
 0x6a2   : > { %v4845_v32 = vadd.f32 %v4647_v60, %v13782_v49  ;;  %v6332_v28 = vrot.slane %v10473_v44, 2  ;;  %v13785_v10 = vld [vmem:[#allocation4_spill] sm:$0xff] }
 0x6a3   : > { %v7847_v2 = vpack.c.bf16 %v7736_v38, %v7736_v38  ;;  %v6880_v54 = vadd.f32 %v6680_v31, %v5805_v6  ;;  %v10935_v31 = vld [vmem:[%s11194_s27 + $0x14c] sm:$0xff]  }
 0x6a4   : > { %8621 = vmatmul.msk.bf16.gmra.mxu1 %vm680_vm2, %v10931_v42 }
 0x6a5   : > { %7959 = vst.msk [vmem:[%s12646_s16 + $0xd0] sm:$0xf] %vm7906_vm3, %v7847_v2  ;;  %v7511_v19 = vadd.f32 %v7311_v30, %v6880_v54  ;;  %8898 = vmatmul.msk.bf16.gmra.mxu2 %vm680_vm2, %v9126_v11  ;;  %8955 = vmatmul.msk.bf16.gmra.mxu3 %vm680_vm2, %v6329_v48  ;;  %v9128_v54 = vld [vmem:[%s11194_s27 + $0x168] sm:$0xff] }
 0x6a7   : > { %v7626_v36 = vadd.f32 %v12902_v43, %v7511_v19  ;;  %v6333_v19 = vsel %vm568_vm1, %v6330_v52, %v6332_v28 }
 0x6a8   : > { %v7314_v35 = vpop.f32.mrf.mxu0  ;;  %v5608_v25 = vpop.f32.mrf.mxu2 }
 0x6a9   : > { %v7737_v0 = vmax.f32 %v7626_v36, 0.0  ;;  %v5806_v39 = vadd.f32 %v5608_v25, %v4845_v32  ;;  %v6683_v34 = vpop.f32.mrf.mxu3  ;;  %v4649_v45 = vpop.f32.mrf.mxu1 }
 0x6aa   : > { %v4846_v58 = vadd.f32 %v4649_v45, %v13783_v17 }
 0x6ab   : > { %v7848_v23 = vpack.c.bf16 %v7737_v0, %v7737_v0  ;;  %v6881_v15 = vadd.f32 %v6683_v34, %v5806_v39  ;;  %9012 = vmatmul.msk.bf16.gmra.mxu0 %vm680_vm2, %v11037_v57  ;;  %v11041_v0 = vld [vmem:[%s11194_s27 + $0x16c] sm:$0xff]  }
 0x6ad   : > { %7960 = vst.msk [vmem:[%s12646_s16 + $0xd4] sm:$0xf] %vm7906_vm3, %v7848_v23  ;;  %v7512_v47 = vadd.f32 %v7314_v35, %v6881_v15  ;;  %v13786_v35 = vld [vmem:[#allocation6_spill] sm:$0xff] }
 0x6af   : > { %v7627_v55 = vadd.f32 %v12902_v43, %v7512_v47 }
 0x6b0   : > { %v7316_v4 = vpop.f32.mrf.mxu0  ;;  %v5610_v8 = vpop.f32.mrf.mxu2 }
 0x6b1   : > { %v7738_v53 = vmax.f32 %v7627_v55, 0.0  ;;  %v5807_v5 = vadd.f32 %v5610_v8, %v4846_v58  ;;  %v6685_v3 = vpop.f32.mrf.mxu3  ;;  %v4652_v16 = vpop.f32.mrf.mxu1  ;;  %v10474_v55 = vld [vmem:[%s11194_s27 + $0x178] sm:$0xff]   ;;  %v13787_v8 = vld [vmem:[#allocation8_spill] sm:$0xff] }
 0x6b2   : > { %v4847_v56 = vadd.f32 %v4652_v16, %v13784_v22  ;;  %v6334_v58 = vrot.slane %v10474_v55, 2 }
 0x6b3   : > { %v7849_v51 = vpack.c.bf16 %v7738_v53, %v7738_v53  ;;  %v6882_v26 = vadd.f32 %v6685_v3, %v5807_v5  ;;  %v10937_v3 = vld [vmem:[%s11194_s27 + $0x154] sm:$0xff]  }
 0x6b4   : > { %8622 = vmatmul.msk.bf16.gmra.mxu1 %vm680_vm2, %v10933_v40 }
 0x6b5   : > { %7961 = vst.msk [vmem:[%s12646_s16 + $0xd8] sm:$0xf] %vm7906_vm3, %v7849_v51  ;;  %v7513_v13 = vadd.f32 %v7316_v4, %v6882_v26  ;;  %8899 = vmatmul.msk.bf16.gmra.mxu2 %vm680_vm2, %v9127_v37  ;;  %8956 = vmatmul.msk.bf16.gmra.mxu3 %vm680_vm2, %v6331_v7  ;;  %v9129_v26 = vld [vmem:[%s11194_s27 + $0x170] sm:$0xff] }
 0x6b7   : > { %v7628_v9 = vadd.f32 %v12902_v43, %v7513_v13  ;;  %v6335_v13 = vsel %vm568_vm1, %v6332_v28, %v6334_v58 }
 0x6b8   : > { %v7319_v29 = vpop.f32.mrf.mxu0  ;;  %v5613_v1 = vpop.f32.mrf.mxu2 }
 0x6b9   : > { %v7739_v20 = vmax.f32 %v7628_v9, 0.0  ;;  %v5808_v14 = vadd.f32 %v5613_v1, %v4847_v56  ;;  %v6688_v18 = vpop.f32.mrf.mxu3  ;;  %v4654_v27 = vpop.f32.mrf.mxu1 }
 0x6ba   : > { %v4848_v42 = vadd.f32 %v4654_v27, %v13785_v10 }
 0x6bb   : > { %v7850_v59 = vpack.c.bf16 %v7739_v20, %v7739_v20  ;;  %v6883_v46 = vadd.f32 %v6688_v18, %v5808_v14  ;;  %9013 = vmatmul.msk.bf16.gmra.mxu0 %vm680_vm2, %v11039_v12  ;;  %v11043_v20 = vld [vmem:[%s11194_s27 + $0x174] sm:$0xff]  }
 0x6bd   : > { %7962 = vst.msk [vmem:[%s12646_s16 + $0xdc] sm:$0xf] %vm7906_vm3, %v7850_v59  ;;  %v7514_v50 = vadd.f32 %v7319_v29, %v6883_v46  ;;  %v13788_v29 = vld [vmem:[#allocation10_spill] sm:$0xff] }
 0x6bf   : > { %v7629_v30 = vadd.f32 %v12902_v43, %v7514_v50 }
 0x6c0   : > { %v7321_v38 = vpop.f32.mrf.mxu0  ;;  %v5615_v6 = vpop.f32.mrf.mxu2 }
 0x6c1   : > { %v7740_v60 = vmax.f32 %v7629_v30, 0.0  ;;  %v5809_v11 = vadd.f32 %v5615_v6, %v4848_v42  ;;  %v6690_v48 = vpop.f32.mrf.mxu3  ;;  %v4657_v2 = vpop.f32.mrf.mxu1  ;;  %v10475_v30 = vld [vmem:[%s11194_s27 + $0x180] sm:$0xff]   ;;  %v13789_v6 = vld [vmem:[#allocation12_spill] sm:$0xff] }
 0x6c2   : > { %v4849_v25 = vadd.f32 %v4657_v2, %v13786_v35  ;;  %v6336_v42 = vrot.slane %v10475_v30, 2 }
 0x6c3   : > { %v7851_v36 = vpack.c.bf16 %v7740_v60, %v7740_v60  ;;  %v6884_v49 = vadd.f32 %v6690_v48, %v5809_v11  ;;  %v10939_v48 = vld [vmem:[%s11194_s27 + $0x15c] sm:$0xff]  }
 0x6c4   : > { %8623 = vmatmul.msk.bf16.gmra.mxu1 %vm680_vm2, %v10935_v31 }
 0x6c5   : > { %7963 = vst.msk [vmem:[%s12646_s16 + $0xe0] sm:$0xf] %vm7906_vm3, %v7851_v36  ;;  %v7515_v32 = vadd.f32 %v7321_v38, %v6884_v49  ;;  %8900 = vmatmul.msk.bf16.gmra.mxu2 %vm680_vm2, %v9128_v54  ;;  %8957 = vmatmul.msk.bf16.gmra.mxu3 %vm680_vm2, %v6333_v19  ;;  %v9130_v49 = vld [vmem:[%s11194_s27 + $0x178] sm:$0xff] }
 0x6c7   : > { %v7630_v57 = vadd.f32 %v12902_v43, %v7515_v32  ;;  %v6337_v32 = vsel %vm568_vm1, %v6334_v58, %v6336_v42 }
 0x6c8   : > { %v7324_v39 = vpop.f32.mrf.mxu0  ;;  %v5618_v34 = vpop.f32.mrf.mxu2 }
 0x6c9   : > { %v7741_v45 = vmax.f32 %v7630_v57, 0.0  ;;  %v5810_v23 = vadd.f32 %v5618_v34, %v4849_v25  ;;  %v6693_v15 = vpop.f32.mrf.mxu3  ;;  %v4659_v61 = vpop.f32.mrf.mxu1  ;;  %v13172_v25 = vld [vmem:[%s13539_s2] ss:$0 sm:$0xff] }
 0x6ca   : > { %v4850_v40 = vadd.f32 %v4659_v61, %v13787_v8 }
 0x6cb   : > { %v7852_v47 = vpack.c.bf16 %v7741_v45, %v7741_v45  ;;  %v6885_v52 = vadd.f32 %v6693_v15, %v5810_v23  ;;  %9014 = vmatmul.msk.bf16.gmra.mxu0 %vm680_vm2, %v11041_v0  ;;  %v11045_v45 = vld [vmem:[%s11194_s27 + $0x17c] sm:$0xff]  }
 0x6cd   : > { %7964 = vst.msk [vmem:[%s12646_s16 + $0xe4] sm:$0xf] %vm7906_vm3, %v7852_v47  ;;  %v7516_v17 = vadd.f32 %v7324_v39, %v6885_v52  ;;  %v13790_v39 = vld [vmem:[#allocation15_spill] sm:$0xff] }
 0x6cf   : > { %v7631_v4 = vadd.f32 %v12902_v43, %v7516_v17 }
 0x6d0   : > { %v7326_v53 = vpop.f32.mrf.mxu0  ;;  %v5620_v5 = vpop.f32.mrf.mxu2 }
 0x6d1   : > { %v7742_v16 = vmax.f32 %v7631_v4, 0.0  ;;  %v5811_v37 = vadd.f32 %v5620_v5, %v4850_v40  ;;  %v6695_v7 = vpop.f32.mrf.mxu3  ;;  %v4662_v51 = vpop.f32.mrf.mxu1  ;;  %v10476_v4 = vld [vmem:[%s11194_s27 + $0x188] sm:$0xff]   ;;  %v13791_v5 = vld [vmem:[#allocation17_spill] sm:$0xff] }
 0x6d2   : > { %v4851_v1 = vadd.f32 %v4662_v51, %v13788_v29  ;;  %v6338_v40 = vrot.slane %v10476_v4, 2 }
 0x6d3   : > { %v7853_v9 = vpack.c.bf16 %v7742_v16, %v7742_v16  ;;  %v6886_v22 = vadd.f32 %v6695_v7, %v5811_v37  ;;  %v10941_v7 = vld [vmem:[%s11194_s27 + $0x164] sm:$0xff]  }
 0x6d4   : > { %8624 = vmatmul.msk.bf16.gmra.mxu1 %vm680_vm2, %v10937_v3 }
 0x6d5   : > { %7965 = vst.msk [vmem:[%s12646_s16 + $0xe8] sm:$0xf] %vm7906_vm3, %v7853_v9  ;;  %v7517_v56 = vadd.f32 %v7326_v53, %v6886_v22  ;;  %8901 = vmatmul.msk.bf16.gmra.mxu2 %vm680_vm2, %v9129_v26  ;;  %8958 = vmatmul.msk.bf16.gmra.mxu3 %vm680_vm2, %v6335_v13  ;;  %v9131_v22 = vld [vmem:[%s11194_s27 + $0x180] sm:$0xff] }
 0x6d7   : > { %v7632_v12 = vadd.f32 %v12902_v43, %v7517_v56  ;;  %v6339_v56 = vsel %vm568_vm1, %v6336_v42, %v6338_v40 }
 0x6d8   : > { %v7329_v14 = vpop.f32.mrf.mxu0  ;;  %v5623_v18 = vpop.f32.mrf.mxu2 }
 0x6d9   : > { %v7743_v27 = vmax.f32 %v7632_v12, 0.0  ;;  %v5812_v59 = vadd.f32 %v5623_v18, %v4851_v1  ;;  %v6698_v46 = vpop.f32.mrf.mxu3  ;;  %v4664_v44 = vpop.f32.mrf.mxu1 }
 0x6da   : > { %v4852_v31 = vadd.f32 %v4664_v44, %v13789_v6 }
 0x6db   : > { %v7854_v50 = vpack.c.bf16 %v7743_v27, %v7743_v27  ;;  %v6887_v28 = vadd.f32 %v6698_v46, %v5812_v59  ;;  %9015 = vmatmul.msk.bf16.gmra.mxu0 %vm680_vm2, %v11043_v20  ;;  %v11047_v27 = vld [vmem:[%s11194_s27 + $0x184] sm:$0xff]  }
 0x6dd   : > { %7966 = vst.msk [vmem:[%s12646_s16 + $0xec] sm:$0xf] %vm7906_vm3, %v7854_v50  ;;  %v7518_v10 = vadd.f32 %v7329_v14, %v6887_v28  ;;  %v13792_v14 = vld [vmem:[#allocation19_spill] sm:$0xff] }
 0x6df   : > { %v7633_v38 = vadd.f32 %v12902_v43, %v7518_v10 }
 0x6e0   : > { %v7331_v60 = vpop.f32.mrf.mxu0  ;;  %v5625_v11 = vpop.f32.mrf.mxu2 }
 0x6e1   : > { %v7744_v2 = vmax.f32 %v7633_v38, 0.0  ;;  %v5813_v54 = vadd.f32 %v5625_v11, %v4852_v31  ;;  %v6700_v19 = vpop.f32.mrf.mxu3  ;;  %v4667_v36 = vpop.f32.mrf.mxu1  ;;  %v10477_v38 = vld [vmem:[%s11194_s27 + $0x190] sm:$0xff]   ;;  %v13793_v11 = vld [vmem:[#allocation21_spill] sm:$0xff] }
 0x6e2   : > { %v4853_v34 = vadd.f32 %v4667_v36, %v13790_v39  ;;  %v6340_v31 = vrot.slane %v10477_v38, 2 }
 0x6e3   : > { %v7855_v57 = vpack.c.bf16 %v7744_v2, %v7744_v2  ;;  %v6888_v35 = vadd.f32 %v6700_v19, %v5813_v54  ;;  %v10943_v19 = vld [vmem:[%s11194_s27 + $0x16c] sm:$0xff]  }
 0x6e4   : > { %8625 = vmatmul.msk.bf16.gmra.mxu1 %vm680_vm2, %v10939_v48 }
 0x6e5   : > { %7967 = vst.msk [vmem:[%s12646_s16 + $0xf0] sm:$0xf] %vm7906_vm3, %v7855_v57  ;;  %v7519_v43 = vadd.f32 %v7331_v60, %v6888_v35  ;;  %8902 = vmatmul.msk.bf16.gmra.mxu2 %vm680_vm2, %v9130_v49  ;;  %8959 = vmatmul.msk.bf16.gmra.mxu3 %vm680_vm2, %v6337_v32  ;;  %v9132_v35 = vld [vmem:[%s11194_s27 + $0x188] sm:$0xff] }
 0x6e7   : > { %v7634_v0 = vadd.f32 %v13172_v25, %v7519_v43  ;;  %v6341_v43 = vsel %vm568_vm1, %v6338_v40, %v6340_v31 }
 0x6e8   : > { %v7334_v23 = vpop.f32.mrf.mxu0  ;;  %v5628_v15 = vpop.f32.mrf.mxu2 }
 0x6e9   : > { %v7745_v61 = vmax.f32 %v7634_v0, 0.0  ;;  %v5814_v47 = vadd.f32 %v5628_v15, %v4853_v34  ;;  %v6703_v52 = vpop.f32.mrf.mxu3  ;;  %v4669_v55 = vpop.f32.mrf.mxu1 }
 0x6ea   : > { %v4854_v3 = vadd.f32 %v4669_v55, %v13791_v5 }
 0x6eb   : > { %v7856_v17 = vpack.c.bf16 %v7745_v61, %v7745_v61  ;;  %v6889_v58 = vadd.f32 %v6703_v52, %v5814_v47  ;;  %9016 = vmatmul.msk.bf16.gmra.mxu0 %vm680_vm2, %v11045_v45  ;;  %v11049_v61 = vld [vmem:[%s11194_s27 + $0x18c] sm:$0xff]  }
 0x6ed   : > { %7968 = vst.msk [vmem:[%s12646_s16 + $0xf4] sm:$0xf] %vm7906_vm3, %v7856_v17  ;;  %v7520_v8 = vadd.f32 %v7334_v23, %v6889_v58  ;;  %v13794_v23 = vld [vmem:[#allocation23_spill] sm:$0xff] }
 0x6ef   : > { %v7635_v53 = vadd.f32 %v13172_v25, %v7520_v8 }
 0x6f0   : > { %v7336_v16 = vpop.f32.mrf.mxu0  ;;  %v5630_v37 = vpop.f32.mrf.mxu2 }
 0x6f1   : > { %v7746_v51 = vmax.f32 %v7635_v53, 0.0  ;;  %v5815_v26 = vadd.f32 %v5630_v37, %v4854_v3  ;;  %v6705_v13 = vpop.f32.mrf.mxu3  ;;  %v4672_v9 = vpop.f32.mrf.mxu1  ;;  %v10478_v53 = vld [vmem:[%s11194_s27 + $0x198] sm:$0xff]   ;;  %v13795_v37 = vld [vmem:[#allocation26_spill] sm:$0xff] }
 0x6f2   : > { %v4855_v18 = vadd.f32 %v4672_v9, %v13792_v14  ;;  %v6342_v3 = vrot.slane %v10478_v53, 2 }
 0x6f3   : > { %v7857_v12 = vpack.c.bf16 %v7746_v51, %v7746_v51  ;;  %v6890_v29 = vadd.f32 %v6705_v13, %v5815_v26  ;;  %v10945_v13 = vld [vmem:[%s11194_s27 + $0x174] sm:$0xff]  }
 0x6f4   : > { %8626 = vmatmul.msk.bf16.gmra.mxu1 %vm680_vm2, %v10941_v7 }
 0x6f5   : > { %7969 = vst.msk [vmem:[%s12646_s16 + $0xf8] sm:$0xf] %vm7906_vm3, %v7857_v12  ;;  %v7521_v1 = vadd.f32 %v7336_v16, %v6890_v29  ;;  %8903 = vmatmul.msk.bf16.gmra.mxu2 %vm680_vm2, %v9131_v22  ;;  %8960 = vmatmul.msk.bf16.gmra.mxu3 %vm680_vm2, %v6339_v56  ;;  %v9133_v29 = vld [vmem:[%s11194_s27 + $0x190] sm:$0xff] }
 0x6f7   : > { %v7636_v20 = vadd.f32 %v13172_v25, %v7521_v1  ;;  %v6343_v1 = vsel %vm568_vm1, %v6340_v31, %v6342_v3 }
 0x6f8   : > { %v7339_v59 = vpop.f32.mrf.mxu0  ;;  %v5633_v46 = vpop.f32.mrf.mxu2 }
 0x6f9   : > { %v7747_v44 = vmax.f32 %v7636_v20, 0.0  ;;  %v5816_v50 = vadd.f32 %v5633_v46, %v4855_v18  ;;  %v6708_v28 = vpop.f32.mrf.mxu3  ;;  %v4674_v30 = vpop.f32.mrf.mxu1 }
 0x6fa   : > { %v4856_v48 = vadd.f32 %v4674_v30, %v13793_v11 }
 0x6fb   : > { %v7858_v10 = vpack.c.bf16 %v7747_v44, %v7747_v44  ;;  %v6891_v42 = vadd.f32 %v6708_v28, %v5816_v50  ;;  %9017 = vmatmul.msk.bf16.gmra.mxu0 %vm680_vm2, %v11047_v27  ;;  %v11051_v44 = vld [vmem:[%s11194_s27 + $0x194] sm:$0xff]  }
 0x6fd   : > { %7970 = vst.msk [vmem:[%s12646_s16 + $0xfc] sm:$0xf] %vm7906_vm3, %v7858_v10  ;;  %v7522_v6 = vadd.f32 %v7339_v59, %v6891_v42  ;;  %v13796_v59 = vld [vmem:[#allocation29_spill] sm:$0xff] }
 0x6ff   : > { %v7637_v60 = vadd.f32 %v13172_v25, %v7522_v6 }
 0x700   : > { %v7341_v2 = vpop.f32.mrf.mxu0  ;;  %v5635_v54 = vpop.f32.mrf.mxu2 }
 0x701   : > { %v7748_v36 = vmax.f32 %v7637_v60, 0.0  ;;  %v5817_v49 = vadd.f32 %v5635_v54, %v4856_v48  ;;  %v6710_v32 = vpop.f32.mrf.mxu3  ;;  %v4677_v57 = vpop.f32.mrf.mxu1  ;;  %v10479_v60 = vld [vmem:[%s11194_s27 + $0x1a0] sm:$0xff]   ;;  %v13797_v54 = vld [vmem:[#allocation32_spill] sm:$0xff] }
 0x702   : > { %v4857_v15 = vadd.f32 %v4677_v57, %v13794_v23  ;;  %v6344_v48 = vrot.slane %v10479_v60, 2 }
 0x703   : > { %v7859_v0 = vpack.c.bf16 %v7748_v36, %v7748_v36  ;;  %v6892_v39 = vadd.f32 %v6710_v32, %v5817_v49  ;;  %v10947_v32 = vld [vmem:[%s11194_s27 + $0x17c] sm:$0xff]  }
 0x704   : > { %8627 = vmatmul.msk.bf16.gmra.mxu1 %vm680_vm2, %v10943_v19 }
 0x705   : > { %7971 = vst.msk [vmem:[%s12646_s16 + $0x100] sm:$0xf] %vm7906_vm3, %v7859_v0  ;;  %v7523_v34 = vadd.f32 %v7341_v2, %v6892_v39  ;;  %8904 = vmatmul.msk.bf16.gmra.mxu2 %vm680_vm2, %v9132_v35  ;;  %8961 = vmatmul.msk.bf16.gmra.mxu3 %vm680_vm2, %v6341_v43  ;;  %v9134_v39 = vld [vmem:[%s11194_s27 + $0x198] sm:$0xff] }
 0x707   : > { %v7638_v45 = vadd.f32 %v13172_v25, %v7523_v34  ;;  %v6345_v34 = vsel %vm568_vm1, %v6342_v3, %v6344_v48 }
 0x708   : > { %v7344_v47 = vpop.f32.mrf.mxu0  ;;  %v5638_v52 = vpop.f32.mrf.mxu2 }
 0x709   : > { %v7749_v55 = vmax.f32 %v7638_v45, 0.0  ;;  %v5818_v17 = vadd.f32 %v5638_v52, %v4857_v15  ;;  %v6713_v58 = vpop.f32.mrf.mxu3  ;;  %v4679_v4 = vpop.f32.mrf.mxu1 }
 0x70a   : > { %v4858_v7 = vadd.f32 %v4679_v4, %v13795_v37 }
 0x70b   : > { %v7860_v8 = vpack.c.bf16 %v7749_v55, %v7749_v55  ;;  %v6893_v40 = vadd.f32 %v6713_v58, %v5818_v17  ;;  %9018 = vmatmul.msk.bf16.gmra.mxu0 %vm680_vm2, %v11049_v61  ;;  %v11053_v55 = vld [vmem:[%s11194_s27 + $0x19c] sm:$0xff]  }
 0x70d   : > { %7972 = vst.msk [vmem:[%s12646_s16 + $0x104] sm:$0xf] %vm7906_vm3, %v7860_v8  ;;  %v7524_v5 = vadd.f32 %v7344_v47, %v6893_v40  ;;  %v13798_v47 = vld [vmem:[#allocation35_spill] sm:$0xff] }
 0x70f   : > { %v7639_v16 = vadd.f32 %v13172_v25, %v7524_v5 }
 0x710   : > { %v7346_v51 = vpop.f32.mrf.mxu0  ;;  %v5640_v26 = vpop.f32.mrf.mxu2 }
 0x711   : > { %v7750_v9 = vmax.f32 %v7639_v16, 0.0  ;;  %v5819_v22 = vadd.f32 %v5640_v26, %v4858_v7  ;;  %v6715_v56 = vpop.f32.mrf.mxu3  ;;  %v4682_v12 = vpop.f32.mrf.mxu1  ;;  %v10480_v16 = vld [vmem:[%s11194_s27 + $0x1a8] sm:$0xff]   ;;  %v13799_v26 = vld [vmem:[#allocation38_spill] sm:$0xff] }
 0x712   : > { %v4859_v46 = vadd.f32 %v4682_v12, %v13796_v59  ;;  %v6346_v7 = vrot.slane %v10480_v16, 2 }
 0x713   : > { %v7861_v20 = vpack.c.bf16 %v7750_v9, %v7750_v9  ;;  %v6894_v14 = vadd.f32 %v6715_v56, %v5819_v22  ;;  %v10949_v56 = vld [vmem:[%s11194_s27 + $0x184] sm:$0xff]  }
 0x714   : > { %8628 = vmatmul.msk.bf16.gmra.mxu1 %vm680_vm2, %v10945_v13 }
 0x715   : > { %7973 = vst.msk [vmem:[%s12646_s16 + $0x108] sm:$0xf] %vm7906_vm3, %v7861_v20  ;;  %v7525_v18 = vadd.f32 %v7346_v51, %v6894_v14  ;;  %8905 = vmatmul.msk.bf16.gmra.mxu2 %vm680_vm2, %v9133_v29  ;;  %8962 = vmatmul.msk.bf16.gmra.mxu3 %vm680_vm2, %v6343_v1  ;;  %v9135_v14 = vld [vmem:[%s11194_s27 + $0x1a0] sm:$0xff] }
 0x717   : > { %v7640_v27 = vadd.f32 %v13172_v25, %v7525_v18  ;;  %v6347_v18 = vsel %vm568_vm1, %v6344_v48, %v6346_v7 }
 0x718   : > { %v7349_v50 = vpop.f32.mrf.mxu0  ;;  %v5643_v28 = vpop.f32.mrf.mxu2 }
 0x719   : > { %v7751_v30 = vmax.f32 %v7640_v27, 0.0  ;;  %v5820_v10 = vadd.f32 %v5643_v28, %v4859_v46  ;;  %v6718_v42 = vpop.f32.mrf.mxu3  ;;  %v4684_v38 = vpop.f32.mrf.mxu1 }
 0x71a   : > { %v4860_v19 = vadd.f32 %v4684_v38, %v13797_v54 }
 0x71b   : > { %v7862_v6 = vpack.c.bf16 %v7751_v30, %v7751_v30  ;;  %v6895_v31 = vadd.f32 %v6718_v42, %v5820_v10  ;;  %9019 = vmatmul.msk.bf16.gmra.mxu0 %vm680_vm2, %v11051_v44  ;;  %v11055_v30 = vld [vmem:[%s11194_s27 + $0x1a4] sm:$0xff]  }
 0x71d   : > { %7974 = vst.msk [vmem:[%s12646_s16 + $0x10c] sm:$0xf] %vm7906_vm3, %v7862_v6  ;;  %v7526_v11 = vadd.f32 %v7349_v50, %v6895_v31  ;;  %v13800_v50 = vld [vmem:[#allocation41_spill] sm:$0xff] }
 0x71f   : > { %v7641_v2 = vadd.f32 %v13172_v25, %v7526_v11 }
 0x720   : > { %v7351_v36 = vpop.f32.mrf.mxu0  ;;  %v5645_v49 = vpop.f32.mrf.mxu2 }
 0x721   : > { %v7752_v57 = vmax.f32 %v7641_v2, 0.0  ;;  %v5821_v35 = vadd.f32 %v5645_v49, %v4860_v19  ;;  %v6720_v43 = vpop.f32.mrf.mxu3  ;;  %v4687_v0 = vpop.f32.mrf.mxu1  ;;  %v10481_v2 = vld [vmem:[%s11194_s27 + $0x1b0] sm:$0xff]  }
 0x722   : > { %v4861_v52 = vadd.f32 %v4687_v0, %v13798_v47  ;;  %v6348_v19 = vrot.slane %v10481_v2, 2  ;;  %v13801_v49 = vld [vmem:[#allocation44_spill] sm:$0xff] }
 0x723   : > { %v7863_v45 = vpack.c.bf16 %v7752_v57, %v7752_v57  ;;  %v6896_v23 = vadd.f32 %v6720_v43, %v5821_v35  ;;  %v10951_v43 = vld [vmem:[%s11194_s27 + $0x18c] sm:$0xff]  }
 0x724   : > { %8629 = vmatmul.msk.bf16.gmra.mxu1 %vm680_vm2, %v10947_v32 }
 0x725   : > { %7975 = vst.msk [vmem:[%s12646_s16 + $0x110] sm:$0xf] %vm7906_vm3, %v7863_v45  ;;  %v7527_v15 = vadd.f32 %v7351_v36, %v6896_v23  ;;  %8906 = vmatmul.msk.bf16.gmra.mxu2 %vm680_vm2, %v9134_v39  ;;  %8963 = vmatmul.msk.bf16.gmra.mxu3 %vm680_vm2, %v6345_v34  ;;  %v9136_v23 = vld [vmem:[%s11194_s27 + $0x1a8] sm:$0xff] }
 0x727   : > { %v7642_v61 = vadd.f32 %v13172_v25, %v7527_v15  ;;  %v6349_v15 = vsel %vm568_vm1, %v6346_v7, %v6348_v19 }
 0x728   : > { %v7354_v17 = vpop.f32.mrf.mxu0  ;;  %v5648_v58 = vpop.f32.mrf.mxu2 }
 0x729   : > { %v7753_v4 = vmax.f32 %v7642_v61, 0.0  ;;  %v5822_v8 = vadd.f32 %v5648_v58, %v4861_v52  ;;  %v6723_v40 = vpop.f32.mrf.mxu3  ;;  %v4689_v53 = vpop.f32.mrf.mxu1 }
 0x72a   : > { %v4862_v13 = vadd.f32 %v4689_v53, %v13799_v26 }
 0x72b   : > { %v7864_v5 = vpack.c.bf16 %v7753_v4, %v7753_v4  ;;  %v6897_v3 = vadd.f32 %v6723_v40, %v5822_v8  ;;  %9020 = vmatmul.msk.bf16.gmra.mxu0 %vm680_vm2, %v11053_v55  ;;  %v11057_v4 = vld [vmem:[%s11194_s27 + $0x1ac] sm:$0xff]  }
 0x72d   : > { %7976 = vst.msk [vmem:[%s12646_s16 + $0x114] sm:$0xf] %vm7906_vm3, %v7864_v5  ;;  %v7528_v37 = vadd.f32 %v7354_v17, %v6897_v3  ;;  %v13802_v17 = vld [vmem:[#allocation47_spill] sm:$0xff] }
 0x72f   : > { %v7643_v51 = vadd.f32 %v13172_v25, %v7528_v37 }
 0x730   : > { %v7356_v9 = vpop.f32.mrf.mxu0  ;;  %v5650_v22 = vpop.f32.mrf.mxu2 }
 0x731   : > { %v7754_v12 = vmax.f32 %v7643_v51, 0.0  ;;  %v5823_v29 = vadd.f32 %v5650_v22, %v4862_v13  ;;  %v6725_v1 = vpop.f32.mrf.mxu3  ;;  %v4692_v20 = vpop.f32.mrf.mxu1  ;;  %v10482_v51 = vld [vmem:[%s11194_s27 + $0x1b8] sm:$0xff]   ;;  %v13803_v22 = vld [vmem:[#allocation50_spill] sm:$0xff] }
 0x732   : > { %v4863_v28 = vadd.f32 %v4692_v20, %v13800_v50  ;;  %v6350_v13 = vrot.slane %v10482_v51, 2 }
 0x733   : > { %v7865_v27 = vpack.c.bf16 %v7754_v12, %v7754_v12  ;;  %v6898_v59 = vadd.f32 %v6725_v1, %v5823_v29  ;;  %v10953_v1 = vld [vmem:[%s11194_s27 + $0x194] sm:$0xff]  }
 0x734   : > { %8630 = vmatmul.msk.bf16.gmra.mxu1 %vm680_vm2, %v10949_v56 }
 0x735   : > { %7977 = vst.msk [vmem:[%s12646_s16 + $0x118] sm:$0xf] %vm7906_vm3, %v7865_v27  ;;  %v7529_v46 = vadd.f32 %v7356_v9, %v6898_v59  ;;  %8907 = vmatmul.msk.bf16.gmra.mxu2 %vm680_vm2, %v9135_v14  ;;  %8964 = vmatmul.msk.bf16.gmra.mxu3 %vm680_vm2, %v6347_v18  ;;  %v9137_v59 = vld [vmem:[%s11194_s27 + $0x1b0] sm:$0xff] }
 0x737   : > { %v7644_v44 = vadd.f32 %v13172_v25, %v7529_v46  ;;  %v6351_v46 = vsel %vm568_vm1, %v6348_v19, %v6350_v13 }
 0x738   : > { %v7359_v10 = vpop.f32.mrf.mxu0  ;;  %v5653_v42 = vpop.f32.mrf.mxu2 }
 0x739   : > { %v7755_v38 = vmax.f32 %v7644_v44, 0.0  ;;  %v5824_v6 = vadd.f32 %v5653_v42, %v4863_v28  ;;  %v6728_v31 = vpop.f32.mrf.mxu3  ;;  %v4694_v60 = vpop.f32.mrf.mxu1 }
 0x73a   : > { %v4864_v32 = vadd.f32 %v4694_v60, %v13801_v49 }
 0x73b   : > { %v7866_v11 = vpack.c.bf16 %v7755_v38, %v7755_v38  ;;  %v6899_v48 = vadd.f32 %v6728_v31, %v5824_v6  ;;  %9021 = vmatmul.msk.bf16.gmra.mxu0 %vm680_vm2, %v11055_v30  ;;  %v11059_v38 = vld [vmem:[%s11194_s27 + $0x1b4] sm:$0xff]  }
 0x73d   : > { %7978 = vst.msk [vmem:[%s12646_s16 + $0x11c] sm:$0xf] %vm7906_vm3, %v7866_v11  ;;  %v7530_v54 = vadd.f32 %v7359_v10, %v6899_v48  ;;  %v13804_v10 = vld [vmem:[#allocation53_spill] sm:$0xff] }
 0x73f   : > { %v7645_v36 = vadd.f32 %v13172_v25, %v7530_v54 }
 0x740   : > { %v7361_v57 = vpop.f32.mrf.mxu0  ;;  %v5655_v35 = vpop.f32.mrf.mxu2 }
 0x741   : > { %v7756_v0 = vmax.f32 %v7645_v36, 0.0  ;;  %v5825_v39 = vadd.f32 %v5655_v35, %v4864_v32  ;;  %v6730_v34 = vpop.f32.mrf.mxu3  ;;  %v4697_v45 = vpop.f32.mrf.mxu1  ;;  %v10483_v36 = vld [vmem:[%s11194_s27 + $0x1c0] sm:$0xff]   ;;  %v13805_v35 = vld [vmem:[#allocation56_spill] sm:$0xff] }
 0x742   : > { %v4865_v58 = vadd.f32 %v4697_v45, %v13802_v17  ;;  %v6352_v32 = vrot.slane %v10483_v36, 2 }
 0x743   : > { %v7867_v61 = vpack.c.bf16 %v7756_v0, %v7756_v0  ;;  %v6900_v47 = vadd.f32 %v6730_v34, %v5825_v39  ;;  %v10955_v34 = vld [vmem:[%s11194_s27 + $0x19c] sm:$0xff]  }
 0x744   : > { %8631 = vmatmul.msk.bf16.gmra.mxu1 %vm680_vm2, %v10951_v43 }
 0x745   : > { %7979 = vst.msk [vmem:[%s12646_s16 + $0x120] sm:$0xf] %vm7906_vm3, %v7867_v61  ;;  %v7531_v52 = vadd.f32 %v7361_v57, %v6900_v47  ;;  %8908 = vmatmul.msk.bf16.gmra.mxu2 %vm680_vm2, %v9136_v23  ;;  %8965 = vmatmul.msk.bf16.gmra.mxu3 %vm680_vm2, %v6349_v15  ;;  %v9138_v47 = vld [vmem:[%s11194_s27 + $0x1b8] sm:$0xff] }
 0x747   : > { %v7646_v55 = vadd.f32 %v13172_v25, %v7531_v52  ;;  %v6353_v52 = vsel %vm568_vm1, %v6350_v13, %v6352_v32 }
 0x748   : > { %v7364_v8 = vpop.f32.mrf.mxu0  ;;  %v5658_v40 = vpop.f32.mrf.mxu2 }
 0x749   : > { %v7757_v53 = vmax.f32 %v7646_v55, 0.0  ;;  %v5826_v5 = vadd.f32 %v5658_v40, %v4865_v58  ;;  %v6733_v3 = vpop.f32.mrf.mxu3  ;;  %v4699_v16 = vpop.f32.mrf.mxu1 }
 0x74a   : > { %v4866_v56 = vadd.f32 %v4699_v16, %v13803_v22 }
 0x74b   : > { %v7868_v37 = vpack.c.bf16 %v7757_v53, %v7757_v53  ;;  %v6901_v7 = vadd.f32 %v6733_v3, %v5826_v5  ;;  %9022 = vmatmul.msk.bf16.gmra.mxu0 %vm680_vm2, %v11057_v4  ;;  %v11061_v53 = vld [vmem:[%s11194_s27 + $0x1bc] sm:$0xff]  }
 0x74d   : > { %7980 = vst.msk [vmem:[%s12646_s16 + $0x124] sm:$0xf] %vm7906_vm3, %v7868_v37  ;;  %v7532_v26 = vadd.f32 %v7364_v8, %v6901_v7  ;;  %v13806_v8 = vld [vmem:[#allocation59_spill] sm:$0xff] }
 0x74f   : > { %v7647_v9 = vadd.f32 %v13172_v25, %v7532_v26 }
 0x750   : > { %v7366_v12 = vpop.f32.mrf.mxu0  ;;  %v5660_v29 = vpop.f32.mrf.mxu2 }
 0x751   : > { %v7758_v20 = vmax.f32 %v7647_v9, 0.0  ;;  %v5827_v14 = vadd.f32 %v5660_v29, %v4866_v56  ;;  %v6735_v18 = vpop.f32.mrf.mxu3  ;;  %v4702_v27 = vpop.f32.mrf.mxu1  ;;  %v10484_v9 = vld [vmem:[%s11194_s27 + $0x1c8] sm:$0xff]   ;;  %v13807_v29 = vld [vmem:[#allocation62_spill] sm:$0xff] }
 0x752   : > { %v4867_v42 = vadd.f32 %v4702_v27, %v13804_v10  ;;  %v6354_v56 = vrot.slane %v10484_v9, 2 }
 0x753   : > { %v7869_v44 = vpack.c.bf16 %v7758_v20, %v7758_v20  ;;  %v6902_v50 = vadd.f32 %v6735_v18, %v5827_v14  ;;  %v10957_v18 = vld [vmem:[%s11194_s27 + $0x1a4] sm:$0xff]  }
 0x754   : > { %8632 = vmatmul.msk.bf16.gmra.mxu1 %vm680_vm2, %v10953_v1 }
 0x755   : > { %7981 = vst.msk [vmem:[%s12646_s16 + $0x128] sm:$0xf] %vm7906_vm3, %v7869_v44  ;;  %v7533_v28 = vadd.f32 %v7366_v12, %v6902_v50  ;;  %8909 = vmatmul.msk.bf16.gmra.mxu2 %vm680_vm2, %v9137_v59  ;;  %8966 = vmatmul.msk.bf16.gmra.mxu3 %vm680_vm2, %v6351_v46  ;;  %v9139_v50 = vld [vmem:[%s11194_s27 + $0x1c0] sm:$0xff] }
 0x757   : > { %v7648_v30 = vadd.f32 %v13172_v25, %v7533_v28  ;;  %v6355_v28 = vsel %vm568_vm1, %v6352_v32, %v6354_v56 }
 0x758   : > { %v7369_v6 = vpop.f32.mrf.mxu0  ;;  %v5663_v31 = vpop.f32.mrf.mxu2 }
 0x759   : > { %v7759_v60 = vmax.f32 %v7648_v30, 0.0  ;;  %v5828_v11 = vadd.f32 %v5663_v31, %v4867_v42  ;;  %v6738_v48 = vpop.f32.mrf.mxu3  ;;  %v4704_v2 = vpop.f32.mrf.mxu1 }
 0x75a   : > { %v4868_v43 = vadd.f32 %v4704_v2, %v13805_v35 }
 0x75b   : > { %v7870_v54 = vpack.c.bf16 %v7759_v60, %v7759_v60  ;;  %v6903_v19 = vadd.f32 %v6738_v48, %v5828_v11  ;;  %9023 = vmatmul.msk.bf16.gmra.mxu0 %vm680_vm2, %v11059_v38  ;;  %v11063_v60 = vld [vmem:[%s11194_s27 + $0x1c4] sm:$0xff]  }
 0x75d   : > { %7982 = vst.msk [vmem:[%s12646_s16 + $0x12c] sm:$0xf] %vm7906_vm3, %v7870_v54  ;;  %v7534_v49 = vadd.f32 %v7369_v6, %v6903_v19  ;;  %v13808_v6 = vld [vmem:[#allocation65_spill] sm:$0xff] }
 0x75f   : > { %v7649_v57 = vadd.f32 %v13172_v25, %v7534_v49 }
 0x760   : > { %v7371_v0 = vpop.f32.mrf.mxu0  ;;  %v5665_v39 = vpop.f32.mrf.mxu2 }
 0x761   : > { %v7760_v45 = vmax.f32 %v7649_v57, 0.0  ;;  %v5829_v23 = vadd.f32 %v5665_v39, %v4868_v43  ;;  %v6740_v15 = vpop.f32.mrf.mxu3  ;;  %v4707_v61 = vpop.f32.mrf.mxu1  ;;  %v10485_v57 = vld [vmem:[%s11194_s27 + $0x1d0] sm:$0xff]  }
 0x762   : > { %v4869_v40 = vadd.f32 %v4707_v61, %v13806_v8  ;;  %v6356_v43 = vrot.slane %v10485_v57, 2  ;;  %v13809_v39 = vld [vmem:[#allocation68_spill] sm:$0xff] }
 0x763   : > { %v7871_v55 = vpack.c.bf16 %v7760_v45, %v7760_v45  ;;  %v6904_v17 = vadd.f32 %v6740_v15, %v5829_v23  ;;  %v10959_v15 = vld [vmem:[%s11194_s27 + $0x1ac] sm:$0xff]  }
 0x764   : > { %8633 = vmatmul.msk.bf16.gmra.mxu1 %vm680_vm2, %v10955_v34 }
 0x765   : > { %7983 = vst.msk [vmem:[%s12646_s16 + $0x130] sm:$0xf] %vm7906_vm3, %v7871_v55  ;;  %v7535_v58 = vadd.f32 %v7371_v0, %v6904_v17  ;;  %8910 = vmatmul.msk.bf16.gmra.mxu2 %vm680_vm2, %v9138_v47  ;;  %8967 = vmatmul.msk.bf16.gmra.mxu3 %vm680_vm2, %v6353_v52  ;;  %v9140_v17 = vld [vmem:[%s11194_s27 + $0x1c8] sm:$0xff] }
 0x767   : > { %v7650_v4 = vadd.f32 %v13172_v25, %v7535_v58  ;;  %v6357_v58 = vsel %vm568_vm1, %v6354_v56, %v6356_v43 }
 0x768   : > { %v7374_v5 = vpop.f32.mrf.mxu0  ;;  %v5668_v3 = vpop.f32.mrf.mxu2 }
 0x769   : > { %v7761_v16 = vmax.f32 %v7650_v4, 0.0  ;;  %v5830_v37 = vadd.f32 %v5668_v3, %v4869_v40  ;;  %v6743_v7 = vpop.f32.mrf.mxu3  ;;  %v4709_v51 = vpop.f32.mrf.mxu1 }
 0x76a   : > { %v4870_v1 = vadd.f32 %v4709_v51, %v13807_v29 }
 0x76b   : > { %v7872_v26 = vpack.c.bf16 %v7761_v16, %v7761_v16  ;;  %v6905_v13 = vadd.f32 %v6743_v7, %v5830_v37  ;;  %9024 = vmatmul.msk.bf16.gmra.mxu0 %vm680_vm2, %v11061_v53  ;;  %v11065_v16 = vld [vmem:[%s11194_s27 + $0x1cc] sm:$0xff]  }
 0x76d   : > { %7984 = vst.msk [vmem:[%s12646_s16 + $0x134] sm:$0xf] %vm7906_vm3, %v7872_v26  ;;  %v7536_v22 = vadd.f32 %v7374_v5, %v6905_v13  ;;  %v13810_v5 = vld [vmem:[#allocation71_spill] sm:$0xff] }
 0x76f   : > { %v7651_v12 = vadd.f32 %v13172_v25, %v7536_v22 }
 0x770   : > { %v7376_v20 = vpop.f32.mrf.mxu0  ;;  %v5670_v14 = vpop.f32.mrf.mxu2 }
 0x771   : > { %v7762_v27 = vmax.f32 %v7651_v12, 0.0  ;;  %v5831_v59 = vadd.f32 %v5670_v14, %v4870_v1  ;;  %v6745_v46 = vpop.f32.mrf.mxu3  ;;  %v4712_v44 = vpop.f32.mrf.mxu1  ;;  %v10486_v12 = vld [vmem:[%s11194_s27 + $0x1d8] sm:$0xff]   ;;  %v13811_v14 = vld [vmem:[#allocation74_spill] sm:$0xff] }
 0x772   : > { %v4871_v31 = vadd.f32 %v4712_v44, %v13808_v6  ;;  %v6358_v1 = vrot.slane %v10486_v12, 2 }
 0x773   : > { %v7873_v30 = vpack.c.bf16 %v7762_v27, %v7762_v27  ;;  %v6906_v10 = vadd.f32 %v6745_v46, %v5831_v59  ;;  %v10961_v46 = vld [vmem:[%s11194_s27 + $0x1b4] sm:$0xff]  }
 0x774   : > { %8634 = vmatmul.msk.bf16.gmra.mxu1 %vm680_vm2, %v10957_v18 }
 0x775   : > { %7985 = vst.msk [vmem:[%s12646_s16 + $0x138] sm:$0xf] %vm7906_vm3, %v7873_v30  ;;  %v7537_v42 = vadd.f32 %v7376_v20, %v6906_v10  ;;  %8911 = vmatmul.msk.bf16.gmra.mxu2 %vm680_vm2, %v9139_v50  ;;  %8968 = vmatmul.msk.bf16.gmra.mxu3 %vm680_vm2, %v6355_v28  ;;  %v9141_v10 = vld [vmem:[%s11194_s27 + $0x1d0] sm:$0xff] }
 0x777   : > { %v7652_v38 = vadd.f32 %v13172_v25, %v7537_v42  ;;  %v6359_v42 = vsel %vm568_vm1, %v6356_v43, %v6358_v1 }
 0x778   : > { %v7379_v11 = vpop.f32.mrf.mxu0  ;;  %v5673_v48 = vpop.f32.mrf.mxu2 }
 0x779   : > { %v7763_v2 = vmax.f32 %v7652_v38, 0.0  ;;  %v5832_v54 = vadd.f32 %v5673_v48, %v4871_v31  ;;  %v6748_v19 = vpop.f32.mrf.mxu3  ;;  %v4714_v36 = vpop.f32.mrf.mxu1 }
 0x77a   : > { %v4872_v34 = vadd.f32 %v4714_v36, %v13809_v39 }
 0x77b   : > { %v7874_v49 = vpack.c.bf16 %v7763_v2, %v7763_v2  ;;  %v6907_v32 = vadd.f32 %v6748_v19, %v5832_v54  ;;  %9025 = vmatmul.msk.bf16.gmra.mxu0 %vm680_vm2, %v11063_v60  ;;  %v11067_v2 = vld [vmem:[%s11194_s27 + $0x1d4] sm:$0xff]  }
 0x77d   : > { %7986 = vst.msk [vmem:[%s12646_s16 + $0x13c] sm:$0xf] %vm7906_vm3, %v7874_v49  ;;  %v7538_v35 = vadd.f32 %v7379_v11, %v6907_v32  ;;  %v13812_v11 = vld [vmem:[#allocation3_spill] sm:$0xff] }
 0x77f   : > { %v7653_v0 = vadd.f32 %v13172_v25, %v7538_v35 }
 0x780   : > { %v7381_v45 = vpop.f32.mrf.mxu0  ;;  %v5675_v23 = vpop.f32.mrf.mxu2 }
 0x781   : > { %v7764_v61 = vmax.f32 %v7653_v0, 0.0  ;;  %v5833_v47 = vadd.f32 %v5675_v23, %v4872_v34  ;;  %v6750_v52 = vpop.f32.mrf.mxu3  ;;  %v4717_v55 = vpop.f32.mrf.mxu1  ;;  %v10487_v0 = vld [vmem:[%s11194_s27 + $0x1e0] sm:$0xff]   ;;  %v13813_v23 = vld [vmem:[#allocation5_spill] sm:$0xff] }
 0x782   : > { %v4873_v3 = vadd.f32 %v4717_v55, %v13810_v5  ;;  %v6360_v34 = vrot.slane %v10487_v0, 2 }
 0x783   : > { %v7875_v4 = vpack.c.bf16 %v7764_v61, %v7764_v61  ;;  %v6908_v8 = vadd.f32 %v6750_v52, %v5833_v47  ;;  %v10963_v52 = vld [vmem:[%s11194_s27 + $0x1bc] sm:$0xff]  }
 0x784   : > { %8635 = vmatmul.msk.bf16.gmra.mxu1 %vm680_vm2, %v10959_v15 }
 0x785   : > { %7987 = vst.msk [vmem:[%s12646_s16 + $0x140] sm:$0xf] %vm7906_vm3, %v7875_v4  ;;  %v7539_v40 = vadd.f32 %v7381_v45, %v6908_v8  ;;  %8912 = vmatmul.msk.bf16.gmra.mxu2 %vm680_vm2, %v9140_v17  ;;  %8969 = vmatmul.msk.bf16.gmra.mxu3 %vm680_vm2, %v6357_v58  ;;  %v9142_v8 = vld [vmem:[%s11194_s27 + $0x1d8] sm:$0xff] }
 0x787   : > { %v7654_v53 = vadd.f32 %v13172_v25, %v7539_v40  ;;  %v6361_v40 = vsel %vm568_vm1, %v6358_v1, %v6360_v34 }
 0x788   : > { %v7384_v37 = vpop.f32.mrf.mxu0  ;;  %v5678_v7 = vpop.f32.mrf.mxu2 }
 0x789   : > { %v7765_v51 = vmax.f32 %v7654_v53, 0.0  ;;  %v5834_v26 = vadd.f32 %v5678_v7, %v4873_v3  ;;  %v6753_v13 = vpop.f32.mrf.mxu3  ;;  %v4719_v9 = vpop.f32.mrf.mxu1 }
 0x78a   : > { %v4874_v18 = vadd.f32 %v4719_v9, %v13811_v14 }
 0x78b   : > { %v7876_v22 = vpack.c.bf16 %v7765_v51, %v7765_v51  ;;  %v6909_v56 = vadd.f32 %v6753_v13, %v5834_v26  ;;  %9026 = vmatmul.msk.bf16.gmra.mxu0 %vm680_vm2, %v11065_v16  ;;  %v11069_v51 = vld [vmem:[%s11194_s27 + $0x1dc] sm:$0xff]  }
 0x78d   : > { %7988 = vst.msk [vmem:[%s12646_s16 + $0x144] sm:$0xf] %vm7906_vm3, %v7876_v22  ;;  %v7540_v29 = vadd.f32 %v7384_v37, %v6909_v56  ;;  %v13814_v37 = vld [vmem:[#allocation7_spill] sm:$0xff] }
 0x78f   : > { %v7655_v20 = vadd.f32 %v13172_v25, %v7540_v29 }
 0x790   : > { %v7386_v27 = vpop.f32.mrf.mxu0  ;;  %v5680_v59 = vpop.f32.mrf.mxu2 }
 0x791   : > { %v7766_v44 = vmax.f32 %v7655_v20, 0.0  ;;  %v5835_v50 = vadd.f32 %v5680_v59, %v4874_v18  ;;  %v6755_v28 = vpop.f32.mrf.mxu3  ;;  %v4722_v30 = vpop.f32.mrf.mxu1  ;;  %v10488_v20 = vld [vmem:[%s11194_s27 + $0x1e8] sm:$0xff]   ;;  %v13815_v59 = vld [vmem:[#allocation9_spill] sm:$0xff] }
 0x792   : > { %v4875_v48 = vadd.f32 %v4722_v30, %v13812_v11  ;;  %v6362_v18 = vrot.slane %v10488_v20, 2 }
 0x793   : > { %v7877_v38 = vpack.c.bf16 %v7766_v44, %v7766_v44  ;;  %v6910_v6 = vadd.f32 %v6755_v28, %v5835_v50  ;;  %v10965_v28 = vld [vmem:[%s11194_s27 + $0x1c4] sm:$0xff]  }
 0x794   : > { %8636 = vmatmul.msk.bf16.gmra.mxu1 %vm680_vm2, %v10961_v46 }
 0x795   : > { %7989 = vst.msk [vmem:[%s12646_s16 + $0x148] sm:$0xf] %vm7906_vm3, %v7877_v38  ;;  %v7541_v31 = vadd.f32 %v7386_v27, %v6910_v6  ;;  %8913 = vmatmul.msk.bf16.gmra.mxu2 %vm680_vm2, %v9141_v10  ;;  %8970 = vmatmul.msk.bf16.gmra.mxu3 %vm680_vm2, %v6359_v42  ;;  %v9143_v6 = vld [vmem:[%s11194_s27 + $0x1e0] sm:$0xff] }
 0x797   : > { %v7656_v60 = vadd.f32 %v13172_v25, %v7541_v31  ;;  %v6363_v31 = vsel %vm568_vm1, %v6360_v34, %v6362_v18 }
 0x798   : > { %v7389_v54 = vpop.f32.mrf.mxu0  ;;  %v5683_v19 = vpop.f32.mrf.mxu2 }
 0x799   : > { %v7767_v36 = vmax.f32 %v7656_v60, 0.0  ;;  %v5836_v49 = vadd.f32 %v5683_v19, %v4875_v48  ;;  %v6758_v32 = vpop.f32.mrf.mxu3  ;;  %v4724_v57 = vpop.f32.mrf.mxu1 }
 0x79a   : > { %v4876_v15 = vadd.f32 %v4724_v57, %v13813_v23 }
 0x79b   : > { %v7878_v35 = vpack.c.bf16 %v7767_v36, %v7767_v36  ;;  %v6911_v43 = vadd.f32 %v6758_v32, %v5836_v49  ;;  %9027 = vmatmul.msk.bf16.gmra.mxu0 %vm680_vm2, %v11067_v2  ;;  %v11071_v36 = vld [vmem:[%s11194_s27 + $0x1e4] sm:$0xff]  }
 0x79d   : > { %7990 = vst.msk [vmem:[%s12646_s16 + $0x14c] sm:$0xf] %vm7906_vm3, %v7878_v35  ;;  %v7542_v39 = vadd.f32 %v7389_v54, %v6911_v43  ;;  %v13816_v54 = vld [vmem:[#allocation11_spill] sm:$0xff] }
 0x79f   : > { %v7657_v45 = vadd.f32 %v13172_v25, %v7542_v39 }
 0x7a0   : > { %v7391_v61 = vpop.f32.mrf.mxu0  ;;  %v5685_v47 = vpop.f32.mrf.mxu2 }
 0x7a1   : > { %v7768_v55 = vmax.f32 %v7657_v45, 0.0  ;;  %v5837_v17 = vadd.f32 %v5685_v47, %v4876_v15  ;;  %v6760_v58 = vpop.f32.mrf.mxu3  ;;  %v4727_v4 = vpop.f32.mrf.mxu1  ;;  %v13400_v45 = vld [vmem:[%s11194_s27 + $0x1f0] sm:$0xff]   ;;  %v13817_v47 = vld [vmem:[#allocation13_spill] sm:$0xff] }
 0x7a2   : > { %v4877_v7 = vadd.f32 %v4727_v4, %v13814_v37  ;;  %v6364_v15 = vrot.slane %v13400_v45, 2 }
 0x7a3   : > { %v7879_v53 = vpack.c.bf16 %v7768_v55, %v7768_v55  ;;  %v6912_v5 = vadd.f32 %v6760_v58, %v5837_v17  ;;  %v10966_v58 = vld [vmem:[%s11194_s27 + $0x1cc] sm:$0xff]  }
 0x7a4   : > { %8637 = vmatmul.msk.bf16.gmra.mxu1 %vm680_vm2, %v10963_v52 }
 0x7a5   : > { %7991 = vst.msk [vmem:[%s12646_s16 + $0x150] sm:$0xf] %vm7906_vm3, %v7879_v53  ;;  %v7543_v3 = vadd.f32 %v7391_v61, %v6912_v5  ;;  %8914 = vmatmul.msk.bf16.gmra.mxu2 %vm680_vm2, %v9142_v8  ;;  %8971 = vmatmul.msk.bf16.gmra.mxu3 %vm680_vm2, %v6361_v40  ;;  %v9144_v5 = vld [vmem:[%s11194_s27 + $0x1e8] sm:$0xff] }
 0x7a7   : > { %v7658_v16 = vadd.f32 %v13172_v25, %v7543_v3  ;;  %v6365_v3 = vsel %vm568_vm1, %v6362_v18, %v6364_v15 }
 0x7a8   : > { %v7394_v26 = vpop.f32.mrf.mxu0  ;;  %v5688_v13 = vpop.f32.mrf.mxu2 }
 0x7a9   : > { %v7769_v9 = vmax.f32 %v7658_v16, 0.0  ;;  %v5838_v22 = vadd.f32 %v5688_v13, %v4877_v7  ;;  %v6763_v56 = vpop.f32.mrf.mxu3  ;;  %v4729_v12 = vpop.f32.mrf.mxu1  ;;  %v13411_v7 = vld [vmem:[%s11194_s27 + $0x1f8] sm:$0xff]  }
 0x7aa   : > { %v4878_v46 = vadd.f32 %v4729_v12, %v13815_v59  ;;  %v6199_v13 = vunpack.c.l.b16 %v13411_v7 }
 0x7ab   : > { %v7880_v29 = vpack.c.bf16 %v7769_v9, %v7769_v9  ;;  %v6913_v1 = vadd.f32 %v6763_v56, %v5838_v22  ;;  %9028 = vmatmul.msk.bf16.gmra.mxu0 %vm680_vm2, %v11069_v51  ;;  %v5974_v51 = vld [vmem:[%s11194_s27 + $0x1fc] sm:$0x3]  ;;  %v13818_v56 = vld [vmem:[#allocation75_spill] sm:$0xff] }
 0x7ac   : > { %v6200_v9 = vunpack.c.l.b16 %v5974_v51 }
 0x7ad   : > { %7992 = vst.msk [vmem:[%s12646_s16 + $0x154] sm:$0xf] %vm7906_vm3, %v7880_v29  ;;  %v7544_v14 = vadd.f32 %v7394_v26, %v6913_v1  ;;  %v11072_v29 = vld [vmem:[%s11194_s27 + $0x1ec] sm:$0xff]  }
 0x7af   : > { %v7659_v27 = vadd.f32 %v13172_v25, %v7544_v14 }
 0x7b0   : > { %v7396_v44 = vpop.f32.mrf.mxu0  ;;  %v5690_v50 = vpop.f32.mrf.mxu2 }
 0x7b1   : > { %v7770_v30 = vmax.f32 %v7659_v27, 0.0  ;;  %v5839_v10 = vadd.f32 %v5690_v50, %v4878_v46  ;;  %v6765_v42 = vpop.f32.mrf.mxu3  ;;  %v4732_v38 = vpop.f32.mrf.mxu1  ;;  %v13423_v46 = vpack.c.b16 %v6200_v9, %v6199_v13 }
 0x7b2   : > { %v4879_v19 = vadd.f32 %v4732_v38, %v13816_v54 }
 0x7b3   : > { %v7881_v60 = vpack.c.bf16 %v7770_v30, %v7770_v30  ;;  %v6914_v11 = vadd.f32 %v6765_v42, %v5839_v10  ;;  %v6366_v42 = vrot.slane %v13423_v46, 2 }
 0x7b4   : > { %8638 = vmatmul.msk.bf16.gmra.mxu1 %vm680_vm2, %v10965_v28  ;;  %v11130_v28 = vld [vmem:[%s11194_s27 + $0x1d0] sm:$0xff]  }
 0x7b5   : > { %7993 = vst.msk [vmem:[%s12646_s16 + $0x158] sm:$0xf] %vm7906_vm3, %v7881_v60  ;;  %v7545_v48 = vadd.f32 %v7396_v44, %v6914_v11  ;;  %8915 = vmatmul.msk.bf16.gmra.mxu2 %vm680_vm2, %v9143_v6  ;;  %8972 = vmatmul.msk.bf16.gmra.mxu3 %vm680_vm2, %v6363_v31  ;;  %v9581_v30 = vunpack.c.h.b16 %v11130_v28  ;;  %v13819_v6 = vld [vmem:[#allocation18_spill] sm:$0xff] }
 0x7b7   : > { %v7660_v2 = vadd.f32 %v13172_v25, %v7545_v48  ;;  %v13820_v48 = vld [vmem:[#allocation16_spill] sm:$0xff] }
 0x7b8   : > { %v7399_v49 = vpop.f32.mrf.mxu0  ;;  %v5693_v32 = vpop.f32.mrf.mxu2 }
 0x7b9   : > { %v7771_v57 = vmax.f32 %v7660_v2, 0.0  ;;  %v5840_v35 = vadd.f32 %v5693_v32, %v4879_v19  ;;  %v6768_v43 = vpop.f32.mrf.mxu3  ;;  %v4734_v0 = vpop.f32.mrf.mxu1  ;;  %v13821_v2 = vunpack.c.l.b16 %v13820_v48 }
 0x7ba   : > { %v4880_v52 = vadd.f32 %v4734_v0, %v13817_v47 }
 0x7bb   : > { %v7882_v39 = vpack.c.bf16 %v7771_v57, %v7771_v57  ;;  %v6915_v34 = vadd.f32 %v6768_v43, %v5840_v35  ;;  %9029 = vmatmul.msk.bf16.gmra.mxu0 %vm680_vm2, %v11071_v36  ;;  %v4330_v54 = vpack.c.b16 %v13821_v2, %v9581_v30  ;;  %v9145_v57 = vld [vmem:[%s11194_s27 + $0x1f0] sm:$0xff]  ;;  %v6367_v35 = vsel %vm568_vm1, %v6364_v15, %v6366_v42 }
 0x7bd   : > { %7994 = vst.msk [vmem:[%s12646_s16 + $0x15c] sm:$0xf] %vm7906_vm3, %v7882_v39  ;;  %v7546_v23 = vadd.f32 %v7399_v49, %v6915_v34  ;;  %v9797_v39 = vunpack.c.h.b16 %v13400_v45  ;;  %v13445_v34 = vld [vmem:[%s13539_s2] ss:$0 sm:$0xff] }
 0x7be   : > { %v13822_v45 = vld [vmem:[#allocation14_spill] sm:$0xff] }
 0x7bf   : > { %v7661_v61 = vadd.f32 %v13172_v25, %v7546_v23 }
 0x7c0   : > { %v7401_v55 = vpop.f32.mrf.mxu0  ;;  %v5695_v17 = vpop.f32.mrf.mxu2 }
 0x7c1   : > { %v7772_v4 = vmax.f32 %v7661_v61, 0.0  ;;  %v5841_v8 = vadd.f32 %v5695_v17, %v4880_v52  ;;  %v6770_v40 = vpop.f32.mrf.mxu3  ;;  %v4737_v53 = vpop.f32.mrf.mxu1  ;;  %v6997_v61 = vpack.c.b16 %v6199_v13, %v9797_v39 }
 0x7c2   : > { %v4881_v12 = vadd.f32 %v4737_v53, %v13818_v56 }
 0x7c3   : > { %v7883_v16 = vpack.c.bf16 %v7772_v4, %v7772_v4  ;;  %v6916_v37 = vadd.f32 %v6770_v40, %v5841_v8  ;;  %v4271_v8 = vld [vmem:[%s11194_s27 + $0x1dc] sm:$0xf]  ;;  %v5012_v40 = vld [vmem:[%s11194_s27 + $0x1f8] sm:$0xf] }
 0x7c4   : > { %8639 = vmatmul.msk.bf16.gmra.mxu1 %vm680_vm2, %v10966_v58 }
 0x7c5   : > { %7995 = vst.msk [vmem:[%s12646_s16 + $0x160] sm:$0xf] %vm7906_vm3, %v7883_v16  ;;  %v7547_v26 = vadd.f32 %v7401_v55, %v6916_v37  ;;  %8916 = vmatmul.msk.bf16.gmra.mxu2 %vm680_vm2, %v9144_v5  ;;  %8973 = vmatmul.msk.bf16.gmra.mxu3 %vm680_vm2, %v6365_v3  ;;  %v4275_v3 = vunpack.c.l.b16 %v4271_v8  ;;  %v5236_v37 = vunpack.c.l.b16 %v5012_v40 }
 0x7c7   : > { %v7662_v22 = vadd.f32 %v13172_v25, %v7547_v26  ;;  %v13823_v26 = vld [vmem:[#allocation20_spill] sm:$0xff]  ;;  %v4331_v56 = vpack.c.b16 %v4275_v3, %v4275_v3 }
 0x7c8   : > { %v7404_v1 = vpop.f32.mrf.mxu0  ;;  %v5698_v20 = vpop.f32.mrf.mxu2 }
 0x7c9   : > { %v7773_v14 = vmax.f32 %v7662_v22, 0.0  ;;  %v5842_v18 = vadd.f32 %v5698_v20, %v4881_v12  ;;  %v6773_v27 = vpop.f32.mrf.mxu3  ;;  %v4739_v59 = vpop.f32.mrf.mxu1 }
 0x7ca   : > { %v4882_v31 = vadd.f32 %v4739_v59, %v13819_v6  ;;  %v6942_v59 = vunpack.c.h.b16 %v13411_v7 }
 0x7cb   : > { %v7884_v44 = vpack.c.bf16 %v7773_v14, %v7773_v14  ;;  %v6917_v50 = vadd.f32 %v6773_v27, %v5842_v18  ;;  %9030 = vmatmul.msk.bf16.gmra.mxu0 %vm680_vm2, %v11072_v29  ;;  %v5292_v14 = vpack.c.b16 %v5236_v37, %v5236_v37 }
 0x7cc   : > { %v6998_v28 = vpack.c.b16 %v6942_v59, %v6942_v59 }
 0x7cd   : > { %7996 = vst.msk [vmem:[%s12646_s16 + $0x164] sm:$0xf] %vm7906_vm3, %v7884_v44  ;;  %v7548_v10 = vadd.f32 %v7404_v1, %v6917_v50 }
 0x7cf   : > { %v7663_v38 = vadd.f32 %v13172_v25, %v7548_v10 }
 0x7d0   : > { %v7406_v60 = vpop.f32.mrf.mxu0  ;;  %v5700_v11 = vpop.f32.mrf.mxu2 }
 0x7d1   : > { %v7774_v19 = vmax.f32 %v7663_v38, 0.0  ;;  %v5843_v36 = vadd.f32 %v5700_v11, %v4882_v31  ;;  %v6775_v49 = vpop.f32.mrf.mxu3  ;;  %v4742_v32 = vpop.f32.mrf.mxu1 }
 0x7d2   : > { %v4883_v15 = vadd.f32 %v4742_v32, %v13822_v45 }
 0x7d3   : > { %v7885_v43 = vpack.c.bf16 %v7774_v19, %v7774_v19  ;;  %v6918_v0 = vadd.f32 %v6775_v49, %v5843_v36 }
 0x7d4   : > { %8640 = vmatmul.msk.bf16.gmra.mxu1 %vm680_vm2, %v4330_v54 }
 0x7d5   : > { %7997 = vst.msk [vmem:[%s12646_s16 + $0x168] sm:$0xf] %vm7906_vm3, %v7885_v43  ;;  %v7549_v25 = vadd.f32 %v7406_v60, %v6918_v0  ;;  %8917 = vmatmul.msk.bf16.gmra.mxu2 %vm680_vm2, %v9145_v57  ;;  %8974 = vmatmul.msk.bf16.gmra.mxu3 %vm680_vm2, %v6367_v35 }
 0x7d7   : > { %v7664_v23 = vadd.f32 %v13445_v34, %v7549_v25 }
 0x7d8   : > { %v7409_v47 = vpop.f32.mrf.mxu0  ;;  %v5703_v52 = vpop.f32.mrf.mxu2 }
 0x7d9   : > { %v7775_v55 = vmax.f32 %v7664_v23, 0.0  ;;  %v5844_v17 = vadd.f32 %v5703_v52, %v4883_v15  ;;  %v6778_v58 = vpop.f32.mrf.mxu3  ;;  %v4744_v4 = vpop.f32.mrf.mxu1 }
 0x7da   : > { %v4884_v13 = vadd.f32 %v4744_v4, %v13823_v26 }
 0x7db   : > { %v7886_v53 = vpack.c.bf16 %v7775_v55, %v7775_v55  ;;  %v6919_v5 = vadd.f32 %v6778_v58, %v5844_v17  ;;  %9031 = vmatmul.msk.bf16.gmra.mxu0 %vm680_vm2, %v6997_v61  ;;  %v13824_v58 = vld [vmem:[#allocation22_spill] sm:$0xff] }
 0x7dd   : > { %7998 = vst.msk [vmem:[%s12646_s16 + $0x16c] sm:$0xf] %vm7906_vm3, %v7886_v53  ;;  %v7550_v16 = vadd.f32 %v7409_v47, %v6919_v5 }
 0x7df   : > { %v7665_v51 = vadd.f32 %v13445_v34, %v7550_v16 }
 0x7e0   : > { %v7411_v9 = vpop.f32.mrf.mxu0  ;;  %v5705_v22 = vpop.f32.mrf.mxu2 }
 0x7e1   : > { %v7776_v12 = vmax.f32 %v7665_v51, 0.0  ;;  %v5845_v29 = vadd.f32 %v5705_v22, %v4884_v13  ;;  %v6780_v1 = vpop.f32.mrf.mxu3  ;;  %v4747_v20 = vpop.f32.mrf.mxu1  ;;  %v13825_v13 = vld [vmem:[#allocation24_spill] sm:$0xff] }
 0x7e2   : > { %v4885_v50 = vadd.f32 %v4747_v20, %v12501_v33 }
 0x7e3   : > { %v7887_v18 = vpack.c.bf16 %v7776_v12, %v7776_v12  ;;  %v6920_v27 = vadd.f32 %v6780_v1, %v5845_v29 }
 0x7e4   : > { %8641 = vmatmul.msk.bf16.gmra.mxu1 %vm680_vm2, %v4331_v56 }
 0x7e5   : > { %7999 = vst.msk [vmem:[%s12646_s16 + $0x170] sm:$0xf] %vm7906_vm3, %v7887_v18  ;;  %v7551_v46 = vadd.f32 %v7411_v9, %v6920_v27  ;;  %8918 = vmatmul.msk.bf16.gmra.mxu2 %vm680_vm2, %v5292_v14  ;;  %8975 = vmatmul.msk.bf16.gmra.mxu3 %vm680_vm2, %v6366_v42 }
 0x7e7   : > { %v7666_v44 = vadd.f32 %v13445_v34, %v7551_v46  ;;  %v13826_v46 = vld [vmem:[#allocation27_spill] sm:$0xff] }
 0x7e8   : > { %v7414_v30 = vpop.f32.mrf.mxu0  ;;  %v5708_v10 = vpop.f32.mrf.mxu2 }
 0x7e9   : > { %v7777_v38 = vmax.f32 %v7666_v44, 0.0  ;;  %v5846_v6 = vadd.f32 %v5708_v10, %v4885_v50  ;;  %v6783_v7 = vpop.f32.mrf.mxu3  ;;  %v4749_v31 = vpop.f32.mrf.mxu1 }
 0x7ea   : > { %v4886_v2 = vadd.f32 %v4749_v31, %v12511_v62 }
 0x7eb   : > { %v7888_v60 = vpack.c.bf16 %v7777_v38, %v7777_v38  ;;  %v6921_v11 = vadd.f32 %v6783_v7, %v5846_v6  ;;  %9032 = vmatmul.msk.bf16.gmra.mxu0 %vm680_vm2, %v6998_v28 }
 0x7ed   : > { %8000 = vst.msk [vmem:[%s12646_s16 + $0x174] sm:$0xf] %vm7906_vm3, %v7888_v60  ;;  %v7552_v48 = vadd.f32 %v7414_v30, %v6921_v11 }
 0x7ef   : > { %v7667_v42 = vadd.f32 %v13445_v34, %v7552_v48  ;;  %v13827_v48 = vld [vmem:[#allocation25_spill] sm:$0xff] }
 0x7f0   : > { %v7416_v33 = vpop.f32.mrf.mxu0  ;;  %v5710_v54 = vpop.f32.mrf.mxu2 }
 0x7f1   : > { %v7778_v19 = vmax.f32 %v7667_v42, 0.0  ;;  %v5847_v36 = vadd.f32 %v5710_v54, %v4886_v2  ;;  %v6785_v49 = vpop.f32.mrf.mxu3  ;;  %v4752_v32 = vpop.f32.mrf.mxu1 }
 0x7f2   : > { %v4887_v39 = vadd.f32 %v4752_v32, %v12516_v41 }
 0x7f3   : > { %v7889_v57 = vpack.c.bf16 %v7778_v19, %v7778_v19  ;;  %v6922_v35 = vadd.f32 %v6785_v49, %v5847_v36 }
 0x7f5   : > { %8001 = vst.msk [vmem:[%s12646_s16 + $0x178] sm:$0xf] %vm7906_vm3, %v7889_v57  ;;  %v7553_v43 = vadd.f32 %v7416_v33, %v6922_v35 }
 0x7f7   : > { %v7668_v0 = vadd.f32 %v13445_v34, %v7553_v43 }
 0x7f8   : > { %v7419_v25 = vpop.f32.mrf.mxu0  ;;  %v5713_v23 = vpop.f32.mrf.mxu2 }
 0x7f9   : > { %v7779_v45 = vmax.f32 %v7668_v0, 0.0  ;;  %v5848_v62 = vadd.f32 %v5713_v23, %v4887_v39  ;;  %v6788_v15 = vpop.f32.mrf.mxu3  ;;  %v4754_v61 = vpop.f32.mrf.mxu1  ;;  %v13828_v0 = vld [vmem:[#allocation30_spill] sm:$0xff] }
 0x7fa   : > { %v4888_v4 = vadd.f32 %v4754_v61, %v13824_v58  ;;  %v13829_v58 = vld [vmem:[#allocation33_spill] sm:$0xff] }
 0x7fb   : > { %v7890_v47 = vpack.c.bf16 %v7779_v45, %v7779_v45  ;;  %v6923_v52 = vadd.f32 %v6788_v15, %v5848_v62 }
 0x7fd   : > { %8002 = vst.msk [vmem:[%s12646_s16 + $0x17c] sm:$0xf] %vm7906_vm3, %v7890_v47  ;;  %v7554_v55 = vadd.f32 %v7419_v25, %v6923_v52 }
 0x7ff   : > { %v7669_v17 = vadd.f32 %v13445_v34, %v7554_v55 }
 0x800   : > { %v7421_v8 = vpop.f32.mrf.mxu0  ;;  %v5715_v40 = vpop.f32.mrf.mxu2 }
 0x801   : > { %v7780_v53 = vmax.f32 %v7669_v17, 0.0  ;;  %v5849_v41 = vadd.f32 %v5715_v40, %v4888_v4  ;;  %v6790_v5 = vpop.f32.mrf.mxu3  ;;  %v4757_v3 = vpop.f32.mrf.mxu1 }
 0x802   : > { %v4889_v9 = vadd.f32 %v4757_v3, %v13825_v13  ;;  %v13830_v13 = vld [vmem:[#allocation36_spill] sm:$0xff] }
 0x803   : > { %v7891_v16 = vpack.c.bf16 %v7780_v53, %v7780_v53  ;;  %v6924_v37 = vadd.f32 %v6790_v5, %v5849_v41 }
 0x805   : > { %8003 = vst.msk [vmem:[%s12646_s16 + $0x180] sm:$0xf] %vm7906_vm3, %v7891_v16  ;;  %v7555_v51 = vadd.f32 %v7421_v8, %v6924_v37 }
 0x807   : > { %v7670_v26 = vadd.f32 %v13445_v34, %v7555_v51 }
 0x808   : > { %v7424_v22 = vpop.f32.mrf.mxu0  ;;  %v5718_v56 = vpop.f32.mrf.mxu2 }
 0x809   : > { %v7781_v12 = vmax.f32 %v7670_v26, 0.0  ;;  %v5850_v29 = vadd.f32 %v5718_v56, %v4889_v9  ;;  %v6793_v1 = vpop.f32.mrf.mxu3  ;;  %v4759_v20 = vpop.f32.mrf.mxu1 }
 0x80a   : > { %v4890_v44 = vadd.f32 %v4759_v20, %v13826_v46  ;;  %v13831_v46 = vld [vmem:[#allocation39_spill] sm:$0xff] }
 0x80b   : > { %v7892_v14 = vpack.c.bf16 %v7781_v12, %v7781_v12  ;;  %v6925_v18 = vadd.f32 %v6793_v1, %v5850_v29 }
 0x80d   : > { %8004 = vst.msk [vmem:[%s12646_s16 + $0x184] sm:$0xf] %vm7906_vm3, %v7892_v14  ;;  %v7556_v27 = vadd.f32 %v7424_v22, %v6925_v18 }
 0x80f   : > { %v7671_v59 = vadd.f32 %v13445_v34, %v7556_v27 }
 0x810   : > { %v7426_v50 = vpop.f32.mrf.mxu0  ;;  %v5720_v28 = vpop.f32.mrf.mxu2 }
 0x811   : > { %v7782_v30 = vmax.f32 %v7671_v59, 0.0  ;;  %v5851_v10 = vadd.f32 %v5720_v28, %v4890_v44  ;;  %v6795_v38 = vpop.f32.mrf.mxu3  ;;  %v4762_v6 = vpop.f32.mrf.mxu1 }
 0x812   : > { %v4891_v42 = vadd.f32 %v4762_v6, %v13827_v48  ;;  %v13832_v48 = vld [vmem:[#allocation42_spill] sm:$0xff] }
 0x813   : > { %v7893_v7 = vpack.c.bf16 %v7782_v30, %v7782_v30  ;;  %v6926_v31 = vadd.f32 %v6795_v38, %v5851_v10 }
 0x815   : > { %8005 = vst.msk [vmem:[%s12646_s16 + $0x188] sm:$0xf] %vm7906_vm3, %v7893_v7  ;;  %v7557_v60 = vadd.f32 %v7426_v50, %v6926_v31 }
 0x817   : > { %v7672_v11 = vadd.f32 %v13445_v34, %v7557_v60 }
 0x818   : > { %v7429_v2 = vpop.f32.mrf.mxu0  ;;  %v5723_v33 = vpop.f32.mrf.mxu2 }
 0x819   : > { %v7783_v54 = vmax.f32 %v7672_v11, 0.0  ;;  %v5852_v19 = vadd.f32 %v5723_v33, %v4891_v42  ;;  %v6798_v36 = vpop.f32.mrf.mxu3  ;;  %v4764_v49 = vpop.f32.mrf.mxu1 }
 0x81a   : > { %v4892_v39 = vadd.f32 %v4764_v49, %v13828_v0  ;;  %v13833_v0 = vld [vmem:[#allocation45_spill] sm:$0xff] }
 0x81b   : > { %v7894_v32 = vpack.c.bf16 %v7783_v54, %v7783_v54  ;;  %v6927_v57 = vadd.f32 %v6798_v36, %v5852_v19 }
 0x81d   : > { %8006 = vst.msk [vmem:[%s12646_s16 + $0x18c] sm:$0xf] %vm7906_vm3, %v7894_v32  ;;  %v7558_v35 = vadd.f32 %v7429_v2, %v6927_v57 }
 0x81f   : > { %v7673_v43 = vadd.f32 %v13445_v34, %v7558_v35 }
 0x820   : > { %v7431_v25 = vpop.f32.mrf.mxu0  ;;  %v5725_v23 = vpop.f32.mrf.mxu2 }
 0x821   : > { %v7784_v45 = vmax.f32 %v7673_v43, 0.0  ;;  %v5853_v62 = vadd.f32 %v5725_v23, %v4892_v39  ;;  %v6800_v15 = vpop.f32.mrf.mxu3  ;;  %v4767_v61 = vpop.f32.mrf.mxu1 }
 0x822   : > { %v4893_v4 = vadd.f32 %v4767_v61, %v13829_v58  ;;  %v13834_v58 = vld [vmem:[#allocation48_spill] sm:$0xff] }
 0x823   : > { %v7895_v47 = vpack.c.bf16 %v7784_v45, %v7784_v45  ;;  %v6928_v52 = vadd.f32 %v6800_v15, %v5853_v62 }
 0x825   : > { %8007 = vst.msk [vmem:[%s12646_s16 + $0x190] sm:$0xf] %vm7906_vm3, %v7895_v47  ;;  %v7559_v55 = vadd.f32 %v7431_v25, %v6928_v52 }
 0x827   : > { %v7674_v17 = vadd.f32 %v13445_v34, %v7559_v55 }
 0x828   : > { %v7434_v8 = vpop.f32.mrf.mxu0  ;;  %v5728_v40 = vpop.f32.mrf.mxu2 }
 0x829   : > { %v7785_v53 = vmax.f32 %v7674_v17, 0.0  ;;  %v5854_v41 = vadd.f32 %v5728_v40, %v4893_v4  ;;  %v6803_v5 = vpop.f32.mrf.mxu3  ;;  %v4769_v3 = vpop.f32.mrf.mxu1 }
 0x82a   : > { %v4894_v9 = vadd.f32 %v4769_v3, %v13830_v13 }
 0x82b   : > { %v7896_v16 = vpack.c.bf16 %v7785_v53, %v7785_v53  ;;  %v6929_v37 = vadd.f32 %v6803_v5, %v5854_v41 }
 0x82d   : > { %8008 = vst.msk [vmem:[%s12646_s16 + $0x194] sm:$0xf] %vm7906_vm3, %v7896_v16  ;;  %v7560_v51 = vadd.f32 %v7434_v8, %v6929_v37 }
 0x82f   : > { %v7675_v26 = vadd.f32 %v13445_v34, %v7560_v51 }
 0x830   : > { %v7436_v22 = vpop.f32.mrf.mxu0  ;;  %v5730_v56 = vpop.f32.mrf.mxu2 }
 0x831   : > { %v7786_v12 = vmax.f32 %v7675_v26, 0.0  ;;  %v5855_v29 = vadd.f32 %v5730_v56, %v4894_v9  ;;  %v6805_v1 = vpop.f32.mrf.mxu3  ;;  %v4772_v20 = vpop.f32.mrf.mxu1 }
 0x832   : > { %v4895_v44 = vadd.f32 %v4772_v20, %v13831_v46 }
 0x833   : > { %v7897_v14 = vpack.c.bf16 %v7786_v12, %v7786_v12  ;;  %v6930_v18 = vadd.f32 %v6805_v1, %v5855_v29 }
 0x835   : > { %8009 = vst.msk [vmem:[%s12646_s16 + $0x198] sm:$0xf] %vm7906_vm3, %v7897_v14  ;;  %v7561_v27 = vadd.f32 %v7436_v22, %v6930_v18 }
 0x837   : > { %v7676_v59 = vadd.f32 %v13445_v34, %v7561_v27 }
 0x838   : > { %v7439_v50 = vpop.f32.mrf.mxu0  ;;  %v5733_v28 = vpop.f32.mrf.mxu2 }
 0x839   : > { %v7787_v30 = vmax.f32 %v7676_v59, 0.0  ;;  %v5856_v10 = vadd.f32 %v5733_v28, %v4895_v44  ;;  %v6808_v38 = vpop.f32.mrf.mxu3  ;;  %v4774_v6 = vpop.f32.mrf.mxu1 }
 0x83a   : > { %v4896_v42 = vadd.f32 %v4774_v6, %v13832_v48 }
 0x83b   : > { %v7898_v7 = vpack.c.bf16 %v7787_v30, %v7787_v30  ;;  %v6931_v31 = vadd.f32 %v6808_v38, %v5856_v10 }
 0x83d   : > { %8010 = vst.msk [vmem:[%s12646_s16 + $0x19c] sm:$0xf] %vm7906_vm3, %v7898_v7  ;;  %v7562_v60 = vadd.f32 %v7439_v50, %v6931_v31 }
 0x83f   : > { %v7677_v11 = vadd.f32 %v13445_v34, %v7562_v60 }
 0x840   : > { %v7441_v2 = vpop.f32.mrf.mxu0  ;;  %v5735_v33 = vpop.f32.mrf.mxu2 }
 0x841   : > { %v7788_v54 = vmax.f32 %v7677_v11, 0.0  ;;  %v5857_v19 = vadd.f32 %v5735_v33, %v4896_v42  ;;  %v6810_v36 = vpop.f32.mrf.mxu3  ;;  %v4777_v49 = vpop.f32.mrf.mxu1 }
 0x842   : > { %v4897_v39 = vadd.f32 %v4777_v49, %v13833_v0 }
 0x843   : > { %v7899_v32 = vpack.c.bf16 %v7788_v54, %v7788_v54  ;;  %v6932_v57 = vadd.f32 %v6810_v36, %v5857_v19 }
 0x845   : > { %8011 = vst.msk [vmem:[%s12646_s16 + $0x1a0] sm:$0xf] %vm7906_vm3, %v7899_v32  ;;  %v7563_v35 = vadd.f32 %v7441_v2, %v6932_v57 }
 0x847   : > { %v7678_v43 = vadd.f32 %v13445_v34, %v7563_v35 }
 0x848   : > { %v7444_v25 = vpop.f32.mrf.mxu0  ;;  %v5738_v23 = vpop.f32.mrf.mxu2 }
 0x849   : > { %v7789_v45 = vmax.f32 %v7678_v43, 0.0  ;;  %v5858_v62 = vadd.f32 %v5738_v23, %v4897_v39  ;;  %v6813_v15 = vpop.f32.mrf.mxu3  ;;  %v4779_v61 = vpop.f32.mrf.mxu1 }
 0x84a   : > { %v4898_v4 = vadd.f32 %v4779_v61, %v13834_v58 }
 0x84b   : > { %v7900_v47 = vpack.c.bf16 %v7789_v45, %v7789_v45  ;;  %v6933_v52 = vadd.f32 %v6813_v15, %v5858_v62 }
 0x84d   : > { %8012 = vst.msk [vmem:[%s12646_s16 + $0x1a4] sm:$0xf] %vm7906_vm3, %v7900_v47  ;;  %v7564_v55 = vadd.f32 %v7444_v25, %v6933_v52 }
 0x84f   : > { %v7679_v17 = vadd.f32 %v13445_v34, %v7564_v55 }
 0x850   : > { %v7446_v8 = vpop.f32.mrf.mxu0  ;;  %v5740_v40 = vpop.f32.mrf.mxu2 }
 0x851   : > { %v7790_v53 = vmax.f32 %v7679_v17, 0.0  ;;  %v5859_v41 = vadd.f32 %v5740_v40, %v4898_v4  ;;  %v6815_v5 = vpop.f32.mrf.mxu3  ;;  %v4782_v3 = vpop.f32.mrf.mxu1 }
 0x852   : > { %v4899_v13 = vadd.f32 %v4782_v3, %v12606_v21 }
 0x853   : > { %v7901_v16 = vpack.c.bf16 %v7790_v53, %v7790_v53  ;;  %v6934_v37 = vadd.f32 %v6815_v5, %v5859_v41 }
 0x855   : > { %8013 = vst.msk [vmem:[%s12646_s16 + $0x1a8] sm:$0xf] %vm7906_vm3, %v7901_v16  ;;  %v7565_v51 = vadd.f32 %v7446_v8, %v6934_v37 }
 0x857   : > { %v7680_v26 = vadd.f32 %v13445_v34, %v7565_v51 }
 0x858   : > { %v7449_v9 = vpop.f32.mrf.mxu0  ;;  %v5743_v22 = vpop.f32.mrf.mxu2 }
 0x859   : > { %v7791_v56 = vmax.f32 %v7680_v26, 0.0  ;;  %v5860_v12 = vadd.f32 %v5743_v22, %v4899_v13  ;;  %v6818_v29 = vpop.f32.mrf.mxu3  ;;  %v4784_v1 = vpop.f32.mrf.mxu1 }
 0x85a   : > { %v4900_v59 = vadd.f32 %v4784_v1, %v12615_v63 }
 0x85b   : > { %v7902_v20 = vpack.c.bf16 %v7791_v56, %v7791_v56  ;;  %v6935_v14 = vadd.f32 %v6818_v29, %v5860_v12 }
 0x85d   : > { %8014 = vst.msk [vmem:[%s12646_s16 + $0x1ac] sm:$0xf] %vm7906_vm3, %v7902_v20  ;;  %v7566_v18 = vadd.f32 %v7449_v9, %v6935_v14 }
 0x85f   : > { %v7681_v27 = vadd.f32 %v13445_v34, %v7566_v18 }
 0x860   : > { %v7451_v46 = vpop.f32.mrf.mxu0  ;;  %v5745_v44 = vpop.f32.mrf.mxu2 }
 0x861   : > { %v7792_v50 = vmax.f32 %v7681_v27, 0.0  ;;  %v5861_v21 = vadd.f32 %v5745_v44, %v4900_v59  ;;  %v6820_v28 = vpop.f32.mrf.mxu3  ;;  %v4787_v30 = vpop.f32.mrf.mxu1 }
 0x862   : > { %v4901_v31 = vadd.f32 %v4787_v30, %v12621_v24 }
 0x863   : > { %v7903_v10 = vpack.c.bf16 %v7792_v50, %v7792_v50  ;;  %v6936_v38 = vadd.f32 %v6820_v28, %v5861_v21 }
 0x865   : > { %8015 = vst.msk [vmem:[%s12646_s16 + $0x1b0] sm:$0xf] %vm7906_vm3, %v7903_v10  ;;  %v7567_v6 = vadd.f32 %v7451_v46, %v6936_v38 }
 0x867   : > { %v7682_v7 = vadd.f32 %v13445_v34, %v7567_v6 }
 0x868   : > { %v7454_v60 = vpop.f32.mrf.mxu0  ;;  %v5748_v11 = vpop.f32.mrf.mxu2 }
 0x869   : > { %v7793_v63 = vmax.f32 %v7682_v7, 0.0  ;;  %v5862_v48 = vadd.f32 %v5748_v11, %v4901_v31  ;;  %v6823_v42 = vpop.f32.mrf.mxu3  ;;  %v4789_v2 = vpop.f32.mrf.mxu1 }
 0x86b   : > { %v7904_v33 = vpack.c.bf16 %v7793_v63, %v7793_v63  ;;  %v6937_v54 = vadd.f32 %v6823_v42, %v5862_v48 }
 0x86d   : > { %8016 = vst.msk [vmem:[%s12646_s16 + $0x1b4] sm:$0xf] %vm7906_vm3, %v7904_v33  ;;  %v7568_v19 = vadd.f32 %v7454_v60, %v6937_v54 }
 0x86f   : > { %v7683_v36 = vadd.f32 %v13445_v34, %v7568_v19 }
 0x870   : > { %v7456_v49 = vpop.f32.mrf.mxu0  ;;  %v5750_v32 = vpop.f32.mrf.mxu2 }
 0x871   : > { %v7794_v57 = vmax.f32 %v7683_v36, 0.0  ;;  %v6825_v35 = vpop.f32.mrf.mxu3 }
 0x873   : > { %v7905_v43 = vpack.c.bf16 %v7794_v57, %v7794_v57 }
 0x875   : > { %8017 = vst.msk [vmem:[%s12646_s16 + $0x1b8] sm:$0xf] %vm7906_vm3, %v7905_v43 }
 0x876 PF: > { %s13_s12 = sadd.s32 1, %s11138_s12  }
 0x877   : > { %p10_p4 = scmp.ge.s32.totalorder %s13_s12, 4  }
 0x879   :  { %12 = sbr.rel (!%p10_p4) target bundleno = 1 (0x1), region = 70 }

// kernel: sunet3d2d_forward.6
= control target key start
LH: loop header
LB: loop body
LE: loop exit
PB: predicated region body
PF: predicated region fallthrough
CT: control target
= control target key end

     0   :  { %s1917_s12 = smov 0   ;;  %s2388_s0 = inlined_call_operand.vmem [shape: bf16[2,144,24], index: 0, kind: input, shape index: {}]   ;;  %s2389_s1 = inlined_call_operand.vmem [shape: bf16[9,24,16], index: 1, kind: input, shape index: {}]   ;;  %s2390_s2 = inlined_call_operand.vmem [shape: f32[1,16], index: 2, kind: input, shape index: {}]   ;;  %s2391_s3 = inlined_call_operand.vmem [shape: bf16[2,118,16], index: 3, kind: output, shape index: {}]  }
   0x1 LB: > { %s1625_s13 = sadd.s32 4294967295, %s1895_s12   ;;  %p1629_p0 = scmp.ge.s32.totalorder %s1895_s12, 1  ;;  %s1895_s12 = sphi %s1917_s12, %s13_s12  }
   0x2   : > { %p137_p1 = scmp.lt.s32.totalorder %s1895_s12, 3 }
   0x4   : > { %p138_p2 = pnand %p1629_p0, %p137_p1 }
   0x5   : > { %p161_p3 = scmp.lt.s32.totalorder (!%p138_p2), %s1625_s13, 1 }
   0x6   : > { %141 = sbr.rel (%p138_p2) target bundleno = 444 (0x1bc), region = 32 }
   0xb   : > { %v1634_v0 = vld [vmem:[%s2389_s1 + $0x14] sm:$0xf]  ;;  %v1685_v2 = vld [vmem:[%s2389_s1 + $0x20] sm:$0xf]  ;;  %v1700_v3 = vld [vmem:[%s2389_s1 + $0x2c] sm:$0xf] }
   0xc   : > { %v302_v1 = vunpack.c.l.b16 %v1634_v0  ;;  %vm331_vm0 = vcmask 1043456   ;;  %s2393_s13 = smov (!%p161_p3, %s1625_s13), 1  ;;  %v492_v4 = vunpack.c.l.b16 %v1685_v2  ;;  %v667_v5 = vunpack.c.l.b16 %v1700_v3  ;;  %v189_v6 = vld [vmem:[%s2389_s1 + $0x8] sm:$0xf]  ;;  %v1739_v7 = vld [vmem:[%s2389_s1 + $0x38] sm:$0xf] }
   0xd   : > { %v391_v9 = vunpack.c.l.b16 %v189_v6  ;;  %v846_v10 = vunpack.c.l.b16 %v1739_v7  ;;  %s1878_s24 = smul.u32 72, %s2393_s13  ;;  %v1845_v16 = vld [vmem:[%s2389_s1 + $0xc] sm:$0xff]  ;;  %vm306_vm1 = vcmask 195584   ;;  %vm233_vm2 = vsmask.f32 7424  ;;  %v1846_v49 = vld [vmem:[%s2389_s1 + $0x18] sm:$0xff] }
   0xe   : > { %v304_v8 = vpack.c.b16 %v302_v1, %v302_v1  ;;  %v494_v11 = vpack.c.b16 %v492_v4, %v492_v4  ;;  %v669_v12 = vpack.c.b16 %v667_v5, %v667_v5  ;;  %v1853_v50 = vld [vmem:[%s2389_s1 + $0x24] sm:$0xff]  ;;  %v1854_v58 = vld [vmem:[%s2389_s1 + $0x30] sm:$0xff]  ;;  %v1808_v2 = vld [vmem:[%s2389_s1 + $0x5c] sm:$0xf]  ;;  %vm471_vm3 = vcmask 1046528   ;;  %s1879_s4 = smul.u32 60, %s2393_s13 }
   0xf   : > { %v393_v14 = vpack.c.b16 %v391_v9, %v391_v9  ;;  %v848_v15 = vpack.c.b16 %v846_v10, %v846_v10  ;;  %s1950_s29 = scalar_lea.vmem %s2388_s0, %s1878_s24  ;;  %v1844_v53 = vld [vmem:[%s2389_s1] sm:$0xff]  ;;  %v1769_v63 = vld [vmem:[%s2389_s1 + $0x50] sm:$0xf]  ;;  %v1823_v5 = vld [vmem:[%s2389_s1 + $0x68] sm:$0xf]  ;;  %v1288_v6 = vunpack.c.l.b16 %v1808_v2  ;;  %vm646_vm4 = vcmask 1045504  }
  0x10   : > { %v333_v13 = vsel %vm331_vm0, %v304_v8, 0  ;;  %v1953_v17 = vld [vmem:[%s1950_s29 + $0x10] sm:$0xff]  ;;  %v1956_v18 = vld [vmem:[%s1950_s29 + $0x18] sm:$0xff]  ;;  %v1959_v19 = vld [vmem:[%s1950_s29 + $0x20] sm:$0xff]  ;;  %v521_v20 = vsel %vm331_vm0, %v494_v11, 0  ;;  %v696_v24 = vsel %vm331_vm0, %v669_v12, 0  ;;  %v1125_v4 = vunpack.c.l.b16 %v1769_v63  ;;  %s2327_s7 = scalar_lea.vmem %s2391_s3, %s1879_s4 }
  0x11   : > { %1872 = vmatpush.bf16.msra.mxu1 %v333_v13  ;;  %1873 = vmatpush.bf16.msra.mxu2 %v333_v13  ;;  %v1963_v21 = vld [vmem:[%s1950_s29 + $0x28] sm:$0xff]  ;;  %v1966_v22 = vld [vmem:[%s1950_s29 + $0x30] sm:$0xff]  ;;  %v1969_v23 = vld [vmem:[%s1950_s29 + $0x38] sm:$0xff]   ;;  %v413_v25 = vsel %vm331_vm0, %v393_v14, 0  ;;  %v875_v26 = vsel %vm331_vm0, %v848_v15, 0  ;;  %v250_v27 = vshll.u32 %v1953_v17, 16  ;;  %v1410_v9 = vunpack.c.l.b16 %v1823_v5 }
  0x12   : > { %1874 = vmatpush.bf16.msra.mxu3 %v333_v13  ;;  %341 = vmatpush.bf16.msra.mxu0 %v333_v13  ;;  %v254_v28 = vshrl.u32 %v1953_v17, 16  ;;  %v258_v29 = vshll.u32 %v1956_v18, 16  ;;  %v266_v30 = vshll.u32 %v1959_v19, 16  ;;  %v1979_v31 = vld [vmem:[%s1950_s29 + $0x8] sm:$0xff]  ;;  %v270_v32 = vshrl.u32 %v1959_v19, 16  ;;  %v1986_v36 = vld [vmem:[%s1950_s29] sm:$0xff]  }
  0x13   : > { %v274_v33 = vshll.u32 %v1963_v21, 16  ;;  %v224_v34 = vunpack.c.l.b16 %v1969_v23  ;;  %v282_v35 = vshll.u32 %v1966_v22, 16  ;;  %v1988_v37 = vrot.slane %v250_v27, 1  ;;  %v1754_v3 = vld [vmem:[%s2389_s1 + $0x44] sm:$0xf] }
  0x14   : > { %v260_v38 = vrot.slane %v258_v29, 1  ;;  %v268_v39 = vrot.slane %v266_v30, 1  ;;  %v286_v40 = vshrl.u32 %v1966_v22, 16  ;;  %v235_v44 = vshrl.u32 %v1986_v36, 16 }
  0x15   : > { %1875 = vmatpush.bf16.msra.mxu1 %v1845_v16  ;;  %1876 = vmatpush.bf16.msra.mxu2 %v1845_v16  ;;  %v276_v41 = vrot.slane %v274_v33, 1  ;;  %v1991_v42 = vpack.c.b16 %v224_v34, %v224_v34  ;;  %v284_v43 = vrot.slane %v282_v35, 1  ;;  %v256_v45 = vor.u32 %v254_v28, %v1988_v37 }
  0x16   : > { %1877 = vmatpush.bf16.msra.mxu3 %v1845_v16  ;;  %342 = vmatpush.bf16.msra.mxu0 %v1845_v16  ;;  %v272_v46 = vor.u32 %v270_v32, %v268_v39  ;;  %v237_v47 = vshll.u32 %v1986_v36, 16  ;;  %v242_v48 = vshll.u32 %v1979_v31, 16  ;;  %v262_v0 = vshrl.u32 %v1956_v18, 16  ;;  %v586_v16 = vld [vmem:[%s1950_s29 + $0x4] sm:$0xc] }
  0x17   : > { %v288_v51 = vor.u32 %v286_v40, %v284_v43  ;;  %v290_v52 = vshll.u32 %v1991_v42, 16  ;;  %v261_v54 = vsel %vm233_vm2, %v256_v45, %v260_v38  ;;  %v278_v1 = vshrl.u32 %v1963_v21, 16  ;;  %v1870_v40 = vld [vmem:[%s1950_s29] sm:$0xe] }
  0x18   : > { %v277_v55 = vsel %vm233_vm2, %v272_v46, %v276_v41  ;;  %v239_v56 = vrot.slane %v237_v47, 1  ;;  %v244_v57 = vrot.slane %v242_v48, 1  ;;  %1665 = vmatmul.msk.bf16.vlgmr.msra.gmra.mxu1 %vm306_vm1, %v261_v54  ;;  %v1127_v7 = vpack.c.b16 %v1125_v4, %v1125_v4 }
  0x19   : > { %529 = vmatpush.bf16.msrb.mxu2 %v521_v20  ;;  %421 = vmatpush.bf16.msrb.mxu1 %v413_v25  ;;  %v292_v59 = vrot.slane %v290_v52, 1  ;;  %v969_v8 = vunpack.c.l.b16 %v1754_v3  ;;  %v264_v10 = vor.u32 %v262_v0, %v260_v38  ;;  %v280_v11 = vor.u32 %v278_v1, %v276_v41  ;;  %v2036_v20 = vld [vmem:[%s1950_s29 + $0x8] sm:$0xff]  }
  0x1a   : > { %704 = vmatpush.bf16.msrb.mxu3 %v696_v24  ;;  %883 = vmatpush.bf16.msrb.mxu0 %v875_v26  ;;  %v240_v60 = vor.u32 %v239_v56, %v235_v44  ;;  %v246_v12 = vshrl.u32 %v1979_v31, 16  ;;  %v1154_v13 = vsel %vm331_vm0, %v1127_v7, 0  ;;  %v1290_v14 = vpack.c.b16 %v1288_v6, %v1288_v6  ;;  %v2052_v41 = vld [vmem:[%s1950_s29 + $0xc] sm:$0xff]  ;;  %v2084_v7 = vld [vmem:[%s1950_s29 + $0x1c] sm:$0xff] }
  0x1b   : > { %1667 = vmatmul.msk.bf16.vlgmr.msra.gmra.mxu2 %vm306_vm1, %v277_v55  ;;  %v293_v61 = vsel %vm233_vm2, %v288_v51, %v292_v59  ;;  %v971_v15 = vpack.c.b16 %v969_v8, %v969_v8  ;;  %v1412_v24 = vpack.c.b16 %v1410_v9, %v1410_v9  ;;  %v294_v25 = vshrl.u32 %v1991_v42, 16 }
  0x1c   : > { %1669 = vmatmul.msk.bf16.vlgmr.msra.gmra.mxu3 %vm306_vm1, %v293_v61  ;;  %v245_v62 = vsel %vm233_vm2, %v240_v60, %v244_v57  ;;  %v1317_v26 = vsel %vm331_vm0, %v1290_v14, 0  ;;  %v269_v28 = vsel %vm233_vm2, %v264_v10, %v268_v39  ;;  %v285_v30 = vsel %vm233_vm2, %v280_v11, %v284_v43  ;;  %v1869_v39 = vld [vmem:[%s1950_s29] sm:$0xf0]  ;;  %v2069_v61 = vld [vmem:[%s1950_s29 + $0x14] sm:$0xff] }
  0x1d   : > { %530 = vmatpush.bf16.msrb.mxu2 %v1846_v49  ;;  %422 = vmatpush.bf16.msrb.mxu1 %v1844_v53  ;;  %v998_v27 = vsel %vm331_vm0, %v971_v15, 0  ;;  %v1439_v29 = vsel %vm331_vm0, %v1412_v24, 0  ;;  %v248_v32 = vor.u32 %v246_v12, %v244_v57  ;;  %v622_v33 = vunpack.c.l.b16 %v586_v16  ;;  %v2099_v24 = vld [vmem:[%s1950_s29 + $0x24] sm:$0xff] }
  0x1e   : > { %705 = vmatpush.bf16.msrb.mxu3 %v1853_v50  ;;  %884 = vmatpush.bf16.msrb.mxu0 %v1854_v58  ;;  %v623_v34 = vunpack.c.l.b16 %v2036_v20  ;;  %v296_v35 = vor.u32 %v294_v25, %v292_v59  ;;  %v1871_v44 = vor.u32 %v1870_v40, %v1869_v39  ;;  %v779_v47 = vshrl.u32 %v2052_v41, 16  ;;  %v1862_v25 = vld [vmem:[%s2389_s1 + $0x48] sm:$0xff] }
  0x1f   : > { %1663 = vmatmul.msk.bf16.vlgmr.msra.gmra.mxu0 %vm306_vm1, %v245_v62  ;;  %v253_v38 = vsel %vm233_vm2, %v248_v32, %v1988_v37  ;;  %v782_v48 = vshll.u32 %v2052_v41, 16  ;;  %v473_v37 = vrot.slane %v1979_v31, 1  ;;  %v648_v55 = vrot.slane %v2052_v41, 2 }
  0x20   : > { %v638_v43 = vpack.c.b16 %v623_v34, %v622_v33  ;;  %v472_v49 = vrot.slane %v1871_v44, 1  ;;  %v781_v52 = vrot.slane %v779_v47, 2  ;;  %vm769_vm5 = vsmask.f32 5376  ;;  %v2126_v44 = vld [vmem:[%s1950_s29 + $0x2c] sm:$0xff] }
  0x21   : > { %1162 = vmatpush.bf16.msra.mxu2 %v1154_v13  ;;  %1006 = vmatpush.bf16.msra.mxu1 %v998_v27  ;;  %v784_v53 = vrot.slane %v782_v48, 3  ;;  %v788_v62 = vshrl.u32 %v2069_v61, 16  ;;  %v791_v63 = vshll.u32 %v2069_v61, 16  ;;  %v475_v0 = vrot.slane %v1953_v17, 1  ;;  %v1864_v27 = vld [vmem:[%s2389_s1 + $0x60] sm:$0xff] }
  0x22   : > { %1325 = vmatpush.bf16.msra.mxu3 %v1317_v26  ;;  %1447 = vmatpush.bf16.msra.mxu0 %v1439_v29  ;;  %v771_v45 = vshrl.u32 %v638_v43, 16  ;;  %v774_v46 = vshll.u32 %v638_v43, 16  ;;  %v647_v54 = vrot.slane %v638_v43, 2  ;;  %v474_v56 = vsel %vm471_vm3, %v472_v49, %v473_v37  ;;  %v1855_v26 = vld [vmem:[%s2389_s1 + $0x3c] sm:$0xff] }
  0x23   : > { %v785_v58 = vor.u32 %v784_v53, %v781_v52  ;;  %v793_v1 = vrot.slane %v791_v63, 3  ;;  %v650_v2 = vrot.slane %v2069_v61, 2  ;;  %v476_v3 = vsel %vm471_vm3, %v473_v37, %v475_v0  ;;  %v2141_v53 = vld [vmem:[%s1950_s29 + $0x34] sm:$0xff] }
  0x24   : > { %v773_v50 = vrot.slane %v771_v45, 2  ;;  %v776_v51 = vrot.slane %v774_v46, 3  ;;  %v649_v59 = vsel %vm646_vm4, %v647_v54, %v648_v55  ;;  %v797_v8 = vshrl.u32 %v2084_v7, 16 }
  0x25   : > { %v651_v5 = vsel %vm646_vm4, %v648_v55, %v650_v2  ;;  %v800_v9 = vshll.u32 %v2084_v7, 16  ;;  %v477_v10 = vrot.slane %v1956_v18, 1  ;;  %v652_v12 = vrot.slane %v2084_v7, 2  ;;  %1163 = vmatpush.bf16.msra.mxu2 %v1862_v25  ;;  %1007 = vmatpush.bf16.msra.mxu1 %v1855_v26  ;;  %v186_v25 = vld [vmem:[%s1950_s29 + $0x38] sm:$0x7] }
  0x26   : > { %v777_v57 = vor.u32 %v776_v51, %v773_v50  ;;  %v809_v29 = vshll.u32 %v2099_v24, 16  ;;  %1448 = vmatpush.bf16.msra.mxu0 %v1864_v27  ;;  %v815_v45 = vshrl.u32 %v2126_v44, 16  ;;  %v818_v46 = vshll.u32 %v2126_v44, 16  ;;  %v1064_v27 = vld [vmem:[%s1950_s29 + $0x10] sm:$0xf] }
  0x27   : > { %v802_v11 = vrot.slane %v800_v9, 3  ;;  %v478_v13 = vsel %vm471_vm3, %v475_v0, %v477_v10  ;;  %v653_v15 = vsel %vm646_vm4, %v650_v2, %v652_v12  ;;  %v481_v47 = vrot.slane %v1963_v21, 1  ;;  %v601_v2 = vld [vmem:[%s1950_s29 + $0x40] sm:$0x1] }
  0x28   : > { %1666 = vmatmul.msk.bf16.gmra.mxu1 %vm306_vm1, %v269_v28  ;;  %v786_v60 = vsel %vm769_vm5, %v777_v57, %v785_v58  ;;  %v806_v28 = vshrl.u32 %v2099_v24, 16  ;;  %v811_v33 = vrot.slane %v809_v29, 3  ;;  %v820_v48 = vrot.slane %v818_v46, 3 }
  0x29   : > { %v656_v49 = vrot.slane %v2126_v44, 2  ;;  %v824_v54 = vshrl.u32 %v2141_v53, 16  ;;  %v827_v55 = vshll.u32 %v2141_v53, 16  ;;  %v636_v63 = vunpack.c.h.b16 %v1969_v23 }
  0x2a   : > { %v808_v32 = vrot.slane %v806_v28, 2  ;;  %vm948_vm6 = vcmask 1044480   ;;  %vm1553_vm7 = vcmask 125952   ;;  %vm1568_vm8 = vcmask 124928  }
  0x2b   : > { %1668 = vmatmul.msk.bf16.gmra.mxu2 %vm306_vm1, %v285_v30  ;;  %v479_v30 = vrot.slane %v1959_v19, 1  ;;  %v829_v57 = vrot.slane %v827_v55, 3 }
  0x2c   : > { %1670 = vmatmul.msk.bf16.gmra.mxu3 %vm306_vm1, %v296_v35  ;;  %v654_v35 = vrot.slane %v2099_v24, 2  ;;  %v812_v39 = vor.u32 %v811_v33, %v808_v32  ;;  %v1098_v32 = vunpack.c.l.b16 %v1064_v27 }
  0x2d   : > { %v482_v37 = vsel %vm471_vm3, %v479_v30, %v481_v47 }
  0x2e   : > { %v655_v40 = vsel %vm646_vm4, %v652_v12, %v654_v35  ;;  %v657_v51 = vsel %vm646_vm4, %v654_v35, %v656_v49 }
  0x2f   : > { %1664 = vmatmul.msk.bf16.gmra.mxu0 %vm306_vm1, %v253_v38  ;;  %v480_v38 = vsel %vm471_vm3, %v477_v10, %v479_v30  ;;  %v1097_v30 = vunpack.c.h.b16 %v2036_v20 }
  0x38   : > { %1675 = vmatmul.msk.bf16.vlgmr.msrb.gmra.mxu1 %vm306_vm1, %v1986_v36  ;;  %v790_v36 = vrot.slane %v788_v62, 2 }
  0x3a   : > { %v794_v4 = vor.u32 %v793_v1, %v790_v36 }
  0x3b   : > { %1690 = vmatmul.msk.bf16.vlgmr.msrb.gmra.mxu2 %vm306_vm1, %v474_v56  ;;  %v483_v56 = vrot.slane %v1966_v22, 1 }
  0x3c   : > { %1729 = vmatmul.msk.bf16.vlgmr.msrb.gmra.mxu3 %vm306_vm1, %v649_v59  ;;  %v795_v6 = vsel %vm769_vm5, %v785_v58, %v794_v4  ;;  %v761_v58 = vld [vmem:[%s1950_s29 + $0x40] sm:$0x3]  ;;  %v658_v59 = vrot.slane %v2141_v53, 2 }
  0x3d   : > { %v767_v0 = vunpack.c.l.b16 %v761_v58 }
  0x3e   : > { %v659_v36 = vsel %vm646_vm4, %v656_v49, %v658_v59 }
  0x3f   : > { %1744 = vmatmul.msk.bf16.vlgmr.msrb.gmra.mxu0 %vm306_vm1, %v786_v60  ;;  %v484_v60 = vsel %vm471_vm3, %v481_v47, %v483_v56  ;;  %v1856_v47 = vld [vmem:[%s1950_s29 + $0x14] sm:$0xff] }
  0x48   : > { %1676 = vmatmul.msk.bf16.gmra.mxu1 %vm306_vm1, %v1979_v31  ;;  %v799_v31 = vrot.slane %v797_v8, 2 }
  0x4a   : > { %v803_v14 = vor.u32 %v802_v11, %v799_v31 }
  0x4b   : > { %1691 = vmatmul.msk.bf16.gmra.mxu2 %vm306_vm1, %v476_v3  ;;  %v2158_v3 = vpack.c.b16 %v767_v0, %v636_v63 }
  0x4c   : > { %1730 = vmatmul.msk.bf16.gmra.mxu3 %vm306_vm1, %v651_v5  ;;  %v804_v16 = vsel %vm769_vm5, %v794_v4, %v803_v14  ;;  %v813_v43 = vsel %vm769_vm5, %v803_v14, %v812_v39  ;;  %v637_v4 = vunpack.c.l.b16 %v601_v2 }
  0x4d   : > { %v833_v23 = vshrl.u32 %v2158_v3, 16  ;;  %v836_v5 = vshll.u32 %v2158_v3, 16 }
  0x4f   : > { %1745 = vmatmul.msk.bf16.gmra.mxu0 %vm306_vm1, %v795_v6  ;;  %v645_v6 = vpack.c.b16 %v637_v4, %v636_v63  ;;  %v835_v8 = vrot.slane %v833_v23, 2  ;;  %v838_v9 = vrot.slane %v836_v5, 3  ;;  %v1391_v63 = vrot.slane %v1856_v47, 1  ;;  %v1857_v5 = vld [vmem:[%s1950_s29 + $0x1c] sm:$0xff] }
  0x51   : > { %v660_v10 = vrot.slane %v645_v6, 2  ;;  %v839_v12 = vor.u32 %v838_v9, %v835_v8 }
  0x58   : > { %1677 = vmatmul.msk.bf16.gmra.mxu1 %vm306_vm1, %v1953_v17  ;;  %v1863_v17 = vld [vmem:[%s2389_s1 + $0x54] sm:$0xff] }
  0x59   : > { %1326 = vmatpush.bf16.msra.mxu3 %v1863_v17 }
  0x5b   : > { %1692 = vmatmul.msk.bf16.gmra.mxu2 %vm306_vm1, %v478_v13  ;;  %v661_v13 = vsel %vm646_vm4, %v658_v59, %v660_v10 }
  0x5c   : > { %1731 = vmatmul.msk.bf16.gmra.mxu3 %vm306_vm1, %v653_v15 }
  0x5f   : > { %1746 = vmatmul.msk.bf16.gmra.mxu0 %vm306_vm1, %v804_v16 }
  0x68   : > { %1678 = vmatmul.msk.bf16.gmra.mxu1 %vm306_vm1, %v1956_v18  ;;  %v817_v18 = vrot.slane %v815_v45, 2  ;;  %v1382_v45 = vld [vmem:[%s1950_s29 + $0xc] sm:$0xe] }
  0x6a   : > { %v821_v50 = vor.u32 %v820_v48, %v817_v18 }
  0x6b   : > { %1693 = vmatmul.msk.bf16.gmra.mxu2 %vm306_vm1, %v480_v38  ;;  %v940_v38 = vld [vmem:[%s1950_s29 + $0x4] sm:$0x8] }
  0x6c   : > { %1732 = vmatmul.msk.bf16.gmra.mxu3 %vm306_vm1, %v655_v40  ;;  %v822_v52 = vsel %vm769_vm5, %v812_v39, %v821_v50  ;;  %v1112_v39 = vpack.c.b16 %v1098_v32, %v1097_v30 }
  0x6e   : > { %v1229_v18 = vshll.u32 %v1112_v39, 16 }
  0x6f   : > { %1747 = vmatmul.msk.bf16.gmra.mxu0 %vm306_vm1, %v813_v43  ;;  %v946_v43 = vunpack.c.l.b16 %v940_v38 }
  0x71   : > { %v947_v49 = vpack.c.b16 %v623_v34, %v946_v43 }
  0x78   : > { %1679 = vmatmul.msk.bf16.gmra.mxu1 %vm306_vm1, %v1959_v19  ;;  %v826_v19 = vrot.slane %v824_v54, 2  ;;  %v1233_v54 = vshll.u32 %v1856_v47, 16 }
  0x7a   : > { %v830_v62 = vor.u32 %v829_v57, %v826_v19  ;;  %v950_v19 = vrot.slane %v2052_v41, 3 }
  0x7b   : > { %1694 = vmatmul.msk.bf16.gmra.mxu2 %vm306_vm1, %v482_v37  ;;  %v1388_v37 = vunpack.c.l.b16 %v1382_v45 }
  0x7c   : > { %1733 = vmatmul.msk.bf16.gmra.mxu3 %vm306_vm1, %v657_v51  ;;  %v831_v1 = vsel %vm769_vm5, %v821_v50, %v830_v62  ;;  %v1227_v51 = vshrl.u32 %v1112_v39, 16 }
  0x7d   : > { %v1389_v57 = vpack.c.b16 %v1098_v32, %v1388_v37  ;;  %v1393_v32 = vrot.slane %v1857_v5, 1 }
  0x7f   : > { %1748 = vmatmul.msk.bf16.gmra.mxu0 %vm306_vm1, %v822_v52  ;;  %v1231_v52 = vrot.slane %v1229_v18, 1  ;;  %v1390_v34 = vrot.slane %v1389_v57, 1  ;;  %v1394_v45 = vsel %vm471_vm3, %v1391_v63, %v1393_v32 }
  0x81   : > { %v1232_v59 = vor.u32 %v1231_v52, %v1227_v51  ;;  %v1392_v2 = vsel %vm471_vm3, %v1390_v34, %v1391_v63  ;;  %v1858_v51 = vld [vmem:[%s1950_s29 + $0x24] sm:$0xff] }
  0x88   : > { %1680 = vmatmul.msk.bf16.gmra.mxu1 %vm306_vm1, %v1963_v21  ;;  %v485_v21 = vrot.slane %v1991_v42, 1  ;;  %v840_v42 = vsel %vm769_vm5, %v830_v62, %v839_v12 }
  0x8a   : > { %v486_v11 = vsel %vm471_vm3, %v483_v56, %v485_v21  ;;  %v949_v56 = vrot.slane %v947_v49, 3 }
  0x8b   : > { %1695 = vmatmul.msk.bf16.gmra.mxu2 %vm306_vm1, %v484_v60  ;;  %v1235_v60 = vrot.slane %v1233_v54, 1 }
  0x8c   : > { %1734 = vmatmul.msk.bf16.gmra.mxu3 %vm306_vm1, %v659_v36  ;;  %v951_v20 = vsel %vm948_vm6, %v949_v56, %v950_v19 }
  0x8d   : > { %v1236_v41 = vsel %vm233_vm2, %v1232_v59, %v1235_v60  ;;  %v954_v59 = vrot.slane %v2084_v7, 3 }
  0x8f   : > { %1749 = vmatmul.msk.bf16.gmra.mxu0 %vm306_vm1, %v831_v1 }
  0x95   : > { %v2165_v31 = vpop.f32.mrf.mxu1 }
  0x98   : > { %1681 = vmatmul.msk.bf16.gmra.mxu1 %vm306_vm1, %v1966_v22  ;;  %v384_v22 = vunpack.c.l.b16 %v186_v25 }
  0x9a   : > { %v385_v29 = vpack.c.b16 %v384_v22, %v384_v22 }
  0x9b   : > { %1696 = vmatmul.msk.bf16.gmra.mxu2 %vm306_vm1, %v486_v11  ;;  %v1240_v11 = vshll.u32 %v1857_v5, 16 }
  0x9c   : > { %v344_v14 = vpop.f32.mrf.mxu0  ;;  %1735 = vmatmul.msk.bf16.gmra.mxu3 %vm306_vm1, %v661_v13  ;;  %v952_v13 = vrot.slane %v2069_v61, 3 }
  0x9d   : > { %v2177_v16 = vpop.f32.mrf.mxu1  ;;  %v1242_v27 = vrot.slane %v1240_v11, 1 }
  0x9e   : > { %v2174_v15 = vpop.f32.mrf.mxu2  ;;  %v953_v30 = vsel %vm948_vm6, %v950_v19, %v952_v13  ;;  %v1244_v19 = vshrl.u32 %v1857_v5, 16 }
  0x9f   : > { %1750 = vmatmul.msk.bf16.gmra.mxu0 %vm306_vm1, %v840_v42  ;;  %v2180_v17 = vpop.f32.mrf.mxu3 }
  0xa0   : > { %v1246_v34 = vor.u32 %v1244_v19, %v1242_v27 }
  0xa4   : > { %v346_v26 = vpop.f32.mrf.mxu0 }
  0xa5   : > { %v2186_v33 = vpop.f32.mrf.mxu1 }
  0xa6   : > { %v2183_v28 = vpop.f32.mrf.mxu2 }
  0xa7   : > { %v2188_v35 = vpop.f32.mrf.mxu3 }
  0xa8   : > { %1682 = vmatmul.msk.bf16.gmra.mxu1 %vm306_vm1, %v385_v29 }
  0xab   : > { %1697 = vmatmul.msk.bf16.gmra.mxu2 %vm306_vm1, %v485_v21 }
  0xac   : > { %v349_v40 = vpop.f32.mrf.mxu0  ;;  %1736 = vmatmul.msk.bf16.gmra.mxu3 %vm306_vm1, %v660_v10  ;;  %v1237_v10 = vshrl.u32 %v1856_v47, 16 }
  0xad   : > { %v2199_v48 = vpop.f32.mrf.mxu1 }
  0xae   : > { %v2195_v46 = vpop.f32.mrf.mxu2  ;;  %v1239_v22 = vor.u32 %v1237_v10, %v1235_v60 }
  0xaf   : > { %1751 = vmatmul.msk.bf16.gmra.mxu0 %vm306_vm1, %v839_v12  ;;  %v2203_v50 = vpop.f32.mrf.mxu3 }
  0xb0   : > { %v1243_v61 = vsel %vm233_vm2, %v1239_v22, %v1242_v27 }
  0xb4   : > { %v351_v55 = vpop.f32.mrf.mxu0 }
  0xb5   : > { %v424_v62 = vpop.f32.mrf.mxu1 }
  0xb6   : > { %v2206_v58 = vpop.f32.mrf.mxu2  ;;  %v425_v36 = vadd.f32 %v424_v62, %v344_v14 }
  0xb7   : > { %v381_v0 = vpop.f32.mrf.mxu3 }
  0xb8   : > { %1759 = vmatmul.msk.bf16.vlgmr.msra.gmra.mxu1 %vm306_vm1, %v951_v20 }
  0xbb   : > { %1798 = vmatmul.msk.bf16.vlgmr.msra.gmra.mxu2 %vm306_vm1, %v1112_v39 }
  0xbc   : > { %v886_v1 = vpop.f32.mrf.mxu0  ;;  %1813 = vmatmul.msk.bf16.vlgmr.msra.gmra.mxu3 %vm306_vm1, %v1236_v41  ;;  %v1395_v41 = vrot.slane %v1858_v51, 1 }
  0xbd   : > { %v426_v6 = vpop.f32.mrf.mxu1 }
  0xbe   : > { %v532_v4 = vpop.f32.mrf.mxu2  ;;  %v427_v8 = vadd.f32 %v426_v6, %v346_v26 }
  0xbf   : > { %1828 = vmatmul.msk.bf16.vlgmr.msra.gmra.mxu0 %vm306_vm1, %v1392_v2  ;;  %v571_v23 = vadd.f32 %v532_v4, %v425_v36  ;;  %v707_v21 = vpop.f32.mrf.mxu3  ;;  %v955_v36 = vsel %vm948_vm6, %v952_v13, %v954_v59 }
  0xc1   : > { %v746_v9 = vadd.f32 %v707_v21, %v571_v23  ;;  %v1396_v23 = vsel %vm471_vm3, %v1393_v32, %v1395_v41 }
  0xc3   : > { %v2217_v14 = vadd.f32 %v886_v1, %v746_v9  ;;  %v1859_v9 = vld [vmem:[%s1950_s29 + $0x2c] sm:$0xff] }
  0xc4   : > { %v888_v12 = vpop.f32.mrf.mxu0  ;;  %v1254_v13 = vshll.u32 %v1859_v9, 16 }
  0xc5   : > { %v429_v29 = vpop.f32.mrf.mxu1 }
  0xc6   : > { %v534_v42 = vpop.f32.mrf.mxu2  ;;  %v430_v39 = vadd.f32 %v429_v29, %v349_v40  ;;  %v1256_v32 = vrot.slane %v1254_v13, 1 }
  0xc7   : > { %v572_v25 = vadd.f32 %v534_v42, %v427_v8  ;;  %v709_v38 = vpop.f32.mrf.mxu3 }
  0xc8   : > { %1760 = vmatmul.msk.bf16.gmra.mxu1 %vm306_vm1, %v953_v30 }
  0xc9   : > { %v747_v26 = vadd.f32 %v709_v38, %v572_v25  ;;  %v956_v25 = vrot.slane %v2099_v24, 3 }
  0xcb   : > { %1799 = vmatmul.msk.bf16.gmra.mxu2 %vm306_vm1, %v1856_v47  ;;  %v2224_v18 = vadd.f32 %v888_v12, %v747_v26  ;;  %v1247_v47 = vshll.u32 %v1858_v51, 16  ;;  %v1397_v26 = vrot.slane %v1859_v9, 1 }
  0xcc   : > { %v891_v43 = vpop.f32.mrf.mxu0  ;;  %1814 = vmatmul.msk.bf16.gmra.mxu3 %vm306_vm1, %v1243_v61 }
  0xcd   : > { %v431_v40 = vpop.f32.mrf.mxu1  ;;  %v1249_v63 = vrot.slane %v1247_v47, 1 }
  0xce   : > { %v537_v49 = vpop.f32.mrf.mxu2  ;;  %v432_v54 = vadd.f32 %v431_v40, %v351_v55 }
  0xcf   : > { %1829 = vmatmul.msk.bf16.gmra.mxu0 %vm306_vm1, %v1394_v45  ;;  %v573_v37 = vadd.f32 %v537_v49, %v430_v39  ;;  %v712_v52 = vpop.f32.mrf.mxu3  ;;  %v1250_v7 = vsel %vm233_vm2, %v1246_v34, %v1249_v63  ;;  %v957_v39 = vsel %vm948_vm6, %v954_v59, %v956_v25  ;;  %v1398_v49 = vsel %vm471_vm3, %v1395_v41, %v1397_v26 }
  0xd1   : > { %v748_v56 = vadd.f32 %v712_v52, %v573_v37 }
  0xd3   : > { %v2230_v60 = vadd.f32 %v891_v43, %v748_v56 }
  0xd4   : > { %v893_v57 = vpop.f32.mrf.mxu0 }
  0xd5   : > { %v434_v0 = vpop.f32.mrf.mxu1 }
  0xd6   : > { %v539_v62 = vpop.f32.mrf.mxu2  ;;  %v435_v55 = vadd.f32 %v434_v0, %v2165_v31 }
  0xd7   : > { %v574_v20 = vadd.f32 %v539_v62, %v432_v54  ;;  %v714_v1 = vpop.f32.mrf.mxu3  ;;  %v1860_v54 = vld [vmem:[%s1950_s29 + $0x34] sm:$0xff]  ;;  %v958_v62 = vrot.slane %v2126_v44, 3 }
  0xd8   : > { %1761 = vmatmul.msk.bf16.gmra.mxu1 %vm306_vm1, %v955_v36 }
  0xd9   : > { %v749_v2 = vadd.f32 %v714_v1, %v574_v20  ;;  %v959_v1 = vsel %vm948_vm6, %v956_v25, %v958_v62  ;;  %v960_v25 = vrot.slane %v2141_v53, 3 }
  0xdb   : > { %1800 = vmatmul.msk.bf16.gmra.mxu2 %vm306_vm1, %v1857_v5  ;;  %v2238_v6 = vadd.f32 %v893_v57, %v749_v2  ;;  %v1251_v5 = vshrl.u32 %v1858_v51, 16  ;;  %v1261_v57 = vshll.u32 %v1860_v54, 16 }
  0xdc   : > { %v896_v4 = vpop.f32.mrf.mxu0  ;;  %1815 = vmatmul.msk.bf16.gmra.mxu3 %vm306_vm1, %v1250_v7 }
  0xdd   : > { %v436_v31 = vpop.f32.mrf.mxu1  ;;  %v1253_v30 = vor.u32 %v1251_v5, %v1249_v63  ;;  %v1263_v36 = vrot.slane %v1261_v57, 1  ;;  %v1265_v5 = vshrl.u32 %v1860_v54, 16 }
  0xde   : > { %v542_v21 = vpop.f32.mrf.mxu2  ;;  %v437_v11 = vadd.f32 %v436_v31, %v2177_v16 }
  0xdf   : > { %1830 = vmatmul.msk.bf16.gmra.mxu0 %vm306_vm1, %v1396_v23  ;;  %v575_v8 = vadd.f32 %v542_v21, %v435_v55  ;;  %v717_v10 = vpop.f32.mrf.mxu3  ;;  %v1257_v24 = vsel %vm233_vm2, %v1253_v30, %v1256_v32  ;;  %v1399_v55 = vrot.slane %v1860_v54, 1 }
  0xe1   : > { %v750_v12 = vadd.f32 %v717_v10, %v575_v8  ;;  %v1861_v10 = vld [vmem:[%s1950_s29 + $0x3c] sm:$0xff] }
  0xe2   : > { %v1268_v13 = vshll.u32 %v1861_v10, 16  ;;  %v1272_v57 = vshrl.u32 %v1861_v10, 16 }
  0xe3   : > { %v2245_v22 = vadd.f32 %v896_v4, %v750_v12  ;;  %v1400_v4 = vsel %vm471_vm3, %v1397_v26, %v1399_v55  ;;  %v961_v26 = vsel %vm948_vm6, %v958_v62, %v960_v25 }
  0xe4   : > { %v898_v42 = vpop.f32.mrf.mxu0 }
  0xe5   : > { %v439_v38 = vpop.f32.mrf.mxu1 }
  0xe6   : > { %v544_v27 = vpop.f32.mrf.mxu2  ;;  %v440_v16 = vadd.f32 %v439_v38, %v2186_v33  ;;  %v1270_v38 = vrot.slane %v1268_v13, 1 }
  0xe7   : > { %v576_v29 = vadd.f32 %v544_v27, %v437_v11  ;;  %v719_v61 = vpop.f32.mrf.mxu3 }
  0xe8   : > { %1762 = vmatmul.msk.bf16.gmra.mxu1 %vm306_vm1, %v957_v39 }
  0xe9   : > { %v751_v43 = vadd.f32 %v719_v61, %v576_v29  ;;  %v1401_v61 = vrot.slane %v1861_v10, 1 }
  0xeb   : > { %1801 = vmatmul.msk.bf16.gmra.mxu2 %vm306_vm1, %v1858_v51  ;;  %v2253_v37 = vadd.f32 %v898_v42, %v751_v43  ;;  %v1258_v51 = vshrl.u32 %v1859_v9, 16 }
  0xec   : > { %v901_v45 = vpop.f32.mrf.mxu0  ;;  %1816 = vmatmul.msk.bf16.gmra.mxu3 %vm306_vm1, %v1257_v24 }
  0xed   : > { %v441_v33 = vpop.f32.mrf.mxu1  ;;  %v1260_v0 = vor.u32 %v1258_v51, %v1256_v32  ;;  %v1267_v32 = vor.u32 %v1265_v5, %v1263_v36 }
  0xee   : > { %v547_v40 = vpop.f32.mrf.mxu2  ;;  %v442_v19 = vadd.f32 %v441_v33, %v2199_v48 }
  0xef   : > { %1831 = vmatmul.msk.bf16.gmra.mxu0 %vm306_vm1, %v1398_v49  ;;  %v577_v52 = vadd.f32 %v547_v40, %v440_v16  ;;  %v722_v56 = vpop.f32.mrf.mxu3  ;;  %v1264_v48 = vsel %vm233_vm2, %v1260_v0, %v1263_v36  ;;  %v1219_v16 = vld [vmem:[%s1950_s29 + $0x44] sm:$0xf]  ;;  %v1271_v53 = vsel %vm233_vm2, %v1267_v32, %v1270_v38 }
  0xf1   : > { %v752_v47 = vadd.f32 %v722_v56, %v577_v52 }
  0xf3   : > { %v2260_v20 = vadd.f32 %v901_v45, %v752_v47  ;;  %v1225_v45 = vunpack.c.l.b16 %v1219_v16 }
  0xf4   : > { %v903_v59 = vpop.f32.mrf.mxu0 }
  0xf5   : > { %v444_v41 = vpop.f32.mrf.mxu1 }
  0xf6   : > { %v549_v34 = vpop.f32.mrf.mxu2  ;;  %v445_v21 = vadd.f32 %v444_v41, %v2174_v15  ;;  %v1274_v41 = vor.u32 %v1272_v57, %v1270_v38 }
  0xf7   : > { %v578_v63 = vadd.f32 %v549_v34, %v442_v19  ;;  %v724_v2 = vpop.f32.mrf.mxu3  ;;  %v1226_v19 = vpack.c.b16 %v1225_v45, %v1225_v45  ;;  %v962_v34 = vrot.slane %v2158_v3, 3 }
  0xf8   : > { %1763 = vmatmul.msk.bf16.gmra.mxu1 %vm306_vm1, %v959_v1 }
  0xf9   : > { %v753_v7 = vadd.f32 %v724_v2, %v578_v63  ;;  %v963_v2 = vsel %vm948_vm6, %v960_v25, %v962_v34 }
  0xfb   : > { %1802 = vmatmul.msk.bf16.gmra.mxu2 %vm306_vm1, %v1859_v9  ;;  %v2267_v23 = vadd.f32 %v903_v59, %v753_v7  ;;  %v1276_v59 = vshll.u32 %v1226_v19, 16  ;;  %v1403_v7 = vrot.slane %v1226_v19, 1 }
  0xfc   : > { %v906_v44 = vpop.f32.mrf.mxu0  ;;  %1817 = vmatmul.msk.bf16.gmra.mxu3 %vm306_vm1, %v1264_v48 }
  0xfd   : > { %v446_v11 = vpop.f32.mrf.mxu1  ;;  %v1278_v1 = vrot.slane %v1276_v59, 1 }
  0xfe   : > { %v552_v8 = vpop.f32.mrf.mxu2  ;;  %v447_v15 = vadd.f32 %v446_v11, %v2183_v28  ;;  %v1402_v28 = vsel %vm471_vm3, %v1399_v55, %v1401_v61 }
  0xff   : > { %1832 = vmatmul.msk.bf16.gmra.mxu0 %vm306_vm1, %v1400_v4  ;;  %v579_v31 = vadd.f32 %v552_v8, %v445_v21  ;;  %v727_v12 = vpop.f32.mrf.mxu3  ;;  %v1279_v3 = vsel %vm233_vm2, %v1274_v41, %v1278_v1 }
 0x101   : > { %v754_v9 = vadd.f32 %v727_v12, %v579_v31 }
 0x103   : > { %v2274_v27 = vadd.f32 %v906_v44, %v754_v9  ;;  %v1077_v9 = vld [vmem:[%s1950_s29 + $0x44] sm:$0x7] }
 0x104   : > { %v908_v42 = vpop.f32.mrf.mxu0 }
 0x105   : > { %v449_v39 = vpop.f32.mrf.mxu1 }
 0x106   : > { %v554_v29 = vpop.f32.mrf.mxu2  ;;  %v450_v52 = vadd.f32 %v449_v39, %v2195_v46 }
 0x107   : > { %v580_v30 = vadd.f32 %v554_v29, %v447_v15  ;;  %v729_v43 = vpop.f32.mrf.mxu3 }
 0x108   : > { %1764 = vmatmul.msk.bf16.gmra.mxu1 %vm306_vm1, %v961_v26 }
 0x109   : > { %v755_v24 = vadd.f32 %v729_v43, %v580_v30  ;;  %v1280_v30 = vshrl.u32 %v1226_v19, 16 }
 0x10b   : > { %1803 = vmatmul.msk.bf16.gmra.mxu2 %vm306_vm1, %v1860_v54  ;;  %v2283_v40 = vadd.f32 %v908_v42, %v755_v24 }
 0x10c   : > { %v911_v49 = vpop.f32.mrf.mxu0  ;;  %1818 = vmatmul.msk.bf16.gmra.mxu3 %vm306_vm1, %v1271_v53 }
 0x10d   : > { %v451_v47 = vpop.f32.mrf.mxu1 }
 0x10e   : > { %v557_v33 = vpop.f32.mrf.mxu2  ;;  %v452_v0 = vadd.f32 %v451_v47, %v2206_v58  ;;  %v1404_v58 = vsel %vm471_vm3, %v1401_v61, %v1403_v7  ;;  %v1282_v61 = vor.u32 %v1280_v30, %v1278_v1 }
 0x10f   : > { %1833 = vmatmul.msk.bf16.gmra.mxu0 %vm306_vm1, %v1402_v28  ;;  %v581_v56 = vadd.f32 %v557_v33, %v450_v52  ;;  %v732_v51 = vpop.f32.mrf.mxu3 }
 0x111   : > { %v756_v54 = vadd.f32 %v732_v51, %v581_v56 }
 0x113   : > { %v2289_v63 = vadd.f32 %v911_v49, %v756_v54 }
 0x114   : > { %v913_v62 = vpop.f32.mrf.mxu0 }
 0x115   : > { %v454_v55 = vpop.f32.mrf.mxu1 }
 0x116   : > { %v559_v46 = vpop.f32.mrf.mxu2  ;;  %v455_v8 = vadd.f32 %v454_v55, %v2180_v17 }
 0x117   : > { %v582_v36 = vadd.f32 %v559_v46, %v452_v0  ;;  %v734_v48 = vpop.f32.mrf.mxu3  ;;  %v2319_v0 = vld [vmem:[%s2390_s2] ss:$0 sm:$0xff] }
 0x118   : > { %1765 = vmatmul.msk.bf16.gmra.mxu1 %vm306_vm1, %v963_v2 }
 0x119   : > { %v757_v44 = vadd.f32 %v734_v48, %v582_v36 }
 0x11b   : > { %1804 = vmatmul.msk.bf16.gmra.mxu2 %vm306_vm1, %v1861_v10  ;;  %v2297_v21 = vadd.f32 %v913_v62, %v757_v44  ;;  %v1111_v10 = vunpack.c.l.b16 %v1077_v9 }
 0x11c   : > { %v916_v4 = vpop.f32.mrf.mxu0  ;;  %1819 = vmatmul.msk.bf16.gmra.mxu3 %vm306_vm1, %v1279_v3 }
 0x11d   : > { %v456_v12 = vpop.f32.mrf.mxu1  ;;  %v1119_v17 = vpack.c.b16 %v1111_v10, %v1111_v10 }
 0x11e   : > { %v562_v31 = vpop.f32.mrf.mxu2  ;;  %v457_v15 = vadd.f32 %v456_v12, %v2188_v35 }
 0x11f   : > { %1834 = vmatmul.msk.bf16.gmra.mxu0 %vm306_vm1, %v1404_v58  ;;  %v583_v11 = vadd.f32 %v562_v31, %v455_v8  ;;  %v737_v5 = vpop.f32.mrf.mxu3 }
 0x121   : > { %v758_v13 = vadd.f32 %v737_v5, %v583_v11 }
 0x123   : > { %v2303_v25 = vadd.f32 %v916_v4, %v758_v13 }
 0x124   : > { %v918_v42 = vpop.f32.mrf.mxu0 }
 0x125   : > { %v459_v38 = vpop.f32.mrf.mxu1 }
 0x126   : > { %v564_v29 = vpop.f32.mrf.mxu2  ;;  %v460_v24 = vadd.f32 %v459_v38, %v2203_v50 }
 0x127   : > { %v584_v32 = vadd.f32 %v564_v29, %v457_v15  ;;  %v739_v39 = vpop.f32.mrf.mxu3 }
 0x128   : > { %1766 = vmatmul.msk.bf16.gmra.mxu1 %vm306_vm1, %v962_v34 }
 0x129   : > { %v759_v26 = vadd.f32 %v739_v39, %v584_v32 }
 0x12b   : > { %1805 = vmatmul.msk.bf16.gmra.mxu2 %vm306_vm1, %v1119_v17  ;;  %v2308_v43 = vadd.f32 %v918_v42, %v759_v26 }
 0x12c   : > { %v921_v16 = vpop.f32.mrf.mxu0  ;;  %1820 = vmatmul.msk.bf16.gmra.mxu3 %vm306_vm1, %v1282_v61 }
 0x12d   : > { %v461_v45 = vpop.f32.mrf.mxu1 }
 0x12e   : > { %v567_v35 = vpop.f32.mrf.mxu2 }
 0x12f   : > { %1835 = vmatmul.msk.bf16.gmra.mxu0 %vm306_vm1, %v1403_v7  ;;  %v585_v53 = vadd.f32 %v567_v35, %v460_v24  ;;  %v742_v49 = vpop.f32.mrf.mxu3 }
 0x131   : > { %v760_v28 = vadd.f32 %v742_v49, %v585_v53 }
 0x133   : > { %v2313_v33 = vadd.f32 %v921_v16, %v760_v28 }
 0x134   : > { %v923_v52 = vpop.f32.mrf.mxu0 }
 0x135   : > { %v1009_v19 = vpop.f32.mrf.mxu1 }
 0x136   : > { %v569_v56 = vpop.f32.mrf.mxu2  ;;  %v1048_v54 = vadd.f32 %v1009_v19, %v2217_v14 }
 0x137   : > { %v744_v47 = vpop.f32.mrf.mxu3 }
 0x13c   : > { %v1450_v51 = vpop.f32.mrf.mxu0 }
 0x13d   : > { %v1011_v59 = vpop.f32.mrf.mxu1 }
 0x13e   : > { %v1165_v50 = vpop.f32.mrf.mxu2  ;;  %v1049_v41 = vadd.f32 %v1011_v59, %v2224_v18 }
 0x13f   : > { %v1204_v57 = vadd.f32 %v1165_v50, %v1048_v54  ;;  %v1328_v62 = vpop.f32.mrf.mxu3 }
 0x141   : > { %v1367_v34 = vadd.f32 %v1328_v62, %v1204_v57 }
 0x143   : > { %v1489_v46 = vadd.f32 %v1450_v51, %v1367_v34 }
 0x144   : > { %v1452_v36 = vpop.f32.mrf.mxu0 }
 0x145   : > { %v1508_v1 = vadd.f32 %v2319_v0, %v1489_v46  ;;  %v1014_v7 = vpop.f32.mrf.mxu1 }
 0x146   : > { %v1167_v55 = vpop.f32.mrf.mxu2  ;;  %v1050_v58 = vadd.f32 %v1014_v7, %v2230_v60 }
 0x147   : > { %v1205_v2 = vadd.f32 %v1167_v55, %v1049_v41  ;;  %v1523_v14 = vmax.f32 %v1508_v1, 0.0  ;;  %v1330_v48 = vpop.f32.mrf.mxu3 }
 0x149   : > { %v1538_v44 = vpack.c.bf16 %v1523_v14, %v1523_v14  ;;  %v1368_v3 = vadd.f32 %v1330_v48, %v1205_v2 }
 0x14b   : > { %1554 = vst.msk [vmem:[%s2327_s7] sm:$0xf] %vm1553_vm7, %v1538_v44  ;;  %v1490_v18 = vadd.f32 %v1452_v36, %v1368_v3 }
 0x14c   : > { %v1455_v4 = vpop.f32.mrf.mxu0 }
 0x14d   : > { %v1509_v8 = vadd.f32 %v2319_v0, %v1490_v18  ;;  %v1016_v9 = vpop.f32.mrf.mxu1 }
 0x14e   : > { %v1170_v31 = vpop.f32.mrf.mxu2  ;;  %v1051_v29 = vadd.f32 %v1016_v9, %v2238_v6 }
 0x14f   : > { %v1206_v11 = vadd.f32 %v1170_v31, %v1050_v58  ;;  %v1524_v12 = vmax.f32 %v1509_v8, 0.0  ;;  %v1333_v5 = vpop.f32.mrf.mxu3 }
 0x151   : > { %v1539_v13 = vpack.c.bf16 %v1524_v12, %v1524_v12  ;;  %v1369_v10 = vadd.f32 %v1333_v5, %v1206_v11 }
 0x153   : > { %1555 = vst.msk [vmem:[%s2327_s7 + $0x4] sm:$0xf] %vm1553_vm7, %v1539_v13  ;;  %v1491_v42 = vadd.f32 %v1455_v4, %v1369_v10 }
 0x154   : > { %v1457_v15 = vpop.f32.mrf.mxu0 }
 0x155   : > { %v1510_v30 = vadd.f32 %v2319_v0, %v1491_v42  ;;  %v1019_v38 = vpop.f32.mrf.mxu1 }
 0x156   : > { %v1172_v32 = vpop.f32.mrf.mxu2  ;;  %v1052_v35 = vadd.f32 %v1019_v38, %v2245_v22 }
 0x157   : > { %v1207_v60 = vadd.f32 %v1172_v32, %v1051_v29  ;;  %v1525_v17 = vmax.f32 %v1510_v30, 0.0  ;;  %v1335_v39 = vpop.f32.mrf.mxu3 }
 0x159   : > { %v1540_v26 = vpack.c.bf16 %v1525_v17, %v1525_v17  ;;  %v1370_v61 = vadd.f32 %v1335_v39, %v1207_v60 }
 0x15b   : > { %1556 = vst.msk [vmem:[%s2327_s7 + $0x8] sm:$0xf] %vm1553_vm7, %v1540_v26  ;;  %v1492_v16 = vadd.f32 %v1457_v15, %v1370_v61 }
 0x15c   : > { %v1460_v24 = vpop.f32.mrf.mxu0 }
 0x15d   : > { %v1511_v53 = vadd.f32 %v2319_v0, %v1492_v16  ;;  %v1021_v28 = vpop.f32.mrf.mxu1 }
 0x15e   : > { %v1175_v45 = vpop.f32.mrf.mxu2  ;;  %v1053_v54 = vadd.f32 %v1021_v28, %v2253_v37 }
 0x15f   : > { %v1208_v6 = vadd.f32 %v1175_v45, %v1052_v35  ;;  %v1526_v49 = vmax.f32 %v1511_v53, 0.0  ;;  %v1338_v52 = vpop.f32.mrf.mxu3 }
 0x161   : > { %v1541_v56 = vpack.c.bf16 %v1526_v49, %v1526_v49  ;;  %v1371_v19 = vadd.f32 %v1338_v52, %v1208_v6 }
 0x163   : > { %1557 = vst.msk [vmem:[%s2327_s7 + $0xc] sm:$0xf] %vm1553_vm7, %v1541_v56  ;;  %v1493_v47 = vadd.f32 %v1460_v24, %v1371_v19 }
 0x164   : > { %v1462_v51 = vpop.f32.mrf.mxu0 }
 0x165   : > { %v1512_v50 = vadd.f32 %v2319_v0, %v1493_v47  ;;  %v1024_v62 = vpop.f32.mrf.mxu1 }
 0x166   : > { %v1177_v57 = vpop.f32.mrf.mxu2  ;;  %v1054_v55 = vadd.f32 %v1024_v62, %v2260_v20 }
 0x167   : > { %v1209_v22 = vadd.f32 %v1177_v57, %v1053_v54  ;;  %v1527_v59 = vmax.f32 %v1512_v50, 0.0  ;;  %v1340_v34 = vpop.f32.mrf.mxu3 }
 0x169   : > { %v1542_v46 = vpack.c.bf16 %v1527_v59, %v1527_v59  ;;  %v1372_v36 = vadd.f32 %v1340_v34, %v1209_v22 }
 0x16b   : > { %1558 = vst.msk [vmem:[%s2327_s7 + $0x10] sm:$0xf] %vm1553_vm7, %v1542_v46  ;;  %v1494_v41 = vadd.f32 %v1462_v51, %v1372_v36 }
 0x16c   : > { %v1465_v1 = vpop.f32.mrf.mxu0 }
 0x16d   : > { %v1513_v2 = vadd.f32 %v2319_v0, %v1494_v41  ;;  %v1026_v48 = vpop.f32.mrf.mxu1 }
 0x16e   : > { %v1180_v14 = vpop.f32.mrf.mxu2  ;;  %v1055_v8 = vadd.f32 %v1026_v48, %v2267_v23 }
 0x16f   : > { %v1210_v37 = vadd.f32 %v1180_v14, %v1054_v55  ;;  %v1528_v7 = vmax.f32 %v1513_v2, 0.0  ;;  %v1343_v44 = vpop.f32.mrf.mxu3 }
 0x171   : > { %v1543_v3 = vpack.c.bf16 %v1528_v7, %v1528_v7  ;;  %v1373_v18 = vadd.f32 %v1343_v44, %v1210_v37 }
 0x173   : > { %1559 = vst.msk [vmem:[%s2327_s7 + $0x14] sm:$0xf] %vm1553_vm7, %v1543_v3  ;;  %v1495_v4 = vadd.f32 %v1465_v1, %v1373_v18 }
 0x174   : > { %v1467_v58 = vpop.f32.mrf.mxu0 }
 0x175   : > { %v1514_v31 = vadd.f32 %v2319_v0, %v1495_v4  ;;  %v1029_v9 = vpop.f32.mrf.mxu1 }
 0x176   : > { %v1182_v11 = vpop.f32.mrf.mxu2  ;;  %v1056_v29 = vadd.f32 %v1029_v9, %v2274_v27 }
 0x177   : > { %v1211_v20 = vadd.f32 %v1182_v11, %v1055_v8  ;;  %v1529_v12 = vmax.f32 %v1514_v31, 0.0  ;;  %v1345_v5 = vpop.f32.mrf.mxu3 }
 0x179   : > { %v1544_v13 = vpack.c.bf16 %v1529_v12, %v1529_v12  ;;  %v1374_v10 = vadd.f32 %v1345_v5, %v1211_v20 }
 0x17b   : > { %1560 = vst.msk [vmem:[%s2327_s7 + $0x18] sm:$0xf] %vm1553_vm7, %v1544_v13  ;;  %v1496_v42 = vadd.f32 %v1467_v58, %v1374_v10 }
 0x17c   : > { %v1470_v15 = vpop.f32.mrf.mxu0 }
 0x17d   : > { %v1515_v30 = vadd.f32 %v2319_v0, %v1496_v42  ;;  %v1031_v17 = vpop.f32.mrf.mxu1 }
 0x17e   : > { %v1185_v32 = vpop.f32.mrf.mxu2  ;;  %v1057_v24 = vadd.f32 %v1031_v17, %v2283_v40 }
 0x17f   : > { %v1212_v23 = vadd.f32 %v1185_v32, %v1056_v29  ;;  %v1530_v60 = vmax.f32 %v1515_v30, 0.0  ;;  %v1348_v38 = vpop.f32.mrf.mxu3 }
 0x181   : > { %v1545_v39 = vpack.c.bf16 %v1530_v60, %v1530_v60  ;;  %v1375_v26 = vadd.f32 %v1348_v38, %v1212_v23 }
 0x183   : > { %1561 = vst.msk [vmem:[%s2327_s7 + $0x1c] sm:$0xf] %vm1553_vm7, %v1545_v39  ;;  %v1497_v61 = vadd.f32 %v1470_v15, %v1375_v26 }
 0x184   : > { %v1472_v16 = vpop.f32.mrf.mxu0 }
 0x185   : > { %v1516_v35 = vadd.f32 %v2319_v0, %v1497_v61  ;;  %v1034_v6 = vpop.f32.mrf.mxu1 }
 0x186   : > { %v1187_v53 = vpop.f32.mrf.mxu2  ;;  %v1058_v47 = vadd.f32 %v1034_v6, %v2289_v63 }
 0x187   : > { %v1213_v27 = vadd.f32 %v1187_v53, %v1057_v24  ;;  %v1531_v45 = vmax.f32 %v1516_v35, 0.0  ;;  %v1350_v49 = vpop.f32.mrf.mxu3 }
 0x189   : > { %v1546_v28 = vpack.c.bf16 %v1531_v45, %v1531_v45  ;;  %v1376_v52 = vadd.f32 %v1350_v49, %v1213_v27 }
 0x18b   : > { %1562 = vst.msk [vmem:[%s2327_s7 + $0x20] sm:$0xf] %vm1553_vm7, %v1546_v28  ;;  %v1498_v56 = vadd.f32 %v1472_v16, %v1376_v52 }
 0x18c   : > { %v1475_v19 = vpop.f32.mrf.mxu0 }
 0x18d   : > { %v1517_v51 = vadd.f32 %v2319_v0, %v1498_v56  ;;  %v1036_v57 = vpop.f32.mrf.mxu1 }
 0x18e   : > { %v1190_v54 = vpop.f32.mrf.mxu2  ;;  %v1059_v36 = vadd.f32 %v1036_v57, %v2297_v21 }
 0x18f   : > { %v1214_v40 = vadd.f32 %v1190_v54, %v1058_v47  ;;  %v1532_v50 = vmax.f32 %v1517_v51, 0.0  ;;  %v1353_v22 = vpop.f32.mrf.mxu3 }
 0x191   : > { %v1547_v59 = vpack.c.bf16 %v1532_v50, %v1532_v50  ;;  %v1377_v62 = vadd.f32 %v1353_v22, %v1214_v40 }
 0x193   : > { %1563 = vst.msk [vmem:[%s2327_s7 + $0x24] sm:$0xf] %vm1553_vm7, %v1547_v59  ;;  %v1499_v34 = vadd.f32 %v1475_v19, %v1377_v62 }
 0x194   : > { %v1477_v46 = vpop.f32.mrf.mxu0 }
 0x195   : > { %v1518_v41 = vadd.f32 %v2319_v0, %v1499_v34  ;;  %v1039_v2 = vpop.f32.mrf.mxu1 }
 0x196   : > { %v1192_v1 = vpop.f32.mrf.mxu2  ;;  %v1060_v3 = vadd.f32 %v1039_v2, %v2303_v25 }
 0x197   : > { %v1215_v63 = vadd.f32 %v1192_v1, %v1059_v36  ;;  %v1533_v55 = vmax.f32 %v1518_v41, 0.0  ;;  %v1355_v14 = vpop.f32.mrf.mxu3 }
 0x199   : > { %v1548_v37 = vpack.c.bf16 %v1533_v55, %v1533_v55  ;;  %v1378_v7 = vadd.f32 %v1355_v14, %v1215_v63 }
 0x19b   : > { %1564 = vst.msk [vmem:[%s2327_s7 + $0x28] sm:$0xf] %vm1553_vm7, %v1548_v37  ;;  %v1500_v48 = vadd.f32 %v1477_v46, %v1378_v7 }
 0x19c   : > { %v1480_v44 = vpop.f32.mrf.mxu0 }
 0x19d   : > { %v1519_v18 = vadd.f32 %v2319_v0, %v1500_v48  ;;  %v1041_v8 = vpop.f32.mrf.mxu1 }
 0x19e   : > { %v1195_v4 = vpop.f32.mrf.mxu2  ;;  %v1061_v5 = vadd.f32 %v1041_v8, %v2308_v43 }
 0x19f   : > { %v1216_v21 = vadd.f32 %v1195_v4, %v1060_v3  ;;  %v1534_v58 = vmax.f32 %v1519_v18, 0.0  ;;  %v1358_v31 = vpop.f32.mrf.mxu3 }
 0x1a1   : > { %v1549_v11 = vpack.c.bf16 %v1534_v58, %v1534_v58  ;;  %v1379_v20 = vadd.f32 %v1358_v31, %v1216_v21 }
 0x1a3   : > { %1565 = vst.msk [vmem:[%s2327_s7 + $0x2c] sm:$0xf] %vm1553_vm7, %v1549_v11  ;;  %v1501_v12 = vadd.f32 %v1480_v44, %v1379_v20 }
 0x1a4   : > { %v1482_v9 = vpop.f32.mrf.mxu0 }
 0x1a5   : > { %v1520_v13 = vadd.f32 %v2319_v0, %v1501_v12  ;;  %v1044_v15 = vpop.f32.mrf.mxu1 }
 0x1a6   : > { %v1197_v10 = vpop.f32.mrf.mxu2  ;;  %v1062_v17 = vadd.f32 %v1044_v15, %v2313_v33 }
 0x1a7   : > { %v1217_v25 = vadd.f32 %v1197_v10, %v1061_v5  ;;  %v1535_v42 = vmax.f32 %v1520_v13, 0.0  ;;  %v1360_v29 = vpop.f32.mrf.mxu3 }
 0x1a9   : > { %v1550_v30 = vpack.c.bf16 %v1535_v42, %v1535_v42  ;;  %v1380_v32 = vadd.f32 %v1360_v29, %v1217_v25 }
 0x1ab   : > { %1566 = vst.msk [vmem:[%s2327_s7 + $0x30] sm:$0xf] %vm1553_vm7, %v1550_v30  ;;  %v1502_v23 = vadd.f32 %v1482_v9, %v1380_v32 }
 0x1ac   : > { %v1485_v60 = vpop.f32.mrf.mxu0 }
 0x1ad   : > { %v1521_v38 = vadd.f32 %v2319_v0, %v1502_v23  ;;  %v1046_v61 = vpop.f32.mrf.mxu1 }
 0x1ae   : > { %v1200_v39 = vpop.f32.mrf.mxu2 }
 0x1af   : > { %v1218_v43 = vadd.f32 %v1200_v39, %v1062_v17  ;;  %v1536_v26 = vmax.f32 %v1521_v38, 0.0  ;;  %v1363_v16 = vpop.f32.mrf.mxu3 }
 0x1b1   : > { %v1551_v24 = vpack.c.bf16 %v1536_v26, %v1536_v26  ;;  %v1381_v35 = vadd.f32 %v1363_v16, %v1218_v43 }
 0x1b3   : > { %1567 = vst.msk [vmem:[%s2327_s7 + $0x34] sm:$0xf] %vm1553_vm7, %v1551_v24  ;;  %v1503_v53 = vadd.f32 %v1485_v60, %v1381_v35 }
 0x1b4   : > { %v1487_v27 = vpop.f32.mrf.mxu0 }
 0x1b5   : > { %v1522_v45 = vadd.f32 %v2319_v0, %v1503_v53 }
 0x1b6   : > { %v1202_v6 = vpop.f32.mrf.mxu2 }
 0x1b7   : > { %v1537_v49 = vmax.f32 %v1522_v45, 0.0  ;;  %v1365_v33 = vpop.f32.mrf.mxu3 }
 0x1b9   : > { %v1552_v28 = vpack.c.bf16 %v1537_v49, %v1537_v49 }
 0x1bb   : > { %1569 = vst.msk [vmem:[%s2327_s7 + $0x38] sm:$0x7] %vm1568_vm8, %v1552_v28 }
 0x1bc PF: > { %s13_s12 = sadd.s32 1, %s1895_s12  }
 0x1bd   : > { %p10_p4 = scmp.ge.s32.totalorder %s13_s12, 4  }
 0x1bf   :  { %12 = sbr.rel (!%p10_p4) target bundleno = 1 (0x1), region = 70 }

// kernel: sunet3d2d_forward.7
= control target key start
LH: loop header
LB: loop body
LE: loop exit
PB: predicated region body
PF: predicated region fallthrough
CT: control target
= control target key end

     0   :  { %s533_s18 = smov 0   ;;  %s578_s0 = inlined_call_operand.vmem [shape: bf16[128,16], index: 0, kind: input, shape index: {}]   ;;  %s579_s1 = inlined_call_operand.vmem [shape: bf16[16,8], index: 1, kind: input, shape index: {}]   ;;  %s580_s2 = inlined_call_operand.vmem [shape: f32[1,8], index: 2, kind: input, shape index: {}]   ;;  %s581_s3 = inlined_call_operand.vmem [shape: bf16[8,3], index: 3, kind: input, shape index: {}]   ;;  %s582_s4 = inlined_call_operand.vmem [shape: f32[1,3], index: 4, kind: input, shape index: {}]   ;;  %s583_s5 = inlined_call_operand.vmem [shape: f32[128,3], index: 5, kind: output, shape index: {}]  }
   0x1 LB: > { %s439_s19 = sadd.s32 4294967295, %s501_s18   ;;  %p443_p0 = scmp.ge.s32.totalorder %s501_s18, 1  ;;  %s501_s18 = sphi %s533_s18, %s15_s18  }
   0x2   : > { %p188_p1 = scmp.lt.s32.totalorder %s501_s18, 3 }
   0x4   : > { %p189_p2 = pnand %p443_p0, %p188_p1 }
   0x5   : > { %s444_s22 = sshll.u32 (!%p189_p2), %s439_s19, 3 }
   0x6   : > { %192 = sbr.rel (%p189_p2) target bundleno = 320 (0x140), region = 40  ;;  %p217_p3 = scmp.lt.s32.totalorder (!%p189_p2), %s444_s22, 15 }
   0xb   : > { %v482_v0 = vld [vmem:[%s579_s1] sm:$0xff]  ;;  %s585_s22 = smov (!%p217_p3, %s444_s22), 15  ;;  %vm269_vm0 = vcmask 130048   ;;  %vm341_vm1 = vcmask 1043456   ;;  %vm328_vm2 = vcmask 64512   ;;  %vm374_vm3 = vcmask 23552  }
   0xc   : > { %289 = vmatpush.bf16.msra.mxu0 %v482_v0  ;;  %483 = vmatpush.bf16.msra.mxu2 %v482_v0  ;;  %s445_s23 = sshll.u32 %s585_s22, 2  ;;  %v323_v5 = vld [vmem:[%s581_s3] sm:$0xf]  ;;  %s447_s6 = sshll.u32 %s585_s22, 3 }
   0xd   : > { %s220_s26 = scalar_lea.vmem %s578_s0, %s445_s23  ;;  %v343_v6 = vsel %vm341_vm1, %v323_v5, 0  ;;  %v493_v8 = vld [vmem:[%s580_s2] ss:$0 sm:$0xff]  ;;  %s226_s11 = scalar_lea.vmem %s583_s5, %s447_s6 }
   0xe   : > { %v478_v1 = vld [vmem:[%s220_s26] sm:$0xff]  ;;  %v480_v2 = vld [vmem:[%s220_s26 + $0x10] sm:$0xff]  ;;  %v479_v3 = vld [vmem:[%s220_s26 + $0x8] sm:$0xff]  ;;  %352 = vmatpush.bf16.msra.mxu1 %v343_v6  ;;  %484 = vmatpush.bf16.msra.mxu3 %v343_v6 }
   0xf   : > { %468 = vmatmul.msk.bf16.vlgmr.msra.gmra.mxu0 %vm269_vm0, %v478_v1  ;;  %470 = vmatmul.msk.bf16.vlgmr.msra.gmra.mxu2 %vm269_vm0, %v480_v2  ;;  %v481_v4 = vld [vmem:[%s220_s26 + $0x18] sm:$0xff]  ;;  %v494_v36 = vld [vmem:[%s582_s4] ss:$0 sm:$0xff] }
  0x1f   : > { %469 = vmatmul.msk.bf16.gmra.mxu0 %vm269_vm0, %v479_v3  ;;  %471 = vmatmul.msk.bf16.gmra.mxu2 %vm269_vm0, %v481_v4 }
  0x8c   : > { %v291_v7 = vpop.f32.mrf.mxu0 }
  0x8d   : > { %v292_v9 = vadd.f32 %v493_v8, %v291_v7 }
  0x8f   : > { %v311_v12 = vmax.f32 %v292_v9, 0.0 }
  0x92   : > { %v301_v10 = vpop.f32.mrf.mxu2 }
  0x93   : > { %v302_v15 = vadd.f32 %v493_v8, %v301_v10 }
  0x94   : > { %v293_v11 = vpop.f32.mrf.mxu0 }
  0x95   : > { %v294_v13 = vadd.f32 %v493_v8, %v293_v11  ;;  %v315_v20 = vmax.f32 %v302_v15, 0.0 }
  0x97   : > { %v312_v14 = vmax.f32 %v294_v13, 0.0 }
  0x99   : > { %v319_v16 = vpack.c.bf16 %v312_v14, %v311_v12 }
  0x9a   : > { %v303_v17 = vpop.f32.mrf.mxu2 }
  0x9b   : > { %v304_v18 = vadd.f32 %v493_v8, %v303_v17  ;;  %472 = vmatmul.msk.bf16.vlgmr.msra.gmra.mxu1 %vm328_vm2, %v319_v16 }
  0x9c   : > { %v296_v19 = vpop.f32.mrf.mxu0 }
  0x9d   : > { %v316_v21 = vmax.f32 %v304_v18, 0.0  ;;  %v297_v23 = vadd.f32 %v493_v8, %v296_v19 }
  0x9f   : > { %v321_v22 = vpack.c.bf16 %v316_v21, %v315_v20  ;;  %v313_v26 = vmax.f32 %v297_v23, 0.0 }
  0xa1   : > { %474 = vmatmul.msk.bf16.vlgmr.msra.gmra.mxu3 %vm328_vm2, %v321_v22 }
  0xa2   : > { %v306_v24 = vpop.f32.mrf.mxu2 }
  0xa3   : > { %v307_v29 = vadd.f32 %v493_v8, %v306_v24 }
  0xa4   : > { %v298_v25 = vpop.f32.mrf.mxu0 }
  0xa5   : > { %v299_v27 = vadd.f32 %v493_v8, %v298_v25  ;;  %v317_v33 = vmax.f32 %v307_v29, 0.0 }
  0xa7   : > { %v314_v28 = vmax.f32 %v299_v27, 0.0 }
  0xa9   : > { %v320_v30 = vpack.c.bf16 %v314_v28, %v313_v26 }
  0xaa   : > { %v308_v31 = vpop.f32.mrf.mxu2 }
  0xab   : > { %v309_v32 = vadd.f32 %v493_v8, %v308_v31  ;;  %473 = vmatmul.msk.bf16.gmra.mxu1 %vm328_vm2, %v320_v30 }
  0xad   : > { %v318_v34 = vmax.f32 %v309_v32, 0.0 }
  0xaf   : > { %v322_v35 = vpack.c.bf16 %v318_v34, %v317_v33 }
  0xb1   : > { %475 = vmatmul.msk.bf16.gmra.mxu3 %vm328_vm2, %v322_v35 }
 0x118   : > { %v354_v37 = vpop.f32.mrf.mxu1 }
 0x119   : > { %v355_v38 = vadd.f32 %v494_v36, %v354_v37 }
 0x11b   : > { %375 = vst.msk [vmem:[%s226_s11] sm:$0xff] %vm374_vm3, %v355_v38 }
 0x120   : > { %v356_v39 = vpop.f32.mrf.mxu1 }
 0x121   : > { %v357_v40 = vadd.f32 %v494_v36, %v356_v39 }
 0x123   : > { %376 = vst.msk [vmem:[%s226_s11 + $0x8] sm:$0xff] %vm374_vm3, %v357_v40 }
 0x124   : > { %v364_v41 = vpop.f32.mrf.mxu3 }
 0x125   : > { %v365_v42 = vadd.f32 %v494_v36, %v364_v41 }
 0x127   : > { %379 = vst.msk [vmem:[%s226_s11 + $0x20] sm:$0xff] %vm374_vm3, %v365_v42 }
 0x128   : > { %v359_v43 = vpop.f32.mrf.mxu1 }
 0x129   : > { %v360_v44 = vadd.f32 %v494_v36, %v359_v43 }
 0x12b   : > { %377 = vst.msk [vmem:[%s226_s11 + $0x10] sm:$0xff] %vm374_vm3, %v360_v44 }
 0x12c   : > { %v366_v45 = vpop.f32.mrf.mxu3 }
 0x12d   : > { %v367_v46 = vadd.f32 %v494_v36, %v366_v45 }
 0x12f   : > { %380 = vst.msk [vmem:[%s226_s11 + $0x28] sm:$0xff] %vm374_vm3, %v367_v46 }
 0x130   : > { %v361_v47 = vpop.f32.mrf.mxu1 }
 0x131   : > { %v362_v48 = vadd.f32 %v494_v36, %v361_v47 }
 0x133   : > { %378 = vst.msk [vmem:[%s226_s11 + $0x18] sm:$0xff] %vm374_vm3, %v362_v48 }
 0x134   : > { %v369_v49 = vpop.f32.mrf.mxu3 }
 0x135   : > { %v370_v50 = vadd.f32 %v494_v36, %v369_v49 }
 0x137   : > { %381 = vst.msk [vmem:[%s226_s11 + $0x30] sm:$0xff] %vm374_vm3, %v370_v50 }
 0x13c   : > { %v371_v51 = vpop.f32.mrf.mxu3 }
 0x13d   : > { %v372_v52 = vadd.f32 %v494_v36, %v371_v51 }
 0x13f   : > { %382 = vst.msk [vmem:[%s226_s11 + $0x38] sm:$0xff] %vm374_vm3, %v372_v52 }
 0x140 PF: > { %s15_s18 = sadd.s32 1, %s501_s18  }
 0x141   : > { %p12_p4 = scmp.ge.s32.totalorder %s15_s18, 4  }
 0x143   :  { %14 = sbr.rel (!%p12_p4) target bundleno = 1 (0x1), region = 70 }

</bundles_post_ra>
